<compile_context>
chip_gen: v6e
topology: v6e:2x2x1
jax: 0.10.0
libtpu: 0.0.40
codegen_flags: <defaults>
</compile_context>

<pallas_src>
import jax
import jax.numpy as jnp
from jax.experimental import pallas as pl
from jax.experimental.pallas import tpu as pltpu

BN_EPS = 1e-5


# ---------------------------------------------------------------------------
# Kernels
# ---------------------------------------------------------------------------
def _conv3x3_tile(xm_ref, xh_ref, w_ref):
    """3x3 conv on one row tile as 9 accumulated MXU matmuls.

    xm_ref: (1, TH, W+2, Cin)  bf16   padded rows [t*TH, t*TH+TH)
    xh_ref: (1, 2,  W+2, Cin)  bf16   halo rows   [t*TH+TH, t*TH+TH+2)
    w_ref : (9, Cin, Cpad)     bf16   per-tap weights, tap index = dy*3 + dx
    returns (TH*W, Cpad) float32
    """
    th = xm_ref.shape[1]
    wp2 = xm_ref.shape[2]
    cin = xm_ref.shape[3]
    w_out = wp2 - 2

    # Full halo'd window for this tile, assembled in VMEM (no HBM im2col).
    xw = jnp.concatenate([xm_ref[0], xh_ref[0]], axis=0)   # (TH+2, W+2, Cin)

    acc = None
    for dy in range(3):
        for dx in range(3):
            patch = xw[dy:dy + th, dx:dx + w_out, :]        # (TH, W, Cin)
            a = patch.reshape(th * w_out, cin)              # clean sublane merge (W % 8 == 0)
            y = jnp.dot(a, w_ref[dy * 3 + dx],
                        preferred_element_type=jnp.float32)
            acc = y if acc is None else acc + y
    return acc                                              # (TH*W, Cpad) f32


def _conv_stats_kernel(xm_ref, xh_ref, w_ref, stats_ref):
    """Pass 1: per-tile per-channel [sum, sum-of-squares] of the conv output."""
    y = _conv3x3_tile(xm_ref, xh_ref, w_ref)                # (TH*W, Cpad) f32
    s = jnp.sum(y, axis=0, keepdims=True)                   # (1, Cpad)
    sq = jnp.sum(y * y, axis=0, keepdims=True)              # (1, Cpad)
    stats_ref[...] = jnp.concatenate([s, sq], axis=0).reshape(stats_ref.shape)


def _conv_apply_kernel(xm_ref, xh_ref, w_ref, scale_ref, shift_ref, o_ref):
    """Pass 2: conv, then fused (folded) BatchNorm affine + ReLU."""
    y = _conv3x3_tile(xm_ref, xh_ref, w_ref)                # (TH*W, Cpad) f32
    out = jnp.maximum(y * scale_ref[...] + shift_ref[...], 0.0)
    o_ref[...] = out.astype(o_ref.dtype)


# ---------------------------------------------------------------------------
# Wrapper
# ---------------------------------------------------------------------------
def _round_up(x, m):
    return (x + m - 1) // m * m


def _pick_tile_h(h, w_out):
    """Largest TILE_H (multiple of 8, dividing H) with <= 2048 output rows/tile."""
    assert h % 8 == 0, "H must be a multiple of 8"
    best = 8
    t = 8
    while t <= h:
        if h % t == 0 and t * w_out <= 2048:
            best = t
        t += 8
    return best


def _conv_bn_relu_block(x_nhwc, w_oihw, gamma, beta, out_dtype):
    """One Conv3x3(bias=False) + BatchNorm2d(batch stats) + ReLU block (NHWC)."""
    n, h, w, cin = x_nhwc.shape
    cout, cin_w, kh, kw = w_oihw.shape
    assert (cin_w, kh, kw) == (cin, 3, 3)
    # Note: W should be a multiple of 8 for the cheap in-kernel sublane merge.
    cpad = _round_up(cout, 128)          # lane-dense channel axis (stripped below)
    th = _pick_tile_h(h, w)
    nt = h // th

    # Spatially padded bf16 input.  Halo rows come from the same array via a
    # second BlockSpec, so nothing extra is materialized in HBM.
    xp = jnp.pad(x_nhwc, ((0, 0), (1, 1), (1, 1), (0, 0))).astype(jnp.bfloat16)

    # (Cout, Cin, 3, 3) -> (9, Cin, Cpad); tap index = dy*3 + dx.
    wt = jnp.transpose(w_oihw, (2, 3, 1, 0)).reshape(9, cin, cout)
    wt = jnp.pad(wt, ((0, 0), (0, 0), (0, cpad - cout))).astype(jnp.bfloat16)

    x_main_spec = pl.BlockSpec((1, th, w + 2, cin),
                               lambda ni, ti: (ni, ti, 0, 0))
    x_halo_spec = pl.BlockSpec((1, 2, w + 2, cin),
                               lambda ni, ti: (ni, (ti + 1) * (th // 2), 0, 0))
    w_spec = pl.BlockSpec((9, cin, cpad), lambda ni, ti: (0, 0, 0))
    vec_spec = pl.BlockSpec((1, cpad), lambda ni, ti: (0, 0))

    # ---- Pass 1: per-(image, tile) partial stats; all grid points independent.
    partial = pl.pallas_call(
        _conv_stats_kernel,
        out_shape=jax.ShapeDtypeStruct((n * nt, 2, cpad), jnp.float32),
        grid=(n, nt),
        in_specs=[x_main_spec, x_halo_spec, w_spec],
        out_specs=pl.BlockSpec((1, 2, cpad), lambda ni, ti: (ni * nt + ti, 0, 0)),
        compiler_params=pltpu.CompilerParams(
            dimension_semantics=("parallel", "parallel")),
    )(xp, xp, wt)
    stats = jnp.sum(partial, axis=0)                         # (2, cpad), tiny

    # Fold train-mode batch stats and gamma/beta into one scale & shift (tiny).
    m_total = float(n * h * w)
    mean = stats[0] / m_total
    var = jnp.maximum(stats[1] / m_total - mean * mean, 0.0)
    inv = jax.lax.rsqrt(var + BN_EPS)
    gamma_p = jnp.pad(gamma.astype(jnp.float32), (0, cpad - cout))
    beta_p = jnp.pad(beta.astype(jnp.float32), (0, cpad - cout))
    scale = (gamma_p * inv).reshape(1, cpad)
    shift = (beta_p - mean * gamma_p * inv).reshape(1, cpad)

    # ---- Pass 2: conv + folded BN + ReLU; all grid points independent.
    out = pl.pallas_call(
        _conv_apply_kernel,
        out_shape=jax.ShapeDtypeStruct((n * h * w, cpad), out_dtype),
        grid=(n, nt),
        in_specs=[x_main_spec, x_halo_spec, w_spec, vec_spec, vec_spec],
        out_specs=pl.BlockSpec((th * w, cpad),
                               lambda ni, ti: (ni * nt + ti, 0)),
        compiler_params=pltpu.CompilerParams(
            dimension_semantics=("parallel", "parallel")),
    )(xp, xp, wt, scale, shift)

    return out.reshape(n, h, w, cpad)[..., :cout]


@jax.jit
def double_conv2d(x_nchw, params):
    """Forward pass of DoubleConv2d.  Input/output in NCHW (PyTorch layout)."""
    x = jnp.transpose(x_nchw, (0, 2, 3, 1))       # NCHW -> NHWC
    # Block-1 output is only consumed as the bf16 input of conv-2: store bf16.
    x = _conv_bn_relu_block(x, params["w1"], params["g1"], params["b1"],
                            out_dtype=jnp.bfloat16)
    x = _conv_bn_relu_block(x, params["w2"], params["g2"], params["b2"],
                            out_dtype=jnp.float32)
    return jnp.transpose(x, (0, 3, 1, 2))         # NHWC -> NCHW


def init_params(key, in_channels, out_channels, kernel_size=3):
    # TODO(synk): only kernel_size=3 / stride=1 / padding=1 (the module
    # defaults) are implemented by the Pallas kernels.
    assert kernel_size == 3
    k1, k2 = jax.random.split(key)
    fan1 = in_channels * 9
    fan2 = out_channels * 9
    w1 = jax.random.normal(k1, (out_channels, in_channels, 3, 3),
                           jnp.float32) * (2.0 / fan1) ** 0.5
    w2 = jax.random.normal(k2, (out_channels, out_channels, 3, 3),
                           jnp.float32) * (2.0 / fan2) ** 0.5
    return {
        "w1": w1, "g1": jnp.ones((out_channels,), jnp.float32),
        "b1": jnp.zeros((out_channels,), jnp.float32),
        "w2": w2, "g2": jnp.ones((out_channels,), jnp.float32),
        "b2": jnp.zeros((out_channels,), jnp.float32),
    }


# ---------------------------------------------------------------------------
# Pure-JAX reference (conv + train-mode BN + ReLU, twice) for self-checking.
# ---------------------------------------------------------------------------
def _reference(x_nchw, params, cast_bf16):
    """cast_bf16=True mirrors the kernel's bf16 MXU inputs (f32 accumulate)."""
    def prep(a):
        return a.astype(jnp.bfloat16).astype(jnp.float32) if cast_bf16 else a

    def block(x, w, g, b):
        y = jax.lax.conv_general_dilated(
            prep(x), prep(w), window_strides=(1, 1), padding=((1, 1), (1, 1)),
            dimension_numbers=("NCHW", "OIHW", "NCHW"),
            precision=jax.lax.Precision.HIGHEST)
        mean = jnp.mean(y, axis=(0, 2, 3), keepdims=True)
        var = jnp.mean((y - mean) ** 2, axis=(0, 2, 3), keepdims=True)
        yh = (y - mean) * jax.lax.rsqrt(var + BN_EPS)
        yh = yh * g.reshape(1, -1, 1, 1) + b.reshape(1, -1, 1, 1)
        return jnp.maximum(yh, 0.0)

    x = block(x_nchw, params["w1"], params["g1"], params["b1"])
    x = block(x, params["w2"], params["g2"], params["b2"])
    return x


if __name__ == "__main__":
    key = jax.random.PRNGKey(0)
    k_x, k_p, k_g1, k_b1, k_g2, k_b2 = jax.random.split(key, 6)

    N, C_IN, C_OUT, H, W = 2, 4, 8, 16, 16
    x = jax.random.normal(k_x, (N, C_IN, H, W), jnp.float32)
    params = init_params(k_p, C_IN, C_OUT)
    # Non-trivial gamma/beta so the folded BN-affine path is actually exercised.
    params["g1"] = 1.0 + 0.2 * jax.random.normal(k_g1, (C_OUT,), jnp.float32)
    params["b1"] = 0.1 * jax.random.normal(k_b1, (C_OUT,), jnp.float32)
    params["g2"] = 1.0 + 0.2 * jax.random.normal(k_g2, (C_OUT,), jnp.float32)
    params["b2"] = 0.1 * jax.random.normal(k_b2, (C_OUT,), jnp.float32)

    out = jax.block_until_ready(double_conv2d(x, params))
    assert out.shape == (N, C_OUT, H, W)

    # Primary check: reference using the same bf16 conv inputs as the kernel.
    ref_bf16 = jax.block_until_ready(_reference(x, params, cast_bf16=True))
    err_bf16 = float(jnp.max(jnp.abs(out - ref_bf16)))
    assert err_bf16 < 2e-2, f"bf16-input reference mismatch: {err_bf16}"

    # Sanity check against exact float32 semantics (kernel uses bf16 MXU inputs).
    ref_f32 = jax.block_until_ready(_reference(x, params, cast_bf16=False))
    err_f32 = float(jnp.max(jnp.abs(out - ref_f32)))
    assert err_f32 < 2e-1, f"f32 reference mismatch: {err_f32}"

    print("KERNEL_OK")
</pallas_src>

<mosaic_0001>
module attributes {stable_mosaic.version = 11 : i64} {
  func.func @_conv_stats_kernel(%arg0: i32, %arg1: i32, %arg2: memref<1x16x18x4xbf16, #tpu.memory_space<vmem>>, %arg3: memref<1x2x18x4xbf16, #tpu.memory_space<vmem>>, %arg4: memref<9x4x128xbf16, #tpu.memory_space<vmem>>, %arg5: memref<1x2x128xf32, #tpu.memory_space<vmem>>) attributes {dimension_semantics = [#tpu.dimension_semantics<parallel>, #tpu.dimension_semantics<parallel>], iteration_bounds = array<i64: 2, 1>, scalar_prefetch = 0 : i64, scratch_operands = 0 : i64, tpu.core_type = #tpu.core_type<tc>, window_params = [{transform_indices = @transform_0, window_bounds = array<i64: 1, 16, 18, 4>}, {transform_indices = @transform_1, window_bounds = array<i64: 1, 2, 18, 4>}, {pipeline_mode = #tpu.pipeline_mode<synchronous>, transform_indices = @transform_2, window_bounds = array<i64: 9, 4, 128>}, {transform_indices = @transform_3, window_bounds = array<i64: 1, 2, 128>}]} {
    %c0 = arith.constant 0 : index
    %c0_0 = arith.constant 0 : index
    %c0_1 = arith.constant 0 : index
    %c0_2 = arith.constant 0 : index
    %0 = vector.load %arg2[%c0, %c0_0, %c0_1, %c0_2] : memref<1x16x18x4xbf16, #tpu.memory_space<vmem>>, vector<1x16x18x4xbf16>
    %1 = vector.shape_cast %0 : vector<1x16x18x4xbf16> to vector<16x18x4xbf16>
    %c0_3 = arith.constant 0 : index
    %c0_4 = arith.constant 0 : index
    %c0_5 = arith.constant 0 : index
    %c0_6 = arith.constant 0 : index
    %2 = vector.load %arg3[%c0_3, %c0_4, %c0_5, %c0_6] : memref<1x2x18x4xbf16, #tpu.memory_space<vmem>>, vector<1x2x18x4xbf16>
    %3 = vector.shape_cast %2 : vector<1x2x18x4xbf16> to vector<2x18x4xbf16>
    %4 = tpu.concatenate %1, %3 in 0 : vector<16x18x4xbf16>, vector<2x18x4xbf16> -> vector<18x18x4xbf16>
    %5 = vector.extract_strided_slice %4 {offsets = [0, 0, 0], sizes = [16, 16, 4], strides = [1, 1, 1]} : vector<18x18x4xbf16> to vector<16x16x4xbf16>
    %6 = vector.shape_cast %5 : vector<16x16x4xbf16> to vector<256x4xbf16>
    %c0_7 = arith.constant 0 : index
    %c0_8 = arith.constant 0 : index
    %c0_9 = arith.constant 0 : index
    %7 = vector.load %arg4[%c0_7, %c0_8, %c0_9] : memref<9x4x128xbf16, #tpu.memory_space<vmem>>, vector<1x4x128xbf16>
    %8 = vector.shape_cast %7 : vector<1x4x128xbf16> to vector<4x128xbf16>
    %cst = arith.constant dense<0.000000e+00> : vector<256x128xf32>
    %9 = tpu.matmul %6, %8, %cst {dimension_numbers = #tpu.dot_dimension_numbers<[1], [0], [0], [1], [0, 0, 1, 1], [], []>} : vector<256x4xbf16>, vector<4x128xbf16>, vector<256x128xf32> -> vector<256x128xf32>
    %10 = vector.extract_strided_slice %4 {offsets = [0, 1, 0], sizes = [16, 16, 4], strides = [1, 1, 1]} : vector<18x18x4xbf16> to vector<16x16x4xbf16>
    %11 = vector.shape_cast %10 : vector<16x16x4xbf16> to vector<256x4xbf16>
    %c1 = arith.constant 1 : index
    %c0_10 = arith.constant 0 : index
    %c0_11 = arith.constant 0 : index
    %12 = vector.load %arg4[%c1, %c0_10, %c0_11] : memref<9x4x128xbf16, #tpu.memory_space<vmem>>, vector<1x4x128xbf16>
    %13 = vector.shape_cast %12 : vector<1x4x128xbf16> to vector<4x128xbf16>
    %cst_12 = arith.constant dense<0.000000e+00> : vector<256x128xf32>
    %14 = tpu.matmul %11, %13, %cst_12 {dimension_numbers = #tpu.dot_dimension_numbers<[1], [0], [0], [1], [0, 0, 1, 1], [], []>} : vector<256x4xbf16>, vector<4x128xbf16>, vector<256x128xf32> -> vector<256x128xf32>
    %15 = arith.addf %9, %14 : vector<256x128xf32>
    %16 = vector.extract_strided_slice %4 {offsets = [0, 2, 0], sizes = [16, 16, 4], strides = [1, 1, 1]} : vector<18x18x4xbf16> to vector<16x16x4xbf16>
    %17 = vector.shape_cast %16 : vector<16x16x4xbf16> to vector<256x4xbf16>
    %c2 = arith.constant 2 : index
    %c0_13 = arith.constant 0 : index
    %c0_14 = arith.constant 0 : index
    %18 = vector.load %arg4[%c2, %c0_13, %c0_14] : memref<9x4x128xbf16, #tpu.memory_space<vmem>>, vector<1x4x128xbf16>
    %19 = vector.shape_cast %18 : vector<1x4x128xbf16> to vector<4x128xbf16>
    %cst_15 = arith.constant dense<0.000000e+00> : vector<256x128xf32>
    %20 = tpu.matmul %17, %19, %cst_15 {dimension_numbers = #tpu.dot_dimension_numbers<[1], [0], [0], [1], [0, 0, 1, 1], [], []>} : vector<256x4xbf16>, vector<4x128xbf16>, vector<256x128xf32> -> vector<256x128xf32>
    %21 = arith.addf %15, %20 : vector<256x128xf32>
    %22 = vector.extract_strided_slice %4 {offsets = [1, 0, 0], sizes = [16, 16, 4], strides = [1, 1, 1]} : vector<18x18x4xbf16> to vector<16x16x4xbf16>
    %23 = vector.shape_cast %22 : vector<16x16x4xbf16> to vector<256x4xbf16>
    %c3 = arith.constant 3 : index
    %c0_16 = arith.constant 0 : index
    %c0_17 = arith.constant 0 : index
    %24 = vector.load %arg4[%c3, %c0_16, %c0_17] : memref<9x4x128xbf16, #tpu.memory_space<vmem>>, vector<1x4x128xbf16>
    %25 = vector.shape_cast %24 : vector<1x4x128xbf16> to vector<4x128xbf16>
    %cst_18 = arith.constant dense<0.000000e+00> : vector<256x128xf32>
    %26 = tpu.matmul %23, %25, %cst_18 {dimension_numbers = #tpu.dot_dimension_numbers<[1], [0], [0], [1], [0, 0, 1, 1], [], []>} : vector<256x4xbf16>, vector<4x128xbf16>, vector<256x128xf32> -> vector<256x128xf32>
    %27 = arith.addf %21, %26 : vector<256x128xf32>
    %28 = vector.extract_strided_slice %4 {offsets = [1, 1, 0], sizes = [16, 16, 4], strides = [1, 1, 1]} : vector<18x18x4xbf16> to vector<16x16x4xbf16>
    %29 = vector.shape_cast %28 : vector<16x16x4xbf16> to vector<256x4xbf16>
    %c4 = arith.constant 4 : index
    %c0_19 = arith.constant 0 : index
    %c0_20 = arith.constant 0 : index
    %30 = vector.load %arg4[%c4, %c0_19, %c0_20] : memref<9x4x128xbf16, #tpu.memory_space<vmem>>, vector<1x4x128xbf16>
    %31 = vector.shape_cast %30 : vector<1x4x128xbf16> to vector<4x128xbf16>
    %cst_21 = arith.constant dense<0.000000e+00> : vector<256x128xf32>
    %32 = tpu.matmul %29, %31, %cst_21 {dimension_numbers = #tpu.dot_dimension_numbers<[1], [0], [0], [1], [0, 0, 1, 1], [], []>} : vector<256x4xbf16>, vector<4x128xbf16>, vector<256x128xf32> -> vector<256x128xf32>
    %33 = arith.addf %27, %32 : vector<256x128xf32>
    %34 = vector.extract_strided_slice %4 {offsets = [1, 2, 0], sizes = [16, 16, 4], strides = [1, 1, 1]} : vector<18x18x4xbf16> to vector<16x16x4xbf16>
    %35 = vector.shape_cast %34 : vector<16x16x4xbf16> to vector<256x4xbf16>
    %c5 = arith.constant 5 : index
    %c0_22 = arith.constant 0 : index
    %c0_23 = arith.constant 0 : index
    %36 = vector.load %arg4[%c5, %c0_22, %c0_23] : memref<9x4x128xbf16, #tpu.memory_space<vmem>>, vector<1x4x128xbf16>
    %37 = vector.shape_cast %36 : vector<1x4x128xbf16> to vector<4x128xbf16>
    %cst_24 = arith.constant dense<0.000000e+00> : vector<256x128xf32>
    %38 = tpu.matmul %35, %37, %cst_24 {dimension_numbers = #tpu.dot_dimension_numbers<[1], [0], [0], [1], [0, 0, 1, 1], [], []>} : vector<256x4xbf16>, vector<4x128xbf16>, vector<256x128xf32> -> vector<256x128xf32>
    %39 = arith.addf %33, %38 : vector<256x128xf32>
    %40 = vector.extract_strided_slice %4 {offsets = [2, 0, 0], sizes = [16, 16, 4], strides = [1, 1, 1]} : vector<18x18x4xbf16> to vector<16x16x4xbf16>
    %41 = vector.shape_cast %40 : vector<16x16x4xbf16> to vector<256x4xbf16>
    %c6 = arith.constant 6 : index
    %c0_25 = arith.constant 0 : index
    %c0_26 = arith.constant 0 : index
    %42 = vector.load %arg4[%c6, %c0_25, %c0_26] : memref<9x4x128xbf16, #tpu.memory_space<vmem>>, vector<1x4x128xbf16>
    %43 = vector.shape_cast %42 : vector<1x4x128xbf16> to vector<4x128xbf16>
    %cst_27 = arith.constant dense<0.000000e+00> : vector<256x128xf32>
    %44 = tpu.matmul %41, %43, %cst_27 {dimension_numbers = #tpu.dot_dimension_numbers<[1], [0], [0], [1], [0, 0, 1, 1], [], []>} : vector<256x4xbf16>, vector<4x128xbf16>, vector<256x128xf32> -> vector<256x128xf32>
    %45 = arith.addf %39, %44 : vector<256x128xf32>
    %46 = vector.extract_strided_slice %4 {offsets = [2, 1, 0], sizes = [16, 16, 4], strides = [1, 1, 1]} : vector<18x18x4xbf16> to vector<16x16x4xbf16>
    %47 = vector.shape_cast %46 : vector<16x16x4xbf16> to vector<256x4xbf16>
    %c7 = arith.constant 7 : index
    %c0_28 = arith.constant 0 : index
    %c0_29 = arith.constant 0 : index
    %48 = vector.load %arg4[%c7, %c0_28, %c0_29] : memref<9x4x128xbf16, #tpu.memory_space<vmem>>, vector<1x4x128xbf16>
    %49 = vector.shape_cast %48 : vector<1x4x128xbf16> to vector<4x128xbf16>
    %cst_30 = arith.constant dense<0.000000e+00> : vector<256x128xf32>
    %50 = tpu.matmul %47, %49, %cst_30 {dimension_numbers = #tpu.dot_dimension_numbers<[1], [0], [0], [1], [0, 0, 1, 1], [], []>} : vector<256x4xbf16>, vector<4x128xbf16>, vector<256x128xf32> -> vector<256x128xf32>
    %51 = arith.addf %45, %50 : vector<256x128xf32>
    %52 = vector.extract_strided_slice %4 {offsets = [2, 2, 0], sizes = [16, 16, 4], strides = [1, 1, 1]} : vector<18x18x4xbf16> to vector<16x16x4xbf16>
    %53 = vector.shape_cast %52 : vector<16x16x4xbf16> to vector<256x4xbf16>
    %c8 = arith.constant 8 : index
    %c0_31 = arith.constant 0 : index
    %c0_32 = arith.constant 0 : index
    %54 = vector.load %arg4[%c8, %c0_31, %c0_32] : memref<9x4x128xbf16, #tpu.memory_space<vmem>>, vector<1x4x128xbf16>
    %55 = vector.shape_cast %54 : vector<1x4x128xbf16> to vector<4x128xbf16>
    %cst_33 = arith.constant dense<0.000000e+00> : vector<256x128xf32>
    %56 = tpu.matmul %53, %55, %cst_33 {dimension_numbers = #tpu.dot_dimension_numbers<[1], [0], [0], [1], [0, 0, 1, 1], [], []>} : vector<256x4xbf16>, vector<4x128xbf16>, vector<256x128xf32> -> vector<256x128xf32>
    %57 = arith.addf %51, %56 : vector<256x128xf32>
    %cst_34 = arith.constant dense<0.000000e+00> : vector<128xf32>
    %58 = vector.multi_reduction <add>, %57, %cst_34 [0] : vector<256x128xf32> to vector<128xf32>
    %59 = vector.shape_cast %58 : vector<128xf32> to vector<1x128xf32>
    %60 = arith.mulf %57, %57 : vector<256x128xf32>
    %cst_35 = arith.constant dense<0.000000e+00> : vector<128xf32>
    %61 = vector.multi_reduction <add>, %60, %cst_35 [0] : vector<256x128xf32> to vector<128xf32>
    %62 = vector.shape_cast %61 : vector<128xf32> to vector<1x128xf32>
    %63 = tpu.concatenate %59, %62 in 0 : vector<1x128xf32>, vector<1x128xf32> -> vector<2x128xf32>
    %64 = vector.shape_cast %63 : vector<2x128xf32> to vector<1x2x128xf32>
    %c0_36 = arith.constant 0 : index
    %c0_37 = arith.constant 0 : index
    %c0_38 = arith.constant 0 : index
    %65 = vector.load %arg5[%c0_36, %c0_37, %c0_38] : memref<1x2x128xf32, #tpu.memory_space<vmem>>, vector<1x2x128xf32>
    tpu.vector_store %arg5[%c0_36, %c0_37, %c0_38], %64 {strides = array<i32>} : memref<1x2x128xf32, #tpu.memory_space<vmem>>, vector<1x2x128xf32>,
    return
  }
  func.func @transform_0(%arg0: i32, %arg1: i32) -> (i32, i32, i32, i32) {
    %c0_i32 = arith.constant 0 : i32
    %c0_i32_0 = arith.constant 0 : i32
    %c0_i32_1 = arith.constant 0 : i32
    return %arg0, %arg1, %c0_i32, %c0_i32_0 : i32, i32, i32, i32
  }
  func.func @transform_1(%arg0: i32, %arg1: i32) -> (i32, i32, i32, i32) {
    %c1_i32 = arith.constant 1 : i32
    %0 = arith.addi %arg1, %c1_i32 : i32
    %c8_i32 = arith.constant 8 : i32
    %1 = arith.muli %0, %c8_i32 : i32
    %c0_i32 = arith.constant 0 : i32
    %c0_i32_0 = arith.constant 0 : i32
    %c0_i32_1 = arith.constant 0 : i32
    return %arg0, %1, %c0_i32, %c0_i32_0 : i32, i32, i32, i32
  }
  func.func @transform_2(%arg0: i32, %arg1: i32) -> (i32, i32, i32) {
    %c0_i32 = arith.constant 0 : i32
    %c0_i32_0 = arith.constant 0 : i32
    %c0_i32_1 = arith.constant 0 : i32
    %c0_i32_2 = arith.constant 0 : i32
    return %c0_i32, %c0_i32_0, %c0_i32_1 : i32, i32, i32
  }
  func.func @transform_3(%arg0: i32, %arg1: i32) -> (i32, i32, i32) {
    %c1_i32 = arith.constant 1 : i32
    %0 = arith.muli %arg0, %c1_i32 : i32
    %1 = arith.addi %0, %arg1 : i32
    %c0_i32 = arith.constant 0 : i32
    %c0_i32_0 = arith.constant 0 : i32
    %c0_i32_1 = arith.constant 0 : i32
    return %1, %c0_i32, %c0_i32_0 : i32, i32, i32
  }
}

module attributes {stable_mosaic.version = 11 : i64} {
  func.func @_conv_stats_kernel(%arg0: i32, %arg1: i32, %arg2: memref<1x16x18x8xbf16, #tpu.memory_space<vmem>>, %arg3: memref<1x2x18x8xbf16, #tpu.memory_space<vmem>>, %arg4: memref<9x8x128xbf16, #tpu.memory_space<vmem>>, %arg5: memref<1x2x128xf32, #tpu.memory_space<vmem>>) attributes {dimension_semantics = [#tpu.dimension_semantics<parallel>, #tpu.dimension_semantics<parallel>], iteration_bounds = array<i64: 2, 1>, scalar_prefetch = 0 : i64, scratch_operands = 0 : i64, tpu.core_type = #tpu.core_type<tc>, window_params = [{transform_indices = @transform_0, window_bounds = array<i64: 1, 16, 18, 8>}, {transform_indices = @transform_1, window_bounds = array<i64: 1, 2, 18, 8>}, {pipeline_mode = #tpu.pipeline_mode<synchronous>, transform_indices = @transform_2, window_bounds = array<i64: 9, 8, 128>}, {transform_indices = @transform_3, window_bounds = array<i64: 1, 2, 128>}]} {
    %c0 = arith.constant 0 : index
    %c0_0 = arith.constant 0 : index
    %c0_1 = arith.constant 0 : index
    %c0_2 = arith.constant 0 : index
    %0 = vector.load %arg2[%c0, %c0_0, %c0_1, %c0_2] : memref<1x16x18x8xbf16, #tpu.memory_space<vmem>>, vector<1x16x18x8xbf16>
    %1 = vector.shape_cast %0 : vector<1x16x18x8xbf16> to vector<16x18x8xbf16>
    %c0_3 = arith.constant 0 : index
    %c0_4 = arith.constant 0 : index
    %c0_5 = arith.constant 0 : index
    %c0_6 = arith.constant 0 : index
    %2 = vector.load %arg3[%c0_3, %c0_4, %c0_5, %c0_6] : memref<1x2x18x8xbf16, #tpu.memory_space<vmem>>, vector<1x2x18x8xbf16>
    %3 = vector.shape_cast %2 : vector<1x2x18x8xbf16> to vector<2x18x8xbf16>
    %4 = tpu.concatenate %1, %3 in 0 : vector<16x18x8xbf16>, vector<2x18x8xbf16> -> vector<18x18x8xbf16>
    %5 = vector.extract_strided_slice %4 {offsets = [0, 0, 0], sizes = [16, 16, 8], strides = [1, 1, 1]} : vector<18x18x8xbf16> to vector<16x16x8xbf16>
    %6 = vector.shape_cast %5 : vector<16x16x8xbf16> to vector<256x8xbf16>
    %c0_7 = arith.constant 0 : index
    %c0_8 = arith.constant 0 : index
    %c0_9 = arith.constant 0 : index
    %7 = vector.load %arg4[%c0_7, %c0_8, %c0_9] : memref<9x8x128xbf16, #tpu.memory_space<vmem>>, vector<1x8x128xbf16>
    %8 = vector.shape_cast %7 : vector<1x8x128xbf16> to vector<8x128xbf16>
    %cst = arith.constant dense<0.000000e+00> : vector<256x128xf32>
    %9 = tpu.matmul %6, %8, %cst {dimension_numbers = #tpu.dot_dimension_numbers<[1], [0], [0], [1], [0, 0, 1, 1], [], []>} : vector<256x8xbf16>, vector<8x128xbf16>, vector<256x128xf32> -> vector<256x128xf32>
    %10 = vector.extract_strided_slice %4 {offsets = [0, 1, 0], sizes = [16, 16, 8], strides = [1, 1, 1]} : vector<18x18x8xbf16> to vector<16x16x8xbf16>
    %11 = vector.shape_cast %10 : vector<16x16x8xbf16> to vector<256x8xbf16>
    %c1 = arith.constant 1 : index
    %c0_10 = arith.constant 0 : index
    %c0_11 = arith.constant 0 : index
    %12 = vector.load %arg4[%c1, %c0_10, %c0_11] : memref<9x8x128xbf16, #tpu.memory_space<vmem>>, vector<1x8x128xbf16>
    %13 = vector.shape_cast %12 : vector<1x8x128xbf16> to vector<8x128xbf16>
    %cst_12 = arith.constant dense<0.000000e+00> : vector<256x128xf32>
    %14 = tpu.matmul %11, %13, %cst_12 {dimension_numbers = #tpu.dot_dimension_numbers<[1], [0], [0], [1], [0, 0, 1, 1], [], []>} : vector<256x8xbf16>, vector<8x128xbf16>, vector<256x128xf32> -> vector<256x128xf32>
    %15 = arith.addf %9, %14 : vector<256x128xf32>
    %16 = vector.extract_strided_slice %4 {offsets = [0, 2, 0], sizes = [16, 16, 8], strides = [1, 1, 1]} : vector<18x18x8xbf16> to vector<16x16x8xbf16>
    %17 = vector.shape_cast %16 : vector<16x16x8xbf16> to vector<256x8xbf16>
    %c2 = arith.constant 2 : index
    %c0_13 = arith.constant 0 : index
    %c0_14 = arith.constant 0 : index
    %18 = vector.load %arg4[%c2, %c0_13, %c0_14] : memref<9x8x128xbf16, #tpu.memory_space<vmem>>, vector<1x8x128xbf16>
    %19 = vector.shape_cast %18 : vector<1x8x128xbf16> to vector<8x128xbf16>
    %cst_15 = arith.constant dense<0.000000e+00> : vector<256x128xf32>
    %20 = tpu.matmul %17, %19, %cst_15 {dimension_numbers = #tpu.dot_dimension_numbers<[1], [0], [0], [1], [0, 0, 1, 1], [], []>} : vector<256x8xbf16>, vector<8x128xbf16>, vector<256x128xf32> -> vector<256x128xf32>
    %21 = arith.addf %15, %20 : vector<256x128xf32>
    %22 = vector.extract_strided_slice %4 {offsets = [1, 0, 0], sizes = [16, 16, 8], strides = [1, 1, 1]} : vector<18x18x8xbf16> to vector<16x16x8xbf16>
    %23 = vector.shape_cast %22 : vector<16x16x8xbf16> to vector<256x8xbf16>
    %c3 = arith.constant 3 : index
    %c0_16 = arith.constant 0 : index
    %c0_17 = arith.constant 0 : index
    %24 = vector.load %arg4[%c3, %c0_16, %c0_17] : memref<9x8x128xbf16, #tpu.memory_space<vmem>>, vector<1x8x128xbf16>
    %25 = vector.shape_cast %24 : vector<1x8x128xbf16> to vector<8x128xbf16>
    %cst_18 = arith.constant dense<0.000000e+00> : vector<256x128xf32>
    %26 = tpu.matmul %23, %25, %cst_18 {dimension_numbers = #tpu.dot_dimension_numbers<[1], [0], [0], [1], [0, 0, 1, 1], [], []>} : vector<256x8xbf16>, vector<8x128xbf16>, vector<256x128xf32> -> vector<256x128xf32>
    %27 = arith.addf %21, %26 : vector<256x128xf32>
    %28 = vector.extract_strided_slice %4 {offsets = [1, 1, 0], sizes = [16, 16, 8], strides = [1, 1, 1]} : vector<18x18x8xbf16> to vector<16x16x8xbf16>
    %29 = vector.shape_cast %28 : vector<16x16x8xbf16> to vector<256x8xbf16>
    %c4 = arith.constant 4 : index
    %c0_19 = arith.constant 0 : index
    %c0_20 = arith.constant 0 : index
    %30 = vector.load %arg4[%c4, %c0_19, %c0_20] : memref<9x8x128xbf16, #tpu.memory_space<vmem>>, vector<1x8x128xbf16>
    %31 = vector.shape_cast %30 : vector<1x8x128xbf16> to vector<8x128xbf16>
    %cst_21 = arith.constant dense<0.000000e+00> : vector<256x128xf32>
    %32 = tpu.matmul %29, %31, %cst_21 {dimension_numbers = #tpu.dot_dimension_numbers<[1], [0], [0], [1], [0, 0, 1, 1], [], []>} : vector<256x8xbf16>, vector<8x128xbf16>, vector<256x128xf32> -> vector<256x128xf32>
    %33 = arith.addf %27, %32 : vector<256x128xf32>
    %34 = vector.extract_strided_slice %4 {offsets = [1, 2, 0], sizes = [16, 16, 8], strides = [1, 1, 1]} : vector<18x18x8xbf16> to vector<16x16x8xbf16>
    %35 = vector.shape_cast %34 : vector<16x16x8xbf16> to vector<256x8xbf16>
    %c5 = arith.constant 5 : index
    %c0_22 = arith.constant 0 : index
    %c0_23 = arith.constant 0 : index
    %36 = vector.load %arg4[%c5, %c0_22, %c0_23] : memref<9x8x128xbf16, #tpu.memory_space<vmem>>, vector<1x8x128xbf16>
    %37 = vector.shape_cast %36 : vector<1x8x128xbf16> to vector<8x128xbf16>
    %cst_24 = arith.constant dense<0.000000e+00> : vector<256x128xf32>
    %38 = tpu.matmul %35, %37, %cst_24 {dimension_numbers = #tpu.dot_dimension_numbers<[1], [0], [0], [1], [0, 0, 1, 1], [], []>} : vector<256x8xbf16>, vector<8x128xbf16>, vector<256x128xf32> -> vector<256x128xf32>
    %39 = arith.addf %33, %38 : vector<256x128xf32>
    %40 = vector.extract_strided_slice %4 {offsets = [2, 0, 0], sizes = [16, 16, 8], strides = [1, 1, 1]} : vector<18x18x8xbf16> to vector<16x16x8xbf16>
    %41 = vector.shape_cast %40 : vector<16x16x8xbf16> to vector<256x8xbf16>
    %c6 = arith.constant 6 : index
    %c0_25 = arith.constant 0 : index
    %c0_26 = arith.constant 0 : index
    %42 = vector.load %arg4[%c6, %c0_25, %c0_26] : memref<9x8x128xbf16, #tpu.memory_space<vmem>>, vector<1x8x128xbf16>
    %43 = vector.shape_cast %42 : vector<1x8x128xbf16> to vector<8x128xbf16>
    %cst_27 = arith.constant dense<0.000000e+00> : vector<256x128xf32>
    %44 = tpu.matmul %41, %43, %cst_27 {dimension_numbers = #tpu.dot_dimension_numbers<[1], [0], [0], [1], [0, 0, 1, 1], [], []>} : vector<256x8xbf16>, vector<8x128xbf16>, vector<256x128xf32> -> vector<256x128xf32>
    %45 = arith.addf %39, %44 : vector<256x128xf32>
    %46 = vector.extract_strided_slice %4 {offsets = [2, 1, 0], sizes = [16, 16, 8], strides = [1, 1, 1]} : vector<18x18x8xbf16> to vector<16x16x8xbf16>
    %47 = vector.shape_cast %46 : vector<16x16x8xbf16> to vector<256x8xbf16>
    %c7 = arith.constant 7 : index
    %c0_28 = arith.constant 0 : index
    %c0_29 = arith.constant 0 : index
    %48 = vector.load %arg4[%c7, %c0_28, %c0_29] : memref<9x8x128xbf16, #tpu.memory_space<vmem>>, vector<1x8x128xbf16>
    %49 = vector.shape_cast %48 : vector<1x8x128xbf16> to vector<8x128xbf16>
    %cst_30 = arith.constant dense<0.000000e+00> : vector<256x128xf32>
    %50 = tpu.matmul %47, %49, %cst_30 {dimension_numbers = #tpu.dot_dimension_numbers<[1], [0], [0], [1], [0, 0, 1, 1], [], []>} : vector<256x8xbf16>, vector<8x128xbf16>, vector<256x128xf32> -> vector<256x128xf32>
    %51 = arith.addf %45, %50 : vector<256x128xf32>
    %52 = vector.extract_strided_slice %4 {offsets = [2, 2, 0], sizes = [16, 16, 8], strides = [1, 1, 1]} : vector<18x18x8xbf16> to vector<16x16x8xbf16>
    %53 = vector.shape_cast %52 : vector<16x16x8xbf16> to vector<256x8xbf16>
    %c8 = arith.constant 8 : index
    %c0_31 = arith.constant 0 : index
    %c0_32 = arith.constant 0 : index
    %54 = vector.load %arg4[%c8, %c0_31, %c0_32] : memref<9x8x128xbf16, #tpu.memory_space<vmem>>, vector<1x8x128xbf16>
    %55 = vector.shape_cast %54 : vector<1x8x128xbf16> to vector<8x128xbf16>
    %cst_33 = arith.constant dense<0.000000e+00> : vector<256x128xf32>
    %56 = tpu.matmul %53, %55, %cst_33 {dimension_numbers = #tpu.dot_dimension_numbers<[1], [0], [0], [1], [0, 0, 1, 1], [], []>} : vector<256x8xbf16>, vector<8x128xbf16>, vector<256x128xf32> -> vector<256x128xf32>
    %57 = arith.addf %51, %56 : vector<256x128xf32>
    %cst_34 = arith.constant dense<0.000000e+00> : vector<128xf32>
    %58 = vector.multi_reduction <add>, %57, %cst_34 [0] : vector<256x128xf32> to vector<128xf32>
    %59 = vector.shape_cast %58 : vector<128xf32> to vector<1x128xf32>
    %60 = arith.mulf %57, %57 : vector<256x128xf32>
    %cst_35 = arith.constant dense<0.000000e+00> : vector<128xf32>
    %61 = vector.multi_reduction <add>, %60, %cst_35 [0] : vector<256x128xf32> to vector<128xf32>
    %62 = vector.shape_cast %61 : vector<128xf32> to vector<1x128xf32>
    %63 = tpu.concatenate %59, %62 in 0 : vector<1x128xf32>, vector<1x128xf32> -> vector<2x128xf32>
    %64 = vector.shape_cast %63 : vector<2x128xf32> to vector<1x2x128xf32>
    %c0_36 = arith.constant 0 : index
    %c0_37 = arith.constant 0 : index
    %c0_38 = arith.constant 0 : index
    %65 = vector.load %arg5[%c0_36, %c0_37, %c0_38] : memref<1x2x128xf32, #tpu.memory_space<vmem>>, vector<1x2x128xf32>
    tpu.vector_store %arg5[%c0_36, %c0_37, %c0_38], %64 {strides = array<i32>} : memref<1x2x128xf32, #tpu.memory_space<vmem>>, vector<1x2x128xf32>,
    return
  }
  func.func @transform_0(%arg0: i32, %arg1: i32) -> (i32, i32, i32, i32) {
    %c0_i32 = arith.constant 0 : i32
    %c0_i32_0 = arith.constant 0 : i32
    %c0_i32_1 = arith.constant 0 : i32
    return %arg0, %arg1, %c0_i32, %c0_i32_0 : i32, i32, i32, i32
  }
  func.func @transform_1(%arg0: i32, %arg1: i32) -> (i32, i32, i32, i32) {
    %c1_i32 = arith.constant 1 : i32
    %0 = arith.addi %arg1, %c1_i32 : i32
    %c8_i32 = arith.constant 8 : i32
    %1 = arith.muli %0, %c8_i32 : i32
    %c0_i32 = arith.constant 0 : i32
    %c0_i32_0 = arith.constant 0 : i32
    %c0_i32_1 = arith.constant 0 : i32
    return %arg0, %1, %c0_i32, %c0_i32_0 : i32, i32, i32, i32
  }
  func.func @transform_2(%arg0: i32, %arg1: i32) -> (i32, i32, i32) {
    %c0_i32 = arith.constant 0 : i32
    %c0_i32_0 = arith.constant 0 : i32
    %c0_i32_1 = arith.constant 0 : i32
    %c0_i32_2 = arith.constant 0 : i32
    return %c0_i32, %c0_i32_0, %c0_i32_1 : i32, i32, i32
  }
  func.func @transform_3(%arg0: i32, %arg1: i32) -> (i32, i32, i32) {
    %c1_i32 = arith.constant 1 : i32
    %0 = arith.muli %arg0, %c1_i32 : i32
    %1 = arith.addi %0, %arg1 : i32
    %c0_i32 = arith.constant 0 : i32
    %c0_i32_0 = arith.constant 0 : i32
    %c0_i32_1 = arith.constant 0 : i32
    return %1, %c0_i32, %c0_i32_0 : i32, i32, i32
  }
}

module attributes {stable_mosaic.version = 11 : i64} {
  func.func @_conv_apply_kernel(%arg0: i32, %arg1: i32, %arg2: memref<1x16x18x4xbf16, #tpu.memory_space<vmem>>, %arg3: memref<1x2x18x4xbf16, #tpu.memory_space<vmem>>, %arg4: memref<9x4x128xbf16, #tpu.memory_space<vmem>>, %arg5: memref<1x128xf32, #tpu.memory_space<vmem>>, %arg6: memref<1x128xf32, #tpu.memory_space<vmem>>, %arg7: memref<256x128xbf16, #tpu.memory_space<vmem>>) attributes {dimension_semantics = [#tpu.dimension_semantics<parallel>, #tpu.dimension_semantics<parallel>], iteration_bounds = array<i64: 2, 1>, scalar_prefetch = 0 : i64, scratch_operands = 0 : i64, tpu.core_type = #tpu.core_type<tc>, window_params = [{transform_indices = @transform_0, window_bounds = array<i64: 1, 16, 18, 4>}, {transform_indices = @transform_1, window_bounds = array<i64: 1, 2, 18, 4>}, {pipeline_mode = #tpu.pipeline_mode<synchronous>, transform_indices = @transform_2, window_bounds = array<i64: 9, 4, 128>}, {pipeline_mode = #tpu.pipeline_mode<synchronous>, transform_indices = @transform_3, window_bounds = array<i64: 1, 128>}, {pipeline_mode = #tpu.pipeline_mode<synchronous>, transform_indices = @transform_4, window_bounds = array<i64: 1, 128>}, {transform_indices = @transform_5, window_bounds = array<i64: 256, 128>}]} {
    %c0 = arith.constant 0 : index
    %c0_0 = arith.constant 0 : index
    %c0_1 = arith.constant 0 : index
    %c0_2 = arith.constant 0 : index
    %0 = vector.load %arg2[%c0, %c0_0, %c0_1, %c0_2] : memref<1x16x18x4xbf16, #tpu.memory_space<vmem>>, vector<1x16x18x4xbf16>
    %1 = vector.shape_cast %0 : vector<1x16x18x4xbf16> to vector<16x18x4xbf16>
    %c0_3 = arith.constant 0 : index
    %c0_4 = arith.constant 0 : index
    %c0_5 = arith.constant 0 : index
    %c0_6 = arith.constant 0 : index
    %2 = vector.load %arg3[%c0_3, %c0_4, %c0_5, %c0_6] : memref<1x2x18x4xbf16, #tpu.memory_space<vmem>>, vector<1x2x18x4xbf16>
    %3 = vector.shape_cast %2 : vector<1x2x18x4xbf16> to vector<2x18x4xbf16>
    %4 = tpu.concatenate %1, %3 in 0 : vector<16x18x4xbf16>, vector<2x18x4xbf16> -> vector<18x18x4xbf16>
    %5 = vector.extract_strided_slice %4 {offsets = [0, 0, 0], sizes = [16, 16, 4], strides = [1, 1, 1]} : vector<18x18x4xbf16> to vector<16x16x4xbf16>
    %6 = vector.shape_cast %5 : vector<16x16x4xbf16> to vector<256x4xbf16>
    %c0_7 = arith.constant 0 : index
    %c0_8 = arith.constant 0 : index
    %c0_9 = arith.constant 0 : index
    %7 = vector.load %arg4[%c0_7, %c0_8, %c0_9] : memref<9x4x128xbf16, #tpu.memory_space<vmem>>, vector<1x4x128xbf16>
    %8 = vector.shape_cast %7 : vector<1x4x128xbf16> to vector<4x128xbf16>
    %cst = arith.constant dense<0.000000e+00> : vector<256x128xf32>
    %9 = tpu.matmul %6, %8, %cst {dimension_numbers = #tpu.dot_dimension_numbers<[1], [0], [0], [1], [0, 0, 1, 1], [], []>} : vector<256x4xbf16>, vector<4x128xbf16>, vector<256x128xf32> -> vector<256x128xf32>
    %10 = vector.extract_strided_slice %4 {offsets = [0, 1, 0], sizes = [16, 16, 4], strides = [1, 1, 1]} : vector<18x18x4xbf16> to vector<16x16x4xbf16>
    %11 = vector.shape_cast %10 : vector<16x16x4xbf16> to vector<256x4xbf16>
    %c1 = arith.constant 1 : index
    %c0_10 = arith.constant 0 : index
    %c0_11 = arith.constant 0 : index
    %12 = vector.load %arg4[%c1, %c0_10, %c0_11] : memref<9x4x128xbf16, #tpu.memory_space<vmem>>, vector<1x4x128xbf16>
    %13 = vector.shape_cast %12 : vector<1x4x128xbf16> to vector<4x128xbf16>
    %cst_12 = arith.constant dense<0.000000e+00> : vector<256x128xf32>
    %14 = tpu.matmul %11, %13, %cst_12 {dimension_numbers = #tpu.dot_dimension_numbers<[1], [0], [0], [1], [0, 0, 1, 1], [], []>} : vector<256x4xbf16>, vector<4x128xbf16>, vector<256x128xf32> -> vector<256x128xf32>
    %15 = arith.addf %9, %14 : vector<256x128xf32>
    %16 = vector.extract_strided_slice %4 {offsets = [0, 2, 0], sizes = [16, 16, 4], strides = [1, 1, 1]} : vector<18x18x4xbf16> to vector<16x16x4xbf16>
    %17 = vector.shape_cast %16 : vector<16x16x4xbf16> to vector<256x4xbf16>
    %c2 = arith.constant 2 : index
    %c0_13 = arith.constant 0 : index
    %c0_14 = arith.constant 0 : index
    %18 = vector.load %arg4[%c2, %c0_13, %c0_14] : memref<9x4x128xbf16, #tpu.memory_space<vmem>>, vector<1x4x128xbf16>
    %19 = vector.shape_cast %18 : vector<1x4x128xbf16> to vector<4x128xbf16>
    %cst_15 = arith.constant dense<0.000000e+00> : vector<256x128xf32>
    %20 = tpu.matmul %17, %19, %cst_15 {dimension_numbers = #tpu.dot_dimension_numbers<[1], [0], [0], [1], [0, 0, 1, 1], [], []>} : vector<256x4xbf16>, vector<4x128xbf16>, vector<256x128xf32> -> vector<256x128xf32>
    %21 = arith.addf %15, %20 : vector<256x128xf32>
    %22 = vector.extract_strided_slice %4 {offsets = [1, 0, 0], sizes = [16, 16, 4], strides = [1, 1, 1]} : vector<18x18x4xbf16> to vector<16x16x4xbf16>
    %23 = vector.shape_cast %22 : vector<16x16x4xbf16> to vector<256x4xbf16>
    %c3 = arith.constant 3 : index
    %c0_16 = arith.constant 0 : index
    %c0_17 = arith.constant 0 : index
    %24 = vector.load %arg4[%c3, %c0_16, %c0_17] : memref<9x4x128xbf16, #tpu.memory_space<vmem>>, vector<1x4x128xbf16>
    %25 = vector.shape_cast %24 : vector<1x4x128xbf16> to vector<4x128xbf16>
    %cst_18 = arith.constant dense<0.000000e+00> : vector<256x128xf32>
    %26 = tpu.matmul %23, %25, %cst_18 {dimension_numbers = #tpu.dot_dimension_numbers<[1], [0], [0], [1], [0, 0, 1, 1], [], []>} : vector<256x4xbf16>, vector<4x128xbf16>, vector<256x128xf32> -> vector<256x128xf32>
    %27 = arith.addf %21, %26 : vector<256x128xf32>
    %28 = vector.extract_strided_slice %4 {offsets = [1, 1, 0], sizes = [16, 16, 4], strides = [1, 1, 1]} : vector<18x18x4xbf16> to vector<16x16x4xbf16>
    %29 = vector.shape_cast %28 : vector<16x16x4xbf16> to vector<256x4xbf16>
    %c4 = arith.constant 4 : index
    %c0_19 = arith.constant 0 : index
    %c0_20 = arith.constant 0 : index
    %30 = vector.load %arg4[%c4, %c0_19, %c0_20] : memref<9x4x128xbf16, #tpu.memory_space<vmem>>, vector<1x4x128xbf16>
    %31 = vector.shape_cast %30 : vector<1x4x128xbf16> to vector<4x128xbf16>
    %cst_21 = arith.constant dense<0.000000e+00> : vector<256x128xf32>
    %32 = tpu.matmul %29, %31, %cst_21 {dimension_numbers = #tpu.dot_dimension_numbers<[1], [0], [0], [1], [0, 0, 1, 1], [], []>} : vector<256x4xbf16>, vector<4x128xbf16>, vector<256x128xf32> -> vector<256x128xf32>
    %33 = arith.addf %27, %32 : vector<256x128xf32>
    %34 = vector.extract_strided_slice %4 {offsets = [1, 2, 0], sizes = [16, 16, 4], strides = [1, 1, 1]} : vector<18x18x4xbf16> to vector<16x16x4xbf16>
    %35 = vector.shape_cast %34 : vector<16x16x4xbf16> to vector<256x4xbf16>
    %c5 = arith.constant 5 : index
    %c0_22 = arith.constant 0 : index
    %c0_23 = arith.constant 0 : index
    %36 = vector.load %arg4[%c5, %c0_22, %c0_23] : memref<9x4x128xbf16, #tpu.memory_space<vmem>>, vector<1x4x128xbf16>
    %37 = vector.shape_cast %36 : vector<1x4x128xbf16> to vector<4x128xbf16>
    %cst_24 = arith.constant dense<0.000000e+00> : vector<256x128xf32>
    %38 = tpu.matmul %35, %37, %cst_24 {dimension_numbers = #tpu.dot_dimension_numbers<[1], [0], [0], [1], [0, 0, 1, 1], [], []>} : vector<256x4xbf16>, vector<4x128xbf16>, vector<256x128xf32> -> vector<256x128xf32>
    %39 = arith.addf %33, %38 : vector<256x128xf32>
    %40 = vector.extract_strided_slice %4 {offsets = [2, 0, 0], sizes = [16, 16, 4], strides = [1, 1, 1]} : vector<18x18x4xbf16> to vector<16x16x4xbf16>
    %41 = vector.shape_cast %40 : vector<16x16x4xbf16> to vector<256x4xbf16>
    %c6 = arith.constant 6 : index
    %c0_25 = arith.constant 0 : index
    %c0_26 = arith.constant 0 : index
    %42 = vector.load %arg4[%c6, %c0_25, %c0_26] : memref<9x4x128xbf16, #tpu.memory_space<vmem>>, vector<1x4x128xbf16>
    %43 = vector.shape_cast %42 : vector<1x4x128xbf16> to vector<4x128xbf16>
    %cst_27 = arith.constant dense<0.000000e+00> : vector<256x128xf32>
    %44 = tpu.matmul %41, %43, %cst_27 {dimension_numbers = #tpu.dot_dimension_numbers<[1], [0], [0], [1], [0, 0, 1, 1], [], []>} : vector<256x4xbf16>, vector<4x128xbf16>, vector<256x128xf32> -> vector<256x128xf32>
    %45 = arith.addf %39, %44 : vector<256x128xf32>
    %46 = vector.extract_strided_slice %4 {offsets = [2, 1, 0], sizes = [16, 16, 4], strides = [1, 1, 1]} : vector<18x18x4xbf16> to vector<16x16x4xbf16>
    %47 = vector.shape_cast %46 : vector<16x16x4xbf16> to vector<256x4xbf16>
    %c7 = arith.constant 7 : index
    %c0_28 = arith.constant 0 : index
    %c0_29 = arith.constant 0 : index
    %48 = vector.load %arg4[%c7, %c0_28, %c0_29] : memref<9x4x128xbf16, #tpu.memory_space<vmem>>, vector<1x4x128xbf16>
    %49 = vector.shape_cast %48 : vector<1x4x128xbf16> to vector<4x128xbf16>
    %cst_30 = arith.constant dense<0.000000e+00> : vector<256x128xf32>
    %50 = tpu.matmul %47, %49, %cst_30 {dimension_numbers = #tpu.dot_dimension_numbers<[1], [0], [0], [1], [0, 0, 1, 1], [], []>} : vector<256x4xbf16>, vector<4x128xbf16>, vector<256x128xf32> -> vector<256x128xf32>
    %51 = arith.addf %45, %50 : vector<256x128xf32>
    %52 = vector.extract_strided_slice %4 {offsets = [2, 2, 0], sizes = [16, 16, 4], strides = [1, 1, 1]} : vector<18x18x4xbf16> to vector<16x16x4xbf16>
    %53 = vector.shape_cast %52 : vector<16x16x4xbf16> to vector<256x4xbf16>
    %c8 = arith.constant 8 : index
    %c0_31 = arith.constant 0 : index
    %c0_32 = arith.constant 0 : index
    %54 = vector.load %arg4[%c8, %c0_31, %c0_32] : memref<9x4x128xbf16, #tpu.memory_space<vmem>>, vector<1x4x128xbf16>
    %55 = vector.shape_cast %54 : vector<1x4x128xbf16> to vector<4x128xbf16>
    %cst_33 = arith.constant dense<0.000000e+00> : vector<256x128xf32>
    %56 = tpu.matmul %53, %55, %cst_33 {dimension_numbers = #tpu.dot_dimension_numbers<[1], [0], [0], [1], [0, 0, 1, 1], [], []>} : vector<256x4xbf16>, vector<4x128xbf16>, vector<256x128xf32> -> vector<256x128xf32>
    %57 = arith.addf %51, %56 : vector<256x128xf32>
    %c0_34 = arith.constant 0 : index
    %c0_35 = arith.constant 0 : index
    %58 = vector.load %arg5[%c0_34, %c0_35] : memref<1x128xf32, #tpu.memory_space<vmem>>, vector<1x128xf32>
    %59 = vector.broadcast %58 : vector<1x128xf32> to vector<256x128xf32>
    %60 = arith.mulf %57, %59 : vector<256x128xf32>
    %c0_36 = arith.constant 0 : index
    %c0_37 = arith.constant 0 : index
    %61 = vector.load %arg6[%c0_36, %c0_37] : memref<1x128xf32, #tpu.memory_space<vmem>>, vector<1x128xf32>
    %62 = vector.broadcast %61 : vector<1x128xf32> to vector<256x128xf32>
    %63 = arith.addf %60, %62 : vector<256x128xf32>
    %cst_38 = arith.constant 0.000000e+00 : f32
    %64 = vector.broadcast %cst_38 : f32 to vector<256x128xf32>
    %65 = arith.maximumf %63, %64 : vector<256x128xf32>
    %66 = arith.truncf %65 : vector<256x128xf32> to vector<256x128xbf16>
    %c0_39 = arith.constant 0 : index
    %c0_40 = arith.constant 0 : index
    %67 = vector.load %arg7[%c0_39, %c0_40] : memref<256x128xbf16, #tpu.memory_space<vmem>>, vector<256x128xbf16>
    tpu.vector_store %arg7[%c0_39, %c0_40], %66 {strides = array<i32>} : memref<256x128xbf16, #tpu.memory_space<vmem>>, vector<256x128xbf16>,
    return
  }
  func.func @transform_0(%arg0: i32, %arg1: i32) -> (i32, i32, i32, i32) {
    %c0_i32 = arith.constant 0 : i32
    %c0_i32_0 = arith.constant 0 : i32
    %c0_i32_1 = arith.constant 0 : i32
    return %arg0, %arg1, %c0_i32, %c0_i32_0 : i32, i32, i32, i32
  }
  func.func @transform_1(%arg0: i32, %arg1: i32) -> (i32, i32, i32, i32) {
    %c1_i32 = arith.constant 1 : i32
    %0 = arith.addi %arg1, %c1_i32 : i32
    %c8_i32 = arith.constant 8 : i32
    %1 = arith.muli %0, %c8_i32 : i32
    %c0_i32 = arith.constant 0 : i32
    %c0_i32_0 = arith.constant 0 : i32
    %c0_i32_1 = arith.constant 0 : i32
    return %arg0, %1, %c0_i32, %c0_i32_0 : i32, i32, i32, i32
  }
  func.func @transform_2(%arg0: i32, %arg1: i32) -> (i32, i32, i32) {
    %c0_i32 = arith.constant 0 : i32
    %c0_i32_0 = arith.constant 0 : i32
    %c0_i32_1 = arith.constant 0 : i32
    %c0_i32_2 = arith.constant 0 : i32
    return %c0_i32, %c0_i32_0, %c0_i32_1 : i32, i32, i32
  }
  func.func @transform_3(%arg0: i32, %arg1: i32) -> (i32, i32) {
    %c0_i32 = arith.constant 0 : i32
    %c0_i32_0 = arith.constant 0 : i32
    %c0_i32_1 = arith.constant 0 : i32
    return %c0_i32, %c0_i32_0 : i32, i32
  }
  func.func @transform_4(%arg0: i32, %arg1: i32) -> (i32, i32) {
    %c0_i32 = arith.constant 0 : i32
    %c0_i32_0 = arith.constant 0 : i32
    %c0_i32_1 = arith.constant 0 : i32
    return %c0_i32, %c0_i32_0 : i32, i32
  }
  func.func @transform_5(%arg0: i32, %arg1: i32) -> (i32, i32) {
    %c1_i32 = arith.constant 1 : i32
    %0 = arith.muli %arg0, %c1_i32 : i32
    %1 = arith.addi %0, %arg1 : i32
    %c0_i32 = arith.constant 0 : i32
    %c0_i32_0 = arith.constant 0 : i32
    return %1, %c0_i32 : i32, i32
  }
}

module attributes {stable_mosaic.version = 11 : i64} {
  func.func @_conv_apply_kernel(%arg0: i32, %arg1: i32, %arg2: memref<1x16x18x8xbf16, #tpu.memory_space<vmem>>, %arg3: memref<1x2x18x8xbf16, #tpu.memory_space<vmem>>, %arg4: memref<9x8x128xbf16, #tpu.memory_space<vmem>>, %arg5: memref<1x128xf32, #tpu.memory_space<vmem>>, %arg6: memref<1x128xf32, #tpu.memory_space<vmem>>, %arg7: memref<256x128xf32, #tpu.memory_space<vmem>>) attributes {dimension_semantics = [#tpu.dimension_semantics<parallel>, #tpu.dimension_semantics<parallel>], iteration_bounds = array<i64: 2, 1>, scalar_prefetch = 0 : i64, scratch_operands = 0 : i64, tpu.core_type = #tpu.core_type<tc>, window_params = [{transform_indices = @transform_0, window_bounds = array<i64: 1, 16, 18, 8>}, {transform_indices = @transform_1, window_bounds = array<i64: 1, 2, 18, 8>}, {pipeline_mode = #tpu.pipeline_mode<synchronous>, transform_indices = @transform_2, window_bounds = array<i64: 9, 8, 128>}, {pipeline_mode = #tpu.pipeline_mode<synchronous>, transform_indices = @transform_3, window_bounds = array<i64: 1, 128>}, {pipeline_mode = #tpu.pipeline_mode<synchronous>, transform_indices = @transform_4, window_bounds = array<i64: 1, 128>}, {transform_indices = @transform_5, window_bounds = array<i64: 256, 128>}]} {
    %c0 = arith.constant 0 : index
    %c0_0 = arith.constant 0 : index
    %c0_1 = arith.constant 0 : index
    %c0_2 = arith.constant 0 : index
    %0 = vector.load %arg2[%c0, %c0_0, %c0_1, %c0_2] : memref<1x16x18x8xbf16, #tpu.memory_space<vmem>>, vector<1x16x18x8xbf16>
    %1 = vector.shape_cast %0 : vector<1x16x18x8xbf16> to vector<16x18x8xbf16>
    %c0_3 = arith.constant 0 : index
    %c0_4 = arith.constant 0 : index
    %c0_5 = arith.constant 0 : index
    %c0_6 = arith.constant 0 : index
    %2 = vector.load %arg3[%c0_3, %c0_4, %c0_5, %c0_6] : memref<1x2x18x8xbf16, #tpu.memory_space<vmem>>, vector<1x2x18x8xbf16>
    %3 = vector.shape_cast %2 : vector<1x2x18x8xbf16> to vector<2x18x8xbf16>
    %4 = tpu.concatenate %1, %3 in 0 : vector<16x18x8xbf16>, vector<2x18x8xbf16> -> vector<18x18x8xbf16>
    %5 = vector.extract_strided_slice %4 {offsets = [0, 0, 0], sizes = [16, 16, 8], strides = [1, 1, 1]} : vector<18x18x8xbf16> to vector<16x16x8xbf16>
    %6 = vector.shape_cast %5 : vector<16x16x8xbf16> to vector<256x8xbf16>
    %c0_7 = arith.constant 0 : index
    %c0_8 = arith.constant 0 : index
    %c0_9 = arith.constant 0 : index
    %7 = vector.load %arg4[%c0_7, %c0_8, %c0_9] : memref<9x8x128xbf16, #tpu.memory_space<vmem>>, vector<1x8x128xbf16>
    %8 = vector.shape_cast %7 : vector<1x8x128xbf16> to vector<8x128xbf16>
    %cst = arith.constant dense<0.000000e+00> : vector<256x128xf32>
    %9 = tpu.matmul %6, %8, %cst {dimension_numbers = #tpu.dot_dimension_numbers<[1], [0], [0], [1], [0, 0, 1, 1], [], []>} : vector<256x8xbf16>, vector<8x128xbf16>, vector<256x128xf32> -> vector<256x128xf32>
    %10 = vector.extract_strided_slice %4 {offsets = [0, 1, 0], sizes = [16, 16, 8], strides = [1, 1, 1]} : vector<18x18x8xbf16> to vector<16x16x8xbf16>
    %11 = vector.shape_cast %10 : vector<16x16x8xbf16> to vector<256x8xbf16>
    %c1 = arith.constant 1 : index
    %c0_10 = arith.constant 0 : index
    %c0_11 = arith.constant 0 : index
    %12 = vector.load %arg4[%c1, %c0_10, %c0_11] : memref<9x8x128xbf16, #tpu.memory_space<vmem>>, vector<1x8x128xbf16>
    %13 = vector.shape_cast %12 : vector<1x8x128xbf16> to vector<8x128xbf16>
    %cst_12 = arith.constant dense<0.000000e+00> : vector<256x128xf32>
    %14 = tpu.matmul %11, %13, %cst_12 {dimension_numbers = #tpu.dot_dimension_numbers<[1], [0], [0], [1], [0, 0, 1, 1], [], []>} : vector<256x8xbf16>, vector<8x128xbf16>, vector<256x128xf32> -> vector<256x128xf32>
    %15 = arith.addf %9, %14 : vector<256x128xf32>
    %16 = vector.extract_strided_slice %4 {offsets = [0, 2, 0], sizes = [16, 16, 8], strides = [1, 1, 1]} : vector<18x18x8xbf16> to vector<16x16x8xbf16>
    %17 = vector.shape_cast %16 : vector<16x16x8xbf16> to vector<256x8xbf16>
    %c2 = arith.constant 2 : index
    %c0_13 = arith.constant 0 : index
    %c0_14 = arith.constant 0 : index
    %18 = vector.load %arg4[%c2, %c0_13, %c0_14] : memref<9x8x128xbf16, #tpu.memory_space<vmem>>, vector<1x8x128xbf16>
    %19 = vector.shape_cast %18 : vector<1x8x128xbf16> to vector<8x128xbf16>
    %cst_15 = arith.constant dense<0.000000e+00> : vector<256x128xf32>
    %20 = tpu.matmul %17, %19, %cst_15 {dimension_numbers = #tpu.dot_dimension_numbers<[1], [0], [0], [1], [0, 0, 1, 1], [], []>} : vector<256x8xbf16>, vector<8x128xbf16>, vector<256x128xf32> -> vector<256x128xf32>
    %21 = arith.addf %15, %20 : vector<256x128xf32>
    %22 = vector.extract_strided_slice %4 {offsets = [1, 0, 0], sizes = [16, 16, 8], strides = [1, 1, 1]} : vector<18x18x8xbf16> to vector<16x16x8xbf16>
    %23 = vector.shape_cast %22 : vector<16x16x8xbf16> to vector<256x8xbf16>
    %c3 = arith.constant 3 : index
    %c0_16 = arith.constant 0 : index
    %c0_17 = arith.constant 0 : index
    %24 = vector.load %arg4[%c3, %c0_16, %c0_17] : memref<9x8x128xbf16, #tpu.memory_space<vmem>>, vector<1x8x128xbf16>
    %25 = vector.shape_cast %24 : vector<1x8x128xbf16> to vector<8x128xbf16>
    %cst_18 = arith.constant dense<0.000000e+00> : vector<256x128xf32>
    %26 = tpu.matmul %23, %25, %cst_18 {dimension_numbers = #tpu.dot_dimension_numbers<[1], [0], [0], [1], [0, 0, 1, 1], [], []>} : vector<256x8xbf16>, vector<8x128xbf16>, vector<256x128xf32> -> vector<256x128xf32>
    %27 = arith.addf %21, %26 : vector<256x128xf32>
    %28 = vector.extract_strided_slice %4 {offsets = [1, 1, 0], sizes = [16, 16, 8], strides = [1, 1, 1]} : vector<18x18x8xbf16> to vector<16x16x8xbf16>
    %29 = vector.shape_cast %28 : vector<16x16x8xbf16> to vector<256x8xbf16>
    %c4 = arith.constant 4 : index
    %c0_19 = arith.constant 0 : index
    %c0_20 = arith.constant 0 : index
    %30 = vector.load %arg4[%c4, %c0_19, %c0_20] : memref<9x8x128xbf16, #tpu.memory_space<vmem>>, vector<1x8x128xbf16>
    %31 = vector.shape_cast %30 : vector<1x8x128xbf16> to vector<8x128xbf16>
    %cst_21 = arith.constant dense<0.000000e+00> : vector<256x128xf32>
    %32 = tpu.matmul %29, %31, %cst_21 {dimension_numbers = #tpu.dot_dimension_numbers<[1], [0], [0], [1], [0, 0, 1, 1], [], []>} : vector<256x8xbf16>, vector<8x128xbf16>, vector<256x128xf32> -> vector<256x128xf32>
    %33 = arith.addf %27, %32 : vector<256x128xf32>
    %34 = vector.extract_strided_slice %4 {offsets = [1, 2, 0], sizes = [16, 16, 8], strides = [1, 1, 1]} : vector<18x18x8xbf16> to vector<16x16x8xbf16>
    %35 = vector.shape_cast %34 : vector<16x16x8xbf16> to vector<256x8xbf16>
    %c5 = arith.constant 5 : index
    %c0_22 = arith.constant 0 : index
    %c0_23 = arith.constant 0 : index
    %36 = vector.load %arg4[%c5, %c0_22, %c0_23] : memref<9x8x128xbf16, #tpu.memory_space<vmem>>, vector<1x8x128xbf16>
    %37 = vector.shape_cast %36 : vector<1x8x128xbf16> to vector<8x128xbf16>
    %cst_24 = arith.constant dense<0.000000e+00> : vector<256x128xf32>
    %38 = tpu.matmul %35, %37, %cst_24 {dimension_numbers = #tpu.dot_dimension_numbers<[1], [0], [0], [1], [0, 0, 1, 1], [], []>} : vector<256x8xbf16>, vector<8x128xbf16>, vector<256x128xf32> -> vector<256x128xf32>
    %39 = arith.addf %33, %38 : vector<256x128xf32>
    %40 = vector.extract_strided_slice %4 {offsets = [2, 0, 0], sizes = [16, 16, 8], strides = [1, 1, 1]} : vector<18x18x8xbf16> to vector<16x16x8xbf16>
    %41 = vector.shape_cast %40 : vector<16x16x8xbf16> to vector<256x8xbf16>
    %c6 = arith.constant 6 : index
    %c0_25 = arith.constant 0 : index
    %c0_26 = arith.constant 0 : index
    %42 = vector.load %arg4[%c6, %c0_25, %c0_26] : memref<9x8x128xbf16, #tpu.memory_space<vmem>>, vector<1x8x128xbf16>
    %43 = vector.shape_cast %42 : vector<1x8x128xbf16> to vector<8x128xbf16>
    %cst_27 = arith.constant dense<0.000000e+00> : vector<256x128xf32>
    %44 = tpu.matmul %41, %43, %cst_27 {dimension_numbers = #tpu.dot_dimension_numbers<[1], [0], [0], [1], [0, 0, 1, 1], [], []>} : vector<256x8xbf16>, vector<8x128xbf16>, vector<256x128xf32> -> vector<256x128xf32>
    %45 = arith.addf %39, %44 : vector<256x128xf32>
    %46 = vector.extract_strided_slice %4 {offsets = [2, 1, 0], sizes = [16, 16, 8], strides = [1, 1, 1]} : vector<18x18x8xbf16> to vector<16x16x8xbf16>
    %47 = vector.shape_cast %46 : vector<16x16x8xbf16> to vector<256x8xbf16>
    %c7 = arith.constant 7 : index
    %c0_28 = arith.constant 0 : index
    %c0_29 = arith.constant 0 : index
    %48 = vector.load %arg4[%c7, %c0_28, %c0_29] : memref<9x8x128xbf16, #tpu.memory_space<vmem>>, vector<1x8x128xbf16>
    %49 = vector.shape_cast %48 : vector<1x8x128xbf16> to vector<8x128xbf16>
    %cst_30 = arith.constant dense<0.000000e+00> : vector<256x128xf32>
    %50 = tpu.matmul %47, %49, %cst_30 {dimension_numbers = #tpu.dot_dimension_numbers<[1], [0], [0], [1], [0, 0, 1, 1], [], []>} : vector<256x8xbf16>, vector<8x128xbf16>, vector<256x128xf32> -> vector<256x128xf32>
    %51 = arith.addf %45, %50 : vector<256x128xf32>
    %52 = vector.extract_strided_slice %4 {offsets = [2, 2, 0], sizes = [16, 16, 8], strides = [1, 1, 1]} : vector<18x18x8xbf16> to vector<16x16x8xbf16>
    %53 = vector.shape_cast %52 : vector<16x16x8xbf16> to vector<256x8xbf16>
    %c8 = arith.constant 8 : index
    %c0_31 = arith.constant 0 : index
    %c0_32 = arith.constant 0 : index
    %54 = vector.load %arg4[%c8, %c0_31, %c0_32] : memref<9x8x128xbf16, #tpu.memory_space<vmem>>, vector<1x8x128xbf16>
    %55 = vector.shape_cast %54 : vector<1x8x128xbf16> to vector<8x128xbf16>
    %cst_33 = arith.constant dense<0.000000e+00> : vector<256x128xf32>
    %56 = tpu.matmul %53, %55, %cst_33 {dimension_numbers = #tpu.dot_dimension_numbers<[1], [0], [0], [1], [0, 0, 1, 1], [], []>} : vector<256x8xbf16>, vector<8x128xbf16>, vector<256x128xf32> -> vector<256x128xf32>
    %57 = arith.addf %51, %56 : vector<256x128xf32>
    %c0_34 = arith.constant 0 : index
    %c0_35 = arith.constant 0 : index
    %58 = vector.load %arg5[%c0_34, %c0_35] : memref<1x128xf32, #tpu.memory_space<vmem>>, vector<1x128xf32>
    %59 = vector.broadcast %58 : vector<1x128xf32> to vector<256x128xf32>
    %60 = arith.mulf %57, %59 : vector<256x128xf32>
    %c0_36 = arith.constant 0 : index
    %c0_37 = arith.constant 0 : index
    %61 = vector.load %arg6[%c0_36, %c0_37] : memref<1x128xf32, #tpu.memory_space<vmem>>, vector<1x128xf32>
    %62 = vector.broadcast %61 : vector<1x128xf32> to vector<256x128xf32>
    %63 = arith.addf %60, %62 : vector<256x128xf32>
    %cst_38 = arith.constant 0.000000e+00 : f32
    %64 = vector.broadcast %cst_38 : f32 to vector<256x128xf32>
    %65 = arith.maximumf %63, %64 : vector<256x128xf32>
    %c0_39 = arith.constant 0 : index
    %c0_40 = arith.constant 0 : index
    %66 = vector.load %arg7[%c0_39, %c0_40] : memref<256x128xf32, #tpu.memory_space<vmem>>, vector<256x128xf32>
    tpu.vector_store %arg7[%c0_39, %c0_40], %65 {strides = array<i32>} : memref<256x128xf32, #tpu.memory_space<vmem>>, vector<256x128xf32>,
    return
  }
  func.func @transform_0(%arg0: i32, %arg1: i32) -> (i32, i32, i32, i32) {
    %c0_i32 = arith.constant 0 : i32
    %c0_i32_0 = arith.constant 0 : i32
    %c0_i32_1 = arith.constant 0 : i32
    return %arg0, %arg1, %c0_i32, %c0_i32_0 : i32, i32, i32, i32
  }
  func.func @transform_1(%arg0: i32, %arg1: i32) -> (i32, i32, i32, i32) {
    %c1_i32 = arith.constant 1 : i32
    %0 = arith.addi %arg1, %c1_i32 : i32
    %c8_i32 = arith.constant 8 : i32
    %1 = arith.muli %0, %c8_i32 : i32
    %c0_i32 = arith.constant 0 : i32
    %c0_i32_0 = arith.constant 0 : i32
    %c0_i32_1 = arith.constant 0 : i32
    return %arg0, %1, %c0_i32, %c0_i32_0 : i32, i32, i32, i32
  }
  func.func @transform_2(%arg0: i32, %arg1: i32) -> (i32, i32, i32) {
    %c0_i32 = arith.constant 0 : i32
    %c0_i32_0 = arith.constant 0 : i32
    %c0_i32_1 = arith.constant 0 : i32
    %c0_i32_2 = arith.constant 0 : i32
    return %c0_i32, %c0_i32_0, %c0_i32_1 : i32, i32, i32
  }
  func.func @transform_3(%arg0: i32, %arg1: i32) -> (i32, i32) {
    %c0_i32 = arith.constant 0 : i32
    %c0_i32_0 = arith.constant 0 : i32
    %c0_i32_1 = arith.constant 0 : i32
    return %c0_i32, %c0_i32_0 : i32, i32
  }
  func.func @transform_4(%arg0: i32, %arg1: i32) -> (i32, i32) {
    %c0_i32 = arith.constant 0 : i32
    %c0_i32_0 = arith.constant 0 : i32
    %c0_i32_1 = arith.constant 0 : i32
    return %c0_i32, %c0_i32_0 : i32, i32
  }
  func.func @transform_5(%arg0: i32, %arg1: i32) -> (i32, i32) {
    %c1_i32 = arith.constant 1 : i32
    %0 = arith.muli %arg0, %c1_i32 : i32
    %1 = arith.addi %0, %arg1 : i32
    %c0_i32 = arith.constant 0 : i32
    %c0_i32_0 = arith.constant 0 : i32
    return %1, %c0_i32 : i32, i32
  }
}

</mosaic_0001>

<bundles_post_ra>
// kernel: double_conv2d.6
= control target key start
LH: loop header
LB: loop body
LE: loop exit
PB: predicated region body
PF: predicated region fallthrough
CT: control target
= control target key end

     0   :  { %s3999_s12 = smov 0   ;;  %s4001_s13 = smov 0   ;;  %s5419_s0 = inlined_call_operand.vmem [shape: bf16[2,18,18,8], index: 0, kind: input, shape index: {}, may-alias: {0,1}]   ;;  %s5420_s1 = inlined_call_operand.vmem [shape: bf16[2,18,18,8], index: 1, kind: input, shape index: {}, may-alias: {0,1}]   ;;  %s5421_s2 = inlined_call_operand.vmem [shape: bf16[9,8,128], index: 2, kind: input, shape index: {}]   ;;  %s5422_s3 = inlined_call_operand.vmem [shape: f32[2,2,128], index: 3, kind: output, shape index: {}]  }
   0x1   :  { %s4003_s14 = smov 0  }
   0x2 LB: > { %s25_s15 = sadd.s32 1, %s3973_s13  ;;  %p3207_p0 = scmp.ge.s32.totalorder %s3977_s14, 1  ;;  %s3977_s14 = sphi %s4003_s14, %s13_s14   ;;  %s3973_s13 = sphi %s4001_s13, %s5578_s13   ;;  %s3969_s12 = sphi %s3999_s12, %s5577_s12  }
   0x3   : > { %p27_p1 = scmp.ge.s32.totalorder %s25_s15, 2  ;;  %p195_p2 = scmp.lt.s32.totalorder %s3977_s14, 3 }
   0x5   : > { %s5580_s15 = smov (%p27_p1, %s25_s15), 0  ;;  %p196_p3 = pnand %p3207_p0, %p195_p2 }
   0x7   : > { %199 = sbr.rel (%p196_p3) target bundleno = 574 (0x23e), region = 32 }
   0xc   : > { %v3211_v0 = vld [vmem:[%s5421_s2 + $0x4] sm:$0xf]  ;;  %vm825_vm0 = vcmask 1043456   ;;  %p247_p4 = scmp.lt.s32.totalorder %s3969_s12, 1  ;;  %v338_v2 = vld [vmem:[%s5421_s2] sm:$0xf] }
   0xd   : > { %3901 = vmatprep.subr.msk.bf16.mxu1 %vm825_vm0, %v3211_v0  ;;  %3900 = vmatprep.subr.msk.bf16.mxu0 %vm825_vm0, %v3211_v0  ;;  %v827_v1 = vsel %vm825_vm0, %v3211_v0, 0  ;;  %v3292_v3 = vld [vmem:[%s5421_s2 + $0x8] sm:$0xf]  ;;  %vm339_vm1 = vsmask.f32 3328  ;;  %v4042_v4 = vsel %vm825_vm0, %v338_v2, 0 }
   0xe   : > { %3899 = vmatpush3.bf16.msra.mxu1 %v827_v1  ;;  %3593 = vmatpush3.bf16.msra.mxu0 %v827_v1  ;;  %s5582_s12 = smov (!%p247_p4, %s3969_s12), 1  ;;  %vm340_vm2 = vsmask.f32 7440  ;;  %v4045_v5 = vsel %vm825_vm0, %v3292_v3, 0  ;;  %vm776_vm3 = vcmask 64512   ;;  %v5466_v32 = vmov 0 }
   0xf   : > { %3902 = vmatprep.subr.msk.bf16.mxu1 %vm825_vm0, %v338_v2  ;;  %3903 = vmatprep.subr.msk.bf16.mxu0 %vm825_vm0, %v3292_v3  ;;  %s3910_s22 = smul.u32 216, %s5582_s12  ;;  %vm4084_vm4 = vmor %vm339_vm1, %vm340_vm2  ;;  %vm1298_vm5 = vcmask 1042432   ;;  %vm1299_vm6 = vcmask 1046532   ;;  %s3210_s19 = sshll.u32 %s5582_s12, 1  ;;  %vm3105_vm8 = vcmask 1040384  }
  0x10   : > { %v5467_v32 = vsel %vm4084_vm4, 4294967295, %v5466_v32  ;;  %vm4407_vm7 = vmor %vm1298_vm5, %vm1299_vm6 }
  0x11   : > { %s4039_s25 = scalar_lea.vmem %s5419_s0, %s3910_s22  ;;  %5468 = vst [vmem:[#allocation2_spill] sm:$0xff] %v5467_v32  ;;  %s3438_s7 = sadd.s32 192, %s3910_s22 }
  0x12   : > { %v4048_v6 = vld [vmem:[%s4039_s25] sm:$0xf]  ;;  %v4051_v7 = vld [vmem:[%s4039_s25 + $0x4] sm:$0xf]  ;;  %v4054_v8 = vld [vmem:[%s4039_s25 + $0x8] sm:$0x1]  ;;  %s4714_s10 = scalar_lea.vmem %s5420_s1, %s3438_s7  ;;  %s281_s22 = scalar_lea.vmem %s5422_s3, %s3210_s19 }
  0x13   : > { %v343_v9 = vshrl.u32 %v4048_v6, 16  ;;  %v346_v10 = vshll.u32 %v4048_v6, 16  ;;  %v352_v11 = vshll.u32 %v4051_v7, 16  ;;  %v356_v12 = vshrl.u32 %v4051_v7, 16  ;;  %v4061_v13 = vld [vmem:[%s4039_s25 + $0x60] sm:$0xf] }
  0x14   : > { %v362_v14 = vshll.u32 %v4054_v8, 16  ;;  %v4066_v16 = vld [vmem:[%s4039_s25 + $0x64] sm:$0xf]  ;;  %v4069_v17 = vld [vmem:[%s4039_s25 + $0x68] sm:$0x1]  ;;  %v535_v23 = vshrl.u32 %v4061_v13, 16 }
  0x15   : > { %v345_v18 = vrot.slane %v343_v9, 4  ;;  %v348_v19 = vrot.slane %v346_v10, 5  ;;  %v354_v20 = vrot.slane %v352_v11, 5  ;;  %v358_v21 = vrot.slane %v356_v12, 4  ;;  %v4077_v30 = vld [vmem:[%s4039_s25 + $0xc] sm:$0xf] }
  0x16   : > { %v364_v22 = vrot.slane %v362_v14, 5  ;;  %v538_v24 = vshll.u32 %v4061_v13, 16  ;;  %v544_v25 = vshll.u32 %v4066_v16, 16  ;;  %v548_v28 = vshrl.u32 %v4066_v16, 16  ;;  %v4080_v31 = vld [vmem:[%s4039_s25 + $0x10] sm:$0xf] }
  0x17   : > { %v349_v26 = vor.u32 %v348_v19, %v345_v18  ;;  %v359_v27 = vor.u32 %v358_v21, %v354_v20  ;;  %v554_v29 = vshll.u32 %v4069_v17, 16  ;;  %v537_v33 = vrot.slane %v535_v23, 4  ;;  %v4091_v42 = vld [vmem:[%s4039_s25 + $0x14] sm:$0x1]  ;;  %v4102_v54 = vld [vmem:[%s4039_s25 + $0x6c] sm:$0xf] }
  0x18   : > { %v540_v34 = vrot.slane %v538_v24, 5  ;;  %v546_v35 = vrot.slane %v544_v25, 5  ;;  %v550_v39 = vrot.slane %v548_v28, 4  ;;  %v367_v43 = vshrl.u32 %v4077_v30, 16  ;;  %5469 = vst [vmem:[#allocation3_spill] sm:$0xff] %v4102_v54 }
  0x19   : > { %v350_v37 = vrot.slane %v349_v26, 4  ;;  %v360_v38 = vrot.slane %v359_v27, 4  ;;  %v556_v40 = vrot.slane %v554_v29, 5  ;;  %v370_v44 = vshll.u32 %v4077_v30, 16  ;;  %v4106_v59 = vld [vmem:[%s4039_s25 + $0x70] sm:$0xf] }
  0x1a   : > { %v541_v41 = vor.u32 %v540_v34, %v537_v33  ;;  %v376_v45 = vshll.u32 %v4080_v31, 16  ;;  %v551_v48 = vor.u32 %v550_v39, %v546_v35  ;;  %v380_v49 = vshrl.u32 %v4080_v31, 16  ;;  %v4114_v0 = vld [vmem:[%s4039_s25 + $0x74] sm:$0x1]  ;;  %v4120_v10 = vld [vmem:[%s4039_s25 + $0x18] sm:$0xf] }
  0x1b   : > { %v355_v46 = vsel %vm4084_vm4, %v350_v37, %v354_v20  ;;  %v365_v47 = vsel %vm4084_vm4, %v360_v38, %v364_v22  ;;  %v369_v52 = vrot.slane %v367_v43, 4  ;;  %v372_v53 = vrot.slane %v370_v44, 5  ;;  %5470 = vst [vmem:[#allocation4_spill] sm:$0xff] %v4114_v0  ;;  %v4129_v23 = vld [vmem:[%s4039_s25 + $0x1c] sm:$0xf] }
  0x1c   : > { %v3212_v50 = vcombine.low %v355_v46, %v365_v47  ;;  %v542_v51 = vrot.slane %v541_v41, 4  ;;  %v552_v55 = vrot.slane %v551_v48, 4  ;;  %v378_v56 = vrot.slane %v376_v45, 5  ;;  %v4136_v27 = vld [vmem:[%s4039_s25 + $0x20] sm:$0x1] }
  0x1d   : > { %v382_v57 = vrot.slane %v380_v49, 4  ;;  %v386_v58 = vshll.u32 %v4091_v42, 16  ;;  %v373_v61 = vor.u32 %v372_v53, %v369_v52  ;;  %v559_v9 = vshrl.u32 %v4102_v54, 16  ;;  %v4143_v37 = vld [vmem:[%s4039_s25 + $0x78] sm:$0xf] }
  0x1e   : > { %3594 = vmatprep.mubr.msk.bf16.mxu0 %vm776_vm3, %v3212_v50  ;;  %v547_v60 = vsel %vm4084_vm4, %v542_v51, %v546_v35  ;;  %v557_v1 = vsel %vm4084_vm4, %v552_v55, %v556_v40  ;;  %v562_v14 = vshll.u32 %v4102_v54, 16  ;;  %v568_v18 = vshll.u32 %v4106_v59, 16  ;;  %5472 = vst [vmem:[#allocation6_spill] sm:$0xff] %v4143_v37  ;;  %v4151_v43 = vld [vmem:[%s5421_s2 + $0x10] sm:$0xf] }
  0x1f   : > { %v383_v2 = vor.u32 %v382_v57, %v378_v56  ;;  %v388_v3 = vrot.slane %v386_v58, 5  ;;  %v4122_v11 = vcombine.low %v547_v60, %v557_v1  ;;  %v374_v12 = vrot.slane %v373_v61, 4  ;;  %v4156_v48 = vld [vmem:[%s4039_s25 + $0x7c] sm:$0xf]  ;;  %v4164_v58 = vld [vmem:[%s4039_s25 + $0x80] sm:$0x1] }
  0x20   : > { %v561_v20 = vrot.slane %v559_v9, 4  ;;  %v572_v21 = vshrl.u32 %v4106_v59, 16  ;;  %v578_v22 = vshll.u32 %v4114_v0, 16  ;;  %v564_v25 = vrot.slane %v562_v14, 5  ;;  %5474 = vst [vmem:[#allocation8_spill] sm:$0xff] %v4156_v48  ;;  %5475 = vst [vmem:[#allocation9_spill] sm:$0xff] %v4164_v58 }
  0x21   : > { %5471 = vst [vmem:[#allocation5_spill] sm:$0xff] %v4122_v11  ;;  %v384_v19 = vrot.slane %v383_v2, 4  ;;  %3610 = vmatprep.mubr.msk.bf16.mxu1 %vm776_vm3, %v4122_v11  ;;  %v379_v24 = vsel %vm4084_vm4, %v374_v12, %v378_v56  ;;  %v570_v26 = vrot.slane %v568_v18, 5  ;;  %v391_v28 = vshrl.u32 %v4120_v10, 16  ;;  %v4178_v18 = vld [vmem:[%s4039_s25 + $0x28] sm:$0xf] }
  0x22   : > { %v574_v33 = vrot.slane %v572_v21, 4  ;;  %v580_v34 = vrot.slane %v578_v22, 5  ;;  %v394_v35 = vshll.u32 %v4120_v10, 16  ;;  %v565_v39 = vor.u32 %v564_v25, %v561_v20 }
  0x23   : > { %v389_v29 = vsel %vm4084_vm4, %v384_v19, %v388_v3  ;;  %v393_v40 = vrot.slane %v391_v28, 4  ;;  %v400_v41 = vshll.u32 %v4129_v23, 16  ;;  %v404_v46 = vshrl.u32 %v4129_v23, 16  ;;  %v4170_v3 = vld [vmem:[%s4039_s25 + $0x24] sm:$0xf] }
  0x24   : > { %v4145_v38 = vcombine.low %v379_v24, %v389_v29  ;;  %v575_v44 = vor.u32 %v574_v33, %v570_v26  ;;  %v396_v45 = vrot.slane %v394_v35, 5  ;;  %v410_v47 = vshll.u32 %v4136_v27, 16  ;;  %v4186_v24 = vld [vmem:[%s5421_s2 + $0xc] sm:$0xf] }
  0x25   : > { %v566_v49 = vrot.slane %v565_v39, 4  ;;  %v402_v50 = vrot.slane %v400_v41, 5  ;;  %v583_v51 = vshrl.u32 %v4143_v37, 16  ;;  %v586_v52 = vshll.u32 %v4143_v37, 16  ;;  %v4191_v29 = vld [vmem:[%s4039_s25 + $0x2c] sm:$0x1] }
  0x26   : > { %5473 = vst [vmem:[#allocation7_spill] sm:$0xff] %v4145_v38  ;;  %3595 = vmatmul.mubr.msk.bf16.vlgmr.msra.gmra.mxu0 %vm776_vm3, %v4145_v38  ;;  %v576_v53 = vrot.slane %v575_v44, 4  ;;  %v397_v55 = vor.u32 %v396_v45, %v393_v40  ;;  %v406_v56 = vrot.slane %v404_v46, 4  ;;  %v412_v57 = vrot.slane %v410_v47, 5  ;;  %v4199_v41 = vld [vmem:[%s4039_s25 + $0x84] sm:$0xf] }
  0x27   : > { %3661 = vmatpush3.bf16.msra.mxu0 %v4045_v5  ;;  %v571_v60 = vsel %vm4084_vm4, %v566_v49, %v570_v26  ;;  %v585_v61 = vrot.slane %v583_v51, 4  ;;  %v588_v1 = vrot.slane %v586_v52, 5  ;;  %v592_v2 = vshll.u32 %v4156_v48, 16  ;;  %v4206_v49 = vld [vmem:[%s4039_s25 + $0x88] sm:$0xf] }
  0x28   : > { %3905 = vmatprep.subr.msk.bf16.mxu0 %vm825_vm0, %v4151_v43  ;;  %v581_v5 = vsel %vm4084_vm4, %v576_v53, %v580_v34  ;;  %v398_v9 = vrot.slane %v397_v55, 4  ;;  %v407_v12 = vor.u32 %v406_v56, %v402_v50  ;;  %v596_v14 = vshrl.u32 %v4156_v48, 16  ;;  %v4346_v38 = vld [vmem:[%s4039_s25 + $0xb0] sm:$0x1]  ;;  %v4368_v48 = vld [vmem:[%s4039_s25 + $0x5c] sm:$0x1] }
  0x29   : > { %v4180_v19 = vcombine.low %v571_v60, %v581_v5  ;;  %v589_v20 = vor.u32 %v588_v1, %v585_v61  ;;  %v594_v21 = vrot.slane %v592_v2, 5  ;;  %v602_v22 = vshll.u32 %v4164_v58, 16  ;;  %5487 = vst [vmem:[#allocation21_spill] sm:$0xff] %v4346_v38 }
  0x2a   : > { %v403_v25 = vsel %vm4084_vm4, %v398_v9, %v402_v50  ;;  %v408_v26 = vrot.slane %v407_v12, 4  ;;  %v598_v28 = vrot.slane %v596_v14, 4  ;;  %v415_v33 = vshrl.u32 %v4170_v3, 16  ;;  %v4225_v9 = vld [vmem:[%s4039_s25 + $0x30] sm:$0xf] }
  0x2b   : > { %5476 = vst [vmem:[#allocation10_spill] sm:$0xff] %v4180_v19  ;;  %3611 = vmatmul.mubr.msk.bf16.vlgmr.msra.gmra.mxu1 %vm776_vm3, %v4180_v19  ;;  %v590_v34 = vrot.slane %v589_v20, 4  ;;  %v604_v35 = vrot.slane %v602_v22, 5  ;;  %v418_v39 = vshll.u32 %v4170_v3, 16  ;;  %v424_v40 = vshll.u32 %v4178_v18, 16 }
  0x2c   : > { %3627 = vmatpush3.bf16.msra.mxu1 %v4042_v4  ;;  %v413_v44 = vsel %vm4084_vm4, %v408_v26, %v412_v57  ;;  %v599_v45 = vor.u32 %v598_v28, %v594_v21  ;;  %v417_v46 = vrot.slane %v415_v33, 4  ;;  %v428_v47 = vshrl.u32 %v4178_v18, 16  ;;  %v4216_v57 = vld [vmem:[%s4039_s25 + $0x8c] sm:$0x1]  ;;  %v4230_v22 = vld [vmem:[%s4039_s25 + $0x34] sm:$0xf] }
  0x2d   : > { %v4208_v50 = vcombine.low %v403_v25, %v413_v44  ;;  %v595_v51 = vsel %vm4084_vm4, %v590_v34, %v594_v21  ;;  %v420_v52 = vrot.slane %v418_v39, 5  ;;  %v426_v53 = vrot.slane %v424_v40, 5  ;;  %3904 = vmatprep.subr.msk.bf16.mxu1 %vm825_vm0, %v4186_v24 }
  0x2e   : > { %v600_v4 = vrot.slane %v599_v45, 4  ;;  %v430_v55 = vrot.slane %v428_v47, 4  ;;  %v434_v56 = vshll.u32 %v4191_v29, 16  ;;  %v607_v60 = vshrl.u32 %v4199_v41, 16 }
  0x2f   : > { %5477 = vst [vmem:[#allocation11_spill] sm:$0xff] %v4208_v50  ;;  %3598 = vmatprep.mubr.msk.bf16.mxu0 %vm776_vm3, %v4208_v50  ;;  %v421_v61 = vor.u32 %v420_v52, %v417_v46  ;;  %v610_v1 = vshll.u32 %v4199_v41, 16  ;;  %v616_v2 = vshll.u32 %v4206_v49, 16  ;;  %v620_v5 = vshrl.u32 %v4206_v49, 16  ;;  %v4241_v46 = vld [vmem:[%s4039_s25 + $0x38] sm:$0x1] }
  0x30   : > { %v605_v12 = vsel %vm4084_vm4, %v600_v4, %v604_v35  ;;  %v431_v14 = vor.u32 %v430_v55, %v426_v53  ;;  %v436_v20 = vrot.slane %v434_v56, 5  ;;  %v609_v21 = vrot.slane %v607_v60, 4  ;;  %v4246_v52 = vld [vmem:[%s4039_s25 + $0x90] sm:$0xf] }
  0x31   : > { %v4232_v25 = vcombine.low %v595_v51, %v605_v12  ;;  %v422_v26 = vrot.slane %v421_v61, 4  ;;  %v612_v28 = vrot.slane %v610_v1, 5  ;;  %v618_v33 = vrot.slane %v616_v2, 5  ;;  %v4251_v61 = vld [vmem:[%s4039_s25 + $0x94] sm:$0xf] }
  0x32   : > { %v432_v34 = vrot.slane %v431_v14, 4  ;;  %v622_v39 = vrot.slane %v620_v5, 4  ;;  %v626_v40 = vshll.u32 %v4216_v57, 16  ;;  %v439_v44 = vshrl.u32 %v4225_v9, 16 }
  0x33   : > { %5478 = vst [vmem:[#allocation12_spill] sm:$0xff] %v4232_v25  ;;  %3614 = vmatprep.mubr.msk.bf16.mxu1 %vm776_vm3, %v4232_v25  ;;  %v427_v35 = vsel %vm4084_vm4, %v422_v26, %v426_v53  ;;  %v613_v45 = vor.u32 %v612_v28, %v609_v21  ;;  %v442_v47 = vshll.u32 %v4225_v9, 16  ;;  %v448_v51 = vshll.u32 %v4230_v22, 16  ;;  %v4297_v25 = vld [vmem:[%s4039_s25 + $0xa0] sm:$0xf] }
  0x34   : > { %v437_v4 = vsel %vm4084_vm4, %v432_v34, %v436_v20  ;;  %v623_v55 = vor.u32 %v622_v39, %v618_v33  ;;  %v628_v56 = vrot.slane %v626_v40, 5  ;;  %v441_v60 = vrot.slane %v439_v44, 4  ;;  %v4263_v34 = vld [vmem:[%s4039_s25 + $0x98] sm:$0x1]  ;;  %v4268_v44 = vld [vmem:[%s4039_s25 + $0x3c] sm:$0xf] }
  0x35   : > { %v4253_v53 = vcombine.low %v427_v35, %v437_v4  ;;  %v614_v1 = vrot.slane %v613_v45, 4  ;;  %v444_v2 = vrot.slane %v442_v47, 5  ;;  %v450_v5 = vrot.slane %v448_v51, 5  ;;  %v4273_v4 = vld [vmem:[%s4039_s25 + $0x40] sm:$0xf] }
  0x36   : > { %v624_v12 = vrot.slane %v623_v55, 4  ;;  %v452_v14 = vshrl.u32 %v4230_v22, 16  ;;  %v458_v21 = vshll.u32 %v4241_v46, 16  ;;  %v631_v20 = vshrl.u32 %v4246_v52, 16 }
  0x37   : > { %5479 = vst [vmem:[#allocation13_spill] sm:$0xff] %v4253_v53  ;;  %3599 = vmatmul.mubr.msk.bf16.gmra.mxu0 %vm776_vm3, %v4253_v53  ;;  %v619_v26 = vsel %vm4084_vm4, %v614_v1, %v618_v33  ;;  %v445_v28 = vor.u32 %v444_v2, %v441_v60  ;;  %v634_v39 = vshll.u32 %v4246_v52, 16  ;;  %v640_v40 = vshll.u32 %v4251_v61, 16 }
  0x38   : > { %v629_v35 = vsel %vm4084_vm4, %v624_v12, %v628_v56  ;;  %v454_v45 = vrot.slane %v452_v14, 4  ;;  %v460_v47 = vrot.slane %v458_v21, 5  ;;  %v633_v51 = vrot.slane %v631_v20, 4  ;;  %v4285_v14 = vld [vmem:[%s4039_s25 + $0x44] sm:$0x1] }
  0x39   : > { %v4275_v33 = vcombine.low %v619_v26, %v629_v35  ;;  %v446_v55 = vrot.slane %v445_v28, 4  ;;  %v636_v60 = vrot.slane %v634_v39, 5  ;;  %v642_v1 = vrot.slane %v640_v40, 5  ;;  %v4290_v26 = vld [vmem:[%s4039_s25 + $0x9c] sm:$0xf] }
  0x3a   : > { %v455_v2 = vor.u32 %v454_v45, %v450_v5  ;;  %v644_v36 = vshrl.u32 %v4251_v61, 16  ;;  %v650_v63 = vshll.u32 %v4263_v34, 16  ;;  %v463_v15 = vshrl.u32 %v4268_v44, 16 }
  0x3b   : > { %5480 = vst [vmem:[#allocation14_spill] sm:$0xff] %v4275_v33  ;;  %3615 = vmatmul.mubr.msk.bf16.gmra.mxu1 %vm776_vm3, %v4275_v33  ;;  %v451_v56 = vsel %vm4084_vm4, %v446_v55, %v450_v5  ;;  %v637_v12 = vor.u32 %v636_v60, %v633_v51  ;;  %v466_v21 = vshll.u32 %v4268_v44, 16  ;;  %v472_v20 = vshll.u32 %v4273_v4, 16 }
  0x3c   : > { %v456_v28 = vrot.slane %v455_v2, 4  ;;  %v646_v39 = vrot.slane %v644_v36, 4  ;;  %v652_v40 = vrot.slane %v650_v63, 5  ;;  %v465_v35 = vrot.slane %v463_v15, 4 }
  0x3d   : > { %v638_v45 = vrot.slane %v637_v12, 4  ;;  %v468_v62 = vrot.slane %v466_v21, 5  ;;  %v474_v33 = vrot.slane %v472_v20, 5  ;;  %v476_v5 = vshrl.u32 %v4273_v4, 16  ;;  %v4305_v21 = vld [vmem:[%s4039_s25 + $0xa4] sm:$0x1] }
  0x3e   : > { %v461_v51 = vsel %vm4084_vm4, %v456_v28, %v460_v47  ;;  %v647_v55 = vor.u32 %v646_v39, %v642_v1  ;;  %v482_v60 = vshll.u32 %v4285_v14, 16  ;;  %v655_v2 = vshrl.u32 %v4290_v26, 16  ;;  %5482 = vst [vmem:[#allocation16_spill] sm:$0xff] %v4305_v21  ;;  %v4308_v20 = vld [vmem:[%s4039_s25 + $0x48] sm:$0xf] }
  0x3f   : > { %v4300_v36 = vcombine.low %v451_v56, %v461_v51  ;;  %v643_v15 = vsel %vm4084_vm4, %v638_v45, %v642_v1  ;;  %v469_v63 = vor.u32 %v468_v62, %v465_v35  ;;  %v478_v12 = vrot.slane %v476_v5, 4 }
  0x40   : > { %v648_v47 = vrot.slane %v647_v55, 4  ;;  %v484_v28 = vrot.slane %v482_v60, 5  ;;  %v657_v39 = vrot.slane %v655_v2, 4  ;;  %v658_v19 = vshll.u32 %v4290_v26, 16  ;;  %v4319_v55 = vld [vmem:[%s4039_s25 + $0x4c] sm:$0xf] }
  0x41   : > { %5481 = vst [vmem:[#allocation15_spill] sm:$0xff] %v4300_v36  ;;  %3602 = vmatprep.mubr.msk.bf16.mxu0 %vm776_vm3, %v4300_v36  ;;  %v470_v56 = vrot.slane %v469_v63, 4  ;;  %v479_v51 = vor.u32 %v478_v12, %v474_v33  ;;  %v664_v1 = vshll.u32 %v4297_v25, 16  ;;  %v668_v62 = vshrl.u32 %v4297_v25, 16  ;;  %v4327_v36 = vld [vmem:[%s4039_s25 + $0x50] sm:$0x1] }
  0x42   : > { %v653_v35 = vsel %vm4084_vm4, %v648_v47, %v652_v40  ;;  %v660_v45 = vrot.slane %v658_v19, 5  ;;  %v674_v5 = vshll.u32 %v4305_v21, 16  ;;  %v487_v60 = vshrl.u32 %v4308_v20, 16  ;;  %v4330_v47 = vld [vmem:[%s4039_s25 + $0xa8] sm:$0xf] }
  0x43   : > { %v4322_v2 = vcombine.low %v643_v15, %v653_v35  ;;  %v475_v63 = vsel %vm4084_vm4, %v470_v56, %v474_v33  ;;  %v480_v12 = vrot.slane %v479_v51, 4  ;;  %v666_v11 = vrot.slane %v664_v1, 5  ;;  %5484 = vst [vmem:[#allocation18_spill] sm:$0xff] %v4330_v47 }
  0x44   : > { %v661_v53 = vor.u32 %v660_v45, %v657_v39  ;;  %v670_v50 = vrot.slane %v668_v62, 4  ;;  %v676_v40 = vrot.slane %v674_v5, 5  ;;  %v489_v19 = vrot.slane %v487_v60, 4  ;;  %v4343_v45 = vld [vmem:[%s4039_s25 + $0xac] sm:$0xf] }
  0x45   : > { %5483 = vst [vmem:[#allocation17_spill] sm:$0xff] %v4322_v2  ;;  %3618 = vmatprep.mubr.msk.bf16.mxu1 %vm776_vm3, %v4322_v2  ;;  %v485_v15 = vsel %vm4084_vm4, %v480_v12, %v484_v28  ;;  %v490_v33 = vshll.u32 %v4308_v20, 16  ;;  %v496_v56 = vshll.u32 %v4319_v55, 16  ;;  %v500_v51 = vshrl.u32 %v4319_v55, 16  ;;  %5486 = vst [vmem:[#allocation20_spill] sm:$0xff] %v4343_v45 }
  0x46   : > { %v4339_v1 = vcombine.low %v475_v63, %v485_v15  ;;  %v662_v39 = vrot.slane %v661_v53, 4  ;;  %v671_v62 = vor.u32 %v670_v50, %v666_v11  ;;  %v506_v35 = vshll.u32 %v4327_v36, 16 }
  0x47   : > { %v492_v5 = vrot.slane %v490_v33, 5  ;;  %v498_v60 = vrot.slane %v496_v56, 5  ;;  %v502_v2 = vrot.slane %v500_v51, 4  ;;  %v679_v28 = vshrl.u32 %v4330_v47, 16  ;;  %v4356_v51 = vld [vmem:[%s4039_s25 + $0x54] sm:$0xf] }
  0x48   : > { %5485 = vst [vmem:[#allocation19_spill] sm:$0xff] %v4339_v1  ;;  %3603 = vmatmul.mubr.msk.bf16.gmra.mxu0 %vm776_vm3, %v4339_v1  ;;  %v667_v53 = vsel %vm4084_vm4, %v662_v39, %v666_v11  ;;  %v672_v50 = vrot.slane %v671_v62, 4  ;;  %v508_v63 = vrot.slane %v506_v35, 5  ;;  %v682_v12 = vshll.u32 %v4330_v47, 16  ;;  %v4363_v62 = vld [vmem:[%s4039_s25 + $0x58] sm:$0xf] }
  0x49   : > { %v493_v15 = vor.u32 %v492_v5, %v489_v19  ;;  %v503_v58 = vor.u32 %v502_v2, %v498_v60  ;;  %v681_v33 = vrot.slane %v679_v28, 4  ;;  %v688_v56 = vshll.u32 %v4343_v45, 16 }
  0x4a   : > { %v677_v1 = vsel %vm4084_vm4, %v672_v50, %v676_v40  ;;  %v684_v37 = vrot.slane %v682_v12, 5  ;;  %v692_v11 = vshrl.u32 %v4343_v45, 16  ;;  %v698_v39 = vshll.u32 %v4346_v38, 16 }
  0x4b   : > { %v4365_v2 = vcombine.low %v667_v53, %v677_v1  ;;  %v494_v19 = vrot.slane %v493_v15, 4  ;;  %v504_v35 = vrot.slane %v503_v58, 4  ;;  %v690_v5 = vrot.slane %v688_v56, 5 }
  0x4c   : > { %v685_v28 = vor.u32 %v684_v37, %v681_v33  ;;  %v694_v0 = vrot.slane %v692_v11, 4  ;;  %v700_v54 = vrot.slane %v698_v39, 5  ;;  %v511_v40 = vshrl.u32 %v4356_v51, 16  ;;  %v4380_v37 = vld [vmem:[%s4039_s25 + $0xb4] sm:$0xf] }
  0x4d   : > { %5488 = vst [vmem:[#allocation22_spill] sm:$0xff] %v4365_v2  ;;  %3619 = vmatmul.mubr.msk.bf16.gmra.mxu1 %vm776_vm3, %v4365_v2  ;;  %v499_v50 = vsel %vm4084_vm4, %v494_v19, %v498_v60  ;;  %v509_v1 = vsel %vm4084_vm4, %v504_v35, %v508_v63  ;;  %v514_v58 = vshll.u32 %v4356_v51, 16  ;;  %v520_v53 = vshll.u32 %v4363_v62, 16  ;;  %5489 = vst [vmem:[#allocation23_spill] sm:$0xff] %v4380_v37  ;;  %v4385_v11 = vld [vmem:[%s4039_s25 + $0xb8] sm:$0xf] }
  0x4e   : > { %v4382_v12 = vcombine.low %v499_v50, %v509_v1  ;;  %v686_v15 = vrot.slane %v685_v28, 4  ;;  %v695_v33 = vor.u32 %v694_v0, %v690_v5  ;;  %v513_v56 = vrot.slane %v511_v40, 4 }
  0x4f   : > { %v516_v39 = vrot.slane %v514_v58, 5  ;;  %v522_v2 = vrot.slane %v520_v53, 5  ;;  %v524_v60 = vshrl.u32 %v4363_v62, 16  ;;  %v530_v63 = vshll.u32 %v4368_v48, 16  ;;  %v4396_v58 = vld [vmem:[%s4039_s25 + $0xbc] sm:$0x1] }
  0x50   : > { %5490 = vst [vmem:[#allocation24_spill] sm:$0xff] %v4382_v12  ;;  %3606 = vmatprep.mubr.msk.bf16.mxu0 %vm776_vm3, %v4382_v12  ;;  %v691_v19 = vsel %vm4084_vm4, %v686_v15, %v690_v5  ;;  %v696_v35 = vrot.slane %v695_v33, 4  ;;  %v703_v28 = vshrl.u32 %v4380_v37, 16  ;;  %v706_v0 = vshll.u32 %v4380_v37, 16 }
  0x51   : > { %v517_v40 = vor.u32 %v516_v39, %v513_v56  ;;  %v526_v50 = vrot.slane %v524_v60, 4  ;;  %v532_v1 = vrot.slane %v530_v63, 5  ;;  %v712_v53 = vshll.u32 %v4385_v11, 16 }
  0x52   : > { %v701_v38 = vsel %vm4084_vm4, %v696_v35, %v700_v54  ;;  %v705_v47 = vrot.slane %v703_v28, 4  ;;  %v708_v12 = vrot.slane %v706_v0, 5  ;;  %v716_v45 = vshrl.u32 %v4385_v11, 16 }
  0x53   : > { %v4402_v5 = vcombine.low %v691_v19, %v701_v38  ;;  %v518_v15 = vrot.slane %v517_v40, 4  ;;  %v527_v33 = vor.u32 %v526_v50, %v522_v2  ;;  %v714_v21 = vrot.slane %v712_v53, 5 }
  0x54   : > { %v709_v37 = vor.u32 %v708_v12, %v705_v47  ;;  %v718_v56 = vrot.slane %v716_v45, 4  ;;  %v722_v39 = vshll.u32 %v4396_v58, 16  ;;  %v3276_v54 = vrot.slane %v4048_v6, 9 }
  0x55   : > { %3622 = vmatprep.mubr.msk.bf16.mxu1 %vm776_vm3, %v4402_v5  ;;  %v523_v38 = vsel %vm4084_vm4, %v518_v15, %v522_v2  ;;  %v528_v63 = vrot.slane %v527_v33, 4  ;;  %v1303_v47 = vrot.slane %v4051_v7, 5  ;;  %v4419_v45 = vcombine.low %v4077_v30, %v4080_v31 }
  0x56   : > { %v710_v12 = vrot.slane %v709_v37, 4  ;;  %v719_v19 = vor.u32 %v718_v56, %v714_v21  ;;  %v724_v35 = vrot.slane %v722_v39, 5  ;;  %v3277_v28 = vrot.slane %v4077_v30, 9 }
  0x57   : > { %v533_v0 = vsel %vm4084_vm4, %v528_v63, %v532_v1  ;;  %v1304_v40 = vsel %vm4407_vm7, %v3276_v54, %v1303_v47  ;;  %v1305_v50 = vrot.slane %v1303_v47, 4  ;;  %v5493_v2 = vrot.slane %v4080_v31, 5 }
  0x58   : > { %v4428_v15 = vcombine.low %v523_v38, %v533_v0  ;;  %v715_v33 = vsel %vm4084_vm4, %v710_v12, %v714_v21  ;;  %v720_v37 = vrot.slane %v719_v19, 4  ;;  %v5495_v1 = vrot.slane %v4054_v8, 5 }
  0x59   : > { %v1312_v53 = vrot.slane %v5493_v2, 4  ;;  %v5494_v56 = vmov %v5493_v2  ;;  %v5496_v54 = vrot.slane %v4091_v42, 5  ;;  %v4446_v63 = vcombine.low %v4120_v10, %v4129_v23 }
  0x5a   : > { %v1311_v30 = vsel %vm4407_vm7, %v3277_v28, %v5494_v56  ;;  %v1307_v39 = vsel %vm4407_vm7, %v1305_v50, %v5495_v1  ;;  %v3278_v21 = vrot.slane %v4120_v10, 9  ;;  %3607 = vmatmul.mubr.msk.bf16.gmra.mxu0 %vm776_vm3, %v4428_v15  ;;  %v725_v8 = vsel %vm4084_vm4, %v720_v37, %v724_v35 }
  0x5b   : > { %v1314_v38 = vsel %vm4407_vm7, %v1312_v53, %v5496_v54  ;;  %v3293_v31 = vcombine.low %v1304_v40, %v1307_v39  ;;  %v1317_v42 = vrot.slane %v4129_v23, 5  ;;  %v4456_v12 = vcombine.low %v715_v33, %v725_v8 }
  0x5c   : > { %v4453_v47 = vcombine.low %v1311_v30, %v1314_v38  ;;  %v1320_v19 = vrot.slane %v4136_v27, 5  ;;  %v1324_v0 = vrot.slane %v4178_v18, 5  ;;  %v3279_v35 = vrot.slane %v4170_v3, 9 }
  0x5d   : > { %5497 = vst [vmem:[#allocation25_spill] sm:$0xff] %v4456_v12  ;;  %3662 = vmatprep.mubr.msk.bf16.mxu0 %vm776_vm3, %v3293_v31  ;;  %v1318_v10 = vsel %vm4407_vm7, %v3278_v21, %v1317_v42  ;;  %v1319_v28 = vrot.slane %v1317_v42, 4  ;;  %3623 = vmatmul.mubr.msk.bf16.gmra.mxu1 %vm776_vm3, %v4456_v12  ;;  %v3280_v40 = vrot.slane %v4225_v9, 9  ;;  %v1331_v23 = vrot.slane %v4230_v22, 5 }
  0x5e   : > { %v5498_v27 = vcombine.low %v4048_v6, %v4051_v7  ;;  %v1326_v2 = vrot.slane %v1324_v0, 4  ;;  %v1327_v53 = vrot.slane %v4191_v29, 5  ;;  %v1334_v33 = vrot.slane %v4241_v46, 5  ;;  %v4491_v46 = vld [vmem:[%s5421_s2 + $0x18] sm:$0xf] }
  0x5f   : > { %v1321_v50 = vsel %vm4407_vm7, %v1319_v28, %v1320_v19  ;;  %v1333_v56 = vrot.slane %v1331_v23, 4  ;;  %v1946_v30 = vsel %vm825_vm0, %v4151_v43, 0  ;;  %v1338_v1 = vrot.slane %v4273_v4, 5  ;;  %v4508_v19 = vld [vmem:[%s5421_s2 + $0x14] sm:$0xf] }
  0x60   : > { %3628 = vmatprep.mubr.msk.bf16.mxu1 %vm776_vm3, %v5498_v27  ;;  %v4476_v37 = vcombine.low %v1318_v10, %v1321_v50  ;;  %v1718_v6 = vsel %vm825_vm0, %v4186_v24, 0  ;;  %v1325_v7 = vsel %vm4407_vm7, %v3279_v35, %v1324_v0  ;;  %v1332_v39 = vsel %vm4407_vm7, %v3280_v40, %v1331_v23 }
  0x61   : > { %v1345_v29 = vrot.slane %v4319_v55, 5  ;;  %v1328_v43 = vsel %vm4407_vm7, %v1326_v2, %v1327_v53  ;;  %v1335_v24 = vsel %vm4407_vm7, %v1333_v56, %v1334_v33  ;;  %v3281_v54 = vrot.slane %v4268_v44, 9 }
  0x62   : > { %3663 = vmatmul.mubr.msk.bf16.vlgmr.msra.gmra.mxu0 %vm776_vm3, %v4453_v47  ;;  %v1341_v38 = vrot.slane %v4285_v14, 5  ;;  %v1340_v21 = vrot.slane %v1338_v1, 4  ;;  %v3282_v8 = vrot.slane %v4308_v20, 9  ;;  %v1348_v42 = vrot.slane %v4327_v36, 5 }
  0x63   : > { %3729 = vmatpush3.bf16.msra.mxu0 %v1946_v30  ;;  %3666 = vmatprep.mubr.msk.bf16.mxu0 %vm776_vm3, %v4476_v37  ;;  %v1347_v31 = vrot.slane %v1345_v29, 4  ;;  %v4516_v14 = vcombine.low %v1325_v7, %v1328_v43  ;;  %v4518_v10 = vcombine.low %v1332_v39, %v1335_v24  ;;  %v1339_v36 = vsel %vm4407_vm7, %v3281_v54, %v1338_v1 }
  0x64   : > { %3907 = vmatprep.subr.msk.bf16.mxu0 %vm825_vm0, %v4491_v46  ;;  %v1342_v28 = vsel %vm4407_vm7, %v1340_v21, %v1341_v38  ;;  %v1346_v0 = vsel %vm4407_vm7, %v3282_v8, %v1345_v29  ;;  %v1352_v40 = vrot.slane %v4363_v62, 5  ;;  %v1362_v23 = vrot.slane %v4069_v17, 5  ;;  %v5499_v8 = vld [vmem:[#allocation16_spill] sm:$0xff] }
  0x65   : > { %3629 = vmatmul.mubr.msk.bf16.vlgmr.msra.gmra.mxu1 %vm776_vm3, %v4419_v45  ;;  %v1349_v35 = vsel %vm4407_vm7, %v1347_v31, %v1348_v42  ;;  %v3283_v27 = vrot.slane %v4356_v51, 9  ;;  %v3284_v50 = vrot.slane %v4061_v13, 9  ;;  %v1359_v2 = vrot.slane %v4066_v16, 5  ;;  %v5500_v42 = vld [vmem:[#allocation20_spill] sm:$0xff] }
  0x66   : > { %3695 = vmatpush3.bf16.msra.mxu1 %v1718_v6  ;;  %3632 = vmatprep.mubr.msk.bf16.mxu1 %vm776_vm3, %v4446_v63  ;;  %v4537_v53 = vcombine.low %v4170_v3, %v4178_v18  ;;  %v4541_v33 = vcombine.low %v4225_v9, %v4230_v22  ;;  %v4545_v56 = vcombine.low %v4268_v44, %v4273_v4  ;;  %v1355_v3 = vrot.slane %v4368_v48, 5 }
  0x67   : > { %3906 = vmatprep.subr.msk.bf16.mxu1 %vm825_vm0, %v4508_v19  ;;  %v4549_v17 = vcombine.low %v4308_v20, %v4319_v55  ;;  %v4553_v30 = vcombine.low %v1339_v36, %v1342_v28  ;;  %v4555_v1 = vcombine.low %v1346_v0, %v1349_v35  ;;  %v4560_v18 = vcombine.low %v4199_v41, %v4206_v49  ;;  %v5501_v36 = vld [vmem:[#allocation18_spill] sm:$0xff] }
  0x68   : > { %v1354_v9 = vrot.slane %v1352_v40, 4  ;;  %v3287_v22 = vrot.slane %v4199_v41, 9  ;;  %v1380_v44 = vrot.slane %v4206_v49, 5  ;;  %v1383_v4 = vrot.slane %v4216_v57, 5 }
  0x69   : > { %v1353_v20 = vsel %vm4407_vm7, %v3283_v27, %v1352_v40  ;;  %v1360_v48 = vsel %vm4407_vm7, %v3284_v50, %v1359_v2  ;;  %v1361_v55 = vrot.slane %v1359_v2, 4  ;;  %v4573_v6 = vcombine.low %v4246_v52, %v4251_v61  ;;  %v5502_v40 = vld [vmem:[#allocation21_spill] sm:$0xff] }
  0x6a   : > { %3667 = vmatmul.mubr.msk.bf16.gmra.mxu0 %vm776_vm3, %v4516_v14  ;;  %v1381_v41 = vsel %vm4407_vm7, %v3287_v22, %v1380_v44  ;;  %v1382_v49 = vrot.slane %v1380_v44, 4  ;;  %v3288_v57 = vrot.slane %v4246_v52, 9  ;;  %v1387_v7 = vrot.slane %v4251_v61, 5 }
  0x6b   : > { %3670 = vmatprep.mubr.msk.bf16.mxu0 %vm776_vm3, %v4518_v10  ;;  %v1366_v39 = vrot.slane %v4106_v59, 5  ;;  %v1390_v29 = vrot.slane %v4263_v34, 5  ;;  %v4587_v43 = vcombine.low %v4290_v26, %v4297_v25  ;;  %v3289_v24 = vrot.slane %v4290_v26, 9 }
  0x6c   : > { %v1356_v54 = vsel %vm4407_vm7, %v1354_v9, %v1355_v3  ;;  %v1384_v52 = vsel %vm4407_vm7, %v1382_v49, %v1383_v4  ;;  %v1388_v61 = vsel %vm4407_vm7, %v3288_v57, %v1387_v7  ;;  %v1389_v38 = vrot.slane %v1387_v7, 4  ;;  %v5503_v3 = vld [vmem:[#allocation23_spill] sm:$0xff]  ;;  %v5504_v57 = vld [vmem:[#allocation8_spill] sm:$0xff] }
  0x6d   : > { %3633 = vmatmul.mubr.msk.bf16.gmra.mxu1 %vm776_vm3, %v4537_v53  ;;  %v4596_v21 = vcombine.low %v1381_v41, %v1384_v52  ;;  %v1394_v34 = vrot.slane %v4297_v25, 5  ;;  %v1397_v31 = vrot.slane %v5499_v8, 5  ;;  %v4602_v28 = vcombine.low %v5501_v36, %v5500_v42 }
  0x6e   : > { %3636 = vmatprep.mubr.msk.bf16.mxu1 %vm776_vm3, %v4541_v33  ;;  %v1391_v26 = vsel %vm4407_vm7, %v1389_v38, %v1390_v29  ;;  %v3290_v0 = vrot.slane %v5501_v36, 9  ;;  %v1401_v35 = vrot.slane %v5500_v42, 5  ;;  %v1404_v27 = vrot.slane %v5502_v40, 5  ;;  %v5506_v42 = vld [vmem:[#allocation4_spill] sm:$0xff] }
  0x6f   : > { %v4611_v50 = vcombine.low %v1388_v61, %v1391_v26  ;;  %v1395_v25 = vsel %vm4407_vm7, %v3289_v24, %v1394_v34  ;;  %v1396_v2 = vrot.slane %v1394_v34, 4  ;;  %v4617_v9 = vcombine.low %v5503_v3, %v4385_v11 }
  0x70   : > { %v1402_v22 = vsel %vm4407_vm7, %v3290_v0, %v1401_v35  ;;  %v1403_v44 = vrot.slane %v1401_v35, 4  ;;  %v3291_v4 = vrot.slane %v5503_v3, 9  ;;  %v1408_v41 = vrot.slane %v4385_v11, 5  ;;  %v5507_v0 = vld [vmem:[#allocation6_spill] sm:$0xff] }
  0x71   : > { %v1363_v49 = vsel %vm4407_vm7, %v1361_v55, %v1362_v23  ;;  %v1373_v7 = vrot.slane %v5504_v57, 5  ;;  %v1398_v29 = vsel %vm4407_vm7, %v1396_v2, %v1397_v31  ;;  %v1411_v24 = vrot.slane %v4396_v58, 5  ;;  %v5505_v55 = vld [vmem:[#allocation3_spill] sm:$0xff] }
  0x72   : > { %3671 = vmatmul.mubr.msk.bf16.gmra.mxu0 %vm776_vm3, %v4553_v30  ;;  %v4633_v52 = vcombine.low %v1395_v25, %v1398_v29  ;;  %v1405_v61 = vsel %vm4407_vm7, %v1403_v44, %v1404_v27  ;;  %v1409_v11 = vsel %vm4407_vm7, %v3291_v4, %v1408_v41  ;;  %v1410_v38 = vrot.slane %v1408_v41, 4  ;;  %v5508_v27 = vld [vmem:[#allocation9_spill] sm:$0xff]  ;;  %v4727_v4 = vld [vmem:[%s4714_s10] sm:$0xf]  ;;  %v334_v41 = vld [vmem:[%s4714_s10 + $0x8] sm:$0x1] }
  0x73   : > { %3674 = vmatprep.mubr.msk.bf16.mxu0 %vm776_vm3, %v4555_v1  ;;  %v4641_v23 = vcombine.low %v1353_v20, %v1356_v54  ;;  %v3285_v34 = vrot.slane %v5505_v55, 9  ;;  %v4644_v58 = vcombine.low %v1402_v22, %v1405_v61  ;;  %v4646_v8 = vcombine.low %v1360_v48, %v1363_v49  ;;  %v5509_v61 = vld [vmem:[#allocation7_spill] sm:$0xff] }
  0x74   : > { %v1368_v31 = vrot.slane %v1366_v39, 4  ;;  %v1369_v36 = vrot.slane %v5506_v42, 5  ;;  %v1412_v26 = vsel %vm4407_vm7, %v1410_v38, %v1411_v24  ;;  %v3286_v35 = vrot.slane %v5507_v0, 9  ;;  %v5511_v42 = vld [vmem:[#allocation13_spill] sm:$0xff] }
  0x75   : > { %3637 = vmatmul.mubr.msk.bf16.gmra.mxu1 %vm776_vm3, %v4545_v56  ;;  %v1375_v40 = vrot.slane %v1373_v7, 4  ;;  %v1376_v25 = vrot.slane %v5508_v27, 5  ;;  %v4653_v2 = vcombine.low %v1409_v11, %v1412_v26  ;;  %v4657_v20 = vcombine.low %v4356_v51, %v4363_v62  ;;  %v5515_v26 = vld [vmem:[#allocation5_spill] sm:$0xff] }
  0x76   : > { %3640 = vmatprep.mubr.msk.bf16.mxu1 %vm776_vm3, %v4549_v17  ;;  %v4663_v48 = vcombine.low %v4061_v13, %v4066_v16  ;;  %v1367_v54 = vsel %vm4407_vm7, %v3285_v34, %v1366_v39  ;;  %v1370_v3 = vsel %vm4407_vm7, %v1368_v31, %v1369_v36  ;;  %v1374_v51 = vsel %vm4407_vm7, %v3286_v35, %v1373_v7  ;;  %v5510_v34 = vld [vmem:[#allocation11_spill] sm:$0xff]  ;;  %v5514_v36 = vld [vmem:[#allocation24_spill] sm:$0xff] }
  0x77   : > { %v1377_v62 = vsel %vm4407_vm7, %v1375_v40, %v1376_v25  ;;  %v4679_v13 = vcombine.low %v1367_v54, %v1370_v3  ;;  %v4685_v39 = vcombine.low %v5505_v55, %v4106_v59  ;;  %v4691_v22 = vcombine.low %v5507_v0, %v5504_v57  ;;  %v4721_v59 = vld [vmem:[%s4714_s10 + $0x4] sm:$0xf]  ;;  %v3417_v55 = vld [vmem:[%s5421_s2 + $0x20] sm:$0xf]  ;;  %v5517_v35 = vld [vmem:[#allocation12_spill] sm:$0xff] }
  0x78   : > { %v4681_v16 = vcombine.low %v1374_v51, %v1377_v62  ;;  %v2144_v44 = vrot.slane %v4721_v59, 5  ;;  %v3361_v49 = vrot.slane %v4727_v4, 9  ;;  %v2147_v7 = vrot.slane %v334_v41, 5  ;;  %v5516_v0 = vld [vmem:[#allocation10_spill] sm:$0xff] }
  0x79   : > { %v2364_v38 = vsel %vm825_vm0, %v4491_v46, 0  ;;  %v2158_v31 = vsel %vm825_vm0, %v4508_v19, 0  ;;  %v5512_v46 = vld [vmem:[#allocation15_spill] sm:$0xff]  ;;  %v5518_v40 = vld [vmem:[#allocation14_spill] sm:$0xff]  ;;  %v1914_v27 = vshrl.u32 %v4727_v4, 16  ;;  %v1917_v25 = vshll.u32 %v4727_v4, 16 }
  0x7a   : > { %3675 = vmatmul.mubr.msk.bf16.gmra.mxu0 %vm776_vm3, %v4641_v23  ;;  %v2146_v57 = vrot.slane %v2144_v44, 4  ;;  %v2145_v29 = vsel %vm4407_vm7, %v3361_v49, %v2144_v44  ;;  %v5513_v19 = vld [vmem:[#allocation19_spill] sm:$0xff]  ;;  %v1927_v54 = vshrl.u32 %v4721_v59, 16  ;;  %v1923_v3 = vshll.u32 %v4721_v59, 16 }
  0x7b   : > { %3678 = vmatprep.mubr.msk.bf16.mxu0 %vm776_vm3, %v4646_v8  ;;  %v1916_v51 = vrot.slane %v1914_v27, 4  ;;  %v1919_v62 = vrot.slane %v1917_v25, 5 }
  0x7c   : > { %v2148_v24 = vsel %vm4407_vm7, %v2146_v57, %v2147_v7  ;;  %v1925_v44 = vrot.slane %v1923_v3, 5  ;;  %v1929_v49 = vrot.slane %v1927_v54, 4  ;;  %v5519_v57 = vld [vmem:[#allocation17_spill] sm:$0xff]  ;;  %v5520_v7 = vld [vmem:[#allocation22_spill] sm:$0xff]  ;;  %v3326_v3 = vcombine.low %v4727_v4, %v4721_v59 }
  0x7d   : > { %3641 = vmatmul.mubr.msk.bf16.gmra.mxu1 %vm776_vm3, %v4657_v20  ;;  %v4739_v11 = vcombine.low %v2145_v29, %v2148_v24  ;;  %v1920_v29 = vor.u32 %v1919_v62, %v1916_v51  ;;  %v2804_v51 = vsel %vm825_vm0, %v3417_v55, 0 }
  0x7e   : > { %3644 = vmatprep.mubr.msk.bf16.mxu1 %vm776_vm3, %v4663_v48  ;;  %v1930_v24 = vor.u32 %v1929_v49, %v1925_v44 }
  0x82   : > { %3679 = vmatmul.mubr.msk.bf16.gmra.mxu0 %vm776_vm3, %v4679_v13 }
  0x83   : > { %3682 = vmatprep.mubr.msk.bf16.mxu0 %vm776_vm3, %v4681_v16 }
  0x85   : > { %3645 = vmatmul.mubr.msk.bf16.gmra.mxu1 %vm776_vm3, %v4685_v39 }
  0x86   : > { %3648 = vmatprep.mubr.msk.bf16.mxu1 %vm776_vm3, %v4691_v22 }
  0x8a   : > { %3683 = vmatmul.mubr.msk.bf16.gmra.mxu0 %vm776_vm3, %v4596_v21 }
  0x8b   : > { %3686 = vmatprep.mubr.msk.bf16.mxu0 %vm776_vm3, %v4611_v50 }
  0x8d   : > { %3649 = vmatmul.mubr.msk.bf16.gmra.mxu1 %vm776_vm3, %v4560_v18 }
  0x8e   : > { %3652 = vmatprep.mubr.msk.bf16.mxu1 %vm776_vm3, %v4573_v6 }
  0x92   : > { %3687 = vmatmul.mubr.msk.bf16.gmra.mxu0 %vm776_vm3, %v4633_v52 }
  0x93   : > { %3690 = vmatprep.mubr.msk.bf16.mxu0 %vm776_vm3, %v4644_v58 }
  0x95   : > { %3653 = vmatmul.mubr.msk.bf16.gmra.mxu1 %vm776_vm3, %v4587_v43 }
  0x96   : > { %3656 = vmatprep.mubr.msk.bf16.mxu1 %vm776_vm3, %v4602_v28 }
  0x9a   : > { %3691 = vmatmul.mubr.msk.bf16.gmra.mxu0 %vm776_vm3, %v4653_v2 }
  0x9b   : > { %3730 = vmatprep.mubr.msk.bf16.mxu0 %vm776_vm3, %v5509_v61  ;;  %v1933_v61 = vshll.u32 %v334_v41, 16 }
  0x9d   : > { %3657 = vmatmul.mubr.msk.bf16.gmra.mxu1 %vm776_vm3, %v4617_v9  ;;  %v1935_v27 = vrot.slane %v1933_v61, 5  ;;  %v4931_v61 = vld [vmem:[%s4714_s10 + $0x10] sm:$0xf] }
  0x9e   : > { %3696 = vmatprep.mubr.msk.bf16.mxu1 %vm776_vm3, %v4419_v45  ;;  %v3398_v45 = vld [vmem:[%s5421_s2 + $0x1c] sm:$0xf] }
  0x9f   : > { %v2592_v62 = vsel %vm825_vm0, %v3398_v45, 0 }
  0xa2   : > { %3731 = vmatmul.mubr.msk.bf16.vlgmr.msra.gmra.mxu0 %vm776_vm3, %v5510_v34 }
  0xa3   : > { %3797 = vmatpush3.bf16.msra.mxu0 %v2364_v38  ;;  %3734 = vmatprep.mubr.msk.bf16.mxu0 %vm776_vm3, %v5511_v42  ;;  %v1921_v38 = vrot.slane %v1920_v29, 4 }
  0xa4   : > { %3909 = vmatprep.subr.msk.bf16.mxu0 %vm825_vm0, %v3417_v55 }
  0xa5   : > { %3697 = vmatmul.mubr.msk.bf16.vlgmr.msra.gmra.mxu1 %vm776_vm3, %v4446_v63  ;;  %v1926_v25 = vsel %vm4084_vm4, %v1921_v38, %v1925_v44 }
  0xa6   : > { %3763 = vmatpush3.bf16.msra.mxu1 %v2158_v31  ;;  %3700 = vmatprep.mubr.msk.bf16.mxu1 %vm776_vm3, %v4537_v53  ;;  %v1931_v31 = vrot.slane %v1930_v24, 4 }
  0xa7   : > { %3908 = vmatprep.subr.msk.bf16.mxu1 %vm825_vm0, %v3398_v45 }
  0xa8   : > { %v1936_v41 = vsel %vm4084_vm4, %v1931_v31, %v1935_v27 }
  0xa9   : > { %v4821_v54 = vcombine.low %v1926_v25, %v1936_v41 }
  0xaa   : > { %3735 = vmatmul.mubr.msk.bf16.gmra.mxu0 %vm776_vm3, %v5512_v46 }
  0xab   : > { %3738 = vmatprep.mubr.msk.bf16.mxu0 %vm776_vm3, %v5513_v19  ;;  %5521 = vst [vmem:[#allocation16_spill] sm:$0xff] %v4821_v54 }
  0xad   : > { %3701 = vmatmul.mubr.msk.bf16.gmra.mxu1 %vm776_vm3, %v4541_v33 }
  0xae   : > { %3704 = vmatprep.mubr.msk.bf16.mxu1 %vm776_vm3, %v4545_v56 }
  0xb2   : > { %3739 = vmatmul.mubr.msk.bf16.gmra.mxu0 %vm776_vm3, %v5514_v36 }
  0xb3   : > { %3742 = vmatprep.mubr.msk.bf16.mxu0 %vm776_vm3, %v4428_v15 }
  0xb5   : > { %3705 = vmatmul.mubr.msk.bf16.gmra.mxu1 %vm776_vm3, %v4549_v17 }
  0xb6   : > { %3708 = vmatprep.mubr.msk.bf16.mxu1 %vm776_vm3, %v4657_v20 }
  0xba   : > { %3743 = vmatmul.mubr.msk.bf16.gmra.mxu0 %vm776_vm3, %v5515_v26 }
  0xbb   : > { %3746 = vmatprep.mubr.msk.bf16.mxu0 %vm776_vm3, %v5516_v0 }
  0xbd   : > { %3709 = vmatmul.mubr.msk.bf16.gmra.mxu1 %vm776_vm3, %v4663_v48 }
  0xbe   : > { %3712 = vmatprep.mubr.msk.bf16.mxu1 %vm776_vm3, %v4685_v39 }
  0xc2   : > { %3747 = vmatmul.mubr.msk.bf16.gmra.mxu0 %vm776_vm3, %v5517_v35 }
  0xc3   : > { %3750 = vmatprep.mubr.msk.bf16.mxu0 %vm776_vm3, %v5518_v40 }
  0xc5   : > { %3713 = vmatmul.mubr.msk.bf16.gmra.mxu1 %vm776_vm3, %v4691_v22 }
  0xc6   : > { %3716 = vmatprep.mubr.msk.bf16.mxu1 %vm776_vm3, %v4560_v18 }
  0xca   : > { %3751 = vmatmul.mubr.msk.bf16.gmra.mxu0 %vm776_vm3, %v5519_v57 }
  0xcb   : > { %3754 = vmatprep.mubr.msk.bf16.mxu0 %vm776_vm3, %v5520_v7 }
  0xcd   : > { %3717 = vmatmul.mubr.msk.bf16.gmra.mxu1 %vm776_vm3, %v4573_v6 }
  0xce   : > { %3720 = vmatprep.mubr.msk.bf16.mxu1 %vm776_vm3, %v4587_v43 }
  0xd2   : > { %3755 = vmatmul.mubr.msk.bf16.gmra.mxu0 %vm776_vm3, %v4402_v5 }
  0xd3   : > { %3758 = vmatprep.mubr.msk.bf16.mxu0 %vm776_vm3, %v4456_v12 }
  0xd5   : > { %3721 = vmatmul.mubr.msk.bf16.gmra.mxu1 %vm776_vm3, %v4602_v28 }
  0xd6   : > { %3724 = vmatprep.mubr.msk.bf16.mxu1 %vm776_vm3, %v4617_v9 }
  0xda   : > { %3759 = vmatmul.mubr.msk.bf16.gmra.mxu0 %vm776_vm3, %v4821_v54 }
  0xdb   : > { %3798 = vmatprep.mubr.msk.bf16.mxu0 %vm776_vm3, %v4446_v63 }
  0xdd   : > { %3725 = vmatmul.mubr.msk.bf16.gmra.mxu1 %vm776_vm3, %v3326_v3 }
  0xde   : > { %3764 = vmatprep.mubr.msk.bf16.mxu1 %vm776_vm3, %v4453_v47 }
  0xe2   : > { %3799 = vmatmul.mubr.msk.bf16.vlgmr.msra.gmra.mxu0 %vm776_vm3, %v4537_v53 }
  0xe3   : > { %3865 = vmatpush3.bf16.msra.mxu0 %v2804_v51  ;;  %3802 = vmatprep.mubr.msk.bf16.mxu0 %vm776_vm3, %v4541_v33 }
  0xe5   : > { %3765 = vmatmul.mubr.msk.bf16.vlgmr.msra.gmra.mxu1 %vm776_vm3, %v4476_v37 }
  0xe6   : > { %3831 = vmatpush3.bf16.msra.mxu1 %v2592_v62  ;;  %3768 = vmatprep.mubr.msk.bf16.mxu1 %vm776_vm3, %v4516_v14  ;;  %v4844_v63 = vpop.f32.mrf.mxu0 }
  0xe8   : > { %v4854_v53 = vpop.f32.mrf.mxu0 }
  0xea   : > { %3803 = vmatmul.mubr.msk.bf16.gmra.mxu0 %vm776_vm3, %v4545_v56  ;;  %v4860_v56 = vpop.f32.mrf.mxu0 }
  0xeb   : > { %3806 = vmatprep.mubr.msk.bf16.mxu0 %vm776_vm3, %v4549_v17  ;;  %v4850_v47 = vpop.f32.mrf.mxu1 }
  0xec   : > { %v4870_v59 = vpop.f32.mrf.mxu0 }
  0xed   : > { %3769 = vmatmul.mubr.msk.bf16.gmra.mxu1 %vm776_vm3, %v4518_v10  ;;  %v4856_v33 = vpop.f32.mrf.mxu1 }
  0xee   : > { %3772 = vmatprep.mubr.msk.bf16.mxu1 %vm776_vm3, %v4553_v30 }
  0xef   : > { %v4866_v17 = vpop.f32.mrf.mxu1 }
  0xf1   : > { %v4872_v4 = vpop.f32.mrf.mxu1 }
  0xf2   : > { %3807 = vmatmul.mubr.msk.bf16.gmra.mxu0 %vm776_vm3, %v4657_v20 }
  0xf3   : > { %3810 = vmatprep.mubr.msk.bf16.mxu0 %vm776_vm3, %v4663_v48 }
  0xf5   : > { %3773 = vmatmul.mubr.msk.bf16.gmra.mxu1 %vm776_vm3, %v4555_v1 }
  0xf6   : > { %3776 = vmatprep.mubr.msk.bf16.mxu1 %vm776_vm3, %v4641_v23 }
  0xf7   : > { %v4876_v20 = vpop.f32.mrf.mxu0 }
  0xf9   : > { %v4886_v55 = vpop.f32.mrf.mxu0 }
  0xfa   : > { %3811 = vmatmul.mubr.msk.bf16.gmra.mxu0 %vm776_vm3, %v4685_v39 }
  0xfb   : > { %3814 = vmatprep.mubr.msk.bf16.mxu0 %vm776_vm3, %v4691_v22  ;;  %v4882_v48 = vpop.f32.mrf.mxu1  ;;  %v4892_v39 = vpop.f32.mrf.mxu0 }
  0xfd   : > { %3777 = vmatmul.mubr.msk.bf16.gmra.mxu1 %vm776_vm3, %v4646_v8  ;;  %v4888_v45 = vpop.f32.mrf.mxu1  ;;  %v4902_v44 = vpop.f32.mrf.mxu0 }
  0xfe   : > { %3780 = vmatprep.mubr.msk.bf16.mxu1 %vm776_vm3, %v4679_v13 }
  0xff   : > { %v4898_v22 = vpop.f32.mrf.mxu1 }
 0x101   : > { %v4904_v49 = vpop.f32.mrf.mxu1 }
 0x102   : > { %3815 = vmatmul.mubr.msk.bf16.gmra.mxu0 %vm776_vm3, %v4560_v18 }
 0x103   : > { %3818 = vmatprep.mubr.msk.bf16.mxu0 %vm776_vm3, %v4573_v6 }
 0x105   : > { %3781 = vmatmul.mubr.msk.bf16.gmra.mxu1 %vm776_vm3, %v4681_v16 }
 0x106   : > { %3784 = vmatprep.mubr.msk.bf16.mxu1 %vm776_vm3, %v4596_v21 }
 0x108   : > { %v4908_v18 = vpop.f32.mrf.mxu0 }
 0x10a   : > { %3819 = vmatmul.mubr.msk.bf16.gmra.mxu0 %vm776_vm3, %v4587_v43  ;;  %v4918_v29 = vpop.f32.mrf.mxu0 }
 0x10b   : > { %3822 = vmatprep.mubr.msk.bf16.mxu0 %vm776_vm3, %v4602_v28  ;;  %v4928_v28 = vld [vmem:[%s4714_s10 + $0xc] sm:$0xf] }
 0x10c   : > { %v4924_v43 = vpop.f32.mrf.mxu0 }
 0x10d   : > { %3785 = vmatmul.mubr.msk.bf16.gmra.mxu1 %vm776_vm3, %v4611_v50  ;;  %v4914_v6 = vpop.f32.mrf.mxu1 }
 0x10e   : > { %5522 = vst [vmem:[#allocation20_spill] sm:$0xff] %v4914_v6  ;;  %3788 = vmatprep.mubr.msk.bf16.mxu1 %vm776_vm3, %v4633_v52  ;;  %v4937_v31 = vpop.f32.mrf.mxu0 }
 0x10f   : > { %v4920_v24 = vpop.f32.mrf.mxu1 }
 0x110   : > { %5523 = vst [vmem:[#allocation18_spill] sm:$0xff] %v4920_v24 }
 0x111   : > { %v4935_v38 = vpop.f32.mrf.mxu1 }
 0x112   : > { %3823 = vmatmul.mubr.msk.bf16.gmra.mxu0 %vm776_vm3, %v4617_v9  ;;  %5524 = vst [vmem:[#allocation21_spill] sm:$0xff] %v4935_v38  ;;  %v3381_v9 = vcombine.low %v4928_v28, %v4931_v61 }
 0x113   : > { %3826 = vmatprep.mubr.msk.bf16.mxu0 %vm776_vm3, %v3326_v3  ;;  %v4943_v27 = vpop.f32.mrf.mxu1 }
 0x114   : > { %5525 = vst [vmem:[#allocation23_spill] sm:$0xff] %v4943_v27 }
 0x115   : > { %3789 = vmatmul.mubr.msk.bf16.gmra.mxu1 %vm776_vm3, %v4644_v58 }
 0x116   : > { %3792 = vmatprep.mubr.msk.bf16.mxu1 %vm776_vm3, %v4653_v2 }
 0x11a   : > { %v4945_v25 = vpop.f32.mrf.mxu0  ;;  %3827 = vmatmul.mubr.msk.bf16.gmra.mxu0 %vm776_vm3, %v3381_v9 }
 0x11b   : > { %3866 = vmatprep.mubr.msk.bf16.mxu0 %vm776_vm3, %v4476_v37 }
 0x11c   : > { %v4950_v41 = vpop.f32.mrf.mxu0 }
 0x11d   : > { %v4952_v3 = vpop.f32.mrf.mxu1  ;;  %3793 = vmatmul.mubr.msk.bf16.gmra.mxu1 %vm776_vm3, %v4739_v11 }
 0x11e   : > { %5526 = vst [vmem:[#allocation8_spill] sm:$0xff] %v4952_v3  ;;  %v4956_v51 = vpop.f32.mrf.mxu0  ;;  %3832 = vmatprep.mubr.msk.bf16.mxu1 %vm776_vm3, %v5510_v34 }
 0x11f   : > { %v4960_v62 = vpop.f32.mrf.mxu1 }
 0x120   : > { %5527 = vst [vmem:[#allocation3_spill] sm:$0xff] %v4960_v62  ;;  %v4962_v27 = vpop.f32.mrf.mxu0 }
 0x121   : > { %v4964_v9 = vpop.f32.mrf.mxu1 }
 0x122   : > { %5528 = vst [vmem:[#allocation4_spill] sm:$0xff] %v4964_v9  ;;  %v3664_v38 = vpop.f32.mrf.mxu0  ;;  %3867 = vmatmul.mubr.msk.bf16.vlgmr.msra.gmra.mxu0 %vm776_vm3, %v4516_v14 }
 0x123   : > { %v4968_v37 = vpop.f32.mrf.mxu1  ;;  %3870 = vmatprep.mubr.msk.bf16.mxu0 %vm776_vm3, %v4518_v10 }
 0x124   : > { %5529 = vst [vmem:[#allocation6_spill] sm:$0xff] %v4968_v37  ;;  %v1548_v3 = vpop.f32.mrf.mxu0 }
 0x125   : > { %v3630_v24 = vpop.f32.mrf.mxu1  ;;  %3833 = vmatmul.mubr.msk.bf16.vlgmr.msra.gmra.mxu1 %vm776_vm3, %v5511_v42 }
 0x126   : > { %v1164_v34 = vadd.f32 %v3630_v24, %v4844_v63  ;;  %v3665_v62 = vpop.f32.mrf.mxu0  ;;  %3836 = vmatprep.mubr.msk.bf16.mxu1 %vm776_vm3, %v5512_v46 }
 0x127   : > { %v1155_v9 = vpop.f32.mrf.mxu1 }
 0x128   : > { %v4977_v54 = vadd.f32 %v3664_v38, %v1164_v34  ;;  %v1156_v14 = vadd.f32 %v1155_v9, %v4854_v53  ;;  %v1551_v37 = vpop.f32.mrf.mxu0 }
 0x129   : > { %v3631_v6 = vpop.f32.mrf.mxu1 }
 0x12a   : > { %v4980_v32 = vadd.f32 %v1548_v3, %v1156_v14  ;;  %v1167_v10 = vadd.f32 %v3631_v6, %v4860_v56  ;;  %v3668_v12 = vpop.f32.mrf.mxu0  ;;  %3871 = vmatmul.mubr.msk.bf16.gmra.mxu0 %vm776_vm3, %v4553_v30 }
 0x12b   : > { %v1158_v42 = vpop.f32.mrf.mxu1  ;;  %3874 = vmatprep.mubr.msk.bf16.mxu0 %vm776_vm3, %v4555_v1 }
 0x12c   : > { %v4987_v46 = vadd.f32 %v3665_v62, %v1167_v10  ;;  %v1159_v63 = vadd.f32 %v1158_v42, %v4870_v59  ;;  %v1564_v24 = vpop.f32.mrf.mxu0 }
 0x12d   : > { %v3634_v53 = vpop.f32.mrf.mxu1  ;;  %3837 = vmatmul.mubr.msk.bf16.gmra.mxu1 %vm776_vm3, %v5513_v19 }
 0x12e   : > { %v4992_v38 = vadd.f32 %v1551_v37, %v1159_v63  ;;  %v1180_v56 = vadd.f32 %v3634_v53, %v4876_v20  ;;  %v3669_v6 = vpop.f32.mrf.mxu0  ;;  %3840 = vmatprep.mubr.msk.bf16.mxu1 %vm776_vm3, %v5514_v36 }
 0x12f   : > { %v1171_v30 = vpop.f32.mrf.mxu1 }
 0x130   : > { %v4997_v3 = vadd.f32 %v3668_v12, %v1180_v56  ;;  %v1172_v1 = vadd.f32 %v1171_v30, %v4886_v55  ;;  %v1567_v62 = vpop.f32.mrf.mxu0 }
 0x131   : > { %v3635_v59 = vpop.f32.mrf.mxu1 }
 0x132   : > { %v5000_v9 = vadd.f32 %v1564_v24, %v1172_v1  ;;  %v1183_v34 = vadd.f32 %v3635_v59, %v4892_v39  ;;  %v3672_v19 = vpop.f32.mrf.mxu0  ;;  %3875 = vmatmul.mubr.msk.bf16.gmra.mxu0 %vm776_vm3, %v4641_v23 }
 0x133   : > { %v1174_v20 = vpop.f32.mrf.mxu1  ;;  %3878 = vmatprep.mubr.msk.bf16.mxu0 %vm776_vm3, %v4646_v8 }
 0x134   : > { %v5007_v36 = vadd.f32 %v3669_v6, %v1183_v34  ;;  %v1175_v12 = vadd.f32 %v1174_v20, %v4902_v44  ;;  %v1580_v37 = vpop.f32.mrf.mxu0 }
 0x135   : > { %v3638_v55 = vpop.f32.mrf.mxu1  ;;  %3841 = vmatmul.mubr.msk.bf16.gmra.mxu1 %vm776_vm3, %v4428_v15 }
 0x136   : > { %v5012_v14 = vadd.f32 %v1567_v62, %v1175_v12  ;;  %v1196_v39 = vadd.f32 %v3638_v55, %v4908_v18  ;;  %v3673_v10 = vpop.f32.mrf.mxu0  ;;  %3844 = vmatprep.mubr.msk.bf16.mxu1 %vm776_vm3, %v5515_v26 }
 0x137   : > { %v1187_v23 = vpop.f32.mrf.mxu1 }
 0x138   : > { %v5017_v42 = vadd.f32 %v3672_v19, %v1196_v39  ;;  %v1188_v8 = vadd.f32 %v1187_v23, %v4918_v29  ;;  %v1583_v63 = vpop.f32.mrf.mxu0 }
 0x139   : > { %v3639_v44 = vpop.f32.mrf.mxu1 }
 0x13a   : > { %v5020_v24 = vadd.f32 %v1580_v37, %v1188_v8  ;;  %v1199_v53 = vadd.f32 %v3639_v44, %v4924_v43  ;;  %v3676_v15 = vpop.f32.mrf.mxu0  ;;  %3879 = vmatmul.mubr.msk.bf16.gmra.mxu0 %vm776_vm3, %v4679_v13  ;;  %v2563_v37 = vshll.u32 %v4928_v28, 16 }
 0x13b   : > { %v1190_v18 = vpop.f32.mrf.mxu1  ;;  %3882 = vmatprep.mubr.msk.bf16.mxu0 %vm776_vm3, %v4681_v16 }
 0x13c   : > { %v5027_v26 = vadd.f32 %v3673_v10, %v1199_v53  ;;  %v1191_v56 = vadd.f32 %v1190_v18, %v4937_v31  ;;  %v1596_v6 = vpop.f32.mrf.mxu0  ;;  %v2565_v44 = vrot.slane %v2563_v37, 5 }
 0x13d   : > { %v3642_v29 = vpop.f32.mrf.mxu1  ;;  %3845 = vmatmul.mubr.msk.bf16.gmra.mxu1 %vm776_vm3, %v5516_v0 }
 0x13e   : > { %v5032_v30 = vadd.f32 %v1583_v63, %v1191_v56  ;;  %v1212_v43 = vadd.f32 %v3642_v29, %v4945_v25  ;;  %v3677_v1 = vpop.f32.mrf.mxu0  ;;  %3848 = vmatprep.mubr.msk.bf16.mxu1 %vm776_vm3, %v5517_v35 }
 0x13f   : > { %v1203_v13 = vpop.f32.mrf.mxu1 }
 0x140   : > { %v5037_v62 = vadd.f32 %v3676_v15, %v1212_v43  ;;  %v1204_v16 = vadd.f32 %v1203_v13, %v4950_v41  ;;  %v1599_v59 = vpop.f32.mrf.mxu0  ;;  %v2560_v41 = vshrl.u32 %v4928_v28, 16 }
 0x141   : > { %v3643_v31 = vpop.f32.mrf.mxu1 }
 0x142   : > { %v5040_v34 = vadd.f32 %v1596_v6, %v1204_v16  ;;  %v1215_v19 = vadd.f32 %v3643_v31, %v4956_v51  ;;  %v3680_v0 = vpop.f32.mrf.mxu0  ;;  %3883 = vmatmul.mubr.msk.bf16.gmra.mxu0 %vm776_vm3, %v4596_v21  ;;  %v2569_v51 = vshll.u32 %v4931_v61, 16  ;;  %v2573_v21 = vshrl.u32 %v4931_v61, 16 }
 0x143   : > { %v1206_v25 = vpop.f32.mrf.mxu1  ;;  %3886 = vmatprep.mubr.msk.bf16.mxu0 %vm776_vm3, %v4611_v50 }
 0x144   : > { %v5047_v35 = vadd.f32 %v3677_v1, %v1215_v19  ;;  %v1207_v20 = vadd.f32 %v1206_v25, %v4962_v27  ;;  %v1612_v12 = vpop.f32.mrf.mxu0  ;;  %v2571_v15 = vrot.slane %v2569_v51, 5  ;;  %v2575_v18 = vrot.slane %v2573_v21, 4 }
 0x145   : > { %v3646_v55 = vpop.f32.mrf.mxu1  ;;  %3849 = vmatmul.mubr.msk.bf16.gmra.mxu1 %vm776_vm3, %v5518_v40  ;;  %v2562_v40 = vrot.slane %v2560_v41, 4  ;;  %v3416_v19 = vrot.slane %v4928_v28, 9 }
 0x146   : > { %v5056_v39 = vadd.f32 %v1599_v59, %v1207_v20  ;;  %v1228_v50 = vadd.f32 %v3646_v55, %v4850_v47  ;;  %v3681_v10 = vpop.f32.mrf.mxu0  ;;  %3852 = vmatprep.mubr.msk.bf16.mxu1 %vm776_vm3, %v5519_v57  ;;  %v2790_v57 = vrot.slane %v4931_v61, 5 }
 0x147   : > { %v1219_v27 = vpop.f32.mrf.mxu1 }
 0x148   : > { %v5061_v23 = vadd.f32 %v3680_v0, %v1228_v50  ;;  %v1220_v8 = vadd.f32 %v1219_v27, %v4856_v33  ;;  %v1615_v63 = vpop.f32.mrf.mxu0  ;;  %v337_v33 = vld [vmem:[%s4714_s10 + $0x14] sm:$0x1] }
 0x149   : > { %v3647_v53 = vpop.f32.mrf.mxu1  ;;  %v2579_v31 = vshll.u32 %v337_v33, 16  ;;  %v2793_v25 = vrot.slane %v337_v33, 5 }
 0x14a   : > { %v5064_v56 = vadd.f32 %v1612_v12, %v1220_v8  ;;  %v1231_v47 = vadd.f32 %v3647_v53, %v4866_v17  ;;  %v3684_v6 = vpop.f32.mrf.mxu0  ;;  %3887 = vmatmul.mubr.msk.bf16.gmra.mxu0 %vm776_vm3, %v4633_v52  ;;  %v2566_v17 = vor.u32 %v2565_v44, %v2562_v40 }
 0x14b   : > { %v1222_v29 = vpop.f32.mrf.mxu1  ;;  %3890 = vmatprep.mubr.msk.bf16.mxu0 %vm776_vm3, %v4644_v58  ;;  %v2576_v58 = vor.u32 %v2575_v18, %v2571_v15  ;;  %v2581_v28 = vrot.slane %v2579_v31, 5 }
 0x14c   : > { %v5073_v43 = vadd.f32 %v3681_v10, %v1231_v47  ;;  %v1223_v1 = vadd.f32 %v1222_v29, %v4872_v4  ;;  %v1628_v13 = vpop.f32.mrf.mxu0  ;;  %v2792_v4 = vrot.slane %v2790_v57, 4  ;;  %v2567_v37 = vrot.slane %v2566_v17, 4  ;;  %v5533_v47 = vld [vmem:[#allocation16_spill] sm:$0xff]  ;;  %v5534_v29 = vld [vmem:[#allocation18_spill] sm:$0xff]  ;;  %v5535_v17 = vld [vmem:[#allocation21_spill] sm:$0xff] }
 0x14d   : > { %v3650_v16 = vpop.f32.mrf.mxu1  ;;  %3853 = vmatmul.mubr.msk.bf16.gmra.mxu1 %vm776_vm3, %v5520_v7 }
 0x14e   : > { %v5078_v59 = vadd.f32 %v1615_v63, %v1223_v1  ;;  %v1244_v52 = vadd.f32 %v3650_v16, %v4882_v48  ;;  %v3685_v61 = vpop.f32.mrf.mxu0  ;;  %3856 = vmatprep.mubr.msk.bf16.mxu1 %vm776_vm3, %v4402_v5  ;;  %v2577_v5 = vrot.slane %v2576_v58, 4  ;;  %v2794_v50 = vsel %vm4407_vm7, %v2792_v4, %v2793_v25  ;;  %v5530_v63 = vld [vmem:[#allocation25_spill] sm:$0xff] }
 0x14f   : > { %v1235_v0 = vpop.f32.mrf.mxu1  ;;  %v2572_v40 = vsel %vm4084_vm4, %v2567_v37, %v2571_v15 }
 0x150   : > { %v5084_v20 = vadd.f32 %v3684_v6, %v1244_v52  ;;  %v1236_v7 = vadd.f32 %v1235_v0, %v4888_v45  ;;  %v1631_v12 = vpop.f32.mrf.mxu0  ;;  %v2791_v45 = vsel %vm4407_vm7, %v3416_v19, %v2790_v57  ;;  %v2582_v60 = vsel %vm4084_vm4, %v2577_v5, %v2581_v28  ;;  %v5536_v19 = vld [vmem:[#allocation23_spill] sm:$0xff] }
 0x151   : > { %v3651_v41 = vpop.f32.mrf.mxu1  ;;  %v3399_v15 = vcombine.low %v2572_v40, %v2582_v60  ;;  %v5538_v5 = vld [vmem:[#allocation3_spill] sm:$0xff]  ;;  %v5540_v40 = vld [vmem:[#allocation6_spill] sm:$0xff] }
 0x152   : > { %v5087_v55 = vadd.f32 %v1628_v13, %v1236_v7  ;;  %v1247_v48 = vadd.f32 %v3651_v41, %v4898_v22  ;;  %v3688_v51 = vpop.f32.mrf.mxu0  ;;  %3891 = vmatmul.mubr.msk.bf16.gmra.mxu0 %vm776_vm3, %v4653_v2 }
 0x153   : > { %v1238_v21 = vpop.f32.mrf.mxu1  ;;  %3894 = vmatprep.mubr.msk.bf16.mxu0 %vm776_vm3, %v4739_v11  ;;  %v5532_v11 = vld [vmem:[#allocation20_spill] sm:$0xff] }
 0x154   : > { %v5098_v10 = vadd.f32 %v3685_v61, %v1247_v48  ;;  %v1239_v22 = vadd.f32 %v1238_v21, %v4904_v49  ;;  %v1644_v27 = vpop.f32.mrf.mxu0  ;;  %v3418_v49 = vcombine.low %v2791_v45, %v2794_v50 }
 0x155   : > { %v3654_v8 = vpop.f32.mrf.mxu1  ;;  %3857 = vmatmul.mubr.msk.bf16.gmra.mxu1 %vm776_vm3, %v5530_v63 }
 0x156   : > { %v5105_v44 = vadd.f32 %v1631_v12, %v1239_v22  ;;  %v1260_v53 = vadd.f32 %v3654_v8, %v5532_v11  ;;  %v3689_v18 = vpop.f32.mrf.mxu0  ;;  %3860 = vmatprep.mubr.msk.bf16.mxu1 %vm776_vm3, %v5533_v47  ;;  %v5537_v12 = vld [vmem:[#allocation8_spill] sm:$0xff] }
 0x157   : > { %v1251_v6 = vpop.f32.mrf.mxu1  ;;  %v5539_v22 = vld [vmem:[#allocation4_spill] sm:$0xff] }
 0x158   : > { %v5112_v57 = vadd.f32 %v3688_v51, %v1260_v53  ;;  %v1252_v33 = vadd.f32 %v1251_v6, %v5534_v29  ;;  %v1647_v1 = vpop.f32.mrf.mxu0 }
 0x159   : > { %v3655_v13 = vpop.f32.mrf.mxu1 }
 0x15a   : > { %v5115_v16 = vadd.f32 %v1644_v27, %v1252_v33  ;;  %v1263_v52 = vadd.f32 %v3655_v13, %v5535_v17  ;;  %v3692_v61 = vpop.f32.mrf.mxu0  ;;  %3895 = vmatmul.mubr.msk.bf16.gmra.mxu0 %vm776_vm3, %v3418_v49 }
 0x15b   : > { %v1254_v58 = vpop.f32.mrf.mxu1 }
 0x15c   : > { %v5119_v31 = vadd.f32 %v3689_v18, %v1263_v52  ;;  %v1255_v0 = vadd.f32 %v1254_v58, %v5536_v19  ;;  %v1660_v4 = vpop.f32.mrf.mxu0 }
 0x15d   : > { %v3658_v25 = vpop.f32.mrf.mxu1  ;;  %3861 = vmatmul.mubr.msk.bf16.gmra.mxu1 %vm776_vm3, %v3399_v15 }
 0x15e   : > { %v5123_v7 = vadd.f32 %v1647_v1, %v1255_v0  ;;  %v1276_v41 = vadd.f32 %v3658_v25, %v5537_v12  ;;  %v3693_v37 = vpop.f32.mrf.mxu0 }
 0x15f   : > { %v1267_v48 = vpop.f32.mrf.mxu1 }
 0x160   : > { %v5126_v51 = vadd.f32 %v3692_v61, %v1276_v41  ;;  %v1268_v28 = vadd.f32 %v1267_v48, %v5538_v5  ;;  %v1663_v21 = vpop.f32.mrf.mxu0 }
 0x161   : > { %v3659_v45 = vpop.f32.mrf.mxu1 }
 0x162   : > { %v5129_v50 = vadd.f32 %v1660_v4, %v1268_v28  ;;  %v1279_v27 = vadd.f32 %v3659_v45, %v5539_v22  ;;  %v3732_v8 = vpop.f32.mrf.mxu0 }
 0x163   : > { %v1270_v63 = vpop.f32.mrf.mxu1 }
 0x164   : > { %v5132_v2 = vadd.f32 %v3693_v37, %v1279_v27  ;;  %v1271_v11 = vadd.f32 %v1270_v63, %v5540_v40  ;;  %v1982_v53 = vpop.f32.mrf.mxu0 }
 0x165   : > { %v3698_v18 = vpop.f32.mrf.mxu1 }
 0x166   : > { %v5135_v47 = vadd.f32 %v1663_v21, %v1271_v11  ;;  %v1883_v60 = vadd.f32 %v3698_v18, %v4977_v54  ;;  %v3733_v49 = vpop.f32.mrf.mxu0 }
 0x167   : > { %v1754_v6 = vpop.f32.mrf.mxu1 }
 0x168   : > { %v5138_v29 = vadd.f32 %v3732_v8, %v1883_v60  ;;  %v1881_v33 = vadd.f32 %v1754_v6, %v4980_v32  ;;  %v1985_v1 = vpop.f32.mrf.mxu0 }
 0x169   : > { %v3699_v13 = vpop.f32.mrf.mxu1 }
 0x16a   : > { %v5141_v15 = vadd.f32 %v1982_v53, %v1881_v33  ;;  %v1884_v17 = vadd.f32 %v3699_v13, %v4987_v46  ;;  %v3736_v52 = vpop.f32.mrf.mxu0 }
 0x16b   : > { %v1757_v61 = vpop.f32.mrf.mxu1 }
 0x16c   : > { %v5144_v58 = vadd.f32 %v3733_v49, %v1884_v17  ;;  %v1882_v19 = vadd.f32 %v1757_v61, %v4992_v38  ;;  %v1998_v0 = vpop.f32.mrf.mxu0 }
 0x16d   : > { %v3702_v54 = vpop.f32.mrf.mxu1 }
 0x16e   : > { %v5147_v4 = vadd.f32 %v1985_v1, %v1882_v19  ;;  %v1887_v25 = vadd.f32 %v3702_v54, %v4997_v3  ;;  %v3737_v12 = vpop.f32.mrf.mxu0 }
 0x16f   : > { %v1770_v32 = vpop.f32.mrf.mxu1 }
 0x170   : > { %v5150_v41 = vadd.f32 %v3736_v52, %v1887_v25  ;;  %v1885_v37 = vadd.f32 %v1770_v32, %v5000_v9  ;;  %v2001_v48 = vpop.f32.mrf.mxu0 }
 0x171   : > { %v3703_v46 = vpop.f32.mrf.mxu1 }
 0x172   : > { %v5153_v5 = vadd.f32 %v1998_v0, %v1885_v37  ;;  %v1888_v28 = vadd.f32 %v3703_v46, %v5007_v36  ;;  %v3740_v21 = vpop.f32.mrf.mxu0 }
 0x173   : > { %v1773_v38 = vpop.f32.mrf.mxu1 }
 0x174   : > { %v5156_v45 = vadd.f32 %v3737_v12, %v1888_v28  ;;  %v1886_v22 = vadd.f32 %v1773_v38, %v5012_v14  ;;  %v2014_v27 = vpop.f32.mrf.mxu0 }
 0x175   : > { %v3706_v3 = vpop.f32.mrf.mxu1 }
 0x176   : > { %v5159_v8 = vadd.f32 %v2001_v48, %v1886_v22  ;;  %v1891_v63 = vadd.f32 %v3706_v3, %v5017_v42  ;;  %v3741_v40 = vpop.f32.mrf.mxu0 }
 0x177   : > { %v1786_v9 = vpop.f32.mrf.mxu1 }
 0x178   : > { %v5162_v11 = vadd.f32 %v3740_v21, %v1891_v63  ;;  %v1889_v53 = vadd.f32 %v1786_v9, %v5020_v24  ;;  %v2017_v18 = vpop.f32.mrf.mxu0 }
 0x179   : > { %v3707_v36 = vpop.f32.mrf.mxu1 }
 0x17a   : > { %v5165_v60 = vadd.f32 %v2014_v27, %v1889_v53  ;;  %v1892_v49 = vadd.f32 %v3707_v36, %v5027_v26  ;;  %v3744_v6 = vpop.f32.mrf.mxu0 }
 0x17b   : > { %v1789_v14 = vpop.f32.mrf.mxu1 }
 0x17c   : > { %v5168_v33 = vadd.f32 %v3741_v40, %v1892_v49  ;;  %v1890_v1 = vadd.f32 %v1789_v14, %v5032_v30  ;;  %v2030_v13 = vpop.f32.mrf.mxu0 }
 0x17d   : > { %v3710_v42 = vpop.f32.mrf.mxu1 }
 0x17e   : > { %v5171_v17 = vadd.f32 %v2017_v18, %v1890_v1  ;;  %v1895_v52 = vadd.f32 %v3710_v42, %v5037_v62  ;;  %v3745_v61 = vpop.f32.mrf.mxu0 }
 0x17f   : > { %v1802_v24 = vpop.f32.mrf.mxu1 }
 0x180   : > { %v5174_v19 = vadd.f32 %v3744_v6, %v1895_v52  ;;  %v1893_v0 = vadd.f32 %v1802_v24, %v5040_v34  ;;  %v2033_v54 = vpop.f32.mrf.mxu0 }
 0x181   : > { %v3711_v26 = vpop.f32.mrf.mxu1 }
 0x182   : > { %v5177_v25 = vadd.f32 %v2030_v13, %v1893_v0  ;;  %v1896_v12 = vadd.f32 %v3711_v26, %v5047_v35  ;;  %v3748_v32 = vpop.f32.mrf.mxu0 }
 0x183   : > { %v1805_v30 = vpop.f32.mrf.mxu1 }
 0x184   : > { %v5180_v37 = vadd.f32 %v3745_v61, %v1896_v12  ;;  %v1894_v48 = vadd.f32 %v1805_v30, %v5056_v39  ;;  %v2046_v46 = vpop.f32.mrf.mxu0 }
 0x185   : > { %v3714_v62 = vpop.f32.mrf.mxu1 }
 0x186   : > { %v5183_v28 = vadd.f32 %v2033_v54, %v1894_v48  ;;  %v1899_v21 = vadd.f32 %v3714_v62, %v5061_v23  ;;  %v3749_v38 = vpop.f32.mrf.mxu0 }
 0x187   : > { %v1818_v34 = vpop.f32.mrf.mxu1 }
 0x188   : > { %v5186_v22 = vadd.f32 %v3748_v32, %v1899_v21  ;;  %v1897_v27 = vadd.f32 %v1818_v34, %v5064_v56  ;;  %v2049_v3 = vpop.f32.mrf.mxu0 }
 0x189   : > { %v3715_v35 = vpop.f32.mrf.mxu1 }
 0x18a   : > { %v5189_v63 = vadd.f32 %v2046_v46, %v1897_v27  ;;  %v1900_v40 = vadd.f32 %v3715_v35, %v5073_v43  ;;  %v3752_v9 = vpop.f32.mrf.mxu0 }
 0x18b   : > { %v1821_v39 = vpop.f32.mrf.mxu1 }
 0x18c   : > { %v5192_v53 = vadd.f32 %v3749_v38, %v1900_v40  ;;  %v1898_v18 = vadd.f32 %v1821_v39, %v5078_v59  ;;  %v2062_v36 = vpop.f32.mrf.mxu0 }
 0x18d   : > { %v3718_v23 = vpop.f32.mrf.mxu1 }
 0x18e   : > { %v5195_v49 = vadd.f32 %v2049_v3, %v1898_v18  ;;  %v1903_v6 = vadd.f32 %v3718_v23, %v5084_v20  ;;  %v3753_v14 = vpop.f32.mrf.mxu0 }
 0x18f   : > { %v1834_v56 = vpop.f32.mrf.mxu1 }
 0x190   : > { %v5198_v1 = vadd.f32 %v3752_v9, %v1903_v6  ;;  %v1901_v13 = vadd.f32 %v1834_v56, %v5087_v55  ;;  %v2065_v42 = vpop.f32.mrf.mxu0 }
 0x191   : > { %v3719_v43 = vpop.f32.mrf.mxu1 }
 0x192   : > { %v5201_v52 = vadd.f32 %v2062_v36, %v1901_v13  ;;  %v1904_v61 = vadd.f32 %v3719_v43, %v5098_v10  ;;  %v3756_v24 = vpop.f32.mrf.mxu0 }
 0x193   : > { %v1837_v59 = vpop.f32.mrf.mxu1 }
 0x194   : > { %v5204_v0 = vadd.f32 %v3753_v14, %v1904_v61  ;;  %v1902_v54 = vadd.f32 %v1837_v59, %v5105_v44  ;;  %v2078_v26 = vpop.f32.mrf.mxu0 }
 0x195   : > { %v3722_v20 = vpop.f32.mrf.mxu1 }
 0x196   : > { %v5207_v12 = vadd.f32 %v2065_v42, %v1902_v54  ;;  %v1907_v32 = vadd.f32 %v3722_v20, %v5112_v57  ;;  %v3757_v30 = vpop.f32.mrf.mxu0 }
 0x197   : > { %v1850_v55 = vpop.f32.mrf.mxu1 }
 0x198   : > { %v5210_v48 = vadd.f32 %v3756_v24, %v1907_v32  ;;  %v1905_v46 = vadd.f32 %v1850_v55, %v5115_v16  ;;  %v2081_v62 = vpop.f32.mrf.mxu0 }
 0x199   : > { %v3723_v10 = vpop.f32.mrf.mxu1 }
 0x19a   : > { %v5213_v21 = vadd.f32 %v2078_v26, %v1905_v46  ;;  %v1908_v38 = vadd.f32 %v3723_v10, %v5119_v31  ;;  %v3760_v34 = vpop.f32.mrf.mxu0 }
 0x19b   : > { %v1853_v44 = vpop.f32.mrf.mxu1 }
 0x19c   : > { %5541 = vst [vmem:[#allocation9_spill] sm:$0xff] %v5213_v21  ;;  %v5216_v27 = vadd.f32 %v3757_v30, %v1908_v38  ;;  %v1906_v3 = vadd.f32 %v1853_v44, %v5123_v7  ;;  %v2094_v35 = vpop.f32.mrf.mxu0 }
 0x19d   : > { %v3726_v57 = vpop.f32.mrf.mxu1 }
 0x19e   : > { %v5219_v40 = vadd.f32 %v2081_v62, %v1906_v3  ;;  %v1911_v9 = vadd.f32 %v3726_v57, %v5126_v51  ;;  %v3761_v39 = vpop.f32.mrf.mxu0 }
 0x19f   : > { %v1866_v16 = vpop.f32.mrf.mxu1 }
 0x1a0   : > { %5542 = vst [vmem:[#allocation7_spill] sm:$0xff] %v5219_v40  ;;  %v5222_v18 = vadd.f32 %v3760_v34, %v1911_v9  ;;  %v1909_v36 = vadd.f32 %v1866_v16, %v5129_v50  ;;  %v2097_v23 = vpop.f32.mrf.mxu0 }
 0x1a1   : > { %v3727_v31 = vpop.f32.mrf.mxu1 }
 0x1a2   : > { %v5225_v6 = vadd.f32 %v2094_v35, %v1909_v36  ;;  %v1912_v14 = vadd.f32 %v3727_v31, %v5132_v2  ;;  %v3800_v56 = vpop.f32.mrf.mxu0 }
 0x1a3   : > { %v1869_v7 = vpop.f32.mrf.mxu1 }
 0x1a4   : > { %5543 = vst [vmem:[#allocation11_spill] sm:$0xff] %v5225_v6  ;;  %v5228_v13 = vadd.f32 %v3761_v39, %v1912_v14  ;;  %v1910_v42 = vadd.f32 %v1869_v7, %v5135_v47  ;;  %v2400_v43 = vpop.f32.mrf.mxu0 }
 0x1a5   : > { %v3766_v51 = vpop.f32.mrf.mxu1 }
 0x1a6   : > { %v5231_v61 = vadd.f32 %v2097_v23, %v1910_v42  ;;  %v2323_v24 = vadd.f32 %v3766_v51, %v5138_v29  ;;  %v3801_v59 = vpop.f32.mrf.mxu0 }
 0x1a7   : > { %v2194_v50 = vpop.f32.mrf.mxu1 }
 0x1a8   : > { %5544 = vst [vmem:[#allocation13_spill] sm:$0xff] %v5231_v61  ;;  %v5234_v54 = vadd.f32 %v3800_v56, %v2323_v24  ;;  %v2321_v26 = vadd.f32 %v2194_v50, %v5141_v15  ;;  %v5237_v20 = vpop.f32.mrf.mxu0 }
 0x1a9   : > { %v3767_v2 = vpop.f32.mrf.mxu1 }
 0x1aa   : > { %v5239_v32 = vadd.f32 %v2400_v43, %v2321_v26  ;;  %v2324_v30 = vadd.f32 %v3767_v2, %v5144_v58  ;;  %v3804_v47 = vpop.f32.mrf.mxu0 }
 0x1ab   : > { %v5242_v55 = vpop.f32.mrf.mxu1 }
 0x1ac   : > { %v5244_v46 = vadd.f32 %v3801_v59, %v2324_v30  ;;  %v5246_v62 = vpop.f32.mrf.mxu0 }
 0x1ad   : > { %v3770_v29 = vpop.f32.mrf.mxu1 }
 0x1ae   : > { %v2327_v10 = vadd.f32 %v3770_v29, %v5150_v41  ;;  %v3805_v38 = vpop.f32.mrf.mxu0 }
 0x1af   : > { %v5249_v34 = vpop.f32.mrf.mxu1 }
 0x1b0   : > { %v5251_v15 = vadd.f32 %v3804_v47, %v2327_v10  ;;  %v5253_v44 = vpop.f32.mrf.mxu0 }
 0x1b1   : > { %v3771_v3 = vpop.f32.mrf.mxu1 }
 0x1b2   : > { %v2328_v58 = vadd.f32 %v3771_v3, %v5156_v45  ;;  %v3808_v35 = vpop.f32.mrf.mxu0 }
 0x1b3   : > { %v5256_v57 = vpop.f32.mrf.mxu1 }
 0x1b4   : > { %v5258_v9 = vadd.f32 %v3805_v38, %v2328_v58  ;;  %v5260_v39 = vpop.f32.mrf.mxu0 }
 0x1b5   : > { %v3774_v16 = vpop.f32.mrf.mxu1 }
 0x1b6   : > { %v2331_v41 = vadd.f32 %v3774_v16, %v5162_v11  ;;  %v3809_v36 = vpop.f32.mrf.mxu0 }
 0x1b7   : > { %v5263_v23 = vpop.f32.mrf.mxu1 }
 0x1b8   : > { %v5265_v31 = vadd.f32 %v3808_v35, %v2331_v41  ;;  %v5267_v14 = vpop.f32.mrf.mxu0 }
 0x1b9   : > { %v3775_v56 = vpop.f32.mrf.mxu1 }
 0x1ba   : > { %v2332_v45 = vadd.f32 %v3775_v56, %v5168_v33  ;;  %v3812_v7 = vpop.f32.mrf.mxu0 }
 0x1bb   : > { %v5270_v42 = vpop.f32.mrf.mxu1 }
 0x1bc   : > { %v5272_v43 = vadd.f32 %v3809_v36, %v2332_v45  ;;  %v5274_v51 = vpop.f32.mrf.mxu0 }
 0x1bd   : > { %v3778_v24 = vpop.f32.mrf.mxu1 }
 0x1be   : > { %v2335_v11 = vadd.f32 %v3778_v24, %v5174_v19  ;;  %v3813_v59 = vpop.f32.mrf.mxu0 }
 0x1bf   : > { %v5277_v50 = vpop.f32.mrf.mxu1 }
 0x1c0   : > { %v5279_v26 = vadd.f32 %v3812_v7, %v2335_v11  ;;  %v5281_v2 = vpop.f32.mrf.mxu0 }
 0x1c1   : > { %v3779_v30 = vpop.f32.mrf.mxu1 }
 0x1c2   : > { %v2336_v33 = vadd.f32 %v3779_v30, %v5180_v37  ;;  %v3816_v47 = vpop.f32.mrf.mxu0 }
 0x1c3   : > { %v5284_v29 = vpop.f32.mrf.mxu1 }
 0x1c4   : > { %v5286_v10 = vadd.f32 %v3813_v59, %v2336_v33  ;;  %v5288_v38 = vpop.f32.mrf.mxu0 }
 0x1c5   : > { %v3782_v3 = vpop.f32.mrf.mxu1 }
 0x1c6   : > { %v2339_v19 = vadd.f32 %v3782_v3, %v5186_v22  ;;  %v3817_v58 = vpop.f32.mrf.mxu0 }
 0x1c7   : > { %v5291_v35 = vpop.f32.mrf.mxu1 }
 0x1c8   : > { %v5293_v16 = vadd.f32 %v3816_v47, %v2339_v19  ;;  %v5295_v41 = vpop.f32.mrf.mxu0 }
 0x1c9   : > { %v3783_v36 = vpop.f32.mrf.mxu1 }
 0x1ca   : > { %v2340_v37 = vadd.f32 %v3783_v36, %v5192_v53  ;;  %v3820_v56 = vpop.f32.mrf.mxu0 }
 0x1cb   : > { %v5298_v45 = vpop.f32.mrf.mxu1 }
 0x1cc   : > { %v5300_v7 = vadd.f32 %v3817_v58, %v2340_v37  ;;  %v5302_v24 = vpop.f32.mrf.mxu0 }
 0x1cd   : > { %v3786_v11 = vpop.f32.mrf.mxu1 }
 0x1ce   : > { %v2343_v22 = vadd.f32 %v3786_v11, %v5198_v1  ;;  %v3821_v59 = vpop.f32.mrf.mxu0 }
 0x1cf   : > { %v5305_v30 = vpop.f32.mrf.mxu1 }
 0x1d0   : > { %v5307_v33 = vadd.f32 %v3820_v56, %v2343_v22  ;;  %v5309_v47 = vpop.f32.mrf.mxu0 }
 0x1d1   : > { %v3787_v3 = vpop.f32.mrf.mxu1 }
 0x1d2   : > { %5545 = vst [vmem:[#allocation15_spill] sm:$0xff] %v5307_v33  ;;  %v2344_v53 = vadd.f32 %v3787_v3, %v5204_v0  ;;  %v3824_v19 = vpop.f32.mrf.mxu0 }
 0x1d3   : > { %v5312_v36 = vpop.f32.mrf.mxu1 }
 0x1d4   : > { %v5314_v58 = vadd.f32 %v3821_v59, %v2344_v53  ;;  %v5316_v37 = vpop.f32.mrf.mxu0 }
 0x1d5   : > { %5547 = vst [vmem:[#allocation24_spill] sm:$0xff] %v5316_v37  ;;  %v3790_v61 = vpop.f32.mrf.mxu1 }
 0x1d6   : > { %5546 = vst [vmem:[#allocation19_spill] sm:$0xff] %v5314_v58  ;;  %v2347_v1 = vadd.f32 %v3790_v61, %v5210_v48  ;;  %v3825_v11 = vpop.f32.mrf.mxu0 }
 0x1d7   : > { %v5319_v6 = vpop.f32.mrf.mxu1 }
 0x1d8   : > { %5548 = vst [vmem:[#allocation5_spill] sm:$0xff] %v5319_v6  ;;  %v5321_v56 = vadd.f32 %v3824_v19, %v2347_v1  ;;  %v5323_v22 = vpop.f32.mrf.mxu0 }
 0x1d9   : > { %5550 = vst [vmem:[#allocation12_spill] sm:$0xff] %v5323_v22  ;;  %v3791_v40 = vpop.f32.mrf.mxu1 }
 0x1da   : > { %5549 = vst [vmem:[#allocation10_spill] sm:$0xff] %v5321_v56  ;;  %v2348_v0 = vadd.f32 %v3791_v40, %v5216_v27  ;;  %v3828_v3 = vpop.f32.mrf.mxu0 }
 0x1db   : > { %v5326_v33 = vpop.f32.mrf.mxu1 }
 0x1dc   : > { %5551 = vst [vmem:[#allocation14_spill] sm:$0xff] %v5326_v33  ;;  %v5328_v59 = vadd.f32 %v3825_v11, %v2348_v0  ;;  %v5330_v53 = vpop.f32.mrf.mxu0 }
 0x1dd   : > { %5553 = vst [vmem:[#allocation22_spill] sm:$0xff] %v5330_v53  ;;  %v3794_v37 = vpop.f32.mrf.mxu1 }
 0x1de   : > { %5552 = vst [vmem:[#allocation17_spill] sm:$0xff] %v5328_v59  ;;  %v2351_v48 = vadd.f32 %v3794_v37, %v5222_v18  ;;  %v3829_v61 = vpop.f32.mrf.mxu0  ;;  %v2322_v18 = vadd.f32 %v5242_v55, %v5147_v4  ;;  %v2326_v55 = vadd.f32 %v5256_v57, %v5159_v8 }
 0x1df   : > { %v5333_v58 = vpop.f32.mrf.mxu1 }
 0x1e0   : > { %5554 = vst [vmem:[#allocation25_spill] sm:$0xff] %v5333_v58  ;;  %v5335_v19 = vadd.f32 %v3828_v3, %v2351_v48  ;;  %v5337_v1 = vpop.f32.mrf.mxu0 }
 0x1e1   : > { %5556 = vst [vmem:[#allocation20_spill] sm:$0xff] %v5337_v1  ;;  %v3795_v56 = vpop.f32.mrf.mxu1  ;;  %v2528_v1 = vadd.f32 %v5237_v20, %v2322_v18 }
 0x1e2   : > { %5555 = vst [vmem:[#allocation2_spill] sm:$0xff] %v5335_v19  ;;  %v2352_v27 = vadd.f32 %v3795_v56, %v5228_v13  ;;  %v3868_v40 = vpop.f32.mrf.mxu0  ;;  %v2325_v13 = vadd.f32 %v5249_v34, %v5153_v5 }
 0x1e3   : > { %v5340_v22 = vpop.f32.mrf.mxu1 }
 0x1e4   : > { %5557 = vst [vmem:[#allocation16_spill] sm:$0xff] %v5340_v22  ;;  %v5342_v11 = vadd.f32 %v3829_v61, %v2352_v27  ;;  %v2840_v0 = vpop.f32.mrf.mxu0 }
 0x1e5   : > { %v3834_v53 = vpop.f32.mrf.mxu1 }
 0x1e6   : > { %5558 = vst [vmem:[#allocation18_spill] sm:$0xff] %v5342_v11  ;;  %v3869_v37 = vpop.f32.mrf.mxu0  ;;  %v2757_v56 = vadd.f32 %v3834_v53, %v5234_v54 }
 0x1e7   : > { %v2628_v59 = vpop.f32.mrf.mxu1 }
 0x1e8   : > { %v2755_v3 = vadd.f32 %v2628_v59, %v5239_v32  ;;  %v2843_v48 = vpop.f32.mrf.mxu0  ;;  %v2531_v59 = vadd.f32 %v5246_v62, %v2325_v13  ;;  %v2969_v33 = vadd.f32 %v3868_v40, %v2757_v56 }
 0x1e9   : > { %v3835_v19 = vpop.f32.mrf.mxu1 }
 0x1ea   : > { %v3872_v61 = vpop.f32.mrf.mxu0  ;;  %v2758_v27 = vadd.f32 %v3835_v19, %v5244_v46  ;;  %v2967_v22 = vadd.f32 %v2840_v0, %v2755_v3  ;;  %v2532_v19 = vadd.f32 %v5253_v44, %v2326_v55  ;;  %v3038_v0 = vmul.f32 %v2969_v33, %v2969_v33 }
 0x1eb   : > { %v2631_v11 = vpop.f32.mrf.mxu1 }
 0x1ec   : > { %v2756_v58 = vadd.f32 %v2631_v11, %v2528_v1  ;;  %v2856_v4 = vpop.f32.mrf.mxu0  ;;  %v2970_v6 = vadd.f32 %v3869_v37, %v2758_v27  ;;  %v3036_v34 = vmul.f32 %v2967_v22, %v2967_v22 }
 0x1ed   : > { %v3838_v32 = vpop.f32.mrf.mxu1 }
 0x1ee   : > { %v2968_v20 = vadd.f32 %v2843_v48, %v2756_v58  ;;  %v3873_v18 = vpop.f32.mrf.mxu0  ;;  %v2761_v1 = vadd.f32 %v3838_v32, %v5251_v15  ;;  %v2329_v58 = vadd.f32 %v5263_v23, %v5165_v60  ;;  %v3039_v40 = vmul.f32 %v2970_v6, %v2970_v6 }
 0x1ef   : > { %v2644_v5 = vpop.f32.mrf.mxu1  ;;  %v2330_v15 = vadd.f32 %v5270_v42, %v5171_v17 }
 0x1f0   : > { %v2999_v54 = vadd.f32 %v2968_v20, %v2967_v22  ;;  %v3037_v53 = vmul.f32 %v2968_v20, %v2968_v20  ;;  %v2759_v21 = vadd.f32 %v2644_v5, %v2531_v59  ;;  %v2859_v46 = vpop.f32.mrf.mxu0  ;;  %v2973_v44 = vadd.f32 %v3872_v61, %v2761_v1 }
 0x1f1   : > { %v3839_v11 = vpop.f32.mrf.mxu1  ;;  %v2535_v60 = vadd.f32 %v5260_v39, %v2329_v58 }
 0x1f2   : > { %v3000_v8 = vadd.f32 %v2999_v54, %v2969_v33  ;;  %v3068_v57 = vadd.f32 %v3037_v53, %v3036_v34  ;;  %v2971_v3 = vadd.f32 %v2856_v4, %v2759_v21  ;;  %v3876_v62 = vpop.f32.mrf.mxu0  ;;  %v2762_v13 = vadd.f32 %v3839_v11, %v5258_v9 }
 0x1f3   : > { %v2647_v37 = vpop.f32.mrf.mxu1  ;;  %v2333_v54 = vadd.f32 %v5277_v50, %v5177_v25  ;;  %v2536_v53 = vadd.f32 %v5267_v14, %v2330_v15 }
 0x1f4   : > { %v3069_v48 = vadd.f32 %v3068_v57, %v3038_v0  ;;  %v3001_v22 = vadd.f32 %v3000_v8, %v2970_v6  ;;  %v2760_v56 = vadd.f32 %v2647_v37, %v2532_v19  ;;  %v2872_v27 = vpop.f32.mrf.mxu0  ;;  %v3040_v32 = vmul.f32 %v2971_v3, %v2971_v3 }
 0x1f5   : > { %v3842_v55 = vpop.f32.mrf.mxu1  ;;  %v2974_v5 = vadd.f32 %v3873_v18, %v2762_v13  ;;  %v3042_v19 = vmul.f32 %v2973_v44, %v2973_v44  ;;  %v2539_v25 = vadd.f32 %v5274_v51, %v2333_v54  ;;  %v2337_v51 = vadd.f32 %v5291_v35, %v5189_v63 }
 0x1f6   : > { %v3002_v33 = vadd.f32 %v3001_v22, %v2971_v3  ;;  %v3070_v21 = vadd.f32 %v3069_v48, %v3039_v40  ;;  %v2972_v4 = vadd.f32 %v2859_v46, %v2760_v56  ;;  %v3877_v59 = vpop.f32.mrf.mxu0  ;;  %v2765_v17 = vadd.f32 %v3842_v55, %v5265_v31 }
 0x1f7   : > { %v2660_v23 = vpop.f32.mrf.mxu1  ;;  %v3043_v8 = vmul.f32 %v2974_v5, %v2974_v5  ;;  %v2334_v56 = vadd.f32 %v5284_v29, %v5183_v28  ;;  %v2543_v54 = vadd.f32 %v5288_v38, %v2337_v51 }
 0x1f8   : > { %v3071_v20 = vadd.f32 %v3070_v21, %v3040_v32  ;;  %v3003_v6 = vadd.f32 %v3002_v33, %v2972_v4  ;;  %v3041_v34 = vmul.f32 %v2972_v4, %v2972_v4  ;;  %v2875_v9 = vpop.f32.mrf.mxu0  ;;  %v2763_v42 = vadd.f32 %v2660_v23, %v2535_v60 }
 0x1f9   : > { %v3843_v61 = vpop.f32.mrf.mxu1  ;;  %v2977_v31 = vadd.f32 %v3876_v62, %v2765_v17 }
 0x1fa   : > { %v3004_v46 = vadd.f32 %v3003_v6, %v2973_v44  ;;  %v3072_v1 = vadd.f32 %v3071_v20, %v3041_v34  ;;  %v3880_v11 = vpop.f32.mrf.mxu0  ;;  %v2975_v39 = vadd.f32 %v2872_v27, %v2763_v42  ;;  %v2766_v0 = vadd.f32 %v3843_v61, %v5272_v43 }
 0x1fb   : > { %v2663_v18 = vpop.f32.mrf.mxu1  ;;  %v3046_v21 = vmul.f32 %v2977_v31, %v2977_v31  ;;  %v2338_v42 = vadd.f32 %v5298_v45, %v5195_v49 }
 0x1fc   : > { %v3073_v57 = vadd.f32 %v3072_v1, %v3042_v19  ;;  %v3005_v3 = vadd.f32 %v3004_v46, %v2974_v5  ;;  %v2764_v58 = vadd.f32 %v2663_v18, %v2536_v53  ;;  %v2888_v40 = vpop.f32.mrf.mxu0  ;;  %v3044_v48 = vmul.f32 %v2975_v39, %v2975_v39 }
 0x1fd   : > { %v3846_v50 = vpop.f32.mrf.mxu1  ;;  %v2978_v27 = vadd.f32 %v3877_v59, %v2766_v0  ;;  %v2540_v5 = vadd.f32 %v5281_v2, %v2334_v56 }
 0x1fe   : > { %v3006_v37 = vadd.f32 %v3005_v3, %v2975_v39  ;;  %v3074_v14 = vadd.f32 %v3073_v57, %v3043_v8  ;;  %v2976_v22 = vadd.f32 %v2875_v9, %v2764_v58  ;;  %v3881_v13 = vpop.f32.mrf.mxu0  ;;  %v2769_v28 = vadd.f32 %v3846_v50, %v5279_v26 }
 0x1ff   : > { %v2676_v43 = vpop.f32.mrf.mxu1  ;;  %v3047_v59 = vmul.f32 %v2978_v27, %v2978_v27  ;;  %v2341_v58 = vadd.f32 %v5305_v30, %v5201_v52  ;;  %v2342_v52 = vadd.f32 %v5312_v36, %v5207_v12 }
 0x200   : > { %v3075_v15 = vadd.f32 %v3074_v14, %v3044_v48  ;;  %v3007_v44 = vadd.f32 %v3006_v37, %v2976_v22  ;;  %v3045_v55 = vmul.f32 %v2976_v22, %v2976_v22  ;;  %v2767_v33 = vadd.f32 %v2676_v43, %v2539_v25  ;;  %v2891_v32 = vpop.f32.mrf.mxu0 }
 0x201   : > { %v3847_v62 = vpop.f32.mrf.mxu1  ;;  %v2981_v46 = vadd.f32 %v3880_v11, %v2769_v28 }
 0x202   : > { %v3008_v4 = vadd.f32 %v3007_v44, %v2977_v31  ;;  %v3076_v60 = vadd.f32 %v3075_v15, %v3045_v55  ;;  %v2979_v23 = vadd.f32 %v2888_v40, %v2767_v33  ;;  %v3884_v20 = vpop.f32.mrf.mxu0  ;;  %v2770_v17 = vadd.f32 %v3847_v62, %v5286_v10 }
 0x203   : > { %v2679_v29 = vpop.f32.mrf.mxu1  ;;  %v2544_v10 = vadd.f32 %v5295_v41, %v2338_v42  ;;  %v3050_v40 = vmul.f32 %v2981_v46, %v2981_v46  ;;  %v2547_v41 = vadd.f32 %v5302_v24, %v2341_v58  ;;  %v5559_v24 = vld [vmem:[#allocation9_spill] sm:$0xff] }
 0x204   : > { %v3077_v6 = vadd.f32 %v3076_v60, %v3046_v21  ;;  %v3009_v34 = vadd.f32 %v3008_v4, %v2978_v27  ;;  %v2904_v9 = vpop.f32.mrf.mxu0  ;;  %v2768_v63 = vadd.f32 %v2679_v29, %v2540_v5  ;;  %v3048_v53 = vmul.f32 %v2979_v23, %v2979_v23  ;;  %v5560_v5 = vld [vmem:[#allocation5_spill] sm:$0xff] }
 0x205   : > { %v3850_v35 = vpop.f32.mrf.mxu1  ;;  %v2982_v8 = vadd.f32 %v3881_v13, %v2770_v17  ;;  %v2345_v28 = vadd.f32 %v5560_v5, %v5559_v24 }
 0x206   : > { %v3010_v61 = vadd.f32 %v3009_v34, %v2979_v23  ;;  %v3078_v19 = vadd.f32 %v3077_v6, %v3047_v59  ;;  %v3885_v2 = vpop.f32.mrf.mxu0  ;;  %v2980_v26 = vadd.f32 %v2891_v32, %v2768_v63  ;;  %v2773_v49 = vadd.f32 %v3850_v35, %v5293_v16  ;;  %v5561_v59 = vld [vmem:[#allocation15_spill] sm:$0xff] }
 0x207   : > { %v2692_v1 = vpop.f32.mrf.mxu1  ;;  %v3051_v14 = vmul.f32 %v2982_v8, %v2982_v8  ;;  %v2548_v23 = vadd.f32 %v5309_v47, %v2342_v52  ;;  %v5563_v47 = vld [vmem:[#allocation24_spill] sm:$0xff] }
 0x208   : > { %v3079_v39 = vadd.f32 %v3078_v19, %v3048_v53  ;;  %v2771_v0 = vadd.f32 %v2692_v1, %v2543_v54  ;;  %v2907_v18 = vpop.f32.mrf.mxu0  ;;  %v3011_v57 = vadd.f32 %v3010_v61, %v2980_v26  ;;  %v3049_v38 = vmul.f32 %v2980_v26, %v2980_v26  ;;  %v5562_v61 = vld [vmem:[#allocation19_spill] sm:$0xff]  ;;  %v5565_v26 = vld [vmem:[#allocation14_spill] sm:$0xff] }
 0x209   : > { %v3851_v3 = vpop.f32.mrf.mxu1  ;;  %v2985_v16 = vadd.f32 %v3884_v20, %v2773_v49 }
 0x20a   : > { %v3888_v45 = vpop.f32.mrf.mxu0  ;;  %v3012_v25 = vadd.f32 %v3011_v57, %v2981_v46  ;;  %v3080_v11 = vadd.f32 %v3079_v39, %v3049_v38  ;;  %v2983_v31 = vadd.f32 %v2904_v9, %v2771_v0  ;;  %v2774_v56 = vadd.f32 %v3851_v3, %v5300_v7  ;;  %v5564_v46 = vld [vmem:[#allocation7_spill] sm:$0xff] }
 0x20b   : > { %v2695_v50 = vpop.f32.mrf.mxu1  ;;  %v3054_v12 = vmul.f32 %v2985_v16, %v2985_v16  ;;  %v2346_v1 = vadd.f32 %v5565_v26, %v5564_v46 }
 0x20c   : > { %v2772_v37 = vadd.f32 %v2695_v50, %v2544_v10  ;;  %v2920_v48 = vpop.f32.mrf.mxu0  ;;  %v3081_v22 = vadd.f32 %v3080_v11, %v3050_v40  ;;  %v3013_v13 = vadd.f32 %v3012_v25, %v2982_v8  ;;  %v3052_v44 = vmul.f32 %v2983_v31, %v2983_v31  ;;  %v5566_v50 = vld [vmem:[#allocation12_spill] sm:$0xff] }
 0x20d   : > { %v3854_v27 = vpop.f32.mrf.mxu1  ;;  %v2986_v4 = vadd.f32 %v3885_v2, %v2774_v56  ;;  %v2551_v2 = vadd.f32 %v5563_v47, %v2345_v28  ;;  %v5575_v47 = vld [vmem:[#allocation2_spill] sm:$0xff] }
 0x20e   : > { %v2984_v30 = vadd.f32 %v2907_v18, %v2772_v37  ;;  %v3889_v43 = vpop.f32.mrf.mxu0  ;;  %v3014_v15 = vadd.f32 %v3013_v13, %v2983_v31  ;;  %v3082_v55 = vadd.f32 %v3081_v22, %v3051_v14  ;;  %v2777_v6 = vadd.f32 %v3854_v27, %v5561_v59  ;;  %v5568_v14 = vld [vmem:[#allocation25_spill] sm:$0xff]  ;;  %v5569_v13 = vld [vmem:[#allocation10_spill] sm:$0xff] }
 0x20f   : > { %v2708_v33 = vpop.f32.mrf.mxu1  ;;  %v3055_v63 = vmul.f32 %v2986_v4, %v2986_v4  ;;  %v2552_v37 = vadd.f32 %v5566_v50, %v2346_v1 }
 0x210   : > { %v3053_v32 = vmul.f32 %v2984_v30, %v2984_v30  ;;  %v2775_v51 = vadd.f32 %v2708_v33, %v2547_v41  ;;  %v2923_v62 = vpop.f32.mrf.mxu0  ;;  %v3083_v21 = vadd.f32 %v3082_v55, %v3052_v44  ;;  %v3015_v60 = vadd.f32 %v3014_v15, %v2984_v30 }
 0x211   : > { %v3855_v7 = vpop.f32.mrf.mxu1  ;;  %v2989_v18 = vadd.f32 %v3888_v45, %v2777_v6 }
 0x212   : > { %v3892_v36 = vpop.f32.mrf.mxu0  ;;  %v3016_v20 = vadd.f32 %v3015_v60, %v2985_v16  ;;  %v3084_v29 = vadd.f32 %v3083_v21, %v3053_v32  ;;  %v2987_v34 = vadd.f32 %v2920_v48, %v2775_v51  ;;  %v2778_v53 = vadd.f32 %v3855_v7, %v5562_v61  ;;  %v5567_v48 = vld [vmem:[#allocation11_spill] sm:$0xff]  ;;  %v5571_v21 = vld [vmem:[#allocation22_spill] sm:$0xff]  ;;  %v5572_v60 = vld [vmem:[#allocation13_spill] sm:$0xff] }
 0x213   : > { %v2711_v9 = vpop.f32.mrf.mxu1  ;;  %v2349_v22 = vadd.f32 %v5568_v14, %v5567_v48  ;;  %v3058_v45 = vmul.f32 %v2989_v18, %v2989_v18  ;;  %v5573_v7 = vld [vmem:[#allocation16_spill] sm:$0xff] }
 0x214   : > { %v2776_v54 = vadd.f32 %v2711_v9, %v2548_v23  ;;  %v2936_v17 = vpop.f32.mrf.mxu0  ;;  %v3085_v35 = vadd.f32 %v3084_v29, %v3054_v12  ;;  %v3017_v42 = vadd.f32 %v3016_v20, %v2986_v4  ;;  %v3056_v57 = vmul.f32 %v2987_v34, %v2987_v34 }
 0x215   : > { %v3858_v19 = vpop.f32.mrf.mxu1  ;;  %v2990_v25 = vadd.f32 %v3889_v43, %v2778_v53  ;;  %v5570_v43 = vld [vmem:[#allocation17_spill] sm:$0xff]  ;;  %v2555_v4 = vadd.f32 %v5571_v21, %v2349_v22  ;;  %v2350_v23 = vadd.f32 %v5573_v7, %v5572_v60 }
 0x216   : > { %v2988_v39 = vadd.f32 %v2923_v62, %v2776_v54  ;;  %v3893_v0 = vpop.f32.mrf.mxu0  ;;  %v3018_v8 = vadd.f32 %v3017_v42, %v2987_v34  ;;  %v3086_v38 = vadd.f32 %v3085_v35, %v3055_v63  ;;  %v2781_v56 = vadd.f32 %v3858_v19, %v5569_v13  ;;  %v5574_v35 = vld [vmem:[#allocation20_spill] sm:$0xff] }
 0x217   : > { %v2724_v3 = vpop.f32.mrf.mxu1  ;;  %v3059_v44 = vmul.f32 %v2990_v25, %v2990_v25  ;;  %v2556_v42 = vadd.f32 %v5574_v35, %v2350_v23 }
 0x218   : > { %v3057_v10 = vmul.f32 %v2988_v39, %v2988_v39  ;;  %v2779_v58 = vadd.f32 %v2724_v3, %v2551_v2  ;;  %v2939_v49 = vpop.f32.mrf.mxu0  ;;  %v3087_v40 = vadd.f32 %v3086_v38, %v3056_v57  ;;  %v3019_v11 = vadd.f32 %v3018_v8, %v2988_v39  ;;  %v5576_v8 = vld [vmem:[#allocation18_spill] sm:$0xff] }
 0x219   : > { %v3859_v31 = vpop.f32.mrf.mxu1  ;;  %v2993_v24 = vadd.f32 %v3892_v36, %v2781_v56 }
 0x21a   : > { %v3896_v27 = vpop.f32.mrf.mxu0  ;;  %v3020_v41 = vadd.f32 %v3019_v11, %v2989_v18  ;;  %v3088_v52 = vadd.f32 %v3087_v40, %v3057_v10  ;;  %v2991_v16 = vadd.f32 %v2936_v17, %v2779_v58  ;;  %v2782_v32 = vadd.f32 %v3859_v31, %v5570_v43 }
 0x21b   : > { %v2727_v30 = vpop.f32.mrf.mxu1  ;;  %v3062_v61 = vmul.f32 %v2993_v24, %v2993_v24 }
 0x21c   : > { %v2780_v15 = vadd.f32 %v2727_v30, %v2552_v37  ;;  %v3089_v55 = vadd.f32 %v3088_v52, %v3058_v45  ;;  %v3021_v33 = vadd.f32 %v3020_v41, %v2990_v25  ;;  %v2952_v62 = vpop.f32.mrf.mxu0  ;;  %v3060_v12 = vmul.f32 %v2991_v16, %v2991_v16 }
 0x21d   : > { %v3862_v51 = vpop.f32.mrf.mxu1  ;;  %v2994_v9 = vadd.f32 %v3893_v0, %v2782_v32 }
 0x21e   : > { %v2992_v5 = vadd.f32 %v2939_v49, %v2780_v15  ;;  %v3022_v28 = vadd.f32 %v3021_v33, %v2991_v16  ;;  %v3090_v20 = vadd.f32 %v3089_v55, %v3059_v44  ;;  %v3897_v63 = vpop.f32.mrf.mxu0  ;;  %v2785_v2 = vadd.f32 %v3862_v51, %v5575_v47 }
 0x21f   : > { %v2740_v29 = vpop.f32.mrf.mxu1  ;;  %v3063_v1 = vmul.f32 %v2994_v9, %v2994_v9 }
 0x220   : > { %v3061_v59 = vmul.f32 %v2992_v5, %v2992_v5  ;;  %v2783_v6 = vadd.f32 %v2740_v29, %v2555_v4  ;;  %v3091_v34 = vadd.f32 %v3090_v20, %v3060_v12  ;;  %v3023_v54 = vadd.f32 %v3022_v28, %v2992_v5  ;;  %v2955_v38 = vpop.f32.mrf.mxu0 }
 0x221   : > { %v3863_v17 = vpop.f32.mrf.mxu1  ;;  %v2997_v3 = vadd.f32 %v3896_v27, %v2785_v2 }
 0x222   : > { %v3024_v53 = vadd.f32 %v3023_v54, %v2993_v24  ;;  %v3092_v19 = vadd.f32 %v3091_v34, %v3061_v59  ;;  %v2995_v36 = vadd.f32 %v2952_v62, %v2783_v6  ;;  %v2786_v57 = vadd.f32 %v3863_v17, %v5576_v8 }
 0x223   : > { %v2743_v46 = vpop.f32.mrf.mxu1  ;;  %v3066_v50 = vmul.f32 %v2997_v3, %v2997_v3 }
 0x224   : > { %v2784_v26 = vadd.f32 %v2743_v46, %v2556_v42  ;;  %v3093_v39 = vadd.f32 %v3092_v19, %v3062_v61  ;;  %v3025_v18 = vadd.f32 %v3024_v53, %v2994_v9  ;;  %v3064_v58 = vmul.f32 %v2995_v36, %v2995_v36 }
 0x225   : > { %v2998_v11 = vadd.f32 %v3897_v63, %v2786_v57 }
 0x226   : > { %v2996_v0 = vadd.f32 %v2955_v38, %v2784_v26  ;;  %v3026_v10 = vadd.f32 %v3025_v18, %v2995_v36  ;;  %v3094_v49 = vadd.f32 %v3093_v39, %v3063_v1 }
 0x227   : > { %v3067_v14 = vmul.f32 %v2998_v11, %v2998_v11 }
 0x228   : > { %v3065_v40 = vmul.f32 %v2996_v0, %v2996_v0  ;;  %v3095_v25 = vadd.f32 %v3094_v49, %v3064_v58  ;;  %v3027_v31 = vadd.f32 %v3026_v10, %v2996_v0 }
 0x22a   : > { %v3028_v37 = vadd.f32 %v3027_v31, %v2997_v3  ;;  %v3096_v48 = vadd.f32 %v3095_v25, %v3065_v40 }
 0x22c   : > { %v3029_v22 = vadd.f32 %v3028_v37, %v2998_v11  ;;  %v3097_v13 = vadd.f32 %v3096_v48, %v3066_v50 }
 0x22e   : > { %v3030_v56 = vrot.slane %v3029_v22, 4  ;;  %v3098_v45 = vadd.f32 %v3097_v13, %v3067_v14 }
 0x230   : > { %v3031_v41 = vadd.f32 %v3030_v56, %v3029_v22  ;;  %v3099_v52 = vrot.slane %v3098_v45, 4 }
 0x232   : > { %v3032_v16 = vrot.slane %v3031_v41, 2  ;;  %v3100_v27 = vadd.f32 %v3099_v52, %v3098_v45 }
 0x234   : > { %v3033_v30 = vadd.f32 %v3032_v16, %v3031_v41  ;;  %v3101_v15 = vrot.slane %v3100_v27, 2 }
 0x236   : > { %v3034_v44 = vrot.slane %v3033_v30, 1  ;;  %v3102_v55 = vadd.f32 %v3101_v15, %v3100_v27 }
 0x238   : > { %v3103_v33 = vrot.slane %v3102_v55, 1  ;;  %v3035_v43 = vadd.f32 %v3034_v44, %v3033_v30 }
 0x23a   : > { %v3104_v32 = vadd.f32 %v3103_v33, %v3102_v55 }
 0x23c   : > { %v3106_v51 = vsel %vm3105_vm8, %v3035_v43, %v3104_v32 }
 0x23d   : > { %3107 = vst [vmem:[%s281_s22] sm:$0x3] %v3106_v51 }
 0x23e PF: > { %s13_s14 = sadd.s32 1, %s3977_s14   ;;  %s5577_s12 = smov %s3973_s13 }
 0x23f   : > { %p10_p5 = scmp.ge.s32.totalorder %s13_s14, 4   ;;  %s5578_s13 = smov %s5580_s15 }
 0x241   :  { %12 = sbr.rel (!%p10_p5) target bundleno = 2 (0x2), region = 73 }

// kernel: double_conv2d.4
= control target key start
LH: loop header
LB: loop body
LE: loop exit
PB: predicated region body
PF: predicated region fallthrough
CT: control target
= control target key end

     0   :  { %s3999_s12 = smov 0   ;;  %s4001_s13 = smov 0   ;;  %s5419_s0 = inlined_call_operand.vmem [shape: bf16[2,18,18,4], index: 0, kind: input, shape index: {}, may-alias: {0,1}]   ;;  %s5420_s1 = inlined_call_operand.vmem [shape: bf16[2,18,18,4], index: 1, kind: input, shape index: {}, may-alias: {0,1}]   ;;  %s5421_s2 = inlined_call_operand.vmem [shape: bf16[9,4,128], index: 2, kind: input, shape index: {}]   ;;  %s5422_s3 = inlined_call_operand.vmem [shape: f32[2,2,128], index: 3, kind: output, shape index: {}]  }
   0x1   :  { %s4003_s14 = smov 0  }
   0x2 LB: > { %s25_s15 = sadd.s32 1, %s3973_s13  ;;  %p3207_p0 = scmp.ge.s32.totalorder %s3977_s14, 1  ;;  %s3977_s14 = sphi %s4003_s14, %s13_s14   ;;  %s3973_s13 = sphi %s4001_s13, %s5578_s13   ;;  %s3969_s12 = sphi %s3999_s12, %s5577_s12  }
   0x3   : > { %p27_p1 = scmp.ge.s32.totalorder %s25_s15, 2  ;;  %p195_p2 = scmp.lt.s32.totalorder %s3977_s14, 3 }
   0x5   : > { %s5580_s15 = smov (%p27_p1, %s25_s15), 0  ;;  %p196_p3 = pnand %p3207_p0, %p195_p2 }
   0x7   : > { %199 = sbr.rel (%p196_p3) target bundleno = 574 (0x23e), region = 32 }
   0xc   : > { %v3211_v0 = vld [vmem:[%s5421_s2 + $0x2] sm:$0x3]  ;;  %vm825_vm0 = vcmask 1041408   ;;  %p247_p4 = scmp.lt.s32.totalorder %s3969_s12, 1  ;;  %v338_v2 = vld [vmem:[%s5421_s2] sm:$0x3] }
   0xd   : > { %3901 = vmatprep.subr.msk.bf16.mxu1 %vm825_vm0, %v3211_v0  ;;  %3900 = vmatprep.subr.msk.bf16.mxu0 %vm825_vm0, %v3211_v0  ;;  %v827_v1 = vsel %vm825_vm0, %v3211_v0, 0  ;;  %v3292_v3 = vld [vmem:[%s5421_s2 + $0x4] sm:$0x3]  ;;  %vm339_vm1 = vsmask.f32 3328  ;;  %v4042_v4 = vsel %vm825_vm0, %v338_v2, 0 }
   0xe   : > { %3899 = vmatpush3.bf16.msra.mxu1 %v827_v1  ;;  %3593 = vmatpush3.bf16.msra.mxu0 %v827_v1  ;;  %s5582_s12 = smov (!%p247_p4, %s3969_s12), 1  ;;  %vm340_vm2 = vsmask.f32 7440  ;;  %v4045_v5 = vsel %vm825_vm0, %v3292_v3, 0  ;;  %vm776_vm3 = vcmask 31744   ;;  %v5466_v32 = vmov 0 }
   0xf   : > { %3902 = vmatprep.subr.msk.bf16.mxu1 %vm825_vm0, %v338_v2  ;;  %3903 = vmatprep.subr.msk.bf16.mxu0 %vm825_vm0, %v3292_v3  ;;  %s3910_s22 = smul.u32 216, %s5582_s12  ;;  %vm4084_vm4 = vmor %vm339_vm1, %vm340_vm2  ;;  %vm1298_vm5 = vcmask 1042432   ;;  %vm1299_vm6 = vcmask 1046532   ;;  %s3210_s19 = sshll.u32 %s5582_s12, 1  ;;  %vm3105_vm8 = vcmask 1040384  }
  0x10   : > { %v5467_v32 = vsel %vm4084_vm4, 4294967295, %v5466_v32  ;;  %vm4407_vm7 = vmor %vm1298_vm5, %vm1299_vm6 }
  0x11   : > { %s4039_s25 = scalar_lea.vmem %s5419_s0, %s3910_s22  ;;  %5468 = vst [vmem:[#allocation2_spill] sm:$0xff] %v5467_v32  ;;  %s3438_s7 = sadd.s32 192, %s3910_s22 }
  0x12   : > { %v4048_v6 = vld [vmem:[%s4039_s25] sm:$0xf]  ;;  %v4051_v7 = vld [vmem:[%s4039_s25 + $0x4] sm:$0xf]  ;;  %v4054_v8 = vld [vmem:[%s4039_s25 + $0x8] sm:$0x1]  ;;  %s4714_s10 = scalar_lea.vmem %s5420_s1, %s3438_s7  ;;  %s281_s22 = scalar_lea.vmem %s5422_s3, %s3210_s19 }
  0x13   : > { %v343_v9 = vshrl.u32 %v4048_v6, 16  ;;  %v346_v10 = vshll.u32 %v4048_v6, 16  ;;  %v352_v11 = vshll.u32 %v4051_v7, 16  ;;  %v356_v12 = vshrl.u32 %v4051_v7, 16  ;;  %v4061_v13 = vld [vmem:[%s4039_s25 + $0x60] sm:$0xf] }
  0x14   : > { %v362_v14 = vshll.u32 %v4054_v8, 16  ;;  %v4066_v16 = vld [vmem:[%s4039_s25 + $0x64] sm:$0xf]  ;;  %v4069_v17 = vld [vmem:[%s4039_s25 + $0x68] sm:$0x1]  ;;  %v535_v23 = vshrl.u32 %v4061_v13, 16 }
  0x15   : > { %v345_v18 = vrot.slane %v343_v9, 4  ;;  %v348_v19 = vrot.slane %v346_v10, 5  ;;  %v354_v20 = vrot.slane %v352_v11, 5  ;;  %v358_v21 = vrot.slane %v356_v12, 4  ;;  %v4077_v30 = vld [vmem:[%s4039_s25 + $0xc] sm:$0xf] }
  0x16   : > { %v364_v22 = vrot.slane %v362_v14, 5  ;;  %v538_v24 = vshll.u32 %v4061_v13, 16  ;;  %v544_v25 = vshll.u32 %v4066_v16, 16  ;;  %v548_v28 = vshrl.u32 %v4066_v16, 16  ;;  %v4080_v31 = vld [vmem:[%s4039_s25 + $0x10] sm:$0xf] }
  0x17   : > { %v349_v26 = vor.u32 %v348_v19, %v345_v18  ;;  %v359_v27 = vor.u32 %v358_v21, %v354_v20  ;;  %v554_v29 = vshll.u32 %v4069_v17, 16  ;;  %v537_v33 = vrot.slane %v535_v23, 4  ;;  %v4091_v42 = vld [vmem:[%s4039_s25 + $0x14] sm:$0x1]  ;;  %v4102_v54 = vld [vmem:[%s4039_s25 + $0x6c] sm:$0xf] }
  0x18   : > { %v540_v34 = vrot.slane %v538_v24, 5  ;;  %v546_v35 = vrot.slane %v544_v25, 5  ;;  %v550_v39 = vrot.slane %v548_v28, 4  ;;  %v367_v43 = vshrl.u32 %v4077_v30, 16  ;;  %5469 = vst [vmem:[#allocation3_spill] sm:$0xff] %v4102_v54 }
  0x19   : > { %v350_v37 = vrot.slane %v349_v26, 4  ;;  %v360_v38 = vrot.slane %v359_v27, 4  ;;  %v556_v40 = vrot.slane %v554_v29, 5  ;;  %v370_v44 = vshll.u32 %v4077_v30, 16  ;;  %v4106_v59 = vld [vmem:[%s4039_s25 + $0x70] sm:$0xf] }
  0x1a   : > { %v541_v41 = vor.u32 %v540_v34, %v537_v33  ;;  %v376_v45 = vshll.u32 %v4080_v31, 16  ;;  %v551_v48 = vor.u32 %v550_v39, %v546_v35  ;;  %v380_v49 = vshrl.u32 %v4080_v31, 16  ;;  %v4114_v0 = vld [vmem:[%s4039_s25 + $0x74] sm:$0x1]  ;;  %v4120_v10 = vld [vmem:[%s4039_s25 + $0x18] sm:$0xf] }
  0x1b   : > { %v355_v46 = vsel %vm4084_vm4, %v350_v37, %v354_v20  ;;  %v365_v47 = vsel %vm4084_vm4, %v360_v38, %v364_v22  ;;  %v369_v52 = vrot.slane %v367_v43, 4  ;;  %v372_v53 = vrot.slane %v370_v44, 5  ;;  %5470 = vst [vmem:[#allocation4_spill] sm:$0xff] %v4114_v0  ;;  %v4129_v23 = vld [vmem:[%s4039_s25 + $0x1c] sm:$0xf] }
  0x1c   : > { %v3212_v50 = vcombine.low %v355_v46, %v365_v47  ;;  %v542_v51 = vrot.slane %v541_v41, 4  ;;  %v552_v55 = vrot.slane %v551_v48, 4  ;;  %v378_v56 = vrot.slane %v376_v45, 5  ;;  %v4136_v27 = vld [vmem:[%s4039_s25 + $0x20] sm:$0x1] }
  0x1d   : > { %v382_v57 = vrot.slane %v380_v49, 4  ;;  %v386_v58 = vshll.u32 %v4091_v42, 16  ;;  %v373_v61 = vor.u32 %v372_v53, %v369_v52  ;;  %v559_v9 = vshrl.u32 %v4102_v54, 16  ;;  %v4143_v37 = vld [vmem:[%s4039_s25 + $0x78] sm:$0xf] }
  0x1e   : > { %3594 = vmatprep.mubr.msk.bf16.mxu0 %vm776_vm3, %v3212_v50  ;;  %v547_v60 = vsel %vm4084_vm4, %v542_v51, %v546_v35  ;;  %v557_v1 = vsel %vm4084_vm4, %v552_v55, %v556_v40  ;;  %v562_v14 = vshll.u32 %v4102_v54, 16  ;;  %v568_v18 = vshll.u32 %v4106_v59, 16  ;;  %5472 = vst [vmem:[#allocation6_spill] sm:$0xff] %v4143_v37  ;;  %v4151_v43 = vld [vmem:[%s5421_s2 + $0x8] sm:$0x3] }
  0x1f   : > { %v383_v2 = vor.u32 %v382_v57, %v378_v56  ;;  %v388_v3 = vrot.slane %v386_v58, 5  ;;  %v4122_v11 = vcombine.low %v547_v60, %v557_v1  ;;  %v374_v12 = vrot.slane %v373_v61, 4  ;;  %v4156_v48 = vld [vmem:[%s4039_s25 + $0x7c] sm:$0xf]  ;;  %v4164_v58 = vld [vmem:[%s4039_s25 + $0x80] sm:$0x1] }
  0x20   : > { %v561_v20 = vrot.slane %v559_v9, 4  ;;  %v572_v21 = vshrl.u32 %v4106_v59, 16  ;;  %v578_v22 = vshll.u32 %v4114_v0, 16  ;;  %v564_v25 = vrot.slane %v562_v14, 5  ;;  %5474 = vst [vmem:[#allocation8_spill] sm:$0xff] %v4156_v48  ;;  %5475 = vst [vmem:[#allocation9_spill] sm:$0xff] %v4164_v58 }
  0x21   : > { %5471 = vst [vmem:[#allocation5_spill] sm:$0xff] %v4122_v11  ;;  %v384_v19 = vrot.slane %v383_v2, 4  ;;  %3610 = vmatprep.mubr.msk.bf16.mxu1 %vm776_vm3, %v4122_v11  ;;  %v379_v24 = vsel %vm4084_vm4, %v374_v12, %v378_v56  ;;  %v570_v26 = vrot.slane %v568_v18, 5  ;;  %v391_v28 = vshrl.u32 %v4120_v10, 16  ;;  %v4178_v18 = vld [vmem:[%s4039_s25 + $0x28] sm:$0xf] }
  0x22   : > { %v574_v33 = vrot.slane %v572_v21, 4  ;;  %v580_v34 = vrot.slane %v578_v22, 5  ;;  %v394_v35 = vshll.u32 %v4120_v10, 16  ;;  %v565_v39 = vor.u32 %v564_v25, %v561_v20 }
  0x23   : > { %v389_v29 = vsel %vm4084_vm4, %v384_v19, %v388_v3  ;;  %v393_v40 = vrot.slane %v391_v28, 4  ;;  %v400_v41 = vshll.u32 %v4129_v23, 16  ;;  %v404_v46 = vshrl.u32 %v4129_v23, 16  ;;  %v4170_v3 = vld [vmem:[%s4039_s25 + $0x24] sm:$0xf] }
  0x24   : > { %v4145_v38 = vcombine.low %v379_v24, %v389_v29  ;;  %v575_v44 = vor.u32 %v574_v33, %v570_v26  ;;  %v396_v45 = vrot.slane %v394_v35, 5  ;;  %v410_v47 = vshll.u32 %v4136_v27, 16  ;;  %v4186_v24 = vld [vmem:[%s5421_s2 + $0x6] sm:$0x3]  ;;  %v4191_v29 = vld [vmem:[%s4039_s25 + $0x2c] sm:$0x1] }
  0x25   : > { %v566_v49 = vrot.slane %v565_v39, 4  ;;  %v402_v50 = vrot.slane %v400_v41, 5  ;;  %v583_v51 = vshrl.u32 %v4143_v37, 16  ;;  %v586_v52 = vshll.u32 %v4143_v37, 16  ;;  %v4199_v41 = vld [vmem:[%s4039_s25 + $0x84] sm:$0xf] }
  0x26   : > { %5473 = vst [vmem:[#allocation7_spill] sm:$0xff] %v4145_v38  ;;  %3595 = vmatmul.mubr.msk.bf16.vlgmr.msra.gmra.mxu0 %vm776_vm3, %v4145_v38  ;;  %v576_v53 = vrot.slane %v575_v44, 4  ;;  %v397_v55 = vor.u32 %v396_v45, %v393_v40  ;;  %v406_v56 = vrot.slane %v404_v46, 4  ;;  %v412_v57 = vrot.slane %v410_v47, 5  ;;  %v4346_v38 = vld [vmem:[%s4039_s25 + $0xb0] sm:$0x1] }
  0x27   : > { %3661 = vmatpush3.bf16.msra.mxu0 %v4045_v5  ;;  %v571_v60 = vsel %vm4084_vm4, %v566_v49, %v570_v26  ;;  %v585_v61 = vrot.slane %v583_v51, 4  ;;  %v588_v1 = vrot.slane %v586_v52, 5  ;;  %v592_v2 = vshll.u32 %v4156_v48, 16  ;;  %v4206_v49 = vld [vmem:[%s4039_s25 + $0x88] sm:$0xf]  ;;  %5487 = vst [vmem:[#allocation21_spill] sm:$0xff] %v4346_v38 }
  0x28   : > { %3905 = vmatprep.subr.msk.bf16.mxu0 %vm825_vm0, %v4151_v43  ;;  %v581_v5 = vsel %vm4084_vm4, %v576_v53, %v580_v34  ;;  %v398_v9 = vrot.slane %v397_v55, 4  ;;  %v407_v12 = vor.u32 %v406_v56, %v402_v50  ;;  %v596_v14 = vshrl.u32 %v4156_v48, 16  ;;  %v4368_v48 = vld [vmem:[%s4039_s25 + $0x5c] sm:$0x1] }
  0x29   : > { %v4180_v19 = vcombine.low %v571_v60, %v581_v5  ;;  %v589_v20 = vor.u32 %v588_v1, %v585_v61  ;;  %v594_v21 = vrot.slane %v592_v2, 5  ;;  %v602_v22 = vshll.u32 %v4164_v58, 16 }
  0x2a   : > { %v403_v25 = vsel %vm4084_vm4, %v398_v9, %v402_v50  ;;  %v408_v26 = vrot.slane %v407_v12, 4  ;;  %v598_v28 = vrot.slane %v596_v14, 4  ;;  %v415_v33 = vshrl.u32 %v4170_v3, 16  ;;  %v4225_v9 = vld [vmem:[%s4039_s25 + $0x30] sm:$0xf] }
  0x2b   : > { %5476 = vst [vmem:[#allocation10_spill] sm:$0xff] %v4180_v19  ;;  %3611 = vmatmul.mubr.msk.bf16.vlgmr.msra.gmra.mxu1 %vm776_vm3, %v4180_v19  ;;  %v590_v34 = vrot.slane %v589_v20, 4  ;;  %v604_v35 = vrot.slane %v602_v22, 5  ;;  %v418_v39 = vshll.u32 %v4170_v3, 16  ;;  %v424_v40 = vshll.u32 %v4178_v18, 16 }
  0x2c   : > { %3627 = vmatpush3.bf16.msra.mxu1 %v4042_v4  ;;  %v413_v44 = vsel %vm4084_vm4, %v408_v26, %v412_v57  ;;  %v599_v45 = vor.u32 %v598_v28, %v594_v21  ;;  %v417_v46 = vrot.slane %v415_v33, 4  ;;  %v428_v47 = vshrl.u32 %v4178_v18, 16  ;;  %v4216_v57 = vld [vmem:[%s4039_s25 + $0x8c] sm:$0x1]  ;;  %v4230_v22 = vld [vmem:[%s4039_s25 + $0x34] sm:$0xf] }
  0x2d   : > { %v4208_v50 = vcombine.low %v403_v25, %v413_v44  ;;  %v595_v51 = vsel %vm4084_vm4, %v590_v34, %v594_v21  ;;  %v420_v52 = vrot.slane %v418_v39, 5  ;;  %v426_v53 = vrot.slane %v424_v40, 5  ;;  %3904 = vmatprep.subr.msk.bf16.mxu1 %vm825_vm0, %v4186_v24 }
  0x2e   : > { %v600_v4 = vrot.slane %v599_v45, 4  ;;  %v430_v55 = vrot.slane %v428_v47, 4  ;;  %v434_v56 = vshll.u32 %v4191_v29, 16  ;;  %v607_v60 = vshrl.u32 %v4199_v41, 16 }
  0x2f   : > { %5477 = vst [vmem:[#allocation11_spill] sm:$0xff] %v4208_v50  ;;  %3598 = vmatprep.mubr.msk.bf16.mxu0 %vm776_vm3, %v4208_v50  ;;  %v421_v61 = vor.u32 %v420_v52, %v417_v46  ;;  %v610_v1 = vshll.u32 %v4199_v41, 16  ;;  %v616_v2 = vshll.u32 %v4206_v49, 16  ;;  %v620_v5 = vshrl.u32 %v4206_v49, 16  ;;  %v4241_v46 = vld [vmem:[%s4039_s25 + $0x38] sm:$0x1] }
  0x30   : > { %v605_v12 = vsel %vm4084_vm4, %v600_v4, %v604_v35  ;;  %v431_v14 = vor.u32 %v430_v55, %v426_v53  ;;  %v436_v20 = vrot.slane %v434_v56, 5  ;;  %v609_v21 = vrot.slane %v607_v60, 4  ;;  %v4246_v52 = vld [vmem:[%s4039_s25 + $0x90] sm:$0xf] }
  0x31   : > { %v4232_v25 = vcombine.low %v595_v51, %v605_v12  ;;  %v422_v26 = vrot.slane %v421_v61, 4  ;;  %v612_v28 = vrot.slane %v610_v1, 5  ;;  %v618_v33 = vrot.slane %v616_v2, 5  ;;  %v4251_v61 = vld [vmem:[%s4039_s25 + $0x94] sm:$0xf] }
  0x32   : > { %v432_v34 = vrot.slane %v431_v14, 4  ;;  %v622_v39 = vrot.slane %v620_v5, 4  ;;  %v626_v40 = vshll.u32 %v4216_v57, 16  ;;  %v439_v44 = vshrl.u32 %v4225_v9, 16 }
  0x33   : > { %5478 = vst [vmem:[#allocation12_spill] sm:$0xff] %v4232_v25  ;;  %3614 = vmatprep.mubr.msk.bf16.mxu1 %vm776_vm3, %v4232_v25  ;;  %v427_v35 = vsel %vm4084_vm4, %v422_v26, %v426_v53  ;;  %v613_v45 = vor.u32 %v612_v28, %v609_v21  ;;  %v442_v47 = vshll.u32 %v4225_v9, 16  ;;  %v448_v51 = vshll.u32 %v4230_v22, 16  ;;  %v4297_v25 = vld [vmem:[%s4039_s25 + $0xa0] sm:$0xf] }
  0x34   : > { %v437_v4 = vsel %vm4084_vm4, %v432_v34, %v436_v20  ;;  %v623_v55 = vor.u32 %v622_v39, %v618_v33  ;;  %v628_v56 = vrot.slane %v626_v40, 5  ;;  %v441_v60 = vrot.slane %v439_v44, 4  ;;  %v4263_v34 = vld [vmem:[%s4039_s25 + $0x98] sm:$0x1]  ;;  %v4268_v44 = vld [vmem:[%s4039_s25 + $0x3c] sm:$0xf] }
  0x35   : > { %v4253_v53 = vcombine.low %v427_v35, %v437_v4  ;;  %v614_v1 = vrot.slane %v613_v45, 4  ;;  %v444_v2 = vrot.slane %v442_v47, 5  ;;  %v450_v5 = vrot.slane %v448_v51, 5  ;;  %v4273_v4 = vld [vmem:[%s4039_s25 + $0x40] sm:$0xf] }
  0x36   : > { %v624_v12 = vrot.slane %v623_v55, 4  ;;  %v452_v14 = vshrl.u32 %v4230_v22, 16  ;;  %v458_v21 = vshll.u32 %v4241_v46, 16  ;;  %v631_v20 = vshrl.u32 %v4246_v52, 16 }
  0x37   : > { %5479 = vst [vmem:[#allocation13_spill] sm:$0xff] %v4253_v53  ;;  %3599 = vmatmul.mubr.msk.bf16.gmra.mxu0 %vm776_vm3, %v4253_v53  ;;  %v619_v26 = vsel %vm4084_vm4, %v614_v1, %v618_v33  ;;  %v445_v28 = vor.u32 %v444_v2, %v441_v60  ;;  %v634_v39 = vshll.u32 %v4246_v52, 16  ;;  %v640_v40 = vshll.u32 %v4251_v61, 16 }
  0x38   : > { %v629_v35 = vsel %vm4084_vm4, %v624_v12, %v628_v56  ;;  %v454_v45 = vrot.slane %v452_v14, 4  ;;  %v460_v47 = vrot.slane %v458_v21, 5  ;;  %v633_v51 = vrot.slane %v631_v20, 4  ;;  %v4285_v14 = vld [vmem:[%s4039_s25 + $0x44] sm:$0x1] }
  0x39   : > { %v4275_v33 = vcombine.low %v619_v26, %v629_v35  ;;  %v446_v55 = vrot.slane %v445_v28, 4  ;;  %v636_v60 = vrot.slane %v634_v39, 5  ;;  %v642_v1 = vrot.slane %v640_v40, 5  ;;  %v4290_v26 = vld [vmem:[%s4039_s25 + $0x9c] sm:$0xf] }
  0x3a   : > { %v455_v2 = vor.u32 %v454_v45, %v450_v5  ;;  %v644_v36 = vshrl.u32 %v4251_v61, 16  ;;  %v650_v63 = vshll.u32 %v4263_v34, 16  ;;  %v463_v15 = vshrl.u32 %v4268_v44, 16 }
  0x3b   : > { %5480 = vst [vmem:[#allocation14_spill] sm:$0xff] %v4275_v33  ;;  %3615 = vmatmul.mubr.msk.bf16.gmra.mxu1 %vm776_vm3, %v4275_v33  ;;  %v451_v56 = vsel %vm4084_vm4, %v446_v55, %v450_v5  ;;  %v637_v12 = vor.u32 %v636_v60, %v633_v51  ;;  %v466_v21 = vshll.u32 %v4268_v44, 16  ;;  %v472_v20 = vshll.u32 %v4273_v4, 16 }
  0x3c   : > { %v456_v28 = vrot.slane %v455_v2, 4  ;;  %v646_v39 = vrot.slane %v644_v36, 4  ;;  %v652_v40 = vrot.slane %v650_v63, 5  ;;  %v465_v35 = vrot.slane %v463_v15, 4 }
  0x3d   : > { %v638_v45 = vrot.slane %v637_v12, 4  ;;  %v468_v62 = vrot.slane %v466_v21, 5  ;;  %v474_v33 = vrot.slane %v472_v20, 5  ;;  %v476_v5 = vshrl.u32 %v4273_v4, 16  ;;  %v4305_v21 = vld [vmem:[%s4039_s25 + $0xa4] sm:$0x1] }
  0x3e   : > { %v461_v51 = vsel %vm4084_vm4, %v456_v28, %v460_v47  ;;  %v647_v55 = vor.u32 %v646_v39, %v642_v1  ;;  %v482_v60 = vshll.u32 %v4285_v14, 16  ;;  %v655_v2 = vshrl.u32 %v4290_v26, 16  ;;  %5482 = vst [vmem:[#allocation16_spill] sm:$0xff] %v4305_v21  ;;  %v4308_v20 = vld [vmem:[%s4039_s25 + $0x48] sm:$0xf] }
  0x3f   : > { %v4300_v36 = vcombine.low %v451_v56, %v461_v51  ;;  %v643_v15 = vsel %vm4084_vm4, %v638_v45, %v642_v1  ;;  %v469_v63 = vor.u32 %v468_v62, %v465_v35  ;;  %v478_v12 = vrot.slane %v476_v5, 4 }
  0x40   : > { %v648_v47 = vrot.slane %v647_v55, 4  ;;  %v484_v28 = vrot.slane %v482_v60, 5  ;;  %v657_v39 = vrot.slane %v655_v2, 4  ;;  %v658_v19 = vshll.u32 %v4290_v26, 16  ;;  %v4319_v55 = vld [vmem:[%s4039_s25 + $0x4c] sm:$0xf] }
  0x41   : > { %5481 = vst [vmem:[#allocation15_spill] sm:$0xff] %v4300_v36  ;;  %3602 = vmatprep.mubr.msk.bf16.mxu0 %vm776_vm3, %v4300_v36  ;;  %v470_v56 = vrot.slane %v469_v63, 4  ;;  %v479_v51 = vor.u32 %v478_v12, %v474_v33  ;;  %v664_v1 = vshll.u32 %v4297_v25, 16  ;;  %v668_v62 = vshrl.u32 %v4297_v25, 16  ;;  %v4327_v36 = vld [vmem:[%s4039_s25 + $0x50] sm:$0x1] }
  0x42   : > { %v653_v35 = vsel %vm4084_vm4, %v648_v47, %v652_v40  ;;  %v660_v45 = vrot.slane %v658_v19, 5  ;;  %v674_v5 = vshll.u32 %v4305_v21, 16  ;;  %v487_v60 = vshrl.u32 %v4308_v20, 16  ;;  %v4330_v47 = vld [vmem:[%s4039_s25 + $0xa8] sm:$0xf] }
  0x43   : > { %v4322_v2 = vcombine.low %v643_v15, %v653_v35  ;;  %v475_v63 = vsel %vm4084_vm4, %v470_v56, %v474_v33  ;;  %v480_v12 = vrot.slane %v479_v51, 4  ;;  %v666_v11 = vrot.slane %v664_v1, 5  ;;  %5484 = vst [vmem:[#allocation18_spill] sm:$0xff] %v4330_v47 }
  0x44   : > { %v661_v53 = vor.u32 %v660_v45, %v657_v39  ;;  %v670_v50 = vrot.slane %v668_v62, 4  ;;  %v676_v40 = vrot.slane %v674_v5, 5  ;;  %v489_v19 = vrot.slane %v487_v60, 4  ;;  %v4343_v45 = vld [vmem:[%s4039_s25 + $0xac] sm:$0xf] }
  0x45   : > { %5483 = vst [vmem:[#allocation17_spill] sm:$0xff] %v4322_v2  ;;  %3618 = vmatprep.mubr.msk.bf16.mxu1 %vm776_vm3, %v4322_v2  ;;  %v485_v15 = vsel %vm4084_vm4, %v480_v12, %v484_v28  ;;  %v490_v33 = vshll.u32 %v4308_v20, 16  ;;  %v496_v56 = vshll.u32 %v4319_v55, 16  ;;  %v500_v51 = vshrl.u32 %v4319_v55, 16  ;;  %5486 = vst [vmem:[#allocation20_spill] sm:$0xff] %v4343_v45 }
  0x46   : > { %v4339_v1 = vcombine.low %v475_v63, %v485_v15  ;;  %v662_v39 = vrot.slane %v661_v53, 4  ;;  %v671_v62 = vor.u32 %v670_v50, %v666_v11  ;;  %v506_v35 = vshll.u32 %v4327_v36, 16 }
  0x47   : > { %v492_v5 = vrot.slane %v490_v33, 5  ;;  %v498_v60 = vrot.slane %v496_v56, 5  ;;  %v502_v2 = vrot.slane %v500_v51, 4  ;;  %v679_v28 = vshrl.u32 %v4330_v47, 16  ;;  %v4356_v51 = vld [vmem:[%s4039_s25 + $0x54] sm:$0xf] }
  0x48   : > { %5485 = vst [vmem:[#allocation19_spill] sm:$0xff] %v4339_v1  ;;  %3603 = vmatmul.mubr.msk.bf16.gmra.mxu0 %vm776_vm3, %v4339_v1  ;;  %v667_v53 = vsel %vm4084_vm4, %v662_v39, %v666_v11  ;;  %v672_v50 = vrot.slane %v671_v62, 4  ;;  %v508_v63 = vrot.slane %v506_v35, 5  ;;  %v682_v12 = vshll.u32 %v4330_v47, 16  ;;  %v4363_v62 = vld [vmem:[%s4039_s25 + $0x58] sm:$0xf] }
  0x49   : > { %v493_v15 = vor.u32 %v492_v5, %v489_v19  ;;  %v503_v58 = vor.u32 %v502_v2, %v498_v60  ;;  %v681_v33 = vrot.slane %v679_v28, 4  ;;  %v688_v56 = vshll.u32 %v4343_v45, 16 }
  0x4a   : > { %v677_v1 = vsel %vm4084_vm4, %v672_v50, %v676_v40  ;;  %v684_v37 = vrot.slane %v682_v12, 5  ;;  %v692_v11 = vshrl.u32 %v4343_v45, 16  ;;  %v698_v39 = vshll.u32 %v4346_v38, 16 }
  0x4b   : > { %v4365_v2 = vcombine.low %v667_v53, %v677_v1  ;;  %v494_v19 = vrot.slane %v493_v15, 4  ;;  %v504_v35 = vrot.slane %v503_v58, 4  ;;  %v690_v5 = vrot.slane %v688_v56, 5 }
  0x4c   : > { %v685_v28 = vor.u32 %v684_v37, %v681_v33  ;;  %v694_v0 = vrot.slane %v692_v11, 4  ;;  %v700_v54 = vrot.slane %v698_v39, 5  ;;  %v511_v40 = vshrl.u32 %v4356_v51, 16  ;;  %v4380_v37 = vld [vmem:[%s4039_s25 + $0xb4] sm:$0xf] }
  0x4d   : > { %5488 = vst [vmem:[#allocation22_spill] sm:$0xff] %v4365_v2  ;;  %3619 = vmatmul.mubr.msk.bf16.gmra.mxu1 %vm776_vm3, %v4365_v2  ;;  %v499_v50 = vsel %vm4084_vm4, %v494_v19, %v498_v60  ;;  %v509_v1 = vsel %vm4084_vm4, %v504_v35, %v508_v63  ;;  %v514_v58 = vshll.u32 %v4356_v51, 16  ;;  %v520_v53 = vshll.u32 %v4363_v62, 16  ;;  %5489 = vst [vmem:[#allocation23_spill] sm:$0xff] %v4380_v37  ;;  %v4385_v11 = vld [vmem:[%s4039_s25 + $0xb8] sm:$0xf] }
  0x4e   : > { %v4382_v12 = vcombine.low %v499_v50, %v509_v1  ;;  %v686_v15 = vrot.slane %v685_v28, 4  ;;  %v695_v33 = vor.u32 %v694_v0, %v690_v5  ;;  %v513_v56 = vrot.slane %v511_v40, 4 }
  0x4f   : > { %v516_v39 = vrot.slane %v514_v58, 5  ;;  %v522_v2 = vrot.slane %v520_v53, 5  ;;  %v524_v60 = vshrl.u32 %v4363_v62, 16  ;;  %v530_v63 = vshll.u32 %v4368_v48, 16  ;;  %v4396_v58 = vld [vmem:[%s4039_s25 + $0xbc] sm:$0x1] }
  0x50   : > { %5490 = vst [vmem:[#allocation24_spill] sm:$0xff] %v4382_v12  ;;  %3606 = vmatprep.mubr.msk.bf16.mxu0 %vm776_vm3, %v4382_v12  ;;  %v691_v19 = vsel %vm4084_vm4, %v686_v15, %v690_v5  ;;  %v696_v35 = vrot.slane %v695_v33, 4  ;;  %v703_v28 = vshrl.u32 %v4380_v37, 16  ;;  %v706_v0 = vshll.u32 %v4380_v37, 16 }
  0x51   : > { %v517_v40 = vor.u32 %v516_v39, %v513_v56  ;;  %v526_v50 = vrot.slane %v524_v60, 4  ;;  %v532_v1 = vrot.slane %v530_v63, 5  ;;  %v712_v53 = vshll.u32 %v4385_v11, 16 }
  0x52   : > { %v701_v38 = vsel %vm4084_vm4, %v696_v35, %v700_v54  ;;  %v705_v47 = vrot.slane %v703_v28, 4  ;;  %v708_v12 = vrot.slane %v706_v0, 5  ;;  %v716_v45 = vshrl.u32 %v4385_v11, 16 }
  0x53   : > { %v4402_v5 = vcombine.low %v691_v19, %v701_v38  ;;  %v518_v15 = vrot.slane %v517_v40, 4  ;;  %v527_v33 = vor.u32 %v526_v50, %v522_v2  ;;  %v714_v21 = vrot.slane %v712_v53, 5 }
  0x54   : > { %v709_v37 = vor.u32 %v708_v12, %v705_v47  ;;  %v718_v56 = vrot.slane %v716_v45, 4  ;;  %v722_v39 = vshll.u32 %v4396_v58, 16  ;;  %v3276_v54 = vrot.slane %v4048_v6, 9 }
  0x55   : > { %3622 = vmatprep.mubr.msk.bf16.mxu1 %vm776_vm3, %v4402_v5  ;;  %v523_v38 = vsel %vm4084_vm4, %v518_v15, %v522_v2  ;;  %v528_v63 = vrot.slane %v527_v33, 4  ;;  %v1303_v47 = vrot.slane %v4051_v7, 5  ;;  %v4419_v45 = vcombine.low %v4077_v30, %v4080_v31 }
  0x56   : > { %v710_v12 = vrot.slane %v709_v37, 4  ;;  %v719_v19 = vor.u32 %v718_v56, %v714_v21  ;;  %v724_v35 = vrot.slane %v722_v39, 5  ;;  %v3277_v28 = vrot.slane %v4077_v30, 9 }
  0x57   : > { %v533_v0 = vsel %vm4084_vm4, %v528_v63, %v532_v1  ;;  %v1304_v40 = vsel %vm4407_vm7, %v3276_v54, %v1303_v47  ;;  %v1305_v50 = vrot.slane %v1303_v47, 4  ;;  %v5493_v2 = vrot.slane %v4080_v31, 5 }
  0x58   : > { %v4428_v15 = vcombine.low %v523_v38, %v533_v0  ;;  %v715_v33 = vsel %vm4084_vm4, %v710_v12, %v714_v21  ;;  %v720_v37 = vrot.slane %v719_v19, 4  ;;  %v5495_v1 = vrot.slane %v4054_v8, 5 }
  0x59   : > { %v1312_v53 = vrot.slane %v5493_v2, 4  ;;  %v5494_v56 = vmov %v5493_v2  ;;  %v5496_v54 = vrot.slane %v4091_v42, 5  ;;  %v4446_v63 = vcombine.low %v4120_v10, %v4129_v23 }
  0x5a   : > { %v1311_v30 = vsel %vm4407_vm7, %v3277_v28, %v5494_v56  ;;  %v1307_v39 = vsel %vm4407_vm7, %v1305_v50, %v5495_v1  ;;  %v3278_v21 = vrot.slane %v4120_v10, 9  ;;  %3607 = vmatmul.mubr.msk.bf16.gmra.mxu0 %vm776_vm3, %v4428_v15  ;;  %v725_v8 = vsel %vm4084_vm4, %v720_v37, %v724_v35 }
  0x5b   : > { %v1314_v38 = vsel %vm4407_vm7, %v1312_v53, %v5496_v54  ;;  %v3293_v31 = vcombine.low %v1304_v40, %v1307_v39  ;;  %v1317_v42 = vrot.slane %v4129_v23, 5  ;;  %v4456_v12 = vcombine.low %v715_v33, %v725_v8 }
  0x5c   : > { %v4453_v47 = vcombine.low %v1311_v30, %v1314_v38  ;;  %v1320_v19 = vrot.slane %v4136_v27, 5  ;;  %v1324_v0 = vrot.slane %v4178_v18, 5  ;;  %v3279_v35 = vrot.slane %v4170_v3, 9 }
  0x5d   : > { %5497 = vst [vmem:[#allocation25_spill] sm:$0xff] %v4456_v12  ;;  %3662 = vmatprep.mubr.msk.bf16.mxu0 %vm776_vm3, %v3293_v31  ;;  %v1318_v10 = vsel %vm4407_vm7, %v3278_v21, %v1317_v42  ;;  %v1319_v28 = vrot.slane %v1317_v42, 4  ;;  %3623 = vmatmul.mubr.msk.bf16.gmra.mxu1 %vm776_vm3, %v4456_v12  ;;  %v3280_v40 = vrot.slane %v4225_v9, 9  ;;  %v1331_v23 = vrot.slane %v4230_v22, 5 }
  0x5e   : > { %v5498_v27 = vcombine.low %v4048_v6, %v4051_v7  ;;  %v1326_v2 = vrot.slane %v1324_v0, 4  ;;  %v1327_v53 = vrot.slane %v4191_v29, 5  ;;  %v1334_v33 = vrot.slane %v4241_v46, 5  ;;  %v4491_v46 = vld [vmem:[%s5421_s2 + $0xc] sm:$0x3] }
  0x5f   : > { %v1321_v50 = vsel %vm4407_vm7, %v1319_v28, %v1320_v19  ;;  %v1333_v56 = vrot.slane %v1331_v23, 4  ;;  %v1946_v30 = vsel %vm825_vm0, %v4151_v43, 0  ;;  %v1338_v1 = vrot.slane %v4273_v4, 5  ;;  %v4508_v19 = vld [vmem:[%s5421_s2 + $0xa] sm:$0x3] }
  0x60   : > { %3628 = vmatprep.mubr.msk.bf16.mxu1 %vm776_vm3, %v5498_v27  ;;  %v4476_v37 = vcombine.low %v1318_v10, %v1321_v50  ;;  %v1718_v6 = vsel %vm825_vm0, %v4186_v24, 0  ;;  %v1325_v7 = vsel %vm4407_vm7, %v3279_v35, %v1324_v0  ;;  %v1332_v39 = vsel %vm4407_vm7, %v3280_v40, %v1331_v23 }
  0x61   : > { %v1345_v29 = vrot.slane %v4319_v55, 5  ;;  %v1328_v43 = vsel %vm4407_vm7, %v1326_v2, %v1327_v53  ;;  %v1335_v24 = vsel %vm4407_vm7, %v1333_v56, %v1334_v33  ;;  %v3281_v54 = vrot.slane %v4268_v44, 9 }
  0x62   : > { %3663 = vmatmul.mubr.msk.bf16.vlgmr.msra.gmra.mxu0 %vm776_vm3, %v4453_v47  ;;  %v1341_v38 = vrot.slane %v4285_v14, 5  ;;  %v1340_v21 = vrot.slane %v1338_v1, 4  ;;  %v3282_v8 = vrot.slane %v4308_v20, 9  ;;  %v1348_v42 = vrot.slane %v4327_v36, 5 }
  0x63   : > { %3729 = vmatpush3.bf16.msra.mxu0 %v1946_v30  ;;  %3666 = vmatprep.mubr.msk.bf16.mxu0 %vm776_vm3, %v4476_v37  ;;  %v1347_v31 = vrot.slane %v1345_v29, 4  ;;  %v4516_v14 = vcombine.low %v1325_v7, %v1328_v43  ;;  %v4518_v10 = vcombine.low %v1332_v39, %v1335_v24  ;;  %v1339_v36 = vsel %vm4407_vm7, %v3281_v54, %v1338_v1 }
  0x64   : > { %3907 = vmatprep.subr.msk.bf16.mxu0 %vm825_vm0, %v4491_v46  ;;  %v1342_v28 = vsel %vm4407_vm7, %v1340_v21, %v1341_v38  ;;  %v1346_v0 = vsel %vm4407_vm7, %v3282_v8, %v1345_v29  ;;  %v1352_v40 = vrot.slane %v4363_v62, 5  ;;  %v1362_v23 = vrot.slane %v4069_v17, 5  ;;  %v5499_v8 = vld [vmem:[#allocation16_spill] sm:$0xff] }
  0x65   : > { %3629 = vmatmul.mubr.msk.bf16.vlgmr.msra.gmra.mxu1 %vm776_vm3, %v4419_v45  ;;  %v1349_v35 = vsel %vm4407_vm7, %v1347_v31, %v1348_v42  ;;  %v3283_v27 = vrot.slane %v4356_v51, 9  ;;  %v3284_v50 = vrot.slane %v4061_v13, 9  ;;  %v1359_v2 = vrot.slane %v4066_v16, 5  ;;  %v5500_v42 = vld [vmem:[#allocation20_spill] sm:$0xff] }
  0x66   : > { %3695 = vmatpush3.bf16.msra.mxu1 %v1718_v6  ;;  %3632 = vmatprep.mubr.msk.bf16.mxu1 %vm776_vm3, %v4446_v63  ;;  %v4537_v53 = vcombine.low %v4170_v3, %v4178_v18  ;;  %v4541_v33 = vcombine.low %v4225_v9, %v4230_v22  ;;  %v4545_v56 = vcombine.low %v4268_v44, %v4273_v4  ;;  %v1355_v3 = vrot.slane %v4368_v48, 5 }
  0x67   : > { %3906 = vmatprep.subr.msk.bf16.mxu1 %vm825_vm0, %v4508_v19  ;;  %v4549_v17 = vcombine.low %v4308_v20, %v4319_v55  ;;  %v4553_v30 = vcombine.low %v1339_v36, %v1342_v28  ;;  %v4555_v1 = vcombine.low %v1346_v0, %v1349_v35  ;;  %v4560_v18 = vcombine.low %v4199_v41, %v4206_v49  ;;  %v5501_v36 = vld [vmem:[#allocation18_spill] sm:$0xff] }
  0x68   : > { %v1354_v9 = vrot.slane %v1352_v40, 4  ;;  %v3287_v22 = vrot.slane %v4199_v41, 9  ;;  %v1380_v44 = vrot.slane %v4206_v49, 5  ;;  %v1383_v4 = vrot.slane %v4216_v57, 5 }
  0x69   : > { %v1353_v20 = vsel %vm4407_vm7, %v3283_v27, %v1352_v40  ;;  %v1360_v48 = vsel %vm4407_vm7, %v3284_v50, %v1359_v2  ;;  %v1361_v55 = vrot.slane %v1359_v2, 4  ;;  %v4573_v6 = vcombine.low %v4246_v52, %v4251_v61  ;;  %v5502_v40 = vld [vmem:[#allocation21_spill] sm:$0xff] }
  0x6a   : > { %3667 = vmatmul.mubr.msk.bf16.gmra.mxu0 %vm776_vm3, %v4516_v14  ;;  %v1381_v41 = vsel %vm4407_vm7, %v3287_v22, %v1380_v44  ;;  %v1382_v49 = vrot.slane %v1380_v44, 4  ;;  %v3288_v57 = vrot.slane %v4246_v52, 9  ;;  %v1387_v7 = vrot.slane %v4251_v61, 5 }
  0x6b   : > { %3670 = vmatprep.mubr.msk.bf16.mxu0 %vm776_vm3, %v4518_v10  ;;  %v1366_v39 = vrot.slane %v4106_v59, 5  ;;  %v1390_v29 = vrot.slane %v4263_v34, 5  ;;  %v4587_v43 = vcombine.low %v4290_v26, %v4297_v25  ;;  %v3289_v24 = vrot.slane %v4290_v26, 9 }
  0x6c   : > { %v1356_v54 = vsel %vm4407_vm7, %v1354_v9, %v1355_v3  ;;  %v1384_v52 = vsel %vm4407_vm7, %v1382_v49, %v1383_v4  ;;  %v1388_v61 = vsel %vm4407_vm7, %v3288_v57, %v1387_v7  ;;  %v1389_v38 = vrot.slane %v1387_v7, 4  ;;  %v5503_v3 = vld [vmem:[#allocation23_spill] sm:$0xff]  ;;  %v5504_v57 = vld [vmem:[#allocation8_spill] sm:$0xff] }
  0x6d   : > { %3633 = vmatmul.mubr.msk.bf16.gmra.mxu1 %vm776_vm3, %v4537_v53  ;;  %v4596_v21 = vcombine.low %v1381_v41, %v1384_v52  ;;  %v1394_v34 = vrot.slane %v4297_v25, 5  ;;  %v1397_v31 = vrot.slane %v5499_v8, 5  ;;  %v4602_v28 = vcombine.low %v5501_v36, %v5500_v42 }
  0x6e   : > { %3636 = vmatprep.mubr.msk.bf16.mxu1 %vm776_vm3, %v4541_v33  ;;  %v1391_v26 = vsel %vm4407_vm7, %v1389_v38, %v1390_v29  ;;  %v3290_v0 = vrot.slane %v5501_v36, 9  ;;  %v1401_v35 = vrot.slane %v5500_v42, 5  ;;  %v1404_v27 = vrot.slane %v5502_v40, 5  ;;  %v5506_v42 = vld [vmem:[#allocation4_spill] sm:$0xff] }
  0x6f   : > { %v4611_v50 = vcombine.low %v1388_v61, %v1391_v26  ;;  %v1395_v25 = vsel %vm4407_vm7, %v3289_v24, %v1394_v34  ;;  %v1396_v2 = vrot.slane %v1394_v34, 4  ;;  %v4617_v9 = vcombine.low %v5503_v3, %v4385_v11 }
  0x70   : > { %v1402_v22 = vsel %vm4407_vm7, %v3290_v0, %v1401_v35  ;;  %v1403_v44 = vrot.slane %v1401_v35, 4  ;;  %v3291_v4 = vrot.slane %v5503_v3, 9  ;;  %v1408_v41 = vrot.slane %v4385_v11, 5  ;;  %v5507_v0 = vld [vmem:[#allocation6_spill] sm:$0xff] }
  0x71   : > { %v1363_v49 = vsel %vm4407_vm7, %v1361_v55, %v1362_v23  ;;  %v1373_v7 = vrot.slane %v5504_v57, 5  ;;  %v1398_v29 = vsel %vm4407_vm7, %v1396_v2, %v1397_v31  ;;  %v1411_v24 = vrot.slane %v4396_v58, 5  ;;  %v5505_v55 = vld [vmem:[#allocation3_spill] sm:$0xff] }
  0x72   : > { %3671 = vmatmul.mubr.msk.bf16.gmra.mxu0 %vm776_vm3, %v4553_v30  ;;  %v4633_v52 = vcombine.low %v1395_v25, %v1398_v29  ;;  %v1405_v61 = vsel %vm4407_vm7, %v1403_v44, %v1404_v27  ;;  %v1409_v11 = vsel %vm4407_vm7, %v3291_v4, %v1408_v41  ;;  %v1410_v38 = vrot.slane %v1408_v41, 4  ;;  %v5508_v27 = vld [vmem:[#allocation9_spill] sm:$0xff]  ;;  %v4727_v4 = vld [vmem:[%s4714_s10] sm:$0xf]  ;;  %v334_v41 = vld [vmem:[%s4714_s10 + $0x8] sm:$0x1] }
  0x73   : > { %3674 = vmatprep.mubr.msk.bf16.mxu0 %vm776_vm3, %v4555_v1  ;;  %v4641_v23 = vcombine.low %v1353_v20, %v1356_v54  ;;  %v3285_v34 = vrot.slane %v5505_v55, 9  ;;  %v4644_v58 = vcombine.low %v1402_v22, %v1405_v61  ;;  %v4646_v8 = vcombine.low %v1360_v48, %v1363_v49  ;;  %v5509_v61 = vld [vmem:[#allocation7_spill] sm:$0xff] }
  0x74   : > { %v1368_v31 = vrot.slane %v1366_v39, 4  ;;  %v1369_v36 = vrot.slane %v5506_v42, 5  ;;  %v1412_v26 = vsel %vm4407_vm7, %v1410_v38, %v1411_v24  ;;  %v3286_v35 = vrot.slane %v5507_v0, 9  ;;  %v5511_v42 = vld [vmem:[#allocation13_spill] sm:$0xff] }
  0x75   : > { %3637 = vmatmul.mubr.msk.bf16.gmra.mxu1 %vm776_vm3, %v4545_v56  ;;  %v1375_v40 = vrot.slane %v1373_v7, 4  ;;  %v1376_v25 = vrot.slane %v5508_v27, 5  ;;  %v4653_v2 = vcombine.low %v1409_v11, %v1412_v26  ;;  %v4657_v20 = vcombine.low %v4356_v51, %v4363_v62  ;;  %v5515_v26 = vld [vmem:[#allocation5_spill] sm:$0xff] }
  0x76   : > { %3640 = vmatprep.mubr.msk.bf16.mxu1 %vm776_vm3, %v4549_v17  ;;  %v4663_v48 = vcombine.low %v4061_v13, %v4066_v16  ;;  %v1367_v54 = vsel %vm4407_vm7, %v3285_v34, %v1366_v39  ;;  %v1370_v3 = vsel %vm4407_vm7, %v1368_v31, %v1369_v36  ;;  %v1374_v51 = vsel %vm4407_vm7, %v3286_v35, %v1373_v7  ;;  %v5510_v34 = vld [vmem:[#allocation11_spill] sm:$0xff]  ;;  %v5514_v36 = vld [vmem:[#allocation24_spill] sm:$0xff] }
  0x77   : > { %v1377_v62 = vsel %vm4407_vm7, %v1375_v40, %v1376_v25  ;;  %v4679_v13 = vcombine.low %v1367_v54, %v1370_v3  ;;  %v4685_v39 = vcombine.low %v5505_v55, %v4106_v59  ;;  %v4691_v22 = vcombine.low %v5507_v0, %v5504_v57  ;;  %v4721_v59 = vld [vmem:[%s4714_s10 + $0x4] sm:$0xf]  ;;  %v3417_v55 = vld [vmem:[%s5421_s2 + $0x10] sm:$0x3] }
  0x78   : > { %v4681_v16 = vcombine.low %v1374_v51, %v1377_v62  ;;  %v2144_v44 = vrot.slane %v4721_v59, 5  ;;  %v3361_v49 = vrot.slane %v4727_v4, 9  ;;  %v2147_v7 = vrot.slane %v334_v41, 5  ;;  %v5516_v0 = vld [vmem:[#allocation10_spill] sm:$0xff]  ;;  %v5517_v35 = vld [vmem:[#allocation12_spill] sm:$0xff] }
  0x79   : > { %v2364_v38 = vsel %vm825_vm0, %v4491_v46, 0  ;;  %v2158_v31 = vsel %vm825_vm0, %v4508_v19, 0  ;;  %v5512_v46 = vld [vmem:[#allocation15_spill] sm:$0xff]  ;;  %v5518_v40 = vld [vmem:[#allocation14_spill] sm:$0xff]  ;;  %v1914_v27 = vshrl.u32 %v4727_v4, 16  ;;  %v1917_v25 = vshll.u32 %v4727_v4, 16 }
  0x7a   : > { %3675 = vmatmul.mubr.msk.bf16.gmra.mxu0 %vm776_vm3, %v4641_v23  ;;  %v2146_v57 = vrot.slane %v2144_v44, 4  ;;  %v2145_v29 = vsel %vm4407_vm7, %v3361_v49, %v2144_v44  ;;  %v5513_v19 = vld [vmem:[#allocation19_spill] sm:$0xff]  ;;  %v1927_v54 = vshrl.u32 %v4721_v59, 16  ;;  %v1923_v3 = vshll.u32 %v4721_v59, 16 }
  0x7b   : > { %3678 = vmatprep.mubr.msk.bf16.mxu0 %vm776_vm3, %v4646_v8  ;;  %v1916_v51 = vrot.slane %v1914_v27, 4  ;;  %v1919_v62 = vrot.slane %v1917_v25, 5 }
  0x7c   : > { %v2148_v24 = vsel %vm4407_vm7, %v2146_v57, %v2147_v7  ;;  %v1925_v44 = vrot.slane %v1923_v3, 5  ;;  %v1929_v49 = vrot.slane %v1927_v54, 4  ;;  %v5519_v57 = vld [vmem:[#allocation17_spill] sm:$0xff]  ;;  %v5520_v7 = vld [vmem:[#allocation22_spill] sm:$0xff]  ;;  %v3326_v3 = vcombine.low %v4727_v4, %v4721_v59 }
  0x7d   : > { %3641 = vmatmul.mubr.msk.bf16.gmra.mxu1 %vm776_vm3, %v4657_v20  ;;  %v4739_v11 = vcombine.low %v2145_v29, %v2148_v24  ;;  %v1920_v29 = vor.u32 %v1919_v62, %v1916_v51  ;;  %v2804_v51 = vsel %vm825_vm0, %v3417_v55, 0 }
  0x7e   : > { %3644 = vmatprep.mubr.msk.bf16.mxu1 %vm776_vm3, %v4663_v48  ;;  %v1930_v24 = vor.u32 %v1929_v49, %v1925_v44 }
  0x82   : > { %3679 = vmatmul.mubr.msk.bf16.gmra.mxu0 %vm776_vm3, %v4679_v13 }
  0x83   : > { %3682 = vmatprep.mubr.msk.bf16.mxu0 %vm776_vm3, %v4681_v16 }
  0x85   : > { %3645 = vmatmul.mubr.msk.bf16.gmra.mxu1 %vm776_vm3, %v4685_v39 }
  0x86   : > { %3648 = vmatprep.mubr.msk.bf16.mxu1 %vm776_vm3, %v4691_v22 }
  0x8a   : > { %3683 = vmatmul.mubr.msk.bf16.gmra.mxu0 %vm776_vm3, %v4596_v21 }
  0x8b   : > { %3686 = vmatprep.mubr.msk.bf16.mxu0 %vm776_vm3, %v4611_v50 }
  0x8d   : > { %3649 = vmatmul.mubr.msk.bf16.gmra.mxu1 %vm776_vm3, %v4560_v18 }
  0x8e   : > { %3652 = vmatprep.mubr.msk.bf16.mxu1 %vm776_vm3, %v4573_v6 }
  0x92   : > { %3687 = vmatmul.mubr.msk.bf16.gmra.mxu0 %vm776_vm3, %v4633_v52 }
  0x93   : > { %3690 = vmatprep.mubr.msk.bf16.mxu0 %vm776_vm3, %v4644_v58 }
  0x95   : > { %3653 = vmatmul.mubr.msk.bf16.gmra.mxu1 %vm776_vm3, %v4587_v43 }
  0x96   : > { %3656 = vmatprep.mubr.msk.bf16.mxu1 %vm776_vm3, %v4602_v28 }
  0x9a   : > { %3691 = vmatmul.mubr.msk.bf16.gmra.mxu0 %vm776_vm3, %v4653_v2 }
  0x9b   : > { %3730 = vmatprep.mubr.msk.bf16.mxu0 %vm776_vm3, %v5509_v61  ;;  %v1933_v61 = vshll.u32 %v334_v41, 16 }
  0x9d   : > { %3657 = vmatmul.mubr.msk.bf16.gmra.mxu1 %vm776_vm3, %v4617_v9  ;;  %v1935_v27 = vrot.slane %v1933_v61, 5  ;;  %v4931_v61 = vld [vmem:[%s4714_s10 + $0x10] sm:$0xf] }
  0x9e   : > { %3696 = vmatprep.mubr.msk.bf16.mxu1 %vm776_vm3, %v4419_v45  ;;  %v3398_v45 = vld [vmem:[%s5421_s2 + $0xe] sm:$0x3] }
  0x9f   : > { %v2592_v62 = vsel %vm825_vm0, %v3398_v45, 0 }
  0xa2   : > { %3731 = vmatmul.mubr.msk.bf16.vlgmr.msra.gmra.mxu0 %vm776_vm3, %v5510_v34 }
  0xa3   : > { %3797 = vmatpush3.bf16.msra.mxu0 %v2364_v38  ;;  %3734 = vmatprep.mubr.msk.bf16.mxu0 %vm776_vm3, %v5511_v42  ;;  %v1921_v38 = vrot.slane %v1920_v29, 4 }
  0xa4   : > { %3909 = vmatprep.subr.msk.bf16.mxu0 %vm825_vm0, %v3417_v55 }
  0xa5   : > { %3697 = vmatmul.mubr.msk.bf16.vlgmr.msra.gmra.mxu1 %vm776_vm3, %v4446_v63  ;;  %v1926_v25 = vsel %vm4084_vm4, %v1921_v38, %v1925_v44 }
  0xa6   : > { %3763 = vmatpush3.bf16.msra.mxu1 %v2158_v31  ;;  %3700 = vmatprep.mubr.msk.bf16.mxu1 %vm776_vm3, %v4537_v53  ;;  %v1931_v31 = vrot.slane %v1930_v24, 4 }
  0xa7   : > { %3908 = vmatprep.subr.msk.bf16.mxu1 %vm825_vm0, %v3398_v45 }
  0xa8   : > { %v1936_v41 = vsel %vm4084_vm4, %v1931_v31, %v1935_v27 }
  0xa9   : > { %v4821_v54 = vcombine.low %v1926_v25, %v1936_v41 }
  0xaa   : > { %3735 = vmatmul.mubr.msk.bf16.gmra.mxu0 %vm776_vm3, %v5512_v46 }
  0xab   : > { %3738 = vmatprep.mubr.msk.bf16.mxu0 %vm776_vm3, %v5513_v19  ;;  %5521 = vst [vmem:[#allocation16_spill] sm:$0xff] %v4821_v54 }
  0xad   : > { %3701 = vmatmul.mubr.msk.bf16.gmra.mxu1 %vm776_vm3, %v4541_v33 }
  0xae   : > { %3704 = vmatprep.mubr.msk.bf16.mxu1 %vm776_vm3, %v4545_v56 }
  0xb2   : > { %3739 = vmatmul.mubr.msk.bf16.gmra.mxu0 %vm776_vm3, %v5514_v36 }
  0xb3   : > { %3742 = vmatprep.mubr.msk.bf16.mxu0 %vm776_vm3, %v4428_v15 }
  0xb5   : > { %3705 = vmatmul.mubr.msk.bf16.gmra.mxu1 %vm776_vm3, %v4549_v17 }
  0xb6   : > { %3708 = vmatprep.mubr.msk.bf16.mxu1 %vm776_vm3, %v4657_v20 }
  0xba   : > { %3743 = vmatmul.mubr.msk.bf16.gmra.mxu0 %vm776_vm3, %v5515_v26 }
  0xbb   : > { %3746 = vmatprep.mubr.msk.bf16.mxu0 %vm776_vm3, %v5516_v0 }
  0xbd   : > { %3709 = vmatmul.mubr.msk.bf16.gmra.mxu1 %vm776_vm3, %v4663_v48 }
  0xbe   : > { %3712 = vmatprep.mubr.msk.bf16.mxu1 %vm776_vm3, %v4685_v39 }
  0xc2   : > { %3747 = vmatmul.mubr.msk.bf16.gmra.mxu0 %vm776_vm3, %v5517_v35 }
  0xc3   : > { %3750 = vmatprep.mubr.msk.bf16.mxu0 %vm776_vm3, %v5518_v40 }
  0xc5   : > { %3713 = vmatmul.mubr.msk.bf16.gmra.mxu1 %vm776_vm3, %v4691_v22 }
  0xc6   : > { %3716 = vmatprep.mubr.msk.bf16.mxu1 %vm776_vm3, %v4560_v18 }
  0xca   : > { %3751 = vmatmul.mubr.msk.bf16.gmra.mxu0 %vm776_vm3, %v5519_v57 }
  0xcb   : > { %3754 = vmatprep.mubr.msk.bf16.mxu0 %vm776_vm3, %v5520_v7 }
  0xcd   : > { %3717 = vmatmul.mubr.msk.bf16.gmra.mxu1 %vm776_vm3, %v4573_v6 }
  0xce   : > { %3720 = vmatprep.mubr.msk.bf16.mxu1 %vm776_vm3, %v4587_v43 }
  0xd2   : > { %3755 = vmatmul.mubr.msk.bf16.gmra.mxu0 %vm776_vm3, %v4402_v5 }
  0xd3   : > { %3758 = vmatprep.mubr.msk.bf16.mxu0 %vm776_vm3, %v4456_v12 }
  0xd5   : > { %3721 = vmatmul.mubr.msk.bf16.gmra.mxu1 %vm776_vm3, %v4602_v28 }
  0xd6   : > { %3724 = vmatprep.mubr.msk.bf16.mxu1 %vm776_vm3, %v4617_v9 }
  0xda   : > { %3759 = vmatmul.mubr.msk.bf16.gmra.mxu0 %vm776_vm3, %v4821_v54 }
  0xdb   : > { %3798 = vmatprep.mubr.msk.bf16.mxu0 %vm776_vm3, %v4446_v63 }
  0xdd   : > { %3725 = vmatmul.mubr.msk.bf16.gmra.mxu1 %vm776_vm3, %v3326_v3 }
  0xde   : > { %3764 = vmatprep.mubr.msk.bf16.mxu1 %vm776_vm3, %v4453_v47 }
  0xe2   : > { %3799 = vmatmul.mubr.msk.bf16.vlgmr.msra.gmra.mxu0 %vm776_vm3, %v4537_v53 }
  0xe3   : > { %3865 = vmatpush3.bf16.msra.mxu0 %v2804_v51  ;;  %3802 = vmatprep.mubr.msk.bf16.mxu0 %vm776_vm3, %v4541_v33 }
  0xe5   : > { %3765 = vmatmul.mubr.msk.bf16.vlgmr.msra.gmra.mxu1 %vm776_vm3, %v4476_v37 }
  0xe6   : > { %3831 = vmatpush3.bf16.msra.mxu1 %v2592_v62  ;;  %3768 = vmatprep.mubr.msk.bf16.mxu1 %vm776_vm3, %v4516_v14  ;;  %v4844_v63 = vpop.f32.mrf.mxu0 }
  0xe8   : > { %v4854_v53 = vpop.f32.mrf.mxu0 }
  0xea   : > { %3803 = vmatmul.mubr.msk.bf16.gmra.mxu0 %vm776_vm3, %v4545_v56  ;;  %v4860_v56 = vpop.f32.mrf.mxu0 }
  0xeb   : > { %3806 = vmatprep.mubr.msk.bf16.mxu0 %vm776_vm3, %v4549_v17  ;;  %v4850_v47 = vpop.f32.mrf.mxu1 }
  0xec   : > { %v4870_v59 = vpop.f32.mrf.mxu0 }
  0xed   : > { %3769 = vmatmul.mubr.msk.bf16.gmra.mxu1 %vm776_vm3, %v4518_v10  ;;  %v4856_v33 = vpop.f32.mrf.mxu1 }
  0xee   : > { %3772 = vmatprep.mubr.msk.bf16.mxu1 %vm776_vm3, %v4553_v30 }
  0xef   : > { %v4866_v17 = vpop.f32.mrf.mxu1 }
  0xf1   : > { %v4872_v4 = vpop.f32.mrf.mxu1 }
  0xf2   : > { %3807 = vmatmul.mubr.msk.bf16.gmra.mxu0 %vm776_vm3, %v4657_v20 }
  0xf3   : > { %3810 = vmatprep.mubr.msk.bf16.mxu0 %vm776_vm3, %v4663_v48 }
  0xf5   : > { %3773 = vmatmul.mubr.msk.bf16.gmra.mxu1 %vm776_vm3, %v4555_v1 }
  0xf6   : > { %3776 = vmatprep.mubr.msk.bf16.mxu1 %vm776_vm3, %v4641_v23 }
  0xf7   : > { %v4876_v20 = vpop.f32.mrf.mxu0 }
  0xf9   : > { %v4886_v55 = vpop.f32.mrf.mxu0 }
  0xfa   : > { %3811 = vmatmul.mubr.msk.bf16.gmra.mxu0 %vm776_vm3, %v4685_v39 }
  0xfb   : > { %3814 = vmatprep.mubr.msk.bf16.mxu0 %vm776_vm3, %v4691_v22  ;;  %v4882_v48 = vpop.f32.mrf.mxu1  ;;  %v4892_v39 = vpop.f32.mrf.mxu0 }
  0xfd   : > { %3777 = vmatmul.mubr.msk.bf16.gmra.mxu1 %vm776_vm3, %v4646_v8  ;;  %v4888_v45 = vpop.f32.mrf.mxu1  ;;  %v4902_v44 = vpop.f32.mrf.mxu0 }
  0xfe   : > { %3780 = vmatprep.mubr.msk.bf16.mxu1 %vm776_vm3, %v4679_v13 }
  0xff   : > { %v4898_v22 = vpop.f32.mrf.mxu1 }
 0x101   : > { %v4904_v49 = vpop.f32.mrf.mxu1 }
 0x102   : > { %3815 = vmatmul.mubr.msk.bf16.gmra.mxu0 %vm776_vm3, %v4560_v18 }
 0x103   : > { %3818 = vmatprep.mubr.msk.bf16.mxu0 %vm776_vm3, %v4573_v6 }
 0x105   : > { %3781 = vmatmul.mubr.msk.bf16.gmra.mxu1 %vm776_vm3, %v4681_v16 }
 0x106   : > { %3784 = vmatprep.mubr.msk.bf16.mxu1 %vm776_vm3, %v4596_v21 }
 0x108   : > { %v4908_v18 = vpop.f32.mrf.mxu0 }
 0x10a   : > { %3819 = vmatmul.mubr.msk.bf16.gmra.mxu0 %vm776_vm3, %v4587_v43  ;;  %v4918_v29 = vpop.f32.mrf.mxu0 }
 0x10b   : > { %3822 = vmatprep.mubr.msk.bf16.mxu0 %vm776_vm3, %v4602_v28  ;;  %v4928_v28 = vld [vmem:[%s4714_s10 + $0xc] sm:$0xf] }
 0x10c   : > { %v4924_v43 = vpop.f32.mrf.mxu0 }
 0x10d   : > { %3785 = vmatmul.mubr.msk.bf16.gmra.mxu1 %vm776_vm3, %v4611_v50  ;;  %v4914_v6 = vpop.f32.mrf.mxu1 }
 0x10e   : > { %5522 = vst [vmem:[#allocation20_spill] sm:$0xff] %v4914_v6  ;;  %3788 = vmatprep.mubr.msk.bf16.mxu1 %vm776_vm3, %v4633_v52  ;;  %v4937_v31 = vpop.f32.mrf.mxu0 }
 0x10f   : > { %v4920_v24 = vpop.f32.mrf.mxu1 }
 0x110   : > { %5523 = vst [vmem:[#allocation18_spill] sm:$0xff] %v4920_v24 }
 0x111   : > { %v4935_v38 = vpop.f32.mrf.mxu1 }
 0x112   : > { %3823 = vmatmul.mubr.msk.bf16.gmra.mxu0 %vm776_vm3, %v4617_v9  ;;  %5524 = vst [vmem:[#allocation21_spill] sm:$0xff] %v4935_v38  ;;  %v3381_v9 = vcombine.low %v4928_v28, %v4931_v61 }
 0x113   : > { %3826 = vmatprep.mubr.msk.bf16.mxu0 %vm776_vm3, %v3326_v3  ;;  %v4943_v27 = vpop.f32.mrf.mxu1 }
 0x114   : > { %5525 = vst [vmem:[#allocation23_spill] sm:$0xff] %v4943_v27 }
 0x115   : > { %3789 = vmatmul.mubr.msk.bf16.gmra.mxu1 %vm776_vm3, %v4644_v58 }
 0x116   : > { %3792 = vmatprep.mubr.msk.bf16.mxu1 %vm776_vm3, %v4653_v2 }
 0x11a   : > { %v4945_v25 = vpop.f32.mrf.mxu0  ;;  %3827 = vmatmul.mubr.msk.bf16.gmra.mxu0 %vm776_vm3, %v3381_v9 }
 0x11b   : > { %3866 = vmatprep.mubr.msk.bf16.mxu0 %vm776_vm3, %v4476_v37 }
 0x11c   : > { %v4950_v41 = vpop.f32.mrf.mxu0 }
 0x11d   : > { %v4952_v3 = vpop.f32.mrf.mxu1  ;;  %3793 = vmatmul.mubr.msk.bf16.gmra.mxu1 %vm776_vm3, %v4739_v11 }
 0x11e   : > { %5526 = vst [vmem:[#allocation8_spill] sm:$0xff] %v4952_v3  ;;  %v4956_v51 = vpop.f32.mrf.mxu0  ;;  %3832 = vmatprep.mubr.msk.bf16.mxu1 %vm776_vm3, %v5510_v34 }
 0x11f   : > { %v4960_v62 = vpop.f32.mrf.mxu1 }
 0x120   : > { %5527 = vst [vmem:[#allocation3_spill] sm:$0xff] %v4960_v62  ;;  %v4962_v27 = vpop.f32.mrf.mxu0 }
 0x121   : > { %v4964_v9 = vpop.f32.mrf.mxu1 }
 0x122   : > { %5528 = vst [vmem:[#allocation4_spill] sm:$0xff] %v4964_v9  ;;  %v3664_v38 = vpop.f32.mrf.mxu0  ;;  %3867 = vmatmul.mubr.msk.bf16.vlgmr.msra.gmra.mxu0 %vm776_vm3, %v4516_v14 }
 0x123   : > { %v4968_v37 = vpop.f32.mrf.mxu1  ;;  %3870 = vmatprep.mubr.msk.bf16.mxu0 %vm776_vm3, %v4518_v10 }
 0x124   : > { %5529 = vst [vmem:[#allocation6_spill] sm:$0xff] %v4968_v37  ;;  %v1548_v3 = vpop.f32.mrf.mxu0 }
 0x125   : > { %v3630_v24 = vpop.f32.mrf.mxu1  ;;  %3833 = vmatmul.mubr.msk.bf16.vlgmr.msra.gmra.mxu1 %vm776_vm3, %v5511_v42 }
 0x126   : > { %v1164_v34 = vadd.f32 %v3630_v24, %v4844_v63  ;;  %v3665_v62 = vpop.f32.mrf.mxu0  ;;  %3836 = vmatprep.mubr.msk.bf16.mxu1 %vm776_vm3, %v5512_v46 }
 0x127   : > { %v1155_v9 = vpop.f32.mrf.mxu1 }
 0x128   : > { %v4977_v54 = vadd.f32 %v3664_v38, %v1164_v34  ;;  %v1156_v14 = vadd.f32 %v1155_v9, %v4854_v53  ;;  %v1551_v37 = vpop.f32.mrf.mxu0 }
 0x129   : > { %v3631_v6 = vpop.f32.mrf.mxu1 }
 0x12a   : > { %v4980_v32 = vadd.f32 %v1548_v3, %v1156_v14  ;;  %v1167_v10 = vadd.f32 %v3631_v6, %v4860_v56  ;;  %v3668_v12 = vpop.f32.mrf.mxu0  ;;  %3871 = vmatmul.mubr.msk.bf16.gmra.mxu0 %vm776_vm3, %v4553_v30 }
 0x12b   : > { %v1158_v42 = vpop.f32.mrf.mxu1  ;;  %3874 = vmatprep.mubr.msk.bf16.mxu0 %vm776_vm3, %v4555_v1 }
 0x12c   : > { %v4987_v46 = vadd.f32 %v3665_v62, %v1167_v10  ;;  %v1159_v63 = vadd.f32 %v1158_v42, %v4870_v59  ;;  %v1564_v24 = vpop.f32.mrf.mxu0 }
 0x12d   : > { %v3634_v53 = vpop.f32.mrf.mxu1  ;;  %3837 = vmatmul.mubr.msk.bf16.gmra.mxu1 %vm776_vm3, %v5513_v19 }
 0x12e   : > { %v4992_v38 = vadd.f32 %v1551_v37, %v1159_v63  ;;  %v1180_v56 = vadd.f32 %v3634_v53, %v4876_v20  ;;  %v3669_v6 = vpop.f32.mrf.mxu0  ;;  %3840 = vmatprep.mubr.msk.bf16.mxu1 %vm776_vm3, %v5514_v36 }
 0x12f   : > { %v1171_v30 = vpop.f32.mrf.mxu1 }
 0x130   : > { %v4997_v3 = vadd.f32 %v3668_v12, %v1180_v56  ;;  %v1172_v1 = vadd.f32 %v1171_v30, %v4886_v55  ;;  %v1567_v62 = vpop.f32.mrf.mxu0 }
 0x131   : > { %v3635_v59 = vpop.f32.mrf.mxu1 }
 0x132   : > { %v5000_v9 = vadd.f32 %v1564_v24, %v1172_v1  ;;  %v1183_v34 = vadd.f32 %v3635_v59, %v4892_v39  ;;  %v3672_v19 = vpop.f32.mrf.mxu0  ;;  %3875 = vmatmul.mubr.msk.bf16.gmra.mxu0 %vm776_vm3, %v4641_v23 }
 0x133   : > { %v1174_v20 = vpop.f32.mrf.mxu1  ;;  %3878 = vmatprep.mubr.msk.bf16.mxu0 %vm776_vm3, %v4646_v8 }
 0x134   : > { %v5007_v36 = vadd.f32 %v3669_v6, %v1183_v34  ;;  %v1175_v12 = vadd.f32 %v1174_v20, %v4902_v44  ;;  %v1580_v37 = vpop.f32.mrf.mxu0 }
 0x135   : > { %v3638_v55 = vpop.f32.mrf.mxu1  ;;  %3841 = vmatmul.mubr.msk.bf16.gmra.mxu1 %vm776_vm3, %v4428_v15 }
 0x136   : > { %v5012_v14 = vadd.f32 %v1567_v62, %v1175_v12  ;;  %v1196_v39 = vadd.f32 %v3638_v55, %v4908_v18  ;;  %v3673_v10 = vpop.f32.mrf.mxu0  ;;  %3844 = vmatprep.mubr.msk.bf16.mxu1 %vm776_vm3, %v5515_v26 }
 0x137   : > { %v1187_v23 = vpop.f32.mrf.mxu1 }
 0x138   : > { %v5017_v42 = vadd.f32 %v3672_v19, %v1196_v39  ;;  %v1188_v8 = vadd.f32 %v1187_v23, %v4918_v29  ;;  %v1583_v63 = vpop.f32.mrf.mxu0 }
 0x139   : > { %v3639_v44 = vpop.f32.mrf.mxu1 }
 0x13a   : > { %v5020_v24 = vadd.f32 %v1580_v37, %v1188_v8  ;;  %v1199_v53 = vadd.f32 %v3639_v44, %v4924_v43  ;;  %v3676_v15 = vpop.f32.mrf.mxu0  ;;  %3879 = vmatmul.mubr.msk.bf16.gmra.mxu0 %vm776_vm3, %v4679_v13  ;;  %v2563_v37 = vshll.u32 %v4928_v28, 16 }
 0x13b   : > { %v1190_v18 = vpop.f32.mrf.mxu1  ;;  %3882 = vmatprep.mubr.msk.bf16.mxu0 %vm776_vm3, %v4681_v16 }
 0x13c   : > { %v5027_v26 = vadd.f32 %v3673_v10, %v1199_v53  ;;  %v1191_v56 = vadd.f32 %v1190_v18, %v4937_v31  ;;  %v1596_v6 = vpop.f32.mrf.mxu0  ;;  %v2565_v44 = vrot.slane %v2563_v37, 5 }
 0x13d   : > { %v3642_v29 = vpop.f32.mrf.mxu1  ;;  %3845 = vmatmul.mubr.msk.bf16.gmra.mxu1 %vm776_vm3, %v5516_v0 }
 0x13e   : > { %v5032_v30 = vadd.f32 %v1583_v63, %v1191_v56  ;;  %v1212_v43 = vadd.f32 %v3642_v29, %v4945_v25  ;;  %v3677_v1 = vpop.f32.mrf.mxu0  ;;  %3848 = vmatprep.mubr.msk.bf16.mxu1 %vm776_vm3, %v5517_v35 }
 0x13f   : > { %v1203_v13 = vpop.f32.mrf.mxu1 }
 0x140   : > { %v5037_v62 = vadd.f32 %v3676_v15, %v1212_v43  ;;  %v1204_v16 = vadd.f32 %v1203_v13, %v4950_v41  ;;  %v1599_v59 = vpop.f32.mrf.mxu0  ;;  %v2560_v41 = vshrl.u32 %v4928_v28, 16 }
 0x141   : > { %v3643_v31 = vpop.f32.mrf.mxu1 }
 0x142   : > { %v5040_v34 = vadd.f32 %v1596_v6, %v1204_v16  ;;  %v1215_v19 = vadd.f32 %v3643_v31, %v4956_v51  ;;  %v3680_v0 = vpop.f32.mrf.mxu0  ;;  %3883 = vmatmul.mubr.msk.bf16.gmra.mxu0 %vm776_vm3, %v4596_v21  ;;  %v2569_v51 = vshll.u32 %v4931_v61, 16  ;;  %v2573_v21 = vshrl.u32 %v4931_v61, 16 }
 0x143   : > { %v1206_v25 = vpop.f32.mrf.mxu1  ;;  %3886 = vmatprep.mubr.msk.bf16.mxu0 %vm776_vm3, %v4611_v50 }
 0x144   : > { %v5047_v35 = vadd.f32 %v3677_v1, %v1215_v19  ;;  %v1207_v20 = vadd.f32 %v1206_v25, %v4962_v27  ;;  %v1612_v12 = vpop.f32.mrf.mxu0  ;;  %v2571_v15 = vrot.slane %v2569_v51, 5  ;;  %v2575_v18 = vrot.slane %v2573_v21, 4 }
 0x145   : > { %v3646_v55 = vpop.f32.mrf.mxu1  ;;  %3849 = vmatmul.mubr.msk.bf16.gmra.mxu1 %vm776_vm3, %v5518_v40  ;;  %v2562_v40 = vrot.slane %v2560_v41, 4  ;;  %v3416_v19 = vrot.slane %v4928_v28, 9 }
 0x146   : > { %v5056_v39 = vadd.f32 %v1599_v59, %v1207_v20  ;;  %v1228_v50 = vadd.f32 %v3646_v55, %v4850_v47  ;;  %v3681_v10 = vpop.f32.mrf.mxu0  ;;  %3852 = vmatprep.mubr.msk.bf16.mxu1 %vm776_vm3, %v5519_v57  ;;  %v2790_v57 = vrot.slane %v4931_v61, 5 }
 0x147   : > { %v1219_v27 = vpop.f32.mrf.mxu1 }
 0x148   : > { %v5061_v23 = vadd.f32 %v3680_v0, %v1228_v50  ;;  %v1220_v8 = vadd.f32 %v1219_v27, %v4856_v33  ;;  %v1615_v63 = vpop.f32.mrf.mxu0  ;;  %v337_v33 = vld [vmem:[%s4714_s10 + $0x14] sm:$0x1] }
 0x149   : > { %v3647_v53 = vpop.f32.mrf.mxu1  ;;  %v2579_v31 = vshll.u32 %v337_v33, 16  ;;  %v2793_v25 = vrot.slane %v337_v33, 5 }
 0x14a   : > { %v5064_v56 = vadd.f32 %v1612_v12, %v1220_v8  ;;  %v1231_v47 = vadd.f32 %v3647_v53, %v4866_v17  ;;  %v3684_v6 = vpop.f32.mrf.mxu0  ;;  %3887 = vmatmul.mubr.msk.bf16.gmra.mxu0 %vm776_vm3, %v4633_v52  ;;  %v2566_v17 = vor.u32 %v2565_v44, %v2562_v40 }
 0x14b   : > { %v1222_v29 = vpop.f32.mrf.mxu1  ;;  %3890 = vmatprep.mubr.msk.bf16.mxu0 %vm776_vm3, %v4644_v58  ;;  %v2576_v58 = vor.u32 %v2575_v18, %v2571_v15  ;;  %v2581_v28 = vrot.slane %v2579_v31, 5 }
 0x14c   : > { %v5073_v43 = vadd.f32 %v3681_v10, %v1231_v47  ;;  %v1223_v1 = vadd.f32 %v1222_v29, %v4872_v4  ;;  %v1628_v13 = vpop.f32.mrf.mxu0  ;;  %v2792_v4 = vrot.slane %v2790_v57, 4  ;;  %v2567_v37 = vrot.slane %v2566_v17, 4  ;;  %v5533_v47 = vld [vmem:[#allocation16_spill] sm:$0xff]  ;;  %v5534_v29 = vld [vmem:[#allocation18_spill] sm:$0xff]  ;;  %v5535_v17 = vld [vmem:[#allocation21_spill] sm:$0xff] }
 0x14d   : > { %v3650_v16 = vpop.f32.mrf.mxu1  ;;  %3853 = vmatmul.mubr.msk.bf16.gmra.mxu1 %vm776_vm3, %v5520_v7 }
 0x14e   : > { %v5078_v59 = vadd.f32 %v1615_v63, %v1223_v1  ;;  %v1244_v52 = vadd.f32 %v3650_v16, %v4882_v48  ;;  %v3685_v61 = vpop.f32.mrf.mxu0  ;;  %3856 = vmatprep.mubr.msk.bf16.mxu1 %vm776_vm3, %v4402_v5  ;;  %v2577_v5 = vrot.slane %v2576_v58, 4  ;;  %v2794_v50 = vsel %vm4407_vm7, %v2792_v4, %v2793_v25  ;;  %v5530_v63 = vld [vmem:[#allocation25_spill] sm:$0xff] }
 0x14f   : > { %v1235_v0 = vpop.f32.mrf.mxu1  ;;  %v2572_v40 = vsel %vm4084_vm4, %v2567_v37, %v2571_v15 }
 0x150   : > { %v5084_v20 = vadd.f32 %v3684_v6, %v1244_v52  ;;  %v1236_v7 = vadd.f32 %v1235_v0, %v4888_v45  ;;  %v1631_v12 = vpop.f32.mrf.mxu0  ;;  %v2791_v45 = vsel %vm4407_vm7, %v3416_v19, %v2790_v57  ;;  %v2582_v60 = vsel %vm4084_vm4, %v2577_v5, %v2581_v28  ;;  %v5536_v19 = vld [vmem:[#allocation23_spill] sm:$0xff] }
 0x151   : > { %v3651_v41 = vpop.f32.mrf.mxu1  ;;  %v3399_v15 = vcombine.low %v2572_v40, %v2582_v60  ;;  %v5538_v5 = vld [vmem:[#allocation3_spill] sm:$0xff]  ;;  %v5540_v40 = vld [vmem:[#allocation6_spill] sm:$0xff] }
 0x152   : > { %v5087_v55 = vadd.f32 %v1628_v13, %v1236_v7  ;;  %v1247_v48 = vadd.f32 %v3651_v41, %v4898_v22  ;;  %v3688_v51 = vpop.f32.mrf.mxu0  ;;  %3891 = vmatmul.mubr.msk.bf16.gmra.mxu0 %vm776_vm3, %v4653_v2 }
 0x153   : > { %v1238_v21 = vpop.f32.mrf.mxu1  ;;  %3894 = vmatprep.mubr.msk.bf16.mxu0 %vm776_vm3, %v4739_v11  ;;  %v5532_v11 = vld [vmem:[#allocation20_spill] sm:$0xff] }
 0x154   : > { %v5098_v10 = vadd.f32 %v3685_v61, %v1247_v48  ;;  %v1239_v22 = vadd.f32 %v1238_v21, %v4904_v49  ;;  %v1644_v27 = vpop.f32.mrf.mxu0  ;;  %v3418_v49 = vcombine.low %v2791_v45, %v2794_v50 }
 0x155   : > { %v3654_v8 = vpop.f32.mrf.mxu1  ;;  %3857 = vmatmul.mubr.msk.bf16.gmra.mxu1 %vm776_vm3, %v5530_v63 }
 0x156   : > { %v5105_v44 = vadd.f32 %v1631_v12, %v1239_v22  ;;  %v1260_v53 = vadd.f32 %v3654_v8, %v5532_v11  ;;  %v3689_v18 = vpop.f32.mrf.mxu0  ;;  %3860 = vmatprep.mubr.msk.bf16.mxu1 %vm776_vm3, %v5533_v47  ;;  %v5537_v12 = vld [vmem:[#allocation8_spill] sm:$0xff] }
 0x157   : > { %v1251_v6 = vpop.f32.mrf.mxu1  ;;  %v5539_v22 = vld [vmem:[#allocation4_spill] sm:$0xff] }
 0x158   : > { %v5112_v57 = vadd.f32 %v3688_v51, %v1260_v53  ;;  %v1252_v33 = vadd.f32 %v1251_v6, %v5534_v29  ;;  %v1647_v1 = vpop.f32.mrf.mxu0 }
 0x159   : > { %v3655_v13 = vpop.f32.mrf.mxu1 }
 0x15a   : > { %v5115_v16 = vadd.f32 %v1644_v27, %v1252_v33  ;;  %v1263_v52 = vadd.f32 %v3655_v13, %v5535_v17  ;;  %v3692_v61 = vpop.f32.mrf.mxu0  ;;  %3895 = vmatmul.mubr.msk.bf16.gmra.mxu0 %vm776_vm3, %v3418_v49 }
 0x15b   : > { %v1254_v58 = vpop.f32.mrf.mxu1 }
 0x15c   : > { %v5119_v31 = vadd.f32 %v3689_v18, %v1263_v52  ;;  %v1255_v0 = vadd.f32 %v1254_v58, %v5536_v19  ;;  %v1660_v4 = vpop.f32.mrf.mxu0 }
 0x15d   : > { %v3658_v25 = vpop.f32.mrf.mxu1  ;;  %3861 = vmatmul.mubr.msk.bf16.gmra.mxu1 %vm776_vm3, %v3399_v15 }
 0x15e   : > { %v5123_v7 = vadd.f32 %v1647_v1, %v1255_v0  ;;  %v1276_v41 = vadd.f32 %v3658_v25, %v5537_v12  ;;  %v3693_v37 = vpop.f32.mrf.mxu0 }
 0x15f   : > { %v1267_v48 = vpop.f32.mrf.mxu1 }
 0x160   : > { %v5126_v51 = vadd.f32 %v3692_v61, %v1276_v41  ;;  %v1268_v28 = vadd.f32 %v1267_v48, %v5538_v5  ;;  %v1663_v21 = vpop.f32.mrf.mxu0 }
 0x161   : > { %v3659_v45 = vpop.f32.mrf.mxu1 }
 0x162   : > { %v5129_v50 = vadd.f32 %v1660_v4, %v1268_v28  ;;  %v1279_v27 = vadd.f32 %v3659_v45, %v5539_v22  ;;  %v3732_v8 = vpop.f32.mrf.mxu0 }
 0x163   : > { %v1270_v63 = vpop.f32.mrf.mxu1 }
 0x164   : > { %v5132_v2 = vadd.f32 %v3693_v37, %v1279_v27  ;;  %v1271_v11 = vadd.f32 %v1270_v63, %v5540_v40  ;;  %v1982_v53 = vpop.f32.mrf.mxu0 }
 0x165   : > { %v3698_v18 = vpop.f32.mrf.mxu1 }
 0x166   : > { %v5135_v47 = vadd.f32 %v1663_v21, %v1271_v11  ;;  %v1883_v60 = vadd.f32 %v3698_v18, %v4977_v54  ;;  %v3733_v49 = vpop.f32.mrf.mxu0 }
 0x167   : > { %v1754_v6 = vpop.f32.mrf.mxu1 }
 0x168   : > { %v5138_v29 = vadd.f32 %v3732_v8, %v1883_v60  ;;  %v1881_v33 = vadd.f32 %v1754_v6, %v4980_v32  ;;  %v1985_v1 = vpop.f32.mrf.mxu0 }
 0x169   : > { %v3699_v13 = vpop.f32.mrf.mxu1 }
 0x16a   : > { %v5141_v15 = vadd.f32 %v1982_v53, %v1881_v33  ;;  %v1884_v17 = vadd.f32 %v3699_v13, %v4987_v46  ;;  %v3736_v52 = vpop.f32.mrf.mxu0 }
 0x16b   : > { %v1757_v61 = vpop.f32.mrf.mxu1 }
 0x16c   : > { %v5144_v58 = vadd.f32 %v3733_v49, %v1884_v17  ;;  %v1882_v19 = vadd.f32 %v1757_v61, %v4992_v38  ;;  %v1998_v0 = vpop.f32.mrf.mxu0 }
 0x16d   : > { %v3702_v54 = vpop.f32.mrf.mxu1 }
 0x16e   : > { %v5147_v4 = vadd.f32 %v1985_v1, %v1882_v19  ;;  %v1887_v25 = vadd.f32 %v3702_v54, %v4997_v3  ;;  %v3737_v12 = vpop.f32.mrf.mxu0 }
 0x16f   : > { %v1770_v32 = vpop.f32.mrf.mxu1 }
 0x170   : > { %v5150_v41 = vadd.f32 %v3736_v52, %v1887_v25  ;;  %v1885_v37 = vadd.f32 %v1770_v32, %v5000_v9  ;;  %v2001_v48 = vpop.f32.mrf.mxu0 }
 0x171   : > { %v3703_v46 = vpop.f32.mrf.mxu1 }
 0x172   : > { %v5153_v5 = vadd.f32 %v1998_v0, %v1885_v37  ;;  %v1888_v28 = vadd.f32 %v3703_v46, %v5007_v36  ;;  %v3740_v21 = vpop.f32.mrf.mxu0 }
 0x173   : > { %v1773_v38 = vpop.f32.mrf.mxu1 }
 0x174   : > { %v5156_v45 = vadd.f32 %v3737_v12, %v1888_v28  ;;  %v1886_v22 = vadd.f32 %v1773_v38, %v5012_v14  ;;  %v2014_v27 = vpop.f32.mrf.mxu0 }
 0x175   : > { %v3706_v3 = vpop.f32.mrf.mxu1 }
 0x176   : > { %v5159_v8 = vadd.f32 %v2001_v48, %v1886_v22  ;;  %v1891_v63 = vadd.f32 %v3706_v3, %v5017_v42  ;;  %v3741_v40 = vpop.f32.mrf.mxu0 }
 0x177   : > { %v1786_v9 = vpop.f32.mrf.mxu1 }
 0x178   : > { %v5162_v11 = vadd.f32 %v3740_v21, %v1891_v63  ;;  %v1889_v53 = vadd.f32 %v1786_v9, %v5020_v24  ;;  %v2017_v18 = vpop.f32.mrf.mxu0 }
 0x179   : > { %v3707_v36 = vpop.f32.mrf.mxu1 }
 0x17a   : > { %v5165_v60 = vadd.f32 %v2014_v27, %v1889_v53  ;;  %v1892_v49 = vadd.f32 %v3707_v36, %v5027_v26  ;;  %v3744_v6 = vpop.f32.mrf.mxu0 }
 0x17b   : > { %v1789_v14 = vpop.f32.mrf.mxu1 }
 0x17c   : > { %v5168_v33 = vadd.f32 %v3741_v40, %v1892_v49  ;;  %v1890_v1 = vadd.f32 %v1789_v14, %v5032_v30  ;;  %v2030_v13 = vpop.f32.mrf.mxu0 }
 0x17d   : > { %v3710_v42 = vpop.f32.mrf.mxu1 }
 0x17e   : > { %v5171_v17 = vadd.f32 %v2017_v18, %v1890_v1  ;;  %v1895_v52 = vadd.f32 %v3710_v42, %v5037_v62  ;;  %v3745_v61 = vpop.f32.mrf.mxu0 }
 0x17f   : > { %v1802_v24 = vpop.f32.mrf.mxu1 }
 0x180   : > { %v5174_v19 = vadd.f32 %v3744_v6, %v1895_v52  ;;  %v1893_v0 = vadd.f32 %v1802_v24, %v5040_v34  ;;  %v2033_v54 = vpop.f32.mrf.mxu0 }
 0x181   : > { %v3711_v26 = vpop.f32.mrf.mxu1 }
 0x182   : > { %v5177_v25 = vadd.f32 %v2030_v13, %v1893_v0  ;;  %v1896_v12 = vadd.f32 %v3711_v26, %v5047_v35  ;;  %v3748_v32 = vpop.f32.mrf.mxu0 }
 0x183   : > { %v1805_v30 = vpop.f32.mrf.mxu1 }
 0x184   : > { %v5180_v37 = vadd.f32 %v3745_v61, %v1896_v12  ;;  %v1894_v48 = vadd.f32 %v1805_v30, %v5056_v39  ;;  %v2046_v46 = vpop.f32.mrf.mxu0 }
 0x185   : > { %v3714_v62 = vpop.f32.mrf.mxu1 }
 0x186   : > { %v5183_v28 = vadd.f32 %v2033_v54, %v1894_v48  ;;  %v1899_v21 = vadd.f32 %v3714_v62, %v5061_v23  ;;  %v3749_v38 = vpop.f32.mrf.mxu0 }
 0x187   : > { %v1818_v34 = vpop.f32.mrf.mxu1 }
 0x188   : > { %v5186_v22 = vadd.f32 %v3748_v32, %v1899_v21  ;;  %v1897_v27 = vadd.f32 %v1818_v34, %v5064_v56  ;;  %v2049_v3 = vpop.f32.mrf.mxu0 }
 0x189   : > { %v3715_v35 = vpop.f32.mrf.mxu1 }
 0x18a   : > { %v5189_v63 = vadd.f32 %v2046_v46, %v1897_v27  ;;  %v1900_v40 = vadd.f32 %v3715_v35, %v5073_v43  ;;  %v3752_v9 = vpop.f32.mrf.mxu0 }
 0x18b   : > { %v1821_v39 = vpop.f32.mrf.mxu1 }
 0x18c   : > { %v5192_v53 = vadd.f32 %v3749_v38, %v1900_v40  ;;  %v1898_v18 = vadd.f32 %v1821_v39, %v5078_v59  ;;  %v2062_v36 = vpop.f32.mrf.mxu0 }
 0x18d   : > { %v3718_v23 = vpop.f32.mrf.mxu1 }
 0x18e   : > { %v5195_v49 = vadd.f32 %v2049_v3, %v1898_v18  ;;  %v1903_v6 = vadd.f32 %v3718_v23, %v5084_v20  ;;  %v3753_v14 = vpop.f32.mrf.mxu0 }
 0x18f   : > { %v1834_v56 = vpop.f32.mrf.mxu1 }
 0x190   : > { %v5198_v1 = vadd.f32 %v3752_v9, %v1903_v6  ;;  %v1901_v13 = vadd.f32 %v1834_v56, %v5087_v55  ;;  %v2065_v42 = vpop.f32.mrf.mxu0 }
 0x191   : > { %v3719_v43 = vpop.f32.mrf.mxu1 }
 0x192   : > { %v5201_v52 = vadd.f32 %v2062_v36, %v1901_v13  ;;  %v1904_v61 = vadd.f32 %v3719_v43, %v5098_v10  ;;  %v3756_v24 = vpop.f32.mrf.mxu0 }
 0x193   : > { %v1837_v59 = vpop.f32.mrf.mxu1 }
 0x194   : > { %v5204_v0 = vadd.f32 %v3753_v14, %v1904_v61  ;;  %v1902_v54 = vadd.f32 %v1837_v59, %v5105_v44  ;;  %v2078_v26 = vpop.f32.mrf.mxu0 }
 0x195   : > { %v3722_v20 = vpop.f32.mrf.mxu1 }
 0x196   : > { %v5207_v12 = vadd.f32 %v2065_v42, %v1902_v54  ;;  %v1907_v32 = vadd.f32 %v3722_v20, %v5112_v57  ;;  %v3757_v30 = vpop.f32.mrf.mxu0 }
 0x197   : > { %v1850_v55 = vpop.f32.mrf.mxu1 }
 0x198   : > { %v5210_v48 = vadd.f32 %v3756_v24, %v1907_v32  ;;  %v1905_v46 = vadd.f32 %v1850_v55, %v5115_v16  ;;  %v2081_v62 = vpop.f32.mrf.mxu0 }
 0x199   : > { %v3723_v10 = vpop.f32.mrf.mxu1 }
 0x19a   : > { %v5213_v21 = vadd.f32 %v2078_v26, %v1905_v46  ;;  %v1908_v38 = vadd.f32 %v3723_v10, %v5119_v31  ;;  %v3760_v34 = vpop.f32.mrf.mxu0 }
 0x19b   : > { %v1853_v44 = vpop.f32.mrf.mxu1 }
 0x19c   : > { %5541 = vst [vmem:[#allocation9_spill] sm:$0xff] %v5213_v21  ;;  %v5216_v27 = vadd.f32 %v3757_v30, %v1908_v38  ;;  %v1906_v3 = vadd.f32 %v1853_v44, %v5123_v7  ;;  %v2094_v35 = vpop.f32.mrf.mxu0 }
 0x19d   : > { %v3726_v57 = vpop.f32.mrf.mxu1 }
 0x19e   : > { %v5219_v40 = vadd.f32 %v2081_v62, %v1906_v3  ;;  %v1911_v9 = vadd.f32 %v3726_v57, %v5126_v51  ;;  %v3761_v39 = vpop.f32.mrf.mxu0 }
 0x19f   : > { %v1866_v16 = vpop.f32.mrf.mxu1 }
 0x1a0   : > { %5542 = vst [vmem:[#allocation7_spill] sm:$0xff] %v5219_v40  ;;  %v5222_v18 = vadd.f32 %v3760_v34, %v1911_v9  ;;  %v1909_v36 = vadd.f32 %v1866_v16, %v5129_v50  ;;  %v2097_v23 = vpop.f32.mrf.mxu0 }
 0x1a1   : > { %v3727_v31 = vpop.f32.mrf.mxu1 }
 0x1a2   : > { %v5225_v6 = vadd.f32 %v2094_v35, %v1909_v36  ;;  %v1912_v14 = vadd.f32 %v3727_v31, %v5132_v2  ;;  %v3800_v56 = vpop.f32.mrf.mxu0 }
 0x1a3   : > { %v1869_v7 = vpop.f32.mrf.mxu1 }
 0x1a4   : > { %5543 = vst [vmem:[#allocation11_spill] sm:$0xff] %v5225_v6  ;;  %v5228_v13 = vadd.f32 %v3761_v39, %v1912_v14  ;;  %v1910_v42 = vadd.f32 %v1869_v7, %v5135_v47  ;;  %v2400_v43 = vpop.f32.mrf.mxu0 }
 0x1a5   : > { %v3766_v51 = vpop.f32.mrf.mxu1 }
 0x1a6   : > { %v5231_v61 = vadd.f32 %v2097_v23, %v1910_v42  ;;  %v2323_v24 = vadd.f32 %v3766_v51, %v5138_v29  ;;  %v3801_v59 = vpop.f32.mrf.mxu0 }
 0x1a7   : > { %v2194_v50 = vpop.f32.mrf.mxu1 }
 0x1a8   : > { %5544 = vst [vmem:[#allocation13_spill] sm:$0xff] %v5231_v61  ;;  %v5234_v54 = vadd.f32 %v3800_v56, %v2323_v24  ;;  %v2321_v26 = vadd.f32 %v2194_v50, %v5141_v15  ;;  %v5237_v20 = vpop.f32.mrf.mxu0 }
 0x1a9   : > { %v3767_v2 = vpop.f32.mrf.mxu1 }
 0x1aa   : > { %v5239_v32 = vadd.f32 %v2400_v43, %v2321_v26  ;;  %v2324_v30 = vadd.f32 %v3767_v2, %v5144_v58  ;;  %v3804_v47 = vpop.f32.mrf.mxu0 }
 0x1ab   : > { %v5242_v55 = vpop.f32.mrf.mxu1 }
 0x1ac   : > { %v5244_v46 = vadd.f32 %v3801_v59, %v2324_v30  ;;  %v5246_v62 = vpop.f32.mrf.mxu0 }
 0x1ad   : > { %v3770_v29 = vpop.f32.mrf.mxu1 }
 0x1ae   : > { %v2327_v10 = vadd.f32 %v3770_v29, %v5150_v41  ;;  %v3805_v38 = vpop.f32.mrf.mxu0 }
 0x1af   : > { %v5249_v34 = vpop.f32.mrf.mxu1 }
 0x1b0   : > { %v5251_v15 = vadd.f32 %v3804_v47, %v2327_v10  ;;  %v5253_v44 = vpop.f32.mrf.mxu0 }
 0x1b1   : > { %v3771_v3 = vpop.f32.mrf.mxu1 }
 0x1b2   : > { %v2328_v58 = vadd.f32 %v3771_v3, %v5156_v45  ;;  %v3808_v35 = vpop.f32.mrf.mxu0 }
 0x1b3   : > { %v5256_v57 = vpop.f32.mrf.mxu1 }
 0x1b4   : > { %v5258_v9 = vadd.f32 %v3805_v38, %v2328_v58  ;;  %v5260_v39 = vpop.f32.mrf.mxu0 }
 0x1b5   : > { %v3774_v16 = vpop.f32.mrf.mxu1 }
 0x1b6   : > { %v2331_v41 = vadd.f32 %v3774_v16, %v5162_v11  ;;  %v3809_v36 = vpop.f32.mrf.mxu0 }
 0x1b7   : > { %v5263_v23 = vpop.f32.mrf.mxu1 }
 0x1b8   : > { %v5265_v31 = vadd.f32 %v3808_v35, %v2331_v41  ;;  %v5267_v14 = vpop.f32.mrf.mxu0 }
 0x1b9   : > { %v3775_v56 = vpop.f32.mrf.mxu1 }
 0x1ba   : > { %v2332_v45 = vadd.f32 %v3775_v56, %v5168_v33  ;;  %v3812_v7 = vpop.f32.mrf.mxu0 }
 0x1bb   : > { %v5270_v42 = vpop.f32.mrf.mxu1 }
 0x1bc   : > { %v5272_v43 = vadd.f32 %v3809_v36, %v2332_v45  ;;  %v5274_v51 = vpop.f32.mrf.mxu0 }
 0x1bd   : > { %v3778_v24 = vpop.f32.mrf.mxu1 }
 0x1be   : > { %v2335_v11 = vadd.f32 %v3778_v24, %v5174_v19  ;;  %v3813_v59 = vpop.f32.mrf.mxu0 }
 0x1bf   : > { %v5277_v50 = vpop.f32.mrf.mxu1 }
 0x1c0   : > { %v5279_v26 = vadd.f32 %v3812_v7, %v2335_v11  ;;  %v5281_v2 = vpop.f32.mrf.mxu0 }
 0x1c1   : > { %v3779_v30 = vpop.f32.mrf.mxu1 }
 0x1c2   : > { %v2336_v33 = vadd.f32 %v3779_v30, %v5180_v37  ;;  %v3816_v47 = vpop.f32.mrf.mxu0 }
 0x1c3   : > { %v5284_v29 = vpop.f32.mrf.mxu1 }
 0x1c4   : > { %v5286_v10 = vadd.f32 %v3813_v59, %v2336_v33  ;;  %v5288_v38 = vpop.f32.mrf.mxu0 }
 0x1c5   : > { %v3782_v3 = vpop.f32.mrf.mxu1 }
 0x1c6   : > { %v2339_v19 = vadd.f32 %v3782_v3, %v5186_v22  ;;  %v3817_v58 = vpop.f32.mrf.mxu0 }
 0x1c7   : > { %v5291_v35 = vpop.f32.mrf.mxu1 }
 0x1c8   : > { %v5293_v16 = vadd.f32 %v3816_v47, %v2339_v19  ;;  %v5295_v41 = vpop.f32.mrf.mxu0 }
 0x1c9   : > { %v3783_v36 = vpop.f32.mrf.mxu1 }
 0x1ca   : > { %v2340_v37 = vadd.f32 %v3783_v36, %v5192_v53  ;;  %v3820_v56 = vpop.f32.mrf.mxu0 }
 0x1cb   : > { %v5298_v45 = vpop.f32.mrf.mxu1 }
 0x1cc   : > { %v5300_v7 = vadd.f32 %v3817_v58, %v2340_v37  ;;  %v5302_v24 = vpop.f32.mrf.mxu0 }
 0x1cd   : > { %v3786_v11 = vpop.f32.mrf.mxu1 }
 0x1ce   : > { %v2343_v22 = vadd.f32 %v3786_v11, %v5198_v1  ;;  %v3821_v59 = vpop.f32.mrf.mxu0 }
 0x1cf   : > { %v5305_v30 = vpop.f32.mrf.mxu1 }
 0x1d0   : > { %v5307_v33 = vadd.f32 %v3820_v56, %v2343_v22  ;;  %v5309_v47 = vpop.f32.mrf.mxu0 }
 0x1d1   : > { %v3787_v3 = vpop.f32.mrf.mxu1 }
 0x1d2   : > { %5545 = vst [vmem:[#allocation15_spill] sm:$0xff] %v5307_v33  ;;  %v2344_v53 = vadd.f32 %v3787_v3, %v5204_v0  ;;  %v3824_v19 = vpop.f32.mrf.mxu0 }
 0x1d3   : > { %v5312_v36 = vpop.f32.mrf.mxu1 }
 0x1d4   : > { %v5314_v58 = vadd.f32 %v3821_v59, %v2344_v53  ;;  %v5316_v37 = vpop.f32.mrf.mxu0 }
 0x1d5   : > { %5547 = vst [vmem:[#allocation24_spill] sm:$0xff] %v5316_v37  ;;  %v3790_v61 = vpop.f32.mrf.mxu1 }
 0x1d6   : > { %5546 = vst [vmem:[#allocation19_spill] sm:$0xff] %v5314_v58  ;;  %v2347_v1 = vadd.f32 %v3790_v61, %v5210_v48  ;;  %v3825_v11 = vpop.f32.mrf.mxu0 }
 0x1d7   : > { %v5319_v6 = vpop.f32.mrf.mxu1 }
 0x1d8   : > { %5548 = vst [vmem:[#allocation5_spill] sm:$0xff] %v5319_v6  ;;  %v5321_v56 = vadd.f32 %v3824_v19, %v2347_v1  ;;  %v5323_v22 = vpop.f32.mrf.mxu0 }
 0x1d9   : > { %5550 = vst [vmem:[#allocation12_spill] sm:$0xff] %v5323_v22  ;;  %v3791_v40 = vpop.f32.mrf.mxu1 }
 0x1da   : > { %5549 = vst [vmem:[#allocation10_spill] sm:$0xff] %v5321_v56  ;;  %v2348_v0 = vadd.f32 %v3791_v40, %v5216_v27  ;;  %v3828_v3 = vpop.f32.mrf.mxu0 }
 0x1db   : > { %v5326_v33 = vpop.f32.mrf.mxu1 }
 0x1dc   : > { %5551 = vst [vmem:[#allocation14_spill] sm:$0xff] %v5326_v33  ;;  %v5328_v59 = vadd.f32 %v3825_v11, %v2348_v0  ;;  %v5330_v53 = vpop.f32.mrf.mxu0 }
 0x1dd   : > { %5553 = vst [vmem:[#allocation22_spill] sm:$0xff] %v5330_v53  ;;  %v3794_v37 = vpop.f32.mrf.mxu1 }
 0x1de   : > { %5552 = vst [vmem:[#allocation17_spill] sm:$0xff] %v5328_v59  ;;  %v2351_v48 = vadd.f32 %v3794_v37, %v5222_v18  ;;  %v3829_v61 = vpop.f32.mrf.mxu0  ;;  %v2322_v18 = vadd.f32 %v5242_v55, %v5147_v4  ;;  %v2326_v55 = vadd.f32 %v5256_v57, %v5159_v8 }
 0x1df   : > { %v5333_v58 = vpop.f32.mrf.mxu1 }
 0x1e0   : > { %5554 = vst [vmem:[#allocation25_spill] sm:$0xff] %v5333_v58  ;;  %v5335_v19 = vadd.f32 %v3828_v3, %v2351_v48  ;;  %v5337_v1 = vpop.f32.mrf.mxu0 }
 0x1e1   : > { %5556 = vst [vmem:[#allocation20_spill] sm:$0xff] %v5337_v1  ;;  %v3795_v56 = vpop.f32.mrf.mxu1  ;;  %v2528_v1 = vadd.f32 %v5237_v20, %v2322_v18 }
 0x1e2   : > { %5555 = vst [vmem:[#allocation2_spill] sm:$0xff] %v5335_v19  ;;  %v2352_v27 = vadd.f32 %v3795_v56, %v5228_v13  ;;  %v3868_v40 = vpop.f32.mrf.mxu0  ;;  %v2325_v13 = vadd.f32 %v5249_v34, %v5153_v5 }
 0x1e3   : > { %v5340_v22 = vpop.f32.mrf.mxu1 }
 0x1e4   : > { %5557 = vst [vmem:[#allocation16_spill] sm:$0xff] %v5340_v22  ;;  %v5342_v11 = vadd.f32 %v3829_v61, %v2352_v27  ;;  %v2840_v0 = vpop.f32.mrf.mxu0 }
 0x1e5   : > { %v3834_v53 = vpop.f32.mrf.mxu1 }
 0x1e6   : > { %5558 = vst [vmem:[#allocation18_spill] sm:$0xff] %v5342_v11  ;;  %v3869_v37 = vpop.f32.mrf.mxu0  ;;  %v2757_v56 = vadd.f32 %v3834_v53, %v5234_v54 }
 0x1e7   : > { %v2628_v59 = vpop.f32.mrf.mxu1 }
 0x1e8   : > { %v2755_v3 = vadd.f32 %v2628_v59, %v5239_v32  ;;  %v2843_v48 = vpop.f32.mrf.mxu0  ;;  %v2531_v59 = vadd.f32 %v5246_v62, %v2325_v13  ;;  %v2969_v33 = vadd.f32 %v3868_v40, %v2757_v56 }
 0x1e9   : > { %v3835_v19 = vpop.f32.mrf.mxu1 }
 0x1ea   : > { %v3872_v61 = vpop.f32.mrf.mxu0  ;;  %v2758_v27 = vadd.f32 %v3835_v19, %v5244_v46  ;;  %v2967_v22 = vadd.f32 %v2840_v0, %v2755_v3  ;;  %v2532_v19 = vadd.f32 %v5253_v44, %v2326_v55  ;;  %v3038_v0 = vmul.f32 %v2969_v33, %v2969_v33 }
 0x1eb   : > { %v2631_v11 = vpop.f32.mrf.mxu1 }
 0x1ec   : > { %v2756_v58 = vadd.f32 %v2631_v11, %v2528_v1  ;;  %v2856_v4 = vpop.f32.mrf.mxu0  ;;  %v2970_v6 = vadd.f32 %v3869_v37, %v2758_v27  ;;  %v3036_v34 = vmul.f32 %v2967_v22, %v2967_v22 }
 0x1ed   : > { %v3838_v32 = vpop.f32.mrf.mxu1 }
 0x1ee   : > { %v2968_v20 = vadd.f32 %v2843_v48, %v2756_v58  ;;  %v3873_v18 = vpop.f32.mrf.mxu0  ;;  %v2761_v1 = vadd.f32 %v3838_v32, %v5251_v15  ;;  %v2329_v58 = vadd.f32 %v5263_v23, %v5165_v60  ;;  %v3039_v40 = vmul.f32 %v2970_v6, %v2970_v6 }
 0x1ef   : > { %v2644_v5 = vpop.f32.mrf.mxu1  ;;  %v2330_v15 = vadd.f32 %v5270_v42, %v5171_v17 }
 0x1f0   : > { %v2999_v54 = vadd.f32 %v2968_v20, %v2967_v22  ;;  %v3037_v53 = vmul.f32 %v2968_v20, %v2968_v20  ;;  %v2759_v21 = vadd.f32 %v2644_v5, %v2531_v59  ;;  %v2859_v46 = vpop.f32.mrf.mxu0  ;;  %v2973_v44 = vadd.f32 %v3872_v61, %v2761_v1 }
 0x1f1   : > { %v3839_v11 = vpop.f32.mrf.mxu1  ;;  %v2535_v60 = vadd.f32 %v5260_v39, %v2329_v58 }
 0x1f2   : > { %v3000_v8 = vadd.f32 %v2999_v54, %v2969_v33  ;;  %v3068_v57 = vadd.f32 %v3037_v53, %v3036_v34  ;;  %v2971_v3 = vadd.f32 %v2856_v4, %v2759_v21  ;;  %v3876_v62 = vpop.f32.mrf.mxu0  ;;  %v2762_v13 = vadd.f32 %v3839_v11, %v5258_v9 }
 0x1f3   : > { %v2647_v37 = vpop.f32.mrf.mxu1  ;;  %v2333_v54 = vadd.f32 %v5277_v50, %v5177_v25  ;;  %v2536_v53 = vadd.f32 %v5267_v14, %v2330_v15 }
 0x1f4   : > { %v3069_v48 = vadd.f32 %v3068_v57, %v3038_v0  ;;  %v3001_v22 = vadd.f32 %v3000_v8, %v2970_v6  ;;  %v2760_v56 = vadd.f32 %v2647_v37, %v2532_v19  ;;  %v2872_v27 = vpop.f32.mrf.mxu0  ;;  %v3040_v32 = vmul.f32 %v2971_v3, %v2971_v3 }
 0x1f5   : > { %v3842_v55 = vpop.f32.mrf.mxu1  ;;  %v2974_v5 = vadd.f32 %v3873_v18, %v2762_v13  ;;  %v3042_v19 = vmul.f32 %v2973_v44, %v2973_v44  ;;  %v2539_v25 = vadd.f32 %v5274_v51, %v2333_v54  ;;  %v2337_v51 = vadd.f32 %v5291_v35, %v5189_v63 }
 0x1f6   : > { %v3002_v33 = vadd.f32 %v3001_v22, %v2971_v3  ;;  %v3070_v21 = vadd.f32 %v3069_v48, %v3039_v40  ;;  %v2972_v4 = vadd.f32 %v2859_v46, %v2760_v56  ;;  %v3877_v59 = vpop.f32.mrf.mxu0  ;;  %v2765_v17 = vadd.f32 %v3842_v55, %v5265_v31 }
 0x1f7   : > { %v2660_v23 = vpop.f32.mrf.mxu1  ;;  %v3043_v8 = vmul.f32 %v2974_v5, %v2974_v5  ;;  %v2334_v56 = vadd.f32 %v5284_v29, %v5183_v28  ;;  %v2543_v54 = vadd.f32 %v5288_v38, %v2337_v51 }
 0x1f8   : > { %v3071_v20 = vadd.f32 %v3070_v21, %v3040_v32  ;;  %v3003_v6 = vadd.f32 %v3002_v33, %v2972_v4  ;;  %v3041_v34 = vmul.f32 %v2972_v4, %v2972_v4  ;;  %v2875_v9 = vpop.f32.mrf.mxu0  ;;  %v2763_v42 = vadd.f32 %v2660_v23, %v2535_v60 }
 0x1f9   : > { %v3843_v61 = vpop.f32.mrf.mxu1  ;;  %v2977_v31 = vadd.f32 %v3876_v62, %v2765_v17 }
 0x1fa   : > { %v3004_v46 = vadd.f32 %v3003_v6, %v2973_v44  ;;  %v3072_v1 = vadd.f32 %v3071_v20, %v3041_v34  ;;  %v3880_v11 = vpop.f32.mrf.mxu0  ;;  %v2975_v39 = vadd.f32 %v2872_v27, %v2763_v42  ;;  %v2766_v0 = vadd.f32 %v3843_v61, %v5272_v43 }
 0x1fb   : > { %v2663_v18 = vpop.f32.mrf.mxu1  ;;  %v3046_v21 = vmul.f32 %v2977_v31, %v2977_v31  ;;  %v2338_v42 = vadd.f32 %v5298_v45, %v5195_v49 }
 0x1fc   : > { %v3073_v57 = vadd.f32 %v3072_v1, %v3042_v19  ;;  %v3005_v3 = vadd.f32 %v3004_v46, %v2974_v5  ;;  %v2764_v58 = vadd.f32 %v2663_v18, %v2536_v53  ;;  %v2888_v40 = vpop.f32.mrf.mxu0  ;;  %v3044_v48 = vmul.f32 %v2975_v39, %v2975_v39 }
 0x1fd   : > { %v3846_v50 = vpop.f32.mrf.mxu1  ;;  %v2978_v27 = vadd.f32 %v3877_v59, %v2766_v0  ;;  %v2540_v5 = vadd.f32 %v5281_v2, %v2334_v56 }
 0x1fe   : > { %v3006_v37 = vadd.f32 %v3005_v3, %v2975_v39  ;;  %v3074_v14 = vadd.f32 %v3073_v57, %v3043_v8  ;;  %v2976_v22 = vadd.f32 %v2875_v9, %v2764_v58  ;;  %v3881_v13 = vpop.f32.mrf.mxu0  ;;  %v2769_v28 = vadd.f32 %v3846_v50, %v5279_v26 }
 0x1ff   : > { %v2676_v43 = vpop.f32.mrf.mxu1  ;;  %v3047_v59 = vmul.f32 %v2978_v27, %v2978_v27  ;;  %v2341_v58 = vadd.f32 %v5305_v30, %v5201_v52  ;;  %v2342_v52 = vadd.f32 %v5312_v36, %v5207_v12 }
 0x200   : > { %v3075_v15 = vadd.f32 %v3074_v14, %v3044_v48  ;;  %v3007_v44 = vadd.f32 %v3006_v37, %v2976_v22  ;;  %v3045_v55 = vmul.f32 %v2976_v22, %v2976_v22  ;;  %v2767_v33 = vadd.f32 %v2676_v43, %v2539_v25  ;;  %v2891_v32 = vpop.f32.mrf.mxu0 }
 0x201   : > { %v3847_v62 = vpop.f32.mrf.mxu1  ;;  %v2981_v46 = vadd.f32 %v3880_v11, %v2769_v28 }
 0x202   : > { %v3008_v4 = vadd.f32 %v3007_v44, %v2977_v31  ;;  %v3076_v60 = vadd.f32 %v3075_v15, %v3045_v55  ;;  %v2979_v23 = vadd.f32 %v2888_v40, %v2767_v33  ;;  %v3884_v20 = vpop.f32.mrf.mxu0  ;;  %v2770_v17 = vadd.f32 %v3847_v62, %v5286_v10 }
 0x203   : > { %v2679_v29 = vpop.f32.mrf.mxu1  ;;  %v2544_v10 = vadd.f32 %v5295_v41, %v2338_v42  ;;  %v3050_v40 = vmul.f32 %v2981_v46, %v2981_v46  ;;  %v2547_v41 = vadd.f32 %v5302_v24, %v2341_v58  ;;  %v5559_v24 = vld [vmem:[#allocation9_spill] sm:$0xff] }
 0x204   : > { %v3077_v6 = vadd.f32 %v3076_v60, %v3046_v21  ;;  %v3009_v34 = vadd.f32 %v3008_v4, %v2978_v27  ;;  %v2904_v9 = vpop.f32.mrf.mxu0  ;;  %v2768_v63 = vadd.f32 %v2679_v29, %v2540_v5  ;;  %v3048_v53 = vmul.f32 %v2979_v23, %v2979_v23  ;;  %v5560_v5 = vld [vmem:[#allocation5_spill] sm:$0xff] }
 0x205   : > { %v3850_v35 = vpop.f32.mrf.mxu1  ;;  %v2982_v8 = vadd.f32 %v3881_v13, %v2770_v17  ;;  %v2345_v28 = vadd.f32 %v5560_v5, %v5559_v24 }
 0x206   : > { %v3010_v61 = vadd.f32 %v3009_v34, %v2979_v23  ;;  %v3078_v19 = vadd.f32 %v3077_v6, %v3047_v59  ;;  %v3885_v2 = vpop.f32.mrf.mxu0  ;;  %v2980_v26 = vadd.f32 %v2891_v32, %v2768_v63  ;;  %v2773_v49 = vadd.f32 %v3850_v35, %v5293_v16  ;;  %v5561_v59 = vld [vmem:[#allocation15_spill] sm:$0xff] }
 0x207   : > { %v2692_v1 = vpop.f32.mrf.mxu1  ;;  %v3051_v14 = vmul.f32 %v2982_v8, %v2982_v8  ;;  %v2548_v23 = vadd.f32 %v5309_v47, %v2342_v52  ;;  %v5563_v47 = vld [vmem:[#allocation24_spill] sm:$0xff] }
 0x208   : > { %v3079_v39 = vadd.f32 %v3078_v19, %v3048_v53  ;;  %v2771_v0 = vadd.f32 %v2692_v1, %v2543_v54  ;;  %v2907_v18 = vpop.f32.mrf.mxu0  ;;  %v3011_v57 = vadd.f32 %v3010_v61, %v2980_v26  ;;  %v3049_v38 = vmul.f32 %v2980_v26, %v2980_v26  ;;  %v5562_v61 = vld [vmem:[#allocation19_spill] sm:$0xff]  ;;  %v5565_v26 = vld [vmem:[#allocation14_spill] sm:$0xff] }
 0x209   : > { %v3851_v3 = vpop.f32.mrf.mxu1  ;;  %v2985_v16 = vadd.f32 %v3884_v20, %v2773_v49 }
 0x20a   : > { %v3888_v45 = vpop.f32.mrf.mxu0  ;;  %v3012_v25 = vadd.f32 %v3011_v57, %v2981_v46  ;;  %v3080_v11 = vadd.f32 %v3079_v39, %v3049_v38  ;;  %v2983_v31 = vadd.f32 %v2904_v9, %v2771_v0  ;;  %v2774_v56 = vadd.f32 %v3851_v3, %v5300_v7  ;;  %v5564_v46 = vld [vmem:[#allocation7_spill] sm:$0xff] }
 0x20b   : > { %v2695_v50 = vpop.f32.mrf.mxu1  ;;  %v3054_v12 = vmul.f32 %v2985_v16, %v2985_v16  ;;  %v2346_v1 = vadd.f32 %v5565_v26, %v5564_v46 }
 0x20c   : > { %v2772_v37 = vadd.f32 %v2695_v50, %v2544_v10  ;;  %v2920_v48 = vpop.f32.mrf.mxu0  ;;  %v3081_v22 = vadd.f32 %v3080_v11, %v3050_v40  ;;  %v3013_v13 = vadd.f32 %v3012_v25, %v2982_v8  ;;  %v3052_v44 = vmul.f32 %v2983_v31, %v2983_v31  ;;  %v5566_v50 = vld [vmem:[#allocation12_spill] sm:$0xff] }
 0x20d   : > { %v3854_v27 = vpop.f32.mrf.mxu1  ;;  %v2986_v4 = vadd.f32 %v3885_v2, %v2774_v56  ;;  %v2551_v2 = vadd.f32 %v5563_v47, %v2345_v28  ;;  %v5575_v47 = vld [vmem:[#allocation2_spill] sm:$0xff] }
 0x20e   : > { %v2984_v30 = vadd.f32 %v2907_v18, %v2772_v37  ;;  %v3889_v43 = vpop.f32.mrf.mxu0  ;;  %v3014_v15 = vadd.f32 %v3013_v13, %v2983_v31  ;;  %v3082_v55 = vadd.f32 %v3081_v22, %v3051_v14  ;;  %v2777_v6 = vadd.f32 %v3854_v27, %v5561_v59  ;;  %v5568_v14 = vld [vmem:[#allocation25_spill] sm:$0xff]  ;;  %v5569_v13 = vld [vmem:[#allocation10_spill] sm:$0xff] }
 0x20f   : > { %v2708_v33 = vpop.f32.mrf.mxu1  ;;  %v3055_v63 = vmul.f32 %v2986_v4, %v2986_v4  ;;  %v2552_v37 = vadd.f32 %v5566_v50, %v2346_v1 }
 0x210   : > { %v3053_v32 = vmul.f32 %v2984_v30, %v2984_v30  ;;  %v2775_v51 = vadd.f32 %v2708_v33, %v2547_v41  ;;  %v2923_v62 = vpop.f32.mrf.mxu0  ;;  %v3083_v21 = vadd.f32 %v3082_v55, %v3052_v44  ;;  %v3015_v60 = vadd.f32 %v3014_v15, %v2984_v30 }
 0x211   : > { %v3855_v7 = vpop.f32.mrf.mxu1  ;;  %v2989_v18 = vadd.f32 %v3888_v45, %v2777_v6 }
 0x212   : > { %v3892_v36 = vpop.f32.mrf.mxu0  ;;  %v3016_v20 = vadd.f32 %v3015_v60, %v2985_v16  ;;  %v3084_v29 = vadd.f32 %v3083_v21, %v3053_v32  ;;  %v2987_v34 = vadd.f32 %v2920_v48, %v2775_v51  ;;  %v2778_v53 = vadd.f32 %v3855_v7, %v5562_v61  ;;  %v5567_v48 = vld [vmem:[#allocation11_spill] sm:$0xff]  ;;  %v5571_v21 = vld [vmem:[#allocation22_spill] sm:$0xff]  ;;  %v5572_v60 = vld [vmem:[#allocation13_spill] sm:$0xff] }
 0x213   : > { %v2711_v9 = vpop.f32.mrf.mxu1  ;;  %v2349_v22 = vadd.f32 %v5568_v14, %v5567_v48  ;;  %v3058_v45 = vmul.f32 %v2989_v18, %v2989_v18  ;;  %v5573_v7 = vld [vmem:[#allocation16_spill] sm:$0xff] }
 0x214   : > { %v2776_v54 = vadd.f32 %v2711_v9, %v2548_v23  ;;  %v2936_v17 = vpop.f32.mrf.mxu0  ;;  %v3085_v35 = vadd.f32 %v3084_v29, %v3054_v12  ;;  %v3017_v42 = vadd.f32 %v3016_v20, %v2986_v4  ;;  %v3056_v57 = vmul.f32 %v2987_v34, %v2987_v34 }
 0x215   : > { %v3858_v19 = vpop.f32.mrf.mxu1  ;;  %v2990_v25 = vadd.f32 %v3889_v43, %v2778_v53  ;;  %v5570_v43 = vld [vmem:[#allocation17_spill] sm:$0xff]  ;;  %v2555_v4 = vadd.f32 %v5571_v21, %v2349_v22  ;;  %v2350_v23 = vadd.f32 %v5573_v7, %v5572_v60 }
 0x216   : > { %v2988_v39 = vadd.f32 %v2923_v62, %v2776_v54  ;;  %v3893_v0 = vpop.f32.mrf.mxu0  ;;  %v3018_v8 = vadd.f32 %v3017_v42, %v2987_v34  ;;  %v3086_v38 = vadd.f32 %v3085_v35, %v3055_v63  ;;  %v2781_v56 = vadd.f32 %v3858_v19, %v5569_v13  ;;  %v5574_v35 = vld [vmem:[#allocation20_spill] sm:$0xff] }
 0x217   : > { %v2724_v3 = vpop.f32.mrf.mxu1  ;;  %v3059_v44 = vmul.f32 %v2990_v25, %v2990_v25  ;;  %v2556_v42 = vadd.f32 %v5574_v35, %v2350_v23 }
 0x218   : > { %v3057_v10 = vmul.f32 %v2988_v39, %v2988_v39  ;;  %v2779_v58 = vadd.f32 %v2724_v3, %v2551_v2  ;;  %v2939_v49 = vpop.f32.mrf.mxu0  ;;  %v3087_v40 = vadd.f32 %v3086_v38, %v3056_v57  ;;  %v3019_v11 = vadd.f32 %v3018_v8, %v2988_v39  ;;  %v5576_v8 = vld [vmem:[#allocation18_spill] sm:$0xff] }
 0x219   : > { %v3859_v31 = vpop.f32.mrf.mxu1  ;;  %v2993_v24 = vadd.f32 %v3892_v36, %v2781_v56 }
 0x21a   : > { %v3896_v27 = vpop.f32.mrf.mxu0  ;;  %v3020_v41 = vadd.f32 %v3019_v11, %v2989_v18  ;;  %v3088_v52 = vadd.f32 %v3087_v40, %v3057_v10  ;;  %v2991_v16 = vadd.f32 %v2936_v17, %v2779_v58  ;;  %v2782_v32 = vadd.f32 %v3859_v31, %v5570_v43 }
 0x21b   : > { %v2727_v30 = vpop.f32.mrf.mxu1  ;;  %v3062_v61 = vmul.f32 %v2993_v24, %v2993_v24 }
 0x21c   : > { %v2780_v15 = vadd.f32 %v2727_v30, %v2552_v37  ;;  %v3089_v55 = vadd.f32 %v3088_v52, %v3058_v45  ;;  %v3021_v33 = vadd.f32 %v3020_v41, %v2990_v25  ;;  %v2952_v62 = vpop.f32.mrf.mxu0  ;;  %v3060_v12 = vmul.f32 %v2991_v16, %v2991_v16 }
 0x21d   : > { %v3862_v51 = vpop.f32.mrf.mxu1  ;;  %v2994_v9 = vadd.f32 %v3893_v0, %v2782_v32 }
 0x21e   : > { %v2992_v5 = vadd.f32 %v2939_v49, %v2780_v15  ;;  %v3022_v28 = vadd.f32 %v3021_v33, %v2991_v16  ;;  %v3090_v20 = vadd.f32 %v3089_v55, %v3059_v44  ;;  %v3897_v63 = vpop.f32.mrf.mxu0  ;;  %v2785_v2 = vadd.f32 %v3862_v51, %v5575_v47 }
 0x21f   : > { %v2740_v29 = vpop.f32.mrf.mxu1  ;;  %v3063_v1 = vmul.f32 %v2994_v9, %v2994_v9 }
 0x220   : > { %v3061_v59 = vmul.f32 %v2992_v5, %v2992_v5  ;;  %v2783_v6 = vadd.f32 %v2740_v29, %v2555_v4  ;;  %v3091_v34 = vadd.f32 %v3090_v20, %v3060_v12  ;;  %v3023_v54 = vadd.f32 %v3022_v28, %v2992_v5  ;;  %v2955_v38 = vpop.f32.mrf.mxu0 }
 0x221   : > { %v3863_v17 = vpop.f32.mrf.mxu1  ;;  %v2997_v3 = vadd.f32 %v3896_v27, %v2785_v2 }
 0x222   : > { %v3024_v53 = vadd.f32 %v3023_v54, %v2993_v24  ;;  %v3092_v19 = vadd.f32 %v3091_v34, %v3061_v59  ;;  %v2995_v36 = vadd.f32 %v2952_v62, %v2783_v6  ;;  %v2786_v57 = vadd.f32 %v3863_v17, %v5576_v8 }
 0x223   : > { %v2743_v46 = vpop.f32.mrf.mxu1  ;;  %v3066_v50 = vmul.f32 %v2997_v3, %v2997_v3 }
 0x224   : > { %v2784_v26 = vadd.f32 %v2743_v46, %v2556_v42  ;;  %v3093_v39 = vadd.f32 %v3092_v19, %v3062_v61  ;;  %v3025_v18 = vadd.f32 %v3024_v53, %v2994_v9  ;;  %v3064_v58 = vmul.f32 %v2995_v36, %v2995_v36 }
 0x225   : > { %v2998_v11 = vadd.f32 %v3897_v63, %v2786_v57 }
 0x226   : > { %v2996_v0 = vadd.f32 %v2955_v38, %v2784_v26  ;;  %v3026_v10 = vadd.f32 %v3025_v18, %v2995_v36  ;;  %v3094_v49 = vadd.f32 %v3093_v39, %v3063_v1 }
 0x227   : > { %v3067_v14 = vmul.f32 %v2998_v11, %v2998_v11 }
 0x228   : > { %v3065_v40 = vmul.f32 %v2996_v0, %v2996_v0  ;;  %v3095_v25 = vadd.f32 %v3094_v49, %v3064_v58  ;;  %v3027_v31 = vadd.f32 %v3026_v10, %v2996_v0 }
 0x22a   : > { %v3028_v37 = vadd.f32 %v3027_v31, %v2997_v3  ;;  %v3096_v48 = vadd.f32 %v3095_v25, %v3065_v40 }
 0x22c   : > { %v3029_v22 = vadd.f32 %v3028_v37, %v2998_v11  ;;  %v3097_v13 = vadd.f32 %v3096_v48, %v3066_v50 }
 0x22e   : > { %v3030_v56 = vrot.slane %v3029_v22, 4  ;;  %v3098_v45 = vadd.f32 %v3097_v13, %v3067_v14 }
 0x230   : > { %v3031_v41 = vadd.f32 %v3030_v56, %v3029_v22  ;;  %v3099_v52 = vrot.slane %v3098_v45, 4 }
 0x232   : > { %v3032_v16 = vrot.slane %v3031_v41, 2  ;;  %v3100_v27 = vadd.f32 %v3099_v52, %v3098_v45 }
 0x234   : > { %v3033_v30 = vadd.f32 %v3032_v16, %v3031_v41  ;;  %v3101_v15 = vrot.slane %v3100_v27, 2 }
 0x236   : > { %v3034_v44 = vrot.slane %v3033_v30, 1  ;;  %v3102_v55 = vadd.f32 %v3101_v15, %v3100_v27 }
 0x238   : > { %v3103_v33 = vrot.slane %v3102_v55, 1  ;;  %v3035_v43 = vadd.f32 %v3034_v44, %v3033_v30 }
 0x23a   : > { %v3104_v32 = vadd.f32 %v3103_v33, %v3102_v55 }
 0x23c   : > { %v3106_v51 = vsel %vm3105_vm8, %v3035_v43, %v3104_v32 }
 0x23d   : > { %3107 = vst [vmem:[%s281_s22] sm:$0x3] %v3106_v51 }
 0x23e PF: > { %s13_s14 = sadd.s32 1, %s3977_s14   ;;  %s5577_s12 = smov %s3973_s13 }
 0x23f   : > { %p10_p5 = scmp.ge.s32.totalorder %s13_s14, 4   ;;  %s5578_s13 = smov %s5580_s15 }
 0x241   :  { %12 = sbr.rel (!%p10_p5) target bundleno = 2 (0x2), region = 73 }

// kernel: double_conv2d.5
= control target key start
LH: loop header
LB: loop body
LE: loop exit
PB: predicated region body
PF: predicated region fallthrough
CT: control target
= control target key end

     0   :  { %s4392_s18 = smov 0   ;;  %s4394_s19 = smov 0   ;;  %s5914_s0 = inlined_call_operand.vmem [shape: bf16[2,18,18,4], index: 0, kind: input, shape index: {}, may-alias: {0,1}]   ;;  %s5915_s1 = inlined_call_operand.vmem [shape: bf16[2,18,18,4], index: 1, kind: input, shape index: {}, may-alias: {0,1}]   ;;  %s5916_s2 = inlined_call_operand.vmem [shape: bf16[9,4,128], index: 2, kind: input, shape index: {}]   ;;  %s5917_s3 = inlined_call_operand.vmem [shape: f32[1,128], index: 3, kind: input, shape index: {}]   ;;  %s5918_s4 = inlined_call_operand.vmem [shape: f32[1,128], index: 4, kind: input, shape index: {}]   ;;  %s5919_s5 = inlined_call_operand.vmem [shape: bf16[512,128], index: 5, kind: output, shape index: {}]  }
   0x1   :  { %s4396_s20 = smov 0  }
   0x2 LB: > { %s27_s21 = sadd.s32 1, %s4356_s19  ;;  %p3428_p0 = scmp.ge.s32.totalorder %s4360_s20, 1  ;;  %s4360_s20 = sphi %s4396_s20, %s15_s20   ;;  %s4356_s19 = sphi %s4394_s19, %s6069_s19   ;;  %s4352_s18 = sphi %s4392_s18, %s6068_s18  }
   0x3   : > { %p29_p1 = scmp.ge.s32.totalorder %s27_s21, 2  ;;  %p245_p2 = scmp.lt.s32.totalorder %s4360_s20, 3 }
   0x5   : > { %s6071_s21 = smov (%p29_p1, %s27_s21), 0  ;;  %p246_p3 = pnand %p3428_p0, %p245_p2 }
   0x7   : > { %249 = sbr.rel (%p246_p3) target bundleno = 562 (0x232), region = 40 }
   0xc   : > { %v3433_v0 = vld [vmem:[%s5916_s2 + $0x2] sm:$0x3]  ;;  %vm882_vm0 = vcmask 1041408   ;;  %p302_p4 = scmp.lt.s32.totalorder %s4352_s18, 1  ;;  %v395_v2 = vld [vmem:[%s5916_s2] sm:$0x3] }
   0xd   : > { %4284 = vmatprep.subr.msk.bf16.mxu1 %vm882_vm0, %v3433_v0  ;;  %4283 = vmatprep.subr.msk.bf16.mxu0 %vm882_vm0, %v3433_v0  ;;  %v884_v1 = vsel %vm882_vm0, %v3433_v0, 0  ;;  %v3514_v3 = vld [vmem:[%s5916_s2 + $0x4] sm:$0x3]  ;;  %vm396_vm1 = vsmask.f32 3328  ;;  %v4439_v4 = vsel %vm882_vm0, %v395_v2, 0 }
   0xe   : > { %4282 = vmatpush3.bf16.msra.mxu1 %v884_v1  ;;  %3976 = vmatpush3.bf16.msra.mxu0 %v884_v1  ;;  %s4423_s26 = scalar_select %p302_p4, %s4352_s18, 1  ;;  %vm397_vm2 = vsmask.f32 7440  ;;  %v4442_v5 = vsel %vm882_vm0, %v3514_v3, 0  ;;  %vm833_vm3 = vcmask 31744   ;;  %v5963_v32 = vmov 0 }
   0xf   : > { %4285 = vmatprep.subr.msk.bf16.mxu1 %vm882_vm0, %v395_v2  ;;  %4286 = vmatprep.subr.msk.bf16.mxu0 %vm882_vm0, %v3514_v3  ;;  %vm4481_vm4 = vmor %vm396_vm1, %vm397_vm2  ;;  %vm1355_vm5 = vcmask 1042432   ;;  %vm1356_vm6 = vcmask 1046532   ;;  %s3431_s28 = sshll.u32 %s4352_s18, 5 }
  0x10   : > { %s4293_s29 = smul.u32 216, %s4423_s26  ;;  %v5964_v32 = vsel %vm4481_vm4, 4294967295, %v5963_v32  ;;  %vm4804_vm7 = vmor %vm1355_vm5, %vm1356_vm6  ;;  %p334_p5 = scmp.lt.s32.totalorder %s3431_s28, 63 }
  0x11   : > { %5965 = vst [vmem:[#allocation2_spill] sm:$0xff] %v5964_v32 }
  0x12   : > { %s4436_s7 = scalar_lea.vmem %s5914_s0, %s4293_s29  ;;  %s3694_s16 = sadd.s32 192, %s4293_s29 }
  0x13   : > { %v4445_v6 = vld [vmem:[%s4436_s7] sm:$0xf]  ;;  %v4448_v7 = vld [vmem:[%s4436_s7 + $0x4] sm:$0xf]  ;;  %v4451_v8 = vld [vmem:[%s4436_s7 + $0x8] sm:$0x1]  ;;  %s5111_s23 = scalar_lea.vmem %s5915_s1, %s3694_s16 }
  0x14   : > { %v400_v9 = vshrl.u32 %v4445_v6, 16  ;;  %v403_v10 = vshll.u32 %v4445_v6, 16  ;;  %v409_v11 = vshll.u32 %v4448_v7, 16  ;;  %v413_v12 = vshrl.u32 %v4448_v7, 16  ;;  %v4458_v13 = vld [vmem:[%s4436_s7 + $0x60] sm:$0xf] }
  0x15   : > { %v419_v14 = vshll.u32 %v4451_v8, 16  ;;  %v4463_v16 = vld [vmem:[%s4436_s7 + $0x64] sm:$0xf]  ;;  %v4466_v17 = vld [vmem:[%s4436_s7 + $0x68] sm:$0x1]  ;;  %v592_v23 = vshrl.u32 %v4458_v13, 16 }
  0x16   : > { %v402_v18 = vrot.slane %v400_v9, 4  ;;  %v405_v19 = vrot.slane %v403_v10, 5  ;;  %v411_v20 = vrot.slane %v409_v11, 5  ;;  %v415_v21 = vrot.slane %v413_v12, 4  ;;  %v4474_v30 = vld [vmem:[%s4436_s7 + $0xc] sm:$0xf] }
  0x17   : > { %v421_v22 = vrot.slane %v419_v14, 5  ;;  %v595_v24 = vshll.u32 %v4458_v13, 16  ;;  %v601_v25 = vshll.u32 %v4463_v16, 16  ;;  %v605_v28 = vshrl.u32 %v4463_v16, 16  ;;  %v4477_v31 = vld [vmem:[%s4436_s7 + $0x10] sm:$0xf] }
  0x18   : > { %v406_v26 = vor.u32 %v405_v19, %v402_v18  ;;  %v416_v27 = vor.u32 %v415_v21, %v411_v20  ;;  %v611_v29 = vshll.u32 %v4466_v17, 16  ;;  %v594_v33 = vrot.slane %v592_v23, 4  ;;  %v4488_v42 = vld [vmem:[%s4436_s7 + $0x14] sm:$0x1]  ;;  %v4499_v54 = vld [vmem:[%s4436_s7 + $0x6c] sm:$0xf] }
  0x19   : > { %v597_v34 = vrot.slane %v595_v24, 5  ;;  %v603_v35 = vrot.slane %v601_v25, 5  ;;  %v607_v39 = vrot.slane %v605_v28, 4  ;;  %v424_v43 = vshrl.u32 %v4474_v30, 16  ;;  %5966 = vst [vmem:[#allocation3_spill] sm:$0xff] %v4499_v54  ;;  %s6073_s28 = smov (!%p334_p5, %s3431_s28), 63 }
  0x1a   : > { %v407_v37 = vrot.slane %v406_v26, 4  ;;  %v417_v38 = vrot.slane %v416_v27, 4  ;;  %v613_v40 = vrot.slane %v611_v29, 5  ;;  %v427_v44 = vshll.u32 %v4474_v30, 16  ;;  %v4503_v59 = vld [vmem:[%s4436_s7 + $0x70] sm:$0xf] }
  0x1b   : > { %v598_v41 = vor.u32 %v597_v34, %v594_v33  ;;  %v433_v45 = vshll.u32 %v4477_v31, 16  ;;  %v608_v48 = vor.u32 %v607_v39, %v603_v35  ;;  %v437_v49 = vshrl.u32 %v4477_v31, 16  ;;  %v4511_v0 = vld [vmem:[%s4436_s7 + $0x74] sm:$0x1]  ;;  %v4517_v10 = vld [vmem:[%s4436_s7 + $0x18] sm:$0xf] }
  0x1c   : > { %v412_v46 = vsel %vm4481_vm4, %v407_v37, %v411_v20  ;;  %v422_v47 = vsel %vm4481_vm4, %v417_v38, %v421_v22  ;;  %v426_v52 = vrot.slane %v424_v43, 4  ;;  %v429_v53 = vrot.slane %v427_v44, 5  ;;  %5967 = vst [vmem:[#allocation4_spill] sm:$0xff] %v4511_v0  ;;  %v4526_v23 = vld [vmem:[%s4436_s7 + $0x1c] sm:$0xf] }
  0x1d   : > { %v3434_v50 = vcombine.low %v412_v46, %v422_v47  ;;  %v599_v51 = vrot.slane %v598_v41, 4  ;;  %v609_v55 = vrot.slane %v608_v48, 4  ;;  %v435_v56 = vrot.slane %v433_v45, 5  ;;  %v4533_v27 = vld [vmem:[%s4436_s7 + $0x20] sm:$0x1] }
  0x1e   : > { %v439_v57 = vrot.slane %v437_v49, 4  ;;  %v443_v58 = vshll.u32 %v4488_v42, 16  ;;  %v430_v61 = vor.u32 %v429_v53, %v426_v52  ;;  %v616_v9 = vshrl.u32 %v4499_v54, 16  ;;  %v4540_v37 = vld [vmem:[%s4436_s7 + $0x78] sm:$0xf] }
  0x1f   : > { %3977 = vmatprep.mubr.msk.bf16.mxu0 %vm833_vm3, %v3434_v50  ;;  %v604_v60 = vsel %vm4481_vm4, %v599_v51, %v603_v35  ;;  %v614_v1 = vsel %vm4481_vm4, %v609_v55, %v613_v40  ;;  %v619_v14 = vshll.u32 %v4499_v54, 16  ;;  %v625_v18 = vshll.u32 %v4503_v59, 16  ;;  %5969 = vst [vmem:[#allocation6_spill] sm:$0xff] %v4540_v37  ;;  %v4548_v43 = vld [vmem:[%s5916_s2 + $0x8] sm:$0x3] }
  0x20   : > { %v440_v2 = vor.u32 %v439_v57, %v435_v56  ;;  %v445_v3 = vrot.slane %v443_v58, 5  ;;  %v4519_v11 = vcombine.low %v604_v60, %v614_v1  ;;  %v431_v12 = vrot.slane %v430_v61, 4  ;;  %v4553_v48 = vld [vmem:[%s4436_s7 + $0x7c] sm:$0xf]  ;;  %v4561_v58 = vld [vmem:[%s4436_s7 + $0x80] sm:$0x1] }
  0x21   : > { %v618_v20 = vrot.slane %v616_v9, 4  ;;  %v629_v21 = vshrl.u32 %v4503_v59, 16  ;;  %v635_v22 = vshll.u32 %v4511_v0, 16  ;;  %v621_v25 = vrot.slane %v619_v14, 5  ;;  %5971 = vst [vmem:[#allocation8_spill] sm:$0xff] %v4553_v48  ;;  %5972 = vst [vmem:[#allocation9_spill] sm:$0xff] %v4561_v58 }
  0x22   : > { %5968 = vst [vmem:[#allocation5_spill] sm:$0xff] %v4519_v11  ;;  %v441_v19 = vrot.slane %v440_v2, 4  ;;  %3993 = vmatprep.mubr.msk.bf16.mxu1 %vm833_vm3, %v4519_v11  ;;  %v436_v24 = vsel %vm4481_vm4, %v431_v12, %v435_v56  ;;  %v627_v26 = vrot.slane %v625_v18, 5  ;;  %v448_v28 = vshrl.u32 %v4517_v10, 16  ;;  %v4575_v18 = vld [vmem:[%s4436_s7 + $0x28] sm:$0xf] }
  0x23   : > { %v631_v33 = vrot.slane %v629_v21, 4  ;;  %v637_v34 = vrot.slane %v635_v22, 5  ;;  %v451_v35 = vshll.u32 %v4517_v10, 16  ;;  %v622_v39 = vor.u32 %v621_v25, %v618_v20 }
  0x24   : > { %v446_v29 = vsel %vm4481_vm4, %v441_v19, %v445_v3  ;;  %v450_v40 = vrot.slane %v448_v28, 4  ;;  %v457_v41 = vshll.u32 %v4526_v23, 16  ;;  %v461_v46 = vshrl.u32 %v4526_v23, 16  ;;  %v4567_v3 = vld [vmem:[%s4436_s7 + $0x24] sm:$0xf] }
  0x25   : > { %v4542_v38 = vcombine.low %v436_v24, %v446_v29  ;;  %v632_v44 = vor.u32 %v631_v33, %v627_v26  ;;  %v453_v45 = vrot.slane %v451_v35, 5  ;;  %v467_v47 = vshll.u32 %v4533_v27, 16  ;;  %v4583_v24 = vld [vmem:[%s5916_s2 + $0x6] sm:$0x3]  ;;  %v4588_v29 = vld [vmem:[%s4436_s7 + $0x2c] sm:$0x1] }
  0x26   : > { %v623_v49 = vrot.slane %v622_v39, 4  ;;  %v459_v50 = vrot.slane %v457_v41, 5  ;;  %v640_v51 = vshrl.u32 %v4540_v37, 16  ;;  %v643_v52 = vshll.u32 %v4540_v37, 16  ;;  %v4596_v41 = vld [vmem:[%s4436_s7 + $0x84] sm:$0xf] }
  0x27   : > { %5970 = vst [vmem:[#allocation7_spill] sm:$0xff] %v4542_v38  ;;  %3978 = vmatmul.mubr.msk.bf16.vlgmr.msra.gmra.mxu0 %vm833_vm3, %v4542_v38  ;;  %v633_v53 = vrot.slane %v632_v44, 4  ;;  %v454_v55 = vor.u32 %v453_v45, %v450_v40  ;;  %v463_v56 = vrot.slane %v461_v46, 4  ;;  %v469_v57 = vrot.slane %v467_v47, 5  ;;  %v4743_v38 = vld [vmem:[%s4436_s7 + $0xb0] sm:$0x1] }
  0x28   : > { %4044 = vmatpush3.bf16.msra.mxu0 %v4442_v5  ;;  %v628_v60 = vsel %vm4481_vm4, %v623_v49, %v627_v26  ;;  %v642_v61 = vrot.slane %v640_v51, 4  ;;  %v645_v1 = vrot.slane %v643_v52, 5  ;;  %v649_v2 = vshll.u32 %v4553_v48, 16  ;;  %v4603_v49 = vld [vmem:[%s4436_s7 + $0x88] sm:$0xf]  ;;  %5984 = vst [vmem:[#allocation21_spill] sm:$0xff] %v4743_v38 }
  0x29   : > { %4288 = vmatprep.subr.msk.bf16.mxu0 %vm882_vm0, %v4548_v43  ;;  %v638_v5 = vsel %vm4481_vm4, %v633_v53, %v637_v34  ;;  %v455_v9 = vrot.slane %v454_v55, 4  ;;  %v464_v12 = vor.u32 %v463_v56, %v459_v50  ;;  %v653_v14 = vshrl.u32 %v4553_v48, 16  ;;  %v4765_v48 = vld [vmem:[%s4436_s7 + $0x5c] sm:$0x1] }
  0x2a   : > { %v4577_v19 = vcombine.low %v628_v60, %v638_v5  ;;  %v646_v20 = vor.u32 %v645_v1, %v642_v61  ;;  %v651_v21 = vrot.slane %v649_v2, 5  ;;  %v659_v22 = vshll.u32 %v4561_v58, 16 }
  0x2b   : > { %v460_v25 = vsel %vm4481_vm4, %v455_v9, %v459_v50  ;;  %v465_v26 = vrot.slane %v464_v12, 4  ;;  %v655_v28 = vrot.slane %v653_v14, 4  ;;  %v472_v33 = vshrl.u32 %v4567_v3, 16  ;;  %v4622_v9 = vld [vmem:[%s4436_s7 + $0x30] sm:$0xf] }
  0x2c   : > { %5973 = vst [vmem:[#allocation10_spill] sm:$0xff] %v4577_v19  ;;  %3994 = vmatmul.mubr.msk.bf16.vlgmr.msra.gmra.mxu1 %vm833_vm3, %v4577_v19  ;;  %v647_v34 = vrot.slane %v646_v20, 4  ;;  %v661_v35 = vrot.slane %v659_v22, 5  ;;  %v475_v39 = vshll.u32 %v4567_v3, 16  ;;  %v481_v40 = vshll.u32 %v4575_v18, 16 }
  0x2d   : > { %4010 = vmatpush3.bf16.msra.mxu1 %v4439_v4  ;;  %v470_v44 = vsel %vm4481_vm4, %v465_v26, %v469_v57  ;;  %v656_v45 = vor.u32 %v655_v28, %v651_v21  ;;  %v474_v46 = vrot.slane %v472_v33, 4  ;;  %v485_v47 = vshrl.u32 %v4575_v18, 16  ;;  %v4613_v57 = vld [vmem:[%s4436_s7 + $0x8c] sm:$0x1]  ;;  %v4627_v22 = vld [vmem:[%s4436_s7 + $0x34] sm:$0xf] }
  0x2e   : > { %v4605_v50 = vcombine.low %v460_v25, %v470_v44  ;;  %v652_v51 = vsel %vm4481_vm4, %v647_v34, %v651_v21  ;;  %v477_v52 = vrot.slane %v475_v39, 5  ;;  %v483_v53 = vrot.slane %v481_v40, 5  ;;  %4287 = vmatprep.subr.msk.bf16.mxu1 %vm882_vm0, %v4583_v24 }
  0x2f   : > { %v657_v4 = vrot.slane %v656_v45, 4  ;;  %v487_v55 = vrot.slane %v485_v47, 4  ;;  %v491_v56 = vshll.u32 %v4588_v29, 16  ;;  %v664_v60 = vshrl.u32 %v4596_v41, 16 }
  0x30   : > { %5974 = vst [vmem:[#allocation11_spill] sm:$0xff] %v4605_v50  ;;  %3981 = vmatprep.mubr.msk.bf16.mxu0 %vm833_vm3, %v4605_v50  ;;  %v478_v61 = vor.u32 %v477_v52, %v474_v46  ;;  %v667_v1 = vshll.u32 %v4596_v41, 16  ;;  %v673_v2 = vshll.u32 %v4603_v49, 16  ;;  %v677_v5 = vshrl.u32 %v4603_v49, 16  ;;  %v4638_v46 = vld [vmem:[%s4436_s7 + $0x38] sm:$0x1] }
  0x31   : > { %v662_v12 = vsel %vm4481_vm4, %v657_v4, %v661_v35  ;;  %v488_v14 = vor.u32 %v487_v55, %v483_v53  ;;  %v493_v20 = vrot.slane %v491_v56, 5  ;;  %v666_v21 = vrot.slane %v664_v60, 4  ;;  %v4643_v52 = vld [vmem:[%s4436_s7 + $0x90] sm:$0xf] }
  0x32   : > { %v4629_v25 = vcombine.low %v652_v51, %v662_v12  ;;  %v479_v26 = vrot.slane %v478_v61, 4  ;;  %v669_v28 = vrot.slane %v667_v1, 5  ;;  %v675_v33 = vrot.slane %v673_v2, 5  ;;  %v4648_v61 = vld [vmem:[%s4436_s7 + $0x94] sm:$0xf] }
  0x33   : > { %v489_v34 = vrot.slane %v488_v14, 4  ;;  %v679_v39 = vrot.slane %v677_v5, 4  ;;  %v683_v40 = vshll.u32 %v4613_v57, 16  ;;  %v496_v44 = vshrl.u32 %v4622_v9, 16 }
  0x34   : > { %5975 = vst [vmem:[#allocation12_spill] sm:$0xff] %v4629_v25  ;;  %3997 = vmatprep.mubr.msk.bf16.mxu1 %vm833_vm3, %v4629_v25  ;;  %v484_v35 = vsel %vm4481_vm4, %v479_v26, %v483_v53  ;;  %v670_v45 = vor.u32 %v669_v28, %v666_v21  ;;  %v499_v47 = vshll.u32 %v4622_v9, 16  ;;  %v505_v51 = vshll.u32 %v4627_v22, 16  ;;  %v4694_v25 = vld [vmem:[%s4436_s7 + $0xa0] sm:$0xf] }
  0x35   : > { %v494_v4 = vsel %vm4481_vm4, %v489_v34, %v493_v20  ;;  %v680_v55 = vor.u32 %v679_v39, %v675_v33  ;;  %v685_v56 = vrot.slane %v683_v40, 5  ;;  %v498_v60 = vrot.slane %v496_v44, 4  ;;  %v4660_v34 = vld [vmem:[%s4436_s7 + $0x98] sm:$0x1]  ;;  %v4665_v44 = vld [vmem:[%s4436_s7 + $0x3c] sm:$0xf] }
  0x36   : > { %v4650_v53 = vcombine.low %v484_v35, %v494_v4  ;;  %v671_v1 = vrot.slane %v670_v45, 4  ;;  %v501_v2 = vrot.slane %v499_v47, 5  ;;  %v507_v5 = vrot.slane %v505_v51, 5  ;;  %v4670_v4 = vld [vmem:[%s4436_s7 + $0x40] sm:$0xf] }
  0x37   : > { %v681_v12 = vrot.slane %v680_v55, 4  ;;  %v509_v14 = vshrl.u32 %v4627_v22, 16  ;;  %v515_v21 = vshll.u32 %v4638_v46, 16  ;;  %v688_v20 = vshrl.u32 %v4643_v52, 16 }
  0x38   : > { %5976 = vst [vmem:[#allocation13_spill] sm:$0xff] %v4650_v53  ;;  %3982 = vmatmul.mubr.msk.bf16.gmra.mxu0 %vm833_vm3, %v4650_v53  ;;  %v676_v26 = vsel %vm4481_vm4, %v671_v1, %v675_v33  ;;  %v502_v28 = vor.u32 %v501_v2, %v498_v60  ;;  %v691_v39 = vshll.u32 %v4643_v52, 16  ;;  %v697_v40 = vshll.u32 %v4648_v61, 16 }
  0x39   : > { %v686_v35 = vsel %vm4481_vm4, %v681_v12, %v685_v56  ;;  %v511_v45 = vrot.slane %v509_v14, 4  ;;  %v517_v47 = vrot.slane %v515_v21, 5  ;;  %v690_v51 = vrot.slane %v688_v20, 4  ;;  %v4682_v14 = vld [vmem:[%s4436_s7 + $0x44] sm:$0x1] }
  0x3a   : > { %v4672_v33 = vcombine.low %v676_v26, %v686_v35  ;;  %v503_v55 = vrot.slane %v502_v28, 4  ;;  %v693_v60 = vrot.slane %v691_v39, 5  ;;  %v699_v1 = vrot.slane %v697_v40, 5  ;;  %v4687_v26 = vld [vmem:[%s4436_s7 + $0x9c] sm:$0xf] }
  0x3b   : > { %v512_v2 = vor.u32 %v511_v45, %v507_v5  ;;  %v701_v36 = vshrl.u32 %v4648_v61, 16  ;;  %v707_v63 = vshll.u32 %v4660_v34, 16  ;;  %v520_v15 = vshrl.u32 %v4665_v44, 16 }
  0x3c   : > { %5977 = vst [vmem:[#allocation14_spill] sm:$0xff] %v4672_v33  ;;  %3998 = vmatmul.mubr.msk.bf16.gmra.mxu1 %vm833_vm3, %v4672_v33  ;;  %v508_v56 = vsel %vm4481_vm4, %v503_v55, %v507_v5  ;;  %v694_v12 = vor.u32 %v693_v60, %v690_v51  ;;  %v523_v21 = vshll.u32 %v4665_v44, 16  ;;  %v529_v20 = vshll.u32 %v4670_v4, 16 }
  0x3d   : > { %v513_v28 = vrot.slane %v512_v2, 4  ;;  %v703_v39 = vrot.slane %v701_v36, 4  ;;  %v709_v40 = vrot.slane %v707_v63, 5  ;;  %v522_v35 = vrot.slane %v520_v15, 4 }
  0x3e   : > { %v695_v45 = vrot.slane %v694_v12, 4  ;;  %v525_v62 = vrot.slane %v523_v21, 5  ;;  %v531_v33 = vrot.slane %v529_v20, 5  ;;  %v533_v5 = vshrl.u32 %v4670_v4, 16  ;;  %v4702_v21 = vld [vmem:[%s4436_s7 + $0xa4] sm:$0x1] }
  0x3f   : > { %v518_v51 = vsel %vm4481_vm4, %v513_v28, %v517_v47  ;;  %v704_v55 = vor.u32 %v703_v39, %v699_v1  ;;  %v539_v60 = vshll.u32 %v4682_v14, 16  ;;  %v712_v2 = vshrl.u32 %v4687_v26, 16  ;;  %5979 = vst [vmem:[#allocation16_spill] sm:$0xff] %v4702_v21  ;;  %v4705_v20 = vld [vmem:[%s4436_s7 + $0x48] sm:$0xf] }
  0x40   : > { %v4697_v36 = vcombine.low %v508_v56, %v518_v51  ;;  %v700_v15 = vsel %vm4481_vm4, %v695_v45, %v699_v1  ;;  %v526_v63 = vor.u32 %v525_v62, %v522_v35  ;;  %v535_v12 = vrot.slane %v533_v5, 4 }
  0x41   : > { %v705_v47 = vrot.slane %v704_v55, 4  ;;  %v541_v28 = vrot.slane %v539_v60, 5  ;;  %v714_v39 = vrot.slane %v712_v2, 4  ;;  %v715_v19 = vshll.u32 %v4687_v26, 16  ;;  %v4716_v55 = vld [vmem:[%s4436_s7 + $0x4c] sm:$0xf] }
  0x42   : > { %5978 = vst [vmem:[#allocation15_spill] sm:$0xff] %v4697_v36  ;;  %3985 = vmatprep.mubr.msk.bf16.mxu0 %vm833_vm3, %v4697_v36  ;;  %v527_v56 = vrot.slane %v526_v63, 4  ;;  %v536_v51 = vor.u32 %v535_v12, %v531_v33  ;;  %v721_v1 = vshll.u32 %v4694_v25, 16  ;;  %v725_v62 = vshrl.u32 %v4694_v25, 16  ;;  %v4724_v36 = vld [vmem:[%s4436_s7 + $0x50] sm:$0x1] }
  0x43   : > { %v710_v35 = vsel %vm4481_vm4, %v705_v47, %v709_v40  ;;  %v717_v45 = vrot.slane %v715_v19, 5  ;;  %v731_v5 = vshll.u32 %v4702_v21, 16  ;;  %v544_v60 = vshrl.u32 %v4705_v20, 16  ;;  %v4727_v47 = vld [vmem:[%s4436_s7 + $0xa8] sm:$0xf] }
  0x44   : > { %v4719_v2 = vcombine.low %v700_v15, %v710_v35  ;;  %v532_v63 = vsel %vm4481_vm4, %v527_v56, %v531_v33  ;;  %v537_v12 = vrot.slane %v536_v51, 4  ;;  %v723_v11 = vrot.slane %v721_v1, 5  ;;  %5981 = vst [vmem:[#allocation18_spill] sm:$0xff] %v4727_v47 }
  0x45   : > { %v718_v53 = vor.u32 %v717_v45, %v714_v39  ;;  %v727_v50 = vrot.slane %v725_v62, 4  ;;  %v733_v40 = vrot.slane %v731_v5, 5  ;;  %v546_v19 = vrot.slane %v544_v60, 4  ;;  %v4740_v45 = vld [vmem:[%s4436_s7 + $0xac] sm:$0xf] }
  0x46   : > { %5980 = vst [vmem:[#allocation17_spill] sm:$0xff] %v4719_v2  ;;  %4001 = vmatprep.mubr.msk.bf16.mxu1 %vm833_vm3, %v4719_v2  ;;  %v542_v15 = vsel %vm4481_vm4, %v537_v12, %v541_v28  ;;  %v547_v33 = vshll.u32 %v4705_v20, 16  ;;  %v553_v56 = vshll.u32 %v4716_v55, 16  ;;  %v557_v51 = vshrl.u32 %v4716_v55, 16  ;;  %5983 = vst [vmem:[#allocation20_spill] sm:$0xff] %v4740_v45 }
  0x47   : > { %v4736_v1 = vcombine.low %v532_v63, %v542_v15  ;;  %v719_v39 = vrot.slane %v718_v53, 4  ;;  %v728_v62 = vor.u32 %v727_v50, %v723_v11  ;;  %v563_v35 = vshll.u32 %v4724_v36, 16 }
  0x48   : > { %v549_v5 = vrot.slane %v547_v33, 5  ;;  %v555_v60 = vrot.slane %v553_v56, 5  ;;  %v559_v2 = vrot.slane %v557_v51, 4  ;;  %v736_v28 = vshrl.u32 %v4727_v47, 16  ;;  %v4753_v51 = vld [vmem:[%s4436_s7 + $0x54] sm:$0xf] }
  0x49   : > { %5982 = vst [vmem:[#allocation19_spill] sm:$0xff] %v4736_v1  ;;  %3986 = vmatmul.mubr.msk.bf16.gmra.mxu0 %vm833_vm3, %v4736_v1  ;;  %v724_v53 = vsel %vm4481_vm4, %v719_v39, %v723_v11  ;;  %v729_v50 = vrot.slane %v728_v62, 4  ;;  %v565_v63 = vrot.slane %v563_v35, 5  ;;  %v739_v12 = vshll.u32 %v4727_v47, 16  ;;  %v4760_v62 = vld [vmem:[%s4436_s7 + $0x58] sm:$0xf] }
  0x4a   : > { %v550_v15 = vor.u32 %v549_v5, %v546_v19  ;;  %v560_v58 = vor.u32 %v559_v2, %v555_v60  ;;  %v738_v33 = vrot.slane %v736_v28, 4  ;;  %v745_v56 = vshll.u32 %v4740_v45, 16 }
  0x4b   : > { %v734_v1 = vsel %vm4481_vm4, %v729_v50, %v733_v40  ;;  %v741_v37 = vrot.slane %v739_v12, 5  ;;  %v749_v11 = vshrl.u32 %v4740_v45, 16  ;;  %v755_v39 = vshll.u32 %v4743_v38, 16 }
  0x4c   : > { %v4762_v2 = vcombine.low %v724_v53, %v734_v1  ;;  %v551_v19 = vrot.slane %v550_v15, 4  ;;  %v561_v35 = vrot.slane %v560_v58, 4  ;;  %v747_v5 = vrot.slane %v745_v56, 5 }
  0x4d   : > { %v742_v28 = vor.u32 %v741_v37, %v738_v33  ;;  %v751_v0 = vrot.slane %v749_v11, 4  ;;  %v757_v54 = vrot.slane %v755_v39, 5  ;;  %v568_v40 = vshrl.u32 %v4753_v51, 16  ;;  %v4777_v37 = vld [vmem:[%s4436_s7 + $0xb4] sm:$0xf] }
  0x4e   : > { %5985 = vst [vmem:[#allocation22_spill] sm:$0xff] %v4762_v2  ;;  %4002 = vmatmul.mubr.msk.bf16.gmra.mxu1 %vm833_vm3, %v4762_v2  ;;  %v556_v50 = vsel %vm4481_vm4, %v551_v19, %v555_v60  ;;  %v566_v1 = vsel %vm4481_vm4, %v561_v35, %v565_v63  ;;  %v571_v58 = vshll.u32 %v4753_v51, 16  ;;  %v577_v53 = vshll.u32 %v4760_v62, 16  ;;  %5986 = vst [vmem:[#allocation23_spill] sm:$0xff] %v4777_v37  ;;  %v4782_v11 = vld [vmem:[%s4436_s7 + $0xb8] sm:$0xf] }
  0x4f   : > { %v4779_v12 = vcombine.low %v556_v50, %v566_v1  ;;  %v743_v15 = vrot.slane %v742_v28, 4  ;;  %v752_v33 = vor.u32 %v751_v0, %v747_v5  ;;  %v570_v56 = vrot.slane %v568_v40, 4 }
  0x50   : > { %v573_v39 = vrot.slane %v571_v58, 5  ;;  %v579_v2 = vrot.slane %v577_v53, 5  ;;  %v581_v60 = vshrl.u32 %v4760_v62, 16  ;;  %v587_v63 = vshll.u32 %v4765_v48, 16  ;;  %v4793_v58 = vld [vmem:[%s4436_s7 + $0xbc] sm:$0x1] }
  0x51   : > { %5987 = vst [vmem:[#allocation24_spill] sm:$0xff] %v4779_v12  ;;  %3989 = vmatprep.mubr.msk.bf16.mxu0 %vm833_vm3, %v4779_v12  ;;  %v748_v19 = vsel %vm4481_vm4, %v743_v15, %v747_v5  ;;  %v753_v35 = vrot.slane %v752_v33, 4  ;;  %v760_v28 = vshrl.u32 %v4777_v37, 16  ;;  %v763_v0 = vshll.u32 %v4777_v37, 16  ;;  %s3432_s7 = sshll.u32 %s6073_s28, 2 }
  0x52   : > { %v574_v40 = vor.u32 %v573_v39, %v570_v56  ;;  %v583_v50 = vrot.slane %v581_v60, 4  ;;  %v589_v1 = vrot.slane %v587_v63, 5  ;;  %v769_v53 = vshll.u32 %v4782_v11, 16  ;;  %s5785_s10 = scalar_lea.vmem %s5919_s5, %s3432_s7 }
  0x53   : > { %v758_v38 = vsel %vm4481_vm4, %v753_v35, %v757_v54  ;;  %v762_v47 = vrot.slane %v760_v28, 4  ;;  %v765_v12 = vrot.slane %v763_v0, 5  ;;  %v773_v45 = vshrl.u32 %v4782_v11, 16 }
  0x54   : > { %v4799_v5 = vcombine.low %v748_v19, %v758_v38  ;;  %v575_v15 = vrot.slane %v574_v40, 4  ;;  %v584_v33 = vor.u32 %v583_v50, %v579_v2  ;;  %v771_v21 = vrot.slane %v769_v53, 5 }
  0x55   : > { %v766_v37 = vor.u32 %v765_v12, %v762_v47  ;;  %v775_v56 = vrot.slane %v773_v45, 4  ;;  %v779_v39 = vshll.u32 %v4793_v58, 16  ;;  %v3498_v54 = vrot.slane %v4445_v6, 9 }
  0x56   : > { %4005 = vmatprep.mubr.msk.bf16.mxu1 %vm833_vm3, %v4799_v5  ;;  %v580_v38 = vsel %vm4481_vm4, %v575_v15, %v579_v2  ;;  %v585_v63 = vrot.slane %v584_v33, 4  ;;  %v1360_v47 = vrot.slane %v4448_v7, 5  ;;  %v4816_v45 = vcombine.low %v4474_v30, %v4477_v31 }
  0x57   : > { %v767_v12 = vrot.slane %v766_v37, 4  ;;  %v776_v19 = vor.u32 %v775_v56, %v771_v21  ;;  %v781_v35 = vrot.slane %v779_v39, 5  ;;  %v3499_v28 = vrot.slane %v4474_v30, 9 }
  0x58   : > { %v590_v0 = vsel %vm4481_vm4, %v585_v63, %v589_v1  ;;  %v1361_v40 = vsel %vm4804_vm7, %v3498_v54, %v1360_v47  ;;  %v1362_v50 = vrot.slane %v1360_v47, 4  ;;  %v5990_v2 = vrot.slane %v4477_v31, 5 }
  0x59   : > { %v4825_v15 = vcombine.low %v580_v38, %v590_v0  ;;  %v772_v33 = vsel %vm4481_vm4, %v767_v12, %v771_v21  ;;  %v777_v37 = vrot.slane %v776_v19, 4  ;;  %v5992_v1 = vrot.slane %v4451_v8, 5 }
  0x5a   : > { %v1369_v53 = vrot.slane %v5990_v2, 4  ;;  %v5991_v56 = vmov %v5990_v2  ;;  %v5993_v54 = vrot.slane %v4488_v42, 5  ;;  %v4843_v63 = vcombine.low %v4517_v10, %v4526_v23 }
  0x5b   : > { %v1368_v30 = vsel %vm4804_vm7, %v3499_v28, %v5991_v56  ;;  %v1364_v39 = vsel %vm4804_vm7, %v1362_v50, %v5992_v1  ;;  %v3500_v21 = vrot.slane %v4517_v10, 9  ;;  %3990 = vmatmul.mubr.msk.bf16.gmra.mxu0 %vm833_vm3, %v4825_v15  ;;  %v782_v8 = vsel %vm4481_vm4, %v777_v37, %v781_v35 }
  0x5c   : > { %v1371_v38 = vsel %vm4804_vm7, %v1369_v53, %v5993_v54  ;;  %v3515_v31 = vcombine.low %v1361_v40, %v1364_v39  ;;  %v1374_v42 = vrot.slane %v4526_v23, 5  ;;  %v4853_v12 = vcombine.low %v772_v33, %v782_v8 }
  0x5d   : > { %v4850_v47 = vcombine.low %v1368_v30, %v1371_v38  ;;  %v1377_v19 = vrot.slane %v4533_v27, 5  ;;  %v1381_v0 = vrot.slane %v4575_v18, 5  ;;  %v3501_v35 = vrot.slane %v4567_v3, 9 }
  0x5e   : > { %5994 = vst [vmem:[#allocation25_spill] sm:$0xff] %v4853_v12  ;;  %4045 = vmatprep.mubr.msk.bf16.mxu0 %vm833_vm3, %v3515_v31  ;;  %v1375_v10 = vsel %vm4804_vm7, %v3500_v21, %v1374_v42  ;;  %v1376_v28 = vrot.slane %v1374_v42, 4  ;;  %4006 = vmatmul.mubr.msk.bf16.gmra.mxu1 %vm833_vm3, %v4853_v12  ;;  %v3502_v40 = vrot.slane %v4622_v9, 9  ;;  %v1388_v23 = vrot.slane %v4627_v22, 5 }
  0x5f   : > { %v5995_v27 = vcombine.low %v4445_v6, %v4448_v7  ;;  %v1383_v2 = vrot.slane %v1381_v0, 4  ;;  %v1384_v53 = vrot.slane %v4588_v29, 5  ;;  %v1391_v33 = vrot.slane %v4638_v46, 5  ;;  %v4888_v46 = vld [vmem:[%s5916_s2 + $0xc] sm:$0x3] }
  0x60   : > { %v1378_v50 = vsel %vm4804_vm7, %v1376_v28, %v1377_v19  ;;  %v1390_v56 = vrot.slane %v1388_v23, 4  ;;  %v2003_v30 = vsel %vm882_vm0, %v4548_v43, 0  ;;  %v1395_v1 = vrot.slane %v4670_v4, 5  ;;  %v4905_v19 = vld [vmem:[%s5916_s2 + $0xa] sm:$0x3] }
  0x61   : > { %4011 = vmatprep.mubr.msk.bf16.mxu1 %vm833_vm3, %v5995_v27  ;;  %v4873_v37 = vcombine.low %v1375_v10, %v1378_v50  ;;  %v1775_v6 = vsel %vm882_vm0, %v4583_v24, 0  ;;  %v1382_v7 = vsel %vm4804_vm7, %v3501_v35, %v1381_v0  ;;  %v1389_v39 = vsel %vm4804_vm7, %v3502_v40, %v1388_v23 }
  0x62   : > { %v1402_v29 = vrot.slane %v4716_v55, 5  ;;  %v1385_v43 = vsel %vm4804_vm7, %v1383_v2, %v1384_v53  ;;  %v1392_v24 = vsel %vm4804_vm7, %v1390_v56, %v1391_v33  ;;  %v3503_v54 = vrot.slane %v4665_v44, 9 }
  0x63   : > { %4046 = vmatmul.mubr.msk.bf16.vlgmr.msra.gmra.mxu0 %vm833_vm3, %v4850_v47  ;;  %v1398_v38 = vrot.slane %v4682_v14, 5  ;;  %v1397_v21 = vrot.slane %v1395_v1, 4  ;;  %v3504_v8 = vrot.slane %v4705_v20, 9  ;;  %v1405_v42 = vrot.slane %v4724_v36, 5 }
  0x64   : > { %4112 = vmatpush3.bf16.msra.mxu0 %v2003_v30  ;;  %4049 = vmatprep.mubr.msk.bf16.mxu0 %vm833_vm3, %v4873_v37  ;;  %v1404_v31 = vrot.slane %v1402_v29, 4  ;;  %v4913_v14 = vcombine.low %v1382_v7, %v1385_v43  ;;  %v4915_v10 = vcombine.low %v1389_v39, %v1392_v24  ;;  %v1396_v36 = vsel %vm4804_vm7, %v3503_v54, %v1395_v1 }
  0x65   : > { %4290 = vmatprep.subr.msk.bf16.mxu0 %vm882_vm0, %v4888_v46  ;;  %v1399_v28 = vsel %vm4804_vm7, %v1397_v21, %v1398_v38  ;;  %v1403_v0 = vsel %vm4804_vm7, %v3504_v8, %v1402_v29  ;;  %v1409_v40 = vrot.slane %v4760_v62, 5  ;;  %v1419_v23 = vrot.slane %v4466_v17, 5  ;;  %v5996_v8 = vld [vmem:[#allocation16_spill] sm:$0xff] }
  0x66   : > { %4012 = vmatmul.mubr.msk.bf16.vlgmr.msra.gmra.mxu1 %vm833_vm3, %v4816_v45  ;;  %v1406_v35 = vsel %vm4804_vm7, %v1404_v31, %v1405_v42  ;;  %v3505_v27 = vrot.slane %v4753_v51, 9  ;;  %v3506_v50 = vrot.slane %v4458_v13, 9  ;;  %v1416_v2 = vrot.slane %v4463_v16, 5  ;;  %v5997_v42 = vld [vmem:[#allocation20_spill] sm:$0xff] }
  0x67   : > { %4078 = vmatpush3.bf16.msra.mxu1 %v1775_v6  ;;  %4015 = vmatprep.mubr.msk.bf16.mxu1 %vm833_vm3, %v4843_v63  ;;  %v4934_v53 = vcombine.low %v4567_v3, %v4575_v18  ;;  %v4938_v33 = vcombine.low %v4622_v9, %v4627_v22  ;;  %v4942_v56 = vcombine.low %v4665_v44, %v4670_v4  ;;  %v1412_v3 = vrot.slane %v4765_v48, 5 }
  0x68   : > { %4289 = vmatprep.subr.msk.bf16.mxu1 %vm882_vm0, %v4905_v19  ;;  %v4946_v17 = vcombine.low %v4705_v20, %v4716_v55  ;;  %v4950_v30 = vcombine.low %v1396_v36, %v1399_v28  ;;  %v4952_v1 = vcombine.low %v1403_v0, %v1406_v35  ;;  %v4957_v18 = vcombine.low %v4596_v41, %v4603_v49  ;;  %v5998_v36 = vld [vmem:[#allocation18_spill] sm:$0xff] }
  0x69   : > { %v1411_v9 = vrot.slane %v1409_v40, 4  ;;  %v3509_v22 = vrot.slane %v4596_v41, 9  ;;  %v1437_v44 = vrot.slane %v4603_v49, 5  ;;  %v1440_v4 = vrot.slane %v4613_v57, 5 }
  0x6a   : > { %v1410_v20 = vsel %vm4804_vm7, %v3505_v27, %v1409_v40  ;;  %v1417_v48 = vsel %vm4804_vm7, %v3506_v50, %v1416_v2  ;;  %v1418_v55 = vrot.slane %v1416_v2, 4  ;;  %v4970_v6 = vcombine.low %v4643_v52, %v4648_v61  ;;  %v5999_v40 = vld [vmem:[#allocation21_spill] sm:$0xff] }
  0x6b   : > { %4050 = vmatmul.mubr.msk.bf16.gmra.mxu0 %vm833_vm3, %v4913_v14  ;;  %v1438_v41 = vsel %vm4804_vm7, %v3509_v22, %v1437_v44  ;;  %v1439_v49 = vrot.slane %v1437_v44, 4  ;;  %v3510_v57 = vrot.slane %v4643_v52, 9  ;;  %v1444_v7 = vrot.slane %v4648_v61, 5 }
  0x6c   : > { %4053 = vmatprep.mubr.msk.bf16.mxu0 %vm833_vm3, %v4915_v10  ;;  %v1423_v39 = vrot.slane %v4503_v59, 5  ;;  %v1447_v29 = vrot.slane %v4660_v34, 5  ;;  %v4984_v43 = vcombine.low %v4687_v26, %v4694_v25  ;;  %v3511_v24 = vrot.slane %v4687_v26, 9 }
  0x6d   : > { %v1413_v54 = vsel %vm4804_vm7, %v1411_v9, %v1412_v3  ;;  %v1441_v52 = vsel %vm4804_vm7, %v1439_v49, %v1440_v4  ;;  %v1445_v61 = vsel %vm4804_vm7, %v3510_v57, %v1444_v7  ;;  %v1446_v38 = vrot.slane %v1444_v7, 4  ;;  %v6000_v3 = vld [vmem:[#allocation23_spill] sm:$0xff]  ;;  %v6001_v57 = vld [vmem:[#allocation8_spill] sm:$0xff] }
  0x6e   : > { %4016 = vmatmul.mubr.msk.bf16.gmra.mxu1 %vm833_vm3, %v4934_v53  ;;  %v4993_v21 = vcombine.low %v1438_v41, %v1441_v52  ;;  %v1451_v34 = vrot.slane %v4694_v25, 5  ;;  %v1454_v31 = vrot.slane %v5996_v8, 5  ;;  %v4999_v28 = vcombine.low %v5998_v36, %v5997_v42 }
  0x6f   : > { %4019 = vmatprep.mubr.msk.bf16.mxu1 %vm833_vm3, %v4938_v33  ;;  %v1448_v26 = vsel %vm4804_vm7, %v1446_v38, %v1447_v29  ;;  %v3512_v0 = vrot.slane %v5998_v36, 9  ;;  %v1458_v35 = vrot.slane %v5997_v42, 5  ;;  %v1461_v27 = vrot.slane %v5999_v40, 5  ;;  %v6003_v42 = vld [vmem:[#allocation4_spill] sm:$0xff] }
  0x70   : > { %v5008_v50 = vcombine.low %v1445_v61, %v1448_v26  ;;  %v1452_v25 = vsel %vm4804_vm7, %v3511_v24, %v1451_v34  ;;  %v1453_v2 = vrot.slane %v1451_v34, 4  ;;  %v5014_v9 = vcombine.low %v6000_v3, %v4782_v11 }
  0x71   : > { %v1459_v22 = vsel %vm4804_vm7, %v3512_v0, %v1458_v35  ;;  %v1460_v44 = vrot.slane %v1458_v35, 4  ;;  %v3513_v4 = vrot.slane %v6000_v3, 9  ;;  %v1465_v41 = vrot.slane %v4782_v11, 5  ;;  %v6004_v0 = vld [vmem:[#allocation6_spill] sm:$0xff] }
  0x72   : > { %v1420_v49 = vsel %vm4804_vm7, %v1418_v55, %v1419_v23  ;;  %v1430_v7 = vrot.slane %v6001_v57, 5  ;;  %v1455_v29 = vsel %vm4804_vm7, %v1453_v2, %v1454_v31  ;;  %v1468_v24 = vrot.slane %v4793_v58, 5  ;;  %v6002_v55 = vld [vmem:[#allocation3_spill] sm:$0xff] }
  0x73   : > { %4054 = vmatmul.mubr.msk.bf16.gmra.mxu0 %vm833_vm3, %v4950_v30  ;;  %v5030_v52 = vcombine.low %v1452_v25, %v1455_v29  ;;  %v1462_v61 = vsel %vm4804_vm7, %v1460_v44, %v1461_v27  ;;  %v1466_v11 = vsel %vm4804_vm7, %v3513_v4, %v1465_v41  ;;  %v1467_v38 = vrot.slane %v1465_v41, 4  ;;  %v6005_v27 = vld [vmem:[#allocation9_spill] sm:$0xff]  ;;  %v5124_v4 = vld [vmem:[%s5111_s23] sm:$0xf]  ;;  %v391_v41 = vld [vmem:[%s5111_s23 + $0x8] sm:$0x1] }
  0x74   : > { %4057 = vmatprep.mubr.msk.bf16.mxu0 %vm833_vm3, %v4952_v1  ;;  %v5038_v23 = vcombine.low %v1410_v20, %v1413_v54  ;;  %v3507_v34 = vrot.slane %v6002_v55, 9  ;;  %v5041_v58 = vcombine.low %v1459_v22, %v1462_v61  ;;  %v5043_v8 = vcombine.low %v1417_v48, %v1420_v49  ;;  %v6006_v61 = vld [vmem:[#allocation7_spill] sm:$0xff] }
  0x75   : > { %v1425_v31 = vrot.slane %v1423_v39, 4  ;;  %v1426_v36 = vrot.slane %v6003_v42, 5  ;;  %v1469_v26 = vsel %vm4804_vm7, %v1467_v38, %v1468_v24  ;;  %v3508_v35 = vrot.slane %v6004_v0, 9  ;;  %v6008_v42 = vld [vmem:[#allocation13_spill] sm:$0xff] }
  0x76   : > { %4020 = vmatmul.mubr.msk.bf16.gmra.mxu1 %vm833_vm3, %v4942_v56  ;;  %v1432_v40 = vrot.slane %v1430_v7, 4  ;;  %v1433_v25 = vrot.slane %v6005_v27, 5  ;;  %v5050_v2 = vcombine.low %v1466_v11, %v1469_v26  ;;  %v5054_v20 = vcombine.low %v4753_v51, %v4760_v62  ;;  %v6012_v26 = vld [vmem:[#allocation5_spill] sm:$0xff] }
  0x77   : > { %4023 = vmatprep.mubr.msk.bf16.mxu1 %vm833_vm3, %v4946_v17  ;;  %v5060_v48 = vcombine.low %v4458_v13, %v4463_v16  ;;  %v1424_v54 = vsel %vm4804_vm7, %v3507_v34, %v1423_v39  ;;  %v1427_v3 = vsel %vm4804_vm7, %v1425_v31, %v1426_v36  ;;  %v1431_v51 = vsel %vm4804_vm7, %v3508_v35, %v1430_v7  ;;  %v6007_v34 = vld [vmem:[#allocation11_spill] sm:$0xff]  ;;  %v6011_v36 = vld [vmem:[#allocation24_spill] sm:$0xff] }
  0x78   : > { %v1434_v62 = vsel %vm4804_vm7, %v1432_v40, %v1433_v25  ;;  %v5076_v13 = vcombine.low %v1424_v54, %v1427_v3  ;;  %v5082_v39 = vcombine.low %v6002_v55, %v4503_v59  ;;  %v5088_v22 = vcombine.low %v6004_v0, %v6001_v57  ;;  %v5118_v59 = vld [vmem:[%s5111_s23 + $0x4] sm:$0xf]  ;;  %v3639_v55 = vld [vmem:[%s5916_s2 + $0x10] sm:$0x3] }
  0x79   : > { %v5078_v16 = vcombine.low %v1431_v51, %v1434_v62  ;;  %v2201_v44 = vrot.slane %v5118_v59, 5  ;;  %v3583_v49 = vrot.slane %v5124_v4, 9  ;;  %v2204_v7 = vrot.slane %v391_v41, 5  ;;  %v6013_v0 = vld [vmem:[#allocation10_spill] sm:$0xff]  ;;  %v6014_v35 = vld [vmem:[#allocation12_spill] sm:$0xff] }
  0x7a   : > { %v2421_v38 = vsel %vm882_vm0, %v4888_v46, 0  ;;  %v2215_v31 = vsel %vm882_vm0, %v4905_v19, 0  ;;  %v6009_v46 = vld [vmem:[#allocation15_spill] sm:$0xff]  ;;  %v6015_v40 = vld [vmem:[#allocation14_spill] sm:$0xff]  ;;  %v1971_v27 = vshrl.u32 %v5124_v4, 16  ;;  %v1974_v25 = vshll.u32 %v5124_v4, 16 }
  0x7b   : > { %4058 = vmatmul.mubr.msk.bf16.gmra.mxu0 %vm833_vm3, %v5038_v23  ;;  %v2203_v57 = vrot.slane %v2201_v44, 4  ;;  %v2202_v29 = vsel %vm4804_vm7, %v3583_v49, %v2201_v44  ;;  %v6010_v19 = vld [vmem:[#allocation19_spill] sm:$0xff]  ;;  %v1984_v54 = vshrl.u32 %v5118_v59, 16  ;;  %v1980_v3 = vshll.u32 %v5118_v59, 16 }
  0x7c   : > { %4061 = vmatprep.mubr.msk.bf16.mxu0 %vm833_vm3, %v5043_v8  ;;  %v1973_v51 = vrot.slane %v1971_v27, 4  ;;  %v1976_v62 = vrot.slane %v1974_v25, 5 }
  0x7d   : > { %v2205_v24 = vsel %vm4804_vm7, %v2203_v57, %v2204_v7  ;;  %v1982_v44 = vrot.slane %v1980_v3, 5  ;;  %v1986_v49 = vrot.slane %v1984_v54, 4  ;;  %v6016_v57 = vld [vmem:[#allocation17_spill] sm:$0xff]  ;;  %v6017_v7 = vld [vmem:[#allocation22_spill] sm:$0xff]  ;;  %v3548_v3 = vcombine.low %v5124_v4, %v5118_v59 }
  0x7e   : > { %4024 = vmatmul.mubr.msk.bf16.gmra.mxu1 %vm833_vm3, %v5054_v20  ;;  %v5136_v11 = vcombine.low %v2202_v29, %v2205_v24  ;;  %v1977_v29 = vor.u32 %v1976_v62, %v1973_v51  ;;  %v2861_v51 = vsel %vm882_vm0, %v3639_v55, 0 }
  0x7f   : > { %4027 = vmatprep.mubr.msk.bf16.mxu1 %vm833_vm3, %v5060_v48  ;;  %v1987_v24 = vor.u32 %v1986_v49, %v1982_v44 }
  0x83   : > { %4062 = vmatmul.mubr.msk.bf16.gmra.mxu0 %vm833_vm3, %v5076_v13 }
  0x84   : > { %4065 = vmatprep.mubr.msk.bf16.mxu0 %vm833_vm3, %v5078_v16 }
  0x86   : > { %4028 = vmatmul.mubr.msk.bf16.gmra.mxu1 %vm833_vm3, %v5082_v39 }
  0x87   : > { %4031 = vmatprep.mubr.msk.bf16.mxu1 %vm833_vm3, %v5088_v22 }
  0x8b   : > { %4066 = vmatmul.mubr.msk.bf16.gmra.mxu0 %vm833_vm3, %v4993_v21 }
  0x8c   : > { %4069 = vmatprep.mubr.msk.bf16.mxu0 %vm833_vm3, %v5008_v50 }
  0x8e   : > { %4032 = vmatmul.mubr.msk.bf16.gmra.mxu1 %vm833_vm3, %v4957_v18 }
  0x8f   : > { %4035 = vmatprep.mubr.msk.bf16.mxu1 %vm833_vm3, %v4970_v6 }
  0x93   : > { %4070 = vmatmul.mubr.msk.bf16.gmra.mxu0 %vm833_vm3, %v5030_v52 }
  0x94   : > { %4073 = vmatprep.mubr.msk.bf16.mxu0 %vm833_vm3, %v5041_v58 }
  0x96   : > { %4036 = vmatmul.mubr.msk.bf16.gmra.mxu1 %vm833_vm3, %v4984_v43 }
  0x97   : > { %4039 = vmatprep.mubr.msk.bf16.mxu1 %vm833_vm3, %v4999_v28 }
  0x9b   : > { %4074 = vmatmul.mubr.msk.bf16.gmra.mxu0 %vm833_vm3, %v5050_v2 }
  0x9c   : > { %4113 = vmatprep.mubr.msk.bf16.mxu0 %vm833_vm3, %v6006_v61  ;;  %v1990_v61 = vshll.u32 %v391_v41, 16 }
  0x9e   : > { %4040 = vmatmul.mubr.msk.bf16.gmra.mxu1 %vm833_vm3, %v5014_v9  ;;  %v1992_v27 = vrot.slane %v1990_v61, 5  ;;  %v5328_v61 = vld [vmem:[%s5111_s23 + $0x10] sm:$0xf] }
  0x9f   : > { %4079 = vmatprep.mubr.msk.bf16.mxu1 %vm833_vm3, %v4816_v45  ;;  %v3620_v45 = vld [vmem:[%s5916_s2 + $0xe] sm:$0x3] }
  0xa0   : > { %v2649_v62 = vsel %vm882_vm0, %v3620_v45, 0 }
  0xa3   : > { %4114 = vmatmul.mubr.msk.bf16.vlgmr.msra.gmra.mxu0 %vm833_vm3, %v6007_v34 }
  0xa4   : > { %4180 = vmatpush3.bf16.msra.mxu0 %v2421_v38  ;;  %4117 = vmatprep.mubr.msk.bf16.mxu0 %vm833_vm3, %v6008_v42  ;;  %v1978_v38 = vrot.slane %v1977_v29, 4 }
  0xa5   : > { %4292 = vmatprep.subr.msk.bf16.mxu0 %vm882_vm0, %v3639_v55 }
  0xa6   : > { %4080 = vmatmul.mubr.msk.bf16.vlgmr.msra.gmra.mxu1 %vm833_vm3, %v4843_v63  ;;  %v1983_v25 = vsel %vm4481_vm4, %v1978_v38, %v1982_v44 }
  0xa7   : > { %4146 = vmatpush3.bf16.msra.mxu1 %v2215_v31  ;;  %4083 = vmatprep.mubr.msk.bf16.mxu1 %vm833_vm3, %v4934_v53  ;;  %v1988_v31 = vrot.slane %v1987_v24, 4 }
  0xa8   : > { %4291 = vmatprep.subr.msk.bf16.mxu1 %vm882_vm0, %v3620_v45 }
  0xa9   : > { %v1993_v41 = vsel %vm4481_vm4, %v1988_v31, %v1992_v27 }
  0xaa   : > { %v5218_v54 = vcombine.low %v1983_v25, %v1993_v41 }
  0xab   : > { %4118 = vmatmul.mubr.msk.bf16.gmra.mxu0 %vm833_vm3, %v6009_v46 }
  0xac   : > { %4121 = vmatprep.mubr.msk.bf16.mxu0 %vm833_vm3, %v6010_v19  ;;  %6018 = vst [vmem:[#allocation16_spill] sm:$0xff] %v5218_v54 }
  0xae   : > { %4084 = vmatmul.mubr.msk.bf16.gmra.mxu1 %vm833_vm3, %v4938_v33 }
  0xaf   : > { %4087 = vmatprep.mubr.msk.bf16.mxu1 %vm833_vm3, %v4942_v56 }
  0xb3   : > { %4122 = vmatmul.mubr.msk.bf16.gmra.mxu0 %vm833_vm3, %v6011_v36 }
  0xb4   : > { %4125 = vmatprep.mubr.msk.bf16.mxu0 %vm833_vm3, %v4825_v15 }
  0xb6   : > { %4088 = vmatmul.mubr.msk.bf16.gmra.mxu1 %vm833_vm3, %v4946_v17 }
  0xb7   : > { %4091 = vmatprep.mubr.msk.bf16.mxu1 %vm833_vm3, %v5054_v20 }
  0xbb   : > { %4126 = vmatmul.mubr.msk.bf16.gmra.mxu0 %vm833_vm3, %v6012_v26 }
  0xbc   : > { %4129 = vmatprep.mubr.msk.bf16.mxu0 %vm833_vm3, %v6013_v0 }
  0xbe   : > { %4092 = vmatmul.mubr.msk.bf16.gmra.mxu1 %vm833_vm3, %v5060_v48 }
  0xbf   : > { %4095 = vmatprep.mubr.msk.bf16.mxu1 %vm833_vm3, %v5082_v39 }
  0xc3   : > { %4130 = vmatmul.mubr.msk.bf16.gmra.mxu0 %vm833_vm3, %v6014_v35 }
  0xc4   : > { %4133 = vmatprep.mubr.msk.bf16.mxu0 %vm833_vm3, %v6015_v40 }
  0xc6   : > { %4096 = vmatmul.mubr.msk.bf16.gmra.mxu1 %vm833_vm3, %v5088_v22 }
  0xc7   : > { %4099 = vmatprep.mubr.msk.bf16.mxu1 %vm833_vm3, %v4957_v18 }
  0xcb   : > { %4134 = vmatmul.mubr.msk.bf16.gmra.mxu0 %vm833_vm3, %v6016_v57 }
  0xcc   : > { %4137 = vmatprep.mubr.msk.bf16.mxu0 %vm833_vm3, %v6017_v7 }
  0xce   : > { %4100 = vmatmul.mubr.msk.bf16.gmra.mxu1 %vm833_vm3, %v4970_v6 }
  0xcf   : > { %4103 = vmatprep.mubr.msk.bf16.mxu1 %vm833_vm3, %v4984_v43 }
  0xd3   : > { %4138 = vmatmul.mubr.msk.bf16.gmra.mxu0 %vm833_vm3, %v4799_v5 }
  0xd4   : > { %4141 = vmatprep.mubr.msk.bf16.mxu0 %vm833_vm3, %v4853_v12 }
  0xd6   : > { %4104 = vmatmul.mubr.msk.bf16.gmra.mxu1 %vm833_vm3, %v4999_v28 }
  0xd7   : > { %4107 = vmatprep.mubr.msk.bf16.mxu1 %vm833_vm3, %v5014_v9 }
  0xdb   : > { %4142 = vmatmul.mubr.msk.bf16.gmra.mxu0 %vm833_vm3, %v5218_v54 }
  0xdc   : > { %4181 = vmatprep.mubr.msk.bf16.mxu0 %vm833_vm3, %v4843_v63 }
  0xde   : > { %4108 = vmatmul.mubr.msk.bf16.gmra.mxu1 %vm833_vm3, %v3548_v3 }
  0xdf   : > { %4147 = vmatprep.mubr.msk.bf16.mxu1 %vm833_vm3, %v4850_v47 }
  0xe3   : > { %4182 = vmatmul.mubr.msk.bf16.vlgmr.msra.gmra.mxu0 %vm833_vm3, %v4934_v53 }
  0xe4   : > { %4248 = vmatpush3.bf16.msra.mxu0 %v2861_v51  ;;  %4185 = vmatprep.mubr.msk.bf16.mxu0 %vm833_vm3, %v4938_v33 }
  0xe6   : > { %4148 = vmatmul.mubr.msk.bf16.vlgmr.msra.gmra.mxu1 %vm833_vm3, %v4873_v37 }
  0xe7   : > { %4214 = vmatpush3.bf16.msra.mxu1 %v2649_v62  ;;  %4151 = vmatprep.mubr.msk.bf16.mxu1 %vm833_vm3, %v4913_v14  ;;  %v5241_v63 = vpop.f32.mrf.mxu0 }
  0xe9   : > { %v5251_v53 = vpop.f32.mrf.mxu0 }
  0xeb   : > { %4186 = vmatmul.mubr.msk.bf16.gmra.mxu0 %vm833_vm3, %v4942_v56  ;;  %v5257_v56 = vpop.f32.mrf.mxu0 }
  0xec   : > { %4189 = vmatprep.mubr.msk.bf16.mxu0 %vm833_vm3, %v4946_v17  ;;  %v5247_v47 = vpop.f32.mrf.mxu1 }
  0xed   : > { %v5267_v59 = vpop.f32.mrf.mxu0 }
  0xee   : > { %4152 = vmatmul.mubr.msk.bf16.gmra.mxu1 %vm833_vm3, %v4915_v10  ;;  %v5253_v33 = vpop.f32.mrf.mxu1 }
  0xef   : > { %4155 = vmatprep.mubr.msk.bf16.mxu1 %vm833_vm3, %v4950_v30 }
  0xf0   : > { %v5263_v17 = vpop.f32.mrf.mxu1 }
  0xf2   : > { %v5269_v4 = vpop.f32.mrf.mxu1 }
  0xf3   : > { %4190 = vmatmul.mubr.msk.bf16.gmra.mxu0 %vm833_vm3, %v5054_v20 }
  0xf4   : > { %4193 = vmatprep.mubr.msk.bf16.mxu0 %vm833_vm3, %v5060_v48 }
  0xf6   : > { %4156 = vmatmul.mubr.msk.bf16.gmra.mxu1 %vm833_vm3, %v4952_v1 }
  0xf7   : > { %4159 = vmatprep.mubr.msk.bf16.mxu1 %vm833_vm3, %v5038_v23 }
  0xf8   : > { %v5273_v20 = vpop.f32.mrf.mxu0 }
  0xfa   : > { %v5283_v55 = vpop.f32.mrf.mxu0 }
  0xfb   : > { %4194 = vmatmul.mubr.msk.bf16.gmra.mxu0 %vm833_vm3, %v5082_v39 }
  0xfc   : > { %4197 = vmatprep.mubr.msk.bf16.mxu0 %vm833_vm3, %v5088_v22  ;;  %v5279_v48 = vpop.f32.mrf.mxu1  ;;  %v5289_v39 = vpop.f32.mrf.mxu0 }
  0xfe   : > { %4160 = vmatmul.mubr.msk.bf16.gmra.mxu1 %vm833_vm3, %v5043_v8  ;;  %v5285_v45 = vpop.f32.mrf.mxu1  ;;  %v5299_v44 = vpop.f32.mrf.mxu0 }
  0xff   : > { %4163 = vmatprep.mubr.msk.bf16.mxu1 %vm833_vm3, %v5076_v13 }
 0x100   : > { %v5295_v22 = vpop.f32.mrf.mxu1 }
 0x102   : > { %v5301_v49 = vpop.f32.mrf.mxu1 }
 0x103   : > { %4198 = vmatmul.mubr.msk.bf16.gmra.mxu0 %vm833_vm3, %v4957_v18 }
 0x104   : > { %4201 = vmatprep.mubr.msk.bf16.mxu0 %vm833_vm3, %v4970_v6 }
 0x106   : > { %4164 = vmatmul.mubr.msk.bf16.gmra.mxu1 %vm833_vm3, %v5078_v16 }
 0x107   : > { %4167 = vmatprep.mubr.msk.bf16.mxu1 %vm833_vm3, %v4993_v21 }
 0x109   : > { %v5305_v18 = vpop.f32.mrf.mxu0 }
 0x10b   : > { %4202 = vmatmul.mubr.msk.bf16.gmra.mxu0 %vm833_vm3, %v4984_v43  ;;  %v5315_v29 = vpop.f32.mrf.mxu0 }
 0x10c   : > { %4205 = vmatprep.mubr.msk.bf16.mxu0 %vm833_vm3, %v4999_v28  ;;  %v5325_v28 = vld [vmem:[%s5111_s23 + $0xc] sm:$0xf] }
 0x10d   : > { %v5321_v43 = vpop.f32.mrf.mxu0 }
 0x10e   : > { %4168 = vmatmul.mubr.msk.bf16.gmra.mxu1 %vm833_vm3, %v5008_v50  ;;  %v5311_v6 = vpop.f32.mrf.mxu1 }
 0x10f   : > { %6019 = vst [vmem:[#allocation20_spill] sm:$0xff] %v5311_v6  ;;  %4171 = vmatprep.mubr.msk.bf16.mxu1 %vm833_vm3, %v5030_v52  ;;  %v5334_v31 = vpop.f32.mrf.mxu0 }
 0x110   : > { %v5317_v24 = vpop.f32.mrf.mxu1 }
 0x111   : > { %6020 = vst [vmem:[#allocation18_spill] sm:$0xff] %v5317_v24 }
 0x112   : > { %v5332_v38 = vpop.f32.mrf.mxu1 }
 0x113   : > { %4206 = vmatmul.mubr.msk.bf16.gmra.mxu0 %vm833_vm3, %v5014_v9  ;;  %6021 = vst [vmem:[#allocation21_spill] sm:$0xff] %v5332_v38  ;;  %v3603_v9 = vcombine.low %v5325_v28, %v5328_v61 }
 0x114   : > { %4209 = vmatprep.mubr.msk.bf16.mxu0 %vm833_vm3, %v3548_v3  ;;  %v5340_v27 = vpop.f32.mrf.mxu1 }
 0x115   : > { %6022 = vst [vmem:[#allocation23_spill] sm:$0xff] %v5340_v27 }
 0x116   : > { %4172 = vmatmul.mubr.msk.bf16.gmra.mxu1 %vm833_vm3, %v5041_v58 }
 0x117   : > { %4175 = vmatprep.mubr.msk.bf16.mxu1 %vm833_vm3, %v5050_v2 }
 0x11b   : > { %v5342_v25 = vpop.f32.mrf.mxu0  ;;  %4210 = vmatmul.mubr.msk.bf16.gmra.mxu0 %vm833_vm3, %v3603_v9 }
 0x11c   : > { %4249 = vmatprep.mubr.msk.bf16.mxu0 %vm833_vm3, %v4873_v37 }
 0x11d   : > { %v5347_v41 = vpop.f32.mrf.mxu0 }
 0x11e   : > { %v5349_v3 = vpop.f32.mrf.mxu1  ;;  %4176 = vmatmul.mubr.msk.bf16.gmra.mxu1 %vm833_vm3, %v5136_v11 }
 0x11f   : > { %6023 = vst [vmem:[#allocation8_spill] sm:$0xff] %v5349_v3  ;;  %v5353_v51 = vpop.f32.mrf.mxu0  ;;  %4215 = vmatprep.mubr.msk.bf16.mxu1 %vm833_vm3, %v6007_v34 }
 0x120   : > { %v5357_v62 = vpop.f32.mrf.mxu1 }
 0x121   : > { %6024 = vst [vmem:[#allocation3_spill] sm:$0xff] %v5357_v62  ;;  %v5359_v27 = vpop.f32.mrf.mxu0 }
 0x122   : > { %v5361_v9 = vpop.f32.mrf.mxu1 }
 0x123   : > { %6025 = vst [vmem:[#allocation4_spill] sm:$0xff] %v5361_v9  ;;  %v4047_v38 = vpop.f32.mrf.mxu0  ;;  %4250 = vmatmul.mubr.msk.bf16.vlgmr.msra.gmra.mxu0 %vm833_vm3, %v4913_v14 }
 0x124   : > { %v5365_v37 = vpop.f32.mrf.mxu1  ;;  %4253 = vmatprep.mubr.msk.bf16.mxu0 %vm833_vm3, %v4915_v10 }
 0x125   : > { %6026 = vst [vmem:[#allocation6_spill] sm:$0xff] %v5365_v37  ;;  %v1605_v3 = vpop.f32.mrf.mxu0 }
 0x126   : > { %v4013_v24 = vpop.f32.mrf.mxu1  ;;  %4216 = vmatmul.mubr.msk.bf16.vlgmr.msra.gmra.mxu1 %vm833_vm3, %v6008_v42 }
 0x127   : > { %v1221_v34 = vadd.f32 %v4013_v24, %v5241_v63  ;;  %v4048_v62 = vpop.f32.mrf.mxu0  ;;  %4219 = vmatprep.mubr.msk.bf16.mxu1 %vm833_vm3, %v6009_v46 }
 0x128   : > { %v1212_v9 = vpop.f32.mrf.mxu1 }
 0x129   : > { %v5374_v54 = vadd.f32 %v4047_v38, %v1221_v34  ;;  %v1213_v14 = vadd.f32 %v1212_v9, %v5251_v53  ;;  %v1608_v37 = vpop.f32.mrf.mxu0 }
 0x12a   : > { %v4014_v6 = vpop.f32.mrf.mxu1 }
 0x12b   : > { %v5377_v32 = vadd.f32 %v1605_v3, %v1213_v14  ;;  %v1224_v10 = vadd.f32 %v4014_v6, %v5257_v56  ;;  %v4051_v12 = vpop.f32.mrf.mxu0  ;;  %4254 = vmatmul.mubr.msk.bf16.gmra.mxu0 %vm833_vm3, %v4950_v30 }
 0x12c   : > { %v1215_v42 = vpop.f32.mrf.mxu1  ;;  %4257 = vmatprep.mubr.msk.bf16.mxu0 %vm833_vm3, %v4952_v1 }
 0x12d   : > { %v5384_v46 = vadd.f32 %v4048_v62, %v1224_v10  ;;  %v1216_v63 = vadd.f32 %v1215_v42, %v5267_v59  ;;  %v1621_v24 = vpop.f32.mrf.mxu0 }
 0x12e   : > { %v4017_v53 = vpop.f32.mrf.mxu1  ;;  %4220 = vmatmul.mubr.msk.bf16.gmra.mxu1 %vm833_vm3, %v6010_v19 }
 0x12f   : > { %v5389_v38 = vadd.f32 %v1608_v37, %v1216_v63  ;;  %v1237_v56 = vadd.f32 %v4017_v53, %v5273_v20  ;;  %v4052_v6 = vpop.f32.mrf.mxu0  ;;  %4223 = vmatprep.mubr.msk.bf16.mxu1 %vm833_vm3, %v6011_v36 }
 0x130   : > { %v1228_v30 = vpop.f32.mrf.mxu1 }
 0x131   : > { %v5394_v3 = vadd.f32 %v4051_v12, %v1237_v56  ;;  %v1229_v1 = vadd.f32 %v1228_v30, %v5283_v55  ;;  %v1624_v62 = vpop.f32.mrf.mxu0 }
 0x132   : > { %v4018_v59 = vpop.f32.mrf.mxu1 }
 0x133   : > { %v5397_v9 = vadd.f32 %v1621_v24, %v1229_v1  ;;  %v1240_v34 = vadd.f32 %v4018_v59, %v5289_v39  ;;  %v4055_v19 = vpop.f32.mrf.mxu0  ;;  %4258 = vmatmul.mubr.msk.bf16.gmra.mxu0 %vm833_vm3, %v5038_v23 }
 0x134   : > { %v1231_v20 = vpop.f32.mrf.mxu1  ;;  %4261 = vmatprep.mubr.msk.bf16.mxu0 %vm833_vm3, %v5043_v8 }
 0x135   : > { %v5404_v36 = vadd.f32 %v4052_v6, %v1240_v34  ;;  %v1232_v12 = vadd.f32 %v1231_v20, %v5299_v44  ;;  %v1637_v37 = vpop.f32.mrf.mxu0 }
 0x136   : > { %v4021_v55 = vpop.f32.mrf.mxu1  ;;  %4224 = vmatmul.mubr.msk.bf16.gmra.mxu1 %vm833_vm3, %v4825_v15 }
 0x137   : > { %v5409_v14 = vadd.f32 %v1624_v62, %v1232_v12  ;;  %v1253_v39 = vadd.f32 %v4021_v55, %v5305_v18  ;;  %v4056_v10 = vpop.f32.mrf.mxu0  ;;  %4227 = vmatprep.mubr.msk.bf16.mxu1 %vm833_vm3, %v6012_v26 }
 0x138   : > { %v1244_v23 = vpop.f32.mrf.mxu1 }
 0x139   : > { %v5414_v42 = vadd.f32 %v4055_v19, %v1253_v39  ;;  %v1245_v8 = vadd.f32 %v1244_v23, %v5315_v29  ;;  %v1640_v63 = vpop.f32.mrf.mxu0 }
 0x13a   : > { %v4022_v44 = vpop.f32.mrf.mxu1 }
 0x13b   : > { %v5417_v24 = vadd.f32 %v1637_v37, %v1245_v8  ;;  %v1256_v53 = vadd.f32 %v4022_v44, %v5321_v43  ;;  %v4059_v15 = vpop.f32.mrf.mxu0  ;;  %4262 = vmatmul.mubr.msk.bf16.gmra.mxu0 %vm833_vm3, %v5076_v13  ;;  %v2620_v37 = vshll.u32 %v5325_v28, 16 }
 0x13c   : > { %v1247_v18 = vpop.f32.mrf.mxu1  ;;  %4265 = vmatprep.mubr.msk.bf16.mxu0 %vm833_vm3, %v5078_v16 }
 0x13d   : > { %v5424_v26 = vadd.f32 %v4056_v10, %v1256_v53  ;;  %v1248_v56 = vadd.f32 %v1247_v18, %v5334_v31  ;;  %v1653_v6 = vpop.f32.mrf.mxu0  ;;  %v2622_v44 = vrot.slane %v2620_v37, 5 }
 0x13e   : > { %v4025_v29 = vpop.f32.mrf.mxu1  ;;  %4228 = vmatmul.mubr.msk.bf16.gmra.mxu1 %vm833_vm3, %v6013_v0 }
 0x13f   : > { %v5429_v30 = vadd.f32 %v1640_v63, %v1248_v56  ;;  %v1269_v43 = vadd.f32 %v4025_v29, %v5342_v25  ;;  %v4060_v1 = vpop.f32.mrf.mxu0  ;;  %4231 = vmatprep.mubr.msk.bf16.mxu1 %vm833_vm3, %v6014_v35 }
 0x140   : > { %v1260_v13 = vpop.f32.mrf.mxu1 }
 0x141   : > { %v5434_v62 = vadd.f32 %v4059_v15, %v1269_v43  ;;  %v1261_v16 = vadd.f32 %v1260_v13, %v5347_v41  ;;  %v1656_v59 = vpop.f32.mrf.mxu0  ;;  %v2617_v41 = vshrl.u32 %v5325_v28, 16 }
 0x142   : > { %v4026_v31 = vpop.f32.mrf.mxu1 }
 0x143   : > { %v5437_v34 = vadd.f32 %v1653_v6, %v1261_v16  ;;  %v1272_v19 = vadd.f32 %v4026_v31, %v5353_v51  ;;  %v4063_v0 = vpop.f32.mrf.mxu0  ;;  %4266 = vmatmul.mubr.msk.bf16.gmra.mxu0 %vm833_vm3, %v4993_v21  ;;  %v2626_v51 = vshll.u32 %v5328_v61, 16  ;;  %v2630_v21 = vshrl.u32 %v5328_v61, 16 }
 0x144   : > { %v1263_v25 = vpop.f32.mrf.mxu1  ;;  %4269 = vmatprep.mubr.msk.bf16.mxu0 %vm833_vm3, %v5008_v50 }
 0x145   : > { %v5444_v35 = vadd.f32 %v4060_v1, %v1272_v19  ;;  %v1264_v20 = vadd.f32 %v1263_v25, %v5359_v27  ;;  %v1669_v12 = vpop.f32.mrf.mxu0  ;;  %v2628_v15 = vrot.slane %v2626_v51, 5  ;;  %v2632_v18 = vrot.slane %v2630_v21, 4 }
 0x146   : > { %v4029_v55 = vpop.f32.mrf.mxu1  ;;  %4232 = vmatmul.mubr.msk.bf16.gmra.mxu1 %vm833_vm3, %v6015_v40  ;;  %v2619_v40 = vrot.slane %v2617_v41, 4  ;;  %v3638_v19 = vrot.slane %v5325_v28, 9 }
 0x147   : > { %v5453_v39 = vadd.f32 %v1656_v59, %v1264_v20  ;;  %v1285_v50 = vadd.f32 %v4029_v55, %v5247_v47  ;;  %v4064_v10 = vpop.f32.mrf.mxu0  ;;  %4235 = vmatprep.mubr.msk.bf16.mxu1 %vm833_vm3, %v6016_v57  ;;  %v2847_v57 = vrot.slane %v5328_v61, 5 }
 0x148   : > { %v1276_v27 = vpop.f32.mrf.mxu1 }
 0x149   : > { %v5458_v23 = vadd.f32 %v4063_v0, %v1285_v50  ;;  %v1277_v8 = vadd.f32 %v1276_v27, %v5253_v33  ;;  %v1672_v63 = vpop.f32.mrf.mxu0  ;;  %v394_v33 = vld [vmem:[%s5111_s23 + $0x14] sm:$0x1] }
 0x14a   : > { %v4030_v53 = vpop.f32.mrf.mxu1  ;;  %v2636_v31 = vshll.u32 %v394_v33, 16  ;;  %v2850_v25 = vrot.slane %v394_v33, 5 }
 0x14b   : > { %v5461_v56 = vadd.f32 %v1669_v12, %v1277_v8  ;;  %v1288_v47 = vadd.f32 %v4030_v53, %v5263_v17  ;;  %v4067_v6 = vpop.f32.mrf.mxu0  ;;  %4270 = vmatmul.mubr.msk.bf16.gmra.mxu0 %vm833_vm3, %v5030_v52  ;;  %v2623_v17 = vor.u32 %v2622_v44, %v2619_v40 }
 0x14c   : > { %v1279_v29 = vpop.f32.mrf.mxu1  ;;  %4273 = vmatprep.mubr.msk.bf16.mxu0 %vm833_vm3, %v5041_v58  ;;  %v2633_v58 = vor.u32 %v2632_v18, %v2628_v15  ;;  %v2638_v28 = vrot.slane %v2636_v31, 5 }
 0x14d   : > { %v5470_v43 = vadd.f32 %v4064_v10, %v1288_v47  ;;  %v1280_v1 = vadd.f32 %v1279_v29, %v5269_v4  ;;  %v1685_v13 = vpop.f32.mrf.mxu0  ;;  %v2849_v4 = vrot.slane %v2847_v57, 4  ;;  %v2624_v37 = vrot.slane %v2623_v17, 4  ;;  %v6030_v47 = vld [vmem:[#allocation16_spill] sm:$0xff]  ;;  %v6031_v29 = vld [vmem:[#allocation18_spill] sm:$0xff]  ;;  %v6032_v17 = vld [vmem:[#allocation21_spill] sm:$0xff] }
 0x14e   : > { %v4033_v16 = vpop.f32.mrf.mxu1  ;;  %4236 = vmatmul.mubr.msk.bf16.gmra.mxu1 %vm833_vm3, %v6017_v7 }
 0x14f   : > { %v5475_v59 = vadd.f32 %v1672_v63, %v1280_v1  ;;  %v1301_v52 = vadd.f32 %v4033_v16, %v5279_v48  ;;  %v4068_v61 = vpop.f32.mrf.mxu0  ;;  %4239 = vmatprep.mubr.msk.bf16.mxu1 %vm833_vm3, %v4799_v5  ;;  %v2634_v5 = vrot.slane %v2633_v58, 4  ;;  %v2851_v50 = vsel %vm4804_vm7, %v2849_v4, %v2850_v25  ;;  %v6027_v63 = vld [vmem:[#allocation25_spill] sm:$0xff] }
 0x150   : > { %v1292_v0 = vpop.f32.mrf.mxu1  ;;  %v2629_v40 = vsel %vm4481_vm4, %v2624_v37, %v2628_v15 }
 0x151   : > { %v5481_v20 = vadd.f32 %v4067_v6, %v1301_v52  ;;  %v1293_v7 = vadd.f32 %v1292_v0, %v5285_v45  ;;  %v1688_v12 = vpop.f32.mrf.mxu0  ;;  %v2848_v45 = vsel %vm4804_vm7, %v3638_v19, %v2847_v57  ;;  %v2639_v60 = vsel %vm4481_vm4, %v2634_v5, %v2638_v28  ;;  %v6033_v19 = vld [vmem:[#allocation23_spill] sm:$0xff] }
 0x152   : > { %v4034_v41 = vpop.f32.mrf.mxu1  ;;  %v3621_v15 = vcombine.low %v2629_v40, %v2639_v60  ;;  %v6035_v5 = vld [vmem:[#allocation3_spill] sm:$0xff]  ;;  %v6037_v40 = vld [vmem:[#allocation6_spill] sm:$0xff] }
 0x153   : > { %v5484_v55 = vadd.f32 %v1685_v13, %v1293_v7  ;;  %v1304_v48 = vadd.f32 %v4034_v41, %v5295_v22  ;;  %v4071_v51 = vpop.f32.mrf.mxu0  ;;  %4274 = vmatmul.mubr.msk.bf16.gmra.mxu0 %vm833_vm3, %v5050_v2 }
 0x154   : > { %v1295_v21 = vpop.f32.mrf.mxu1  ;;  %4277 = vmatprep.mubr.msk.bf16.mxu0 %vm833_vm3, %v5136_v11  ;;  %v6029_v11 = vld [vmem:[#allocation20_spill] sm:$0xff] }
 0x155   : > { %v5495_v10 = vadd.f32 %v4068_v61, %v1304_v48  ;;  %v1296_v22 = vadd.f32 %v1295_v21, %v5301_v49  ;;  %v1701_v27 = vpop.f32.mrf.mxu0  ;;  %v3640_v49 = vcombine.low %v2848_v45, %v2851_v50 }
 0x156   : > { %v4037_v8 = vpop.f32.mrf.mxu1  ;;  %4240 = vmatmul.mubr.msk.bf16.gmra.mxu1 %vm833_vm3, %v6027_v63 }
 0x157   : > { %v5502_v44 = vadd.f32 %v1688_v12, %v1296_v22  ;;  %v1317_v53 = vadd.f32 %v4037_v8, %v6029_v11  ;;  %v4072_v18 = vpop.f32.mrf.mxu0  ;;  %4243 = vmatprep.mubr.msk.bf16.mxu1 %vm833_vm3, %v6030_v47  ;;  %v6034_v12 = vld [vmem:[#allocation8_spill] sm:$0xff] }
 0x158   : > { %v1308_v6 = vpop.f32.mrf.mxu1  ;;  %v6036_v22 = vld [vmem:[#allocation4_spill] sm:$0xff] }
 0x159   : > { %v5509_v57 = vadd.f32 %v4071_v51, %v1317_v53  ;;  %v1309_v33 = vadd.f32 %v1308_v6, %v6031_v29  ;;  %v1704_v1 = vpop.f32.mrf.mxu0 }
 0x15a   : > { %v4038_v13 = vpop.f32.mrf.mxu1 }
 0x15b   : > { %v5512_v16 = vadd.f32 %v1701_v27, %v1309_v33  ;;  %v1320_v52 = vadd.f32 %v4038_v13, %v6032_v17  ;;  %v4075_v61 = vpop.f32.mrf.mxu0  ;;  %4278 = vmatmul.mubr.msk.bf16.gmra.mxu0 %vm833_vm3, %v3640_v49 }
 0x15c   : > { %v1311_v58 = vpop.f32.mrf.mxu1 }
 0x15d   : > { %v5516_v31 = vadd.f32 %v4072_v18, %v1320_v52  ;;  %v1312_v0 = vadd.f32 %v1311_v58, %v6033_v19  ;;  %v1717_v4 = vpop.f32.mrf.mxu0 }
 0x15e   : > { %v4041_v25 = vpop.f32.mrf.mxu1  ;;  %4244 = vmatmul.mubr.msk.bf16.gmra.mxu1 %vm833_vm3, %v3621_v15 }
 0x15f   : > { %v5520_v7 = vadd.f32 %v1704_v1, %v1312_v0  ;;  %v1333_v41 = vadd.f32 %v4041_v25, %v6034_v12  ;;  %v4076_v37 = vpop.f32.mrf.mxu0 }
 0x160   : > { %v1324_v48 = vpop.f32.mrf.mxu1 }
 0x161   : > { %v5523_v51 = vadd.f32 %v4075_v61, %v1333_v41  ;;  %v1325_v28 = vadd.f32 %v1324_v48, %v6035_v5  ;;  %v1720_v21 = vpop.f32.mrf.mxu0 }
 0x162   : > { %v4042_v45 = vpop.f32.mrf.mxu1 }
 0x163   : > { %v5526_v50 = vadd.f32 %v1717_v4, %v1325_v28  ;;  %v1336_v27 = vadd.f32 %v4042_v45, %v6036_v22  ;;  %v4115_v8 = vpop.f32.mrf.mxu0 }
 0x164   : > { %v1327_v63 = vpop.f32.mrf.mxu1 }
 0x165   : > { %v5529_v2 = vadd.f32 %v4076_v37, %v1336_v27  ;;  %v1328_v11 = vadd.f32 %v1327_v63, %v6037_v40  ;;  %v2039_v53 = vpop.f32.mrf.mxu0 }
 0x166   : > { %v4081_v18 = vpop.f32.mrf.mxu1 }
 0x167   : > { %v5532_v47 = vadd.f32 %v1720_v21, %v1328_v11  ;;  %v1940_v60 = vadd.f32 %v4081_v18, %v5374_v54  ;;  %v4116_v49 = vpop.f32.mrf.mxu0 }
 0x168   : > { %v1811_v6 = vpop.f32.mrf.mxu1 }
 0x169   : > { %v5535_v29 = vadd.f32 %v4115_v8, %v1940_v60  ;;  %v1938_v33 = vadd.f32 %v1811_v6, %v5377_v32  ;;  %v2042_v1 = vpop.f32.mrf.mxu0 }
 0x16a   : > { %v4082_v13 = vpop.f32.mrf.mxu1 }
 0x16b   : > { %v5538_v15 = vadd.f32 %v2039_v53, %v1938_v33  ;;  %v1941_v17 = vadd.f32 %v4082_v13, %v5384_v46  ;;  %v4119_v52 = vpop.f32.mrf.mxu0 }
 0x16c   : > { %v1814_v61 = vpop.f32.mrf.mxu1 }
 0x16d   : > { %v5541_v58 = vadd.f32 %v4116_v49, %v1941_v17  ;;  %v1939_v19 = vadd.f32 %v1814_v61, %v5389_v38  ;;  %v2055_v0 = vpop.f32.mrf.mxu0 }
 0x16e   : > { %v4085_v54 = vpop.f32.mrf.mxu1 }
 0x16f   : > { %v5544_v4 = vadd.f32 %v2042_v1, %v1939_v19  ;;  %v1944_v25 = vadd.f32 %v4085_v54, %v5394_v3  ;;  %v4120_v12 = vpop.f32.mrf.mxu0 }
 0x170   : > { %v1827_v32 = vpop.f32.mrf.mxu1 }
 0x171   : > { %v5547_v41 = vadd.f32 %v4119_v52, %v1944_v25  ;;  %v1942_v37 = vadd.f32 %v1827_v32, %v5397_v9  ;;  %v2058_v48 = vpop.f32.mrf.mxu0 }
 0x172   : > { %v4086_v46 = vpop.f32.mrf.mxu1 }
 0x173   : > { %v5550_v5 = vadd.f32 %v2055_v0, %v1942_v37  ;;  %v1945_v28 = vadd.f32 %v4086_v46, %v5404_v36  ;;  %v4123_v21 = vpop.f32.mrf.mxu0 }
 0x174   : > { %v1830_v38 = vpop.f32.mrf.mxu1 }
 0x175   : > { %v5553_v45 = vadd.f32 %v4120_v12, %v1945_v28  ;;  %v1943_v22 = vadd.f32 %v1830_v38, %v5409_v14  ;;  %v2071_v27 = vpop.f32.mrf.mxu0 }
 0x176   : > { %v4089_v3 = vpop.f32.mrf.mxu1 }
 0x177   : > { %v5556_v8 = vadd.f32 %v2058_v48, %v1943_v22  ;;  %v1948_v63 = vadd.f32 %v4089_v3, %v5414_v42  ;;  %v4124_v40 = vpop.f32.mrf.mxu0 }
 0x178   : > { %v1843_v9 = vpop.f32.mrf.mxu1 }
 0x179   : > { %v5559_v11 = vadd.f32 %v4123_v21, %v1948_v63  ;;  %v1946_v53 = vadd.f32 %v1843_v9, %v5417_v24  ;;  %v2074_v18 = vpop.f32.mrf.mxu0 }
 0x17a   : > { %v4090_v36 = vpop.f32.mrf.mxu1 }
 0x17b   : > { %v5562_v60 = vadd.f32 %v2071_v27, %v1946_v53  ;;  %v1949_v49 = vadd.f32 %v4090_v36, %v5424_v26  ;;  %v4127_v6 = vpop.f32.mrf.mxu0 }
 0x17c   : > { %v1846_v14 = vpop.f32.mrf.mxu1 }
 0x17d   : > { %v5565_v33 = vadd.f32 %v4124_v40, %v1949_v49  ;;  %v1947_v1 = vadd.f32 %v1846_v14, %v5429_v30  ;;  %v2087_v13 = vpop.f32.mrf.mxu0 }
 0x17e   : > { %v4093_v42 = vpop.f32.mrf.mxu1 }
 0x17f   : > { %v5568_v17 = vadd.f32 %v2074_v18, %v1947_v1  ;;  %v1952_v52 = vadd.f32 %v4093_v42, %v5434_v62  ;;  %v4128_v61 = vpop.f32.mrf.mxu0 }
 0x180   : > { %v1859_v24 = vpop.f32.mrf.mxu1 }
 0x181   : > { %v5571_v19 = vadd.f32 %v4127_v6, %v1952_v52  ;;  %v1950_v0 = vadd.f32 %v1859_v24, %v5437_v34  ;;  %v2090_v54 = vpop.f32.mrf.mxu0 }
 0x182   : > { %v4094_v26 = vpop.f32.mrf.mxu1 }
 0x183   : > { %v5574_v25 = vadd.f32 %v2087_v13, %v1950_v0  ;;  %v1953_v12 = vadd.f32 %v4094_v26, %v5444_v35  ;;  %v4131_v32 = vpop.f32.mrf.mxu0 }
 0x184   : > { %v1862_v30 = vpop.f32.mrf.mxu1 }
 0x185   : > { %v5577_v37 = vadd.f32 %v4128_v61, %v1953_v12  ;;  %v1951_v48 = vadd.f32 %v1862_v30, %v5453_v39  ;;  %v2103_v46 = vpop.f32.mrf.mxu0 }
 0x186   : > { %v4097_v62 = vpop.f32.mrf.mxu1 }
 0x187   : > { %v5580_v28 = vadd.f32 %v2090_v54, %v1951_v48  ;;  %v1956_v21 = vadd.f32 %v4097_v62, %v5458_v23  ;;  %v4132_v38 = vpop.f32.mrf.mxu0 }
 0x188   : > { %v1875_v34 = vpop.f32.mrf.mxu1 }
 0x189   : > { %v5583_v22 = vadd.f32 %v4131_v32, %v1956_v21  ;;  %v1954_v27 = vadd.f32 %v1875_v34, %v5461_v56  ;;  %v2106_v3 = vpop.f32.mrf.mxu0 }
 0x18a   : > { %v4098_v35 = vpop.f32.mrf.mxu1 }
 0x18b   : > { %v5586_v63 = vadd.f32 %v2103_v46, %v1954_v27  ;;  %v1957_v40 = vadd.f32 %v4098_v35, %v5470_v43  ;;  %v4135_v9 = vpop.f32.mrf.mxu0 }
 0x18c   : > { %v1878_v39 = vpop.f32.mrf.mxu1 }
 0x18d   : > { %v5589_v53 = vadd.f32 %v4132_v38, %v1957_v40  ;;  %v1955_v18 = vadd.f32 %v1878_v39, %v5475_v59  ;;  %v2119_v36 = vpop.f32.mrf.mxu0 }
 0x18e   : > { %v4101_v23 = vpop.f32.mrf.mxu1 }
 0x18f   : > { %v5592_v49 = vadd.f32 %v2106_v3, %v1955_v18  ;;  %v1960_v6 = vadd.f32 %v4101_v23, %v5481_v20  ;;  %v4136_v14 = vpop.f32.mrf.mxu0 }
 0x190   : > { %v1891_v56 = vpop.f32.mrf.mxu1 }
 0x191   : > { %v5595_v1 = vadd.f32 %v4135_v9, %v1960_v6  ;;  %v1958_v13 = vadd.f32 %v1891_v56, %v5484_v55  ;;  %v2122_v42 = vpop.f32.mrf.mxu0 }
 0x192   : > { %v4102_v43 = vpop.f32.mrf.mxu1 }
 0x193   : > { %v5598_v52 = vadd.f32 %v2119_v36, %v1958_v13  ;;  %v1961_v61 = vadd.f32 %v4102_v43, %v5495_v10  ;;  %v4139_v24 = vpop.f32.mrf.mxu0 }
 0x194   : > { %v1894_v59 = vpop.f32.mrf.mxu1 }
 0x195   : > { %v5601_v0 = vadd.f32 %v4136_v14, %v1961_v61  ;;  %v1959_v54 = vadd.f32 %v1894_v59, %v5502_v44  ;;  %v2135_v26 = vpop.f32.mrf.mxu0 }
 0x196   : > { %v4105_v20 = vpop.f32.mrf.mxu1 }
 0x197   : > { %v5604_v12 = vadd.f32 %v2122_v42, %v1959_v54  ;;  %v1964_v32 = vadd.f32 %v4105_v20, %v5509_v57  ;;  %v4140_v30 = vpop.f32.mrf.mxu0 }
 0x198   : > { %v1907_v55 = vpop.f32.mrf.mxu1 }
 0x199   : > { %v5607_v48 = vadd.f32 %v4139_v24, %v1964_v32  ;;  %v1962_v46 = vadd.f32 %v1907_v55, %v5512_v16  ;;  %v2138_v62 = vpop.f32.mrf.mxu0 }
 0x19a   : > { %v4106_v10 = vpop.f32.mrf.mxu1 }
 0x19b   : > { %v5610_v21 = vadd.f32 %v2135_v26, %v1962_v46  ;;  %v1965_v38 = vadd.f32 %v4106_v10, %v5516_v31  ;;  %v4143_v34 = vpop.f32.mrf.mxu0 }
 0x19c   : > { %v1910_v44 = vpop.f32.mrf.mxu1 }
 0x19d   : > { %v5613_v27 = vadd.f32 %v4140_v30, %v1965_v38  ;;  %v1963_v3 = vadd.f32 %v1910_v44, %v5520_v7  ;;  %v2151_v35 = vpop.f32.mrf.mxu0 }
 0x19e   : > { %v4109_v57 = vpop.f32.mrf.mxu1 }
 0x19f   : > { %6038 = vst [vmem:[#allocation9_spill] sm:$0xff] %v5613_v27  ;;  %v5616_v40 = vadd.f32 %v2138_v62, %v1963_v3  ;;  %v1968_v9 = vadd.f32 %v4109_v57, %v5523_v51  ;;  %v4144_v39 = vpop.f32.mrf.mxu0 }
 0x1a0   : > { %v1923_v16 = vpop.f32.mrf.mxu1 }
 0x1a1   : > { %6039 = vst [vmem:[#allocation7_spill] sm:$0xff] %v5616_v40  ;;  %v5619_v18 = vadd.f32 %v4143_v34, %v1968_v9  ;;  %v1966_v36 = vadd.f32 %v1923_v16, %v5526_v50  ;;  %v2154_v23 = vpop.f32.mrf.mxu0 }
 0x1a2   : > { %v4110_v31 = vpop.f32.mrf.mxu1 }
 0x1a3   : > { %v5622_v6 = vadd.f32 %v2151_v35, %v1966_v36  ;;  %v1969_v14 = vadd.f32 %v4110_v31, %v5529_v2  ;;  %v4183_v56 = vpop.f32.mrf.mxu0 }
 0x1a4   : > { %v1926_v7 = vpop.f32.mrf.mxu1 }
 0x1a5   : > { %v5625_v13 = vadd.f32 %v4144_v39, %v1969_v14  ;;  %v1967_v42 = vadd.f32 %v1926_v7, %v5532_v47  ;;  %v2457_v43 = vpop.f32.mrf.mxu0 }
 0x1a6   : > { %v4149_v51 = vpop.f32.mrf.mxu1 }
 0x1a7   : > { %6040 = vst [vmem:[#allocation11_spill] sm:$0xff] %v5625_v13  ;;  %v5628_v61 = vadd.f32 %v2154_v23, %v1967_v42  ;;  %v2380_v24 = vadd.f32 %v4149_v51, %v5535_v29  ;;  %v5631_v59 = vpop.f32.mrf.mxu0 }
 0x1a8   : > { %v2251_v50 = vpop.f32.mrf.mxu1 }
 0x1a9   : > { %6041 = vst [vmem:[#allocation13_spill] sm:$0xff] %v5628_v61  ;;  %v5633_v54 = vadd.f32 %v4183_v56, %v2380_v24  ;;  %v2378_v26 = vadd.f32 %v2251_v50, %v5538_v15  ;;  %v5636_v2 = vpop.f32.mrf.mxu0 }
 0x1aa   : > { %v5638_v20 = vpop.f32.mrf.mxu1 }
 0x1ab   : > { %v5640_v32 = vadd.f32 %v2457_v43, %v2378_v26  ;;  %v4187_v47 = vpop.f32.mrf.mxu0 }
 0x1ac   : > { %v5642_v30 = vpop.f32.mrf.mxu1 }
 0x1ad   : > { %v2473_v55 = vpop.f32.mrf.mxu0 }
 0x1ae   : > { %v4153_v46 = vpop.f32.mrf.mxu1 }
 0x1af   : > { %v2384_v29 = vadd.f32 %v4153_v46, %v5547_v41  ;;  %v5645_v62 = vpop.f32.mrf.mxu0 }
 0x1b0   : > { %v2267_v10 = vpop.f32.mrf.mxu1 }
 0x1b1   : > { %v5647_v38 = vadd.f32 %v4187_v47, %v2384_v29  ;;  %v2382_v15 = vadd.f32 %v2267_v10, %v5550_v5  ;;  %v5650_v34 = vpop.f32.mrf.mxu0 }
 0x1b2   : > { %v5652_v44 = vpop.f32.mrf.mxu1 }
 0x1b3   : > { %v5654_v3 = vadd.f32 %v2473_v55, %v2382_v15  ;;  %v4191_v35 = vpop.f32.mrf.mxu0 }
 0x1b4   : > { %v5656_v57 = vpop.f32.mrf.mxu1 }
 0x1b5   : > { %v2489_v9 = vpop.f32.mrf.mxu0 }
 0x1b6   : > { %v4157_v39 = vpop.f32.mrf.mxu1 }
 0x1b7   : > { %v2388_v41 = vadd.f32 %v4157_v39, %v5559_v11  ;;  %v5659_v16 = vpop.f32.mrf.mxu0 }
 0x1b8   : > { %v2283_v36 = vpop.f32.mrf.mxu1 }
 0x1b9   : > { %v5661_v23 = vadd.f32 %v4191_v35, %v2388_v41  ;;  %v2386_v5 = vadd.f32 %v2283_v36, %v5562_v60  ;;  %v5664_v31 = vpop.f32.mrf.mxu0 }
 0x1ba   : > { %v5666_v14 = vpop.f32.mrf.mxu1 }
 0x1bb   : > { %v5668_v56 = vadd.f32 %v2489_v9, %v2386_v5  ;;  %v4195_v7 = vpop.f32.mrf.mxu0 }
 0x1bc   : > { %v5670_v42 = vpop.f32.mrf.mxu1 }
 0x1bd   : > { %v2505_v43 = vpop.f32.mrf.mxu0 }
 0x1be   : > { %v4161_v51 = vpop.f32.mrf.mxu1 }
 0x1bf   : > { %v2392_v11 = vadd.f32 %v4161_v51, %v5571_v19  ;;  %v5673_v24 = vpop.f32.mrf.mxu0 }
 0x1c0   : > { %v2299_v50 = vpop.f32.mrf.mxu1 }
 0x1c1   : > { %v5675_v26 = vadd.f32 %v4195_v7, %v2392_v11  ;;  %v2390_v60 = vadd.f32 %v2299_v50, %v5574_v25  ;;  %v5678_v47 = vpop.f32.mrf.mxu0 }
 0x1c2   : > { %v5680_v55 = vpop.f32.mrf.mxu1 }
 0x1c3   : > { %v5682_v46 = vadd.f32 %v2505_v43, %v2390_v60  ;;  %v4199_v29 = vpop.f32.mrf.mxu0 }
 0x1c4   : > { %v5684_v10 = vpop.f32.mrf.mxu1 }
 0x1c5   : > { %v2521_v15 = vpop.f32.mrf.mxu0 }
 0x1c6   : > { %v4165_v35 = vpop.f32.mrf.mxu1 }
 0x1c7   : > { %v2396_v19 = vadd.f32 %v4165_v35, %v5583_v22  ;;  %v5687_v9 = vpop.f32.mrf.mxu0 }
 0x1c8   : > { %v2315_v39 = vpop.f32.mrf.mxu1 }
 0x1c9   : > { %v5689_v41 = vadd.f32 %v4199_v29, %v2396_v19  ;;  %v2394_v25 = vadd.f32 %v2315_v39, %v5586_v63  ;;  %v5692_v36 = vpop.f32.mrf.mxu0 }
 0x1ca   : > { %v5694_v5 = vpop.f32.mrf.mxu1 }
 0x1cb   : > { %v5696_v7 = vadd.f32 %v2521_v15, %v2394_v25  ;;  %v4203_v43 = vpop.f32.mrf.mxu0 }
 0x1cc   : > { %v5698_v51 = vpop.f32.mrf.mxu1 }
 0x1cd   : > { %v2537_v11 = vpop.f32.mrf.mxu0 }
 0x1ce   : > { %v4169_v50 = vpop.f32.mrf.mxu1 }
 0x1cf   : > { %v2400_v22 = vadd.f32 %v4169_v50, %v5595_v1  ;;  %v5701_v60 = vpop.f32.mrf.mxu0 }
 0x1d0   : > { %6042 = vst [vmem:[#allocation15_spill] sm:$0xff] %v5701_v60  ;;  %v2331_v35 = vpop.f32.mrf.mxu1 }
 0x1d1   : > { %v5703_v29 = vadd.f32 %v4203_v43, %v2400_v22  ;;  %v2398_v63 = vadd.f32 %v2331_v35, %v5598_v52  ;;  %v5706_v19 = vpop.f32.mrf.mxu0 }
 0x1d2   : > { %6043 = vst [vmem:[#allocation19_spill] sm:$0xff] %v5706_v19  ;;  %v5708_v39 = vpop.f32.mrf.mxu1 }
 0x1d3   : > { %v5710_v15 = vadd.f32 %v2537_v11, %v2398_v63  ;;  %v4207_v25 = vpop.f32.mrf.mxu0 }
 0x1d4   : > { %v5712_v61 = vpop.f32.mrf.mxu1 }
 0x1d5   : > { %6044 = vst [vmem:[#allocation24_spill] sm:$0xff] %v5710_v15  ;;  %v2553_v13 = vpop.f32.mrf.mxu0 }
 0x1d6   : > { %v4173_v40 = vpop.f32.mrf.mxu1 }
 0x1d7   : > { %v2404_v1 = vadd.f32 %v4173_v40, %v5607_v48  ;;  %v5715_v50 = vpop.f32.mrf.mxu0 }
 0x1d8   : > { %v2347_v27 = vpop.f32.mrf.mxu1 }
 0x1d9   : > { %v5717_v43 = vadd.f32 %v4207_v25, %v2404_v1  ;;  %v2402_v52 = vadd.f32 %v2347_v27, %v5610_v21  ;;  %v5720_v22 = vpop.f32.mrf.mxu0 }
 0x1da   : > { %6045 = vst [vmem:[#allocation5_spill] sm:$0xff] %v5720_v22  ;;  %v5722_v35 = vpop.f32.mrf.mxu1 }
 0x1db   : > { %v5724_v11 = vadd.f32 %v2553_v13, %v2402_v52  ;;  %v4211_v63 = vpop.f32.mrf.mxu0 }
 0x1dc   : > { %v5726_v19 = vpop.f32.mrf.mxu1 }
 0x1dd   : > { %6046 = vst [vmem:[#allocation10_spill] sm:$0xff] %v5724_v11  ;;  %6047 = vst [vmem:[#allocation12_spill] sm:$0xff] %v5726_v19  ;;  %v2569_v15 = vpop.f32.mrf.mxu0  ;;  %v2381_v19 = vadd.f32 %v5638_v20, %v5541_v58 }
 0x1de   : > { %v4177_v60 = vpop.f32.mrf.mxu1 }
 0x1df   : > { %v2408_v48 = vadd.f32 %v4177_v60, %v5619_v18  ;;  %v5729_v40 = vpop.f32.mrf.mxu0 }
 0x1e0   : > { %6048 = vst [vmem:[#allocation14_spill] sm:$0xff] %v5729_v40  ;;  %v2363_v25 = vpop.f32.mrf.mxu1 }
 0x1e1   : > { %v5731_v1 = vadd.f32 %v4211_v63, %v2408_v48  ;;  %v2406_v21 = vadd.f32 %v2363_v25, %v5622_v6  ;;  %v5734_v27 = vpop.f32.mrf.mxu0  ;;  %v2379_v63 = vadd.f32 %v5642_v30, %v5544_v4 }
 0x1e2   : > { %6050 = vst [vmem:[#allocation22_spill] sm:$0xff] %v5734_v27  ;;  %v5736_v22 = vpop.f32.mrf.mxu1 }
 0x1e3   : > { %6049 = vst [vmem:[#allocation17_spill] sm:$0xff] %v5731_v1  ;;  %v5738_v13 = vadd.f32 %v2569_v15, %v2406_v21  ;;  %v4251_v52 = vpop.f32.mrf.mxu0  ;;  %v5751_v15 = vld [vmem:[%s5917_s3] ss:$0 sm:$0xff]  ;;  %v2587_v21 = vadd.f32 %v5631_v59, %v2381_v19  ;;  %v2585_v40 = vadd.f32 %v5636_v2, %v2379_v63  ;;  %v2385_v59 = vadd.f32 %v5652_v44, %v5553_v45 }
 0x1e4   : > { %v5740_v11 = vpop.f32.mrf.mxu1 }
 0x1e5   : > { %6051 = vst [vmem:[#allocation25_spill] sm:$0xff] %v5738_v13  ;;  %6052 = vst [vmem:[#allocation2_spill] sm:$0xff] %v5740_v11  ;;  %v2897_v18 = vpop.f32.mrf.mxu0 }
 0x1e6   : > { %v4217_v60 = vpop.f32.mrf.mxu1 }
 0x1e7   : > { %v2814_v6 = vadd.f32 %v4217_v60, %v5633_v54  ;;  %v4252_v48 = vpop.f32.mrf.mxu0  ;;  %v5760_v54 = vld [vmem:[%s5918_s4] ss:$0 sm:$0xff] }
 0x1e8   : > { %v2685_v25 = vpop.f32.mrf.mxu1 }
 0x1e9   : > { %v3026_v27 = vadd.f32 %v4251_v52, %v2814_v6  ;;  %v2812_v58 = vadd.f32 %v2685_v25, %v5640_v32  ;;  %v2900_v20 = vpop.f32.mrf.mxu0  ;;  %v2383_v25 = vadd.f32 %v5656_v57, %v5556_v8 }
 0x1ea   : > { %v4218_v13 = vpop.f32.mrf.mxu1 }
 0x1eb   : > { %v3065_v4 = vmul.f32 %v5751_v15, %v3026_v27  ;;  %v3024_v30 = vadd.f32 %v2897_v18, %v2812_v58  ;;  %v2815_v60 = vadd.f32 %v4218_v13, %v2587_v21  ;;  %v4255_v11 = vpop.f32.mrf.mxu0  ;;  %v2591_v58 = vadd.f32 %v5645_v62, %v2385_v59 }
 0x1ec   : > { %v2688_v1 = vpop.f32.mrf.mxu1  ;;  %v2389_v62 = vadd.f32 %v5666_v14, %v5565_v33 }
 0x1ed   : > { %v3063_v32 = vmul.f32 %v5751_v15, %v3024_v30  ;;  %v3027_v2 = vadd.f32 %v4252_v48, %v2815_v60  ;;  %v2813_v19 = vadd.f32 %v2688_v1, %v2585_v40  ;;  %v2913_v27 = vpop.f32.mrf.mxu0  ;;  %v3104_v52 = vadd.f32 %v5760_v54, %v3065_v4 }
 0x1ee   : > { %v4221_v63 = vpop.f32.mrf.mxu1 }
 0x1ef   : > { %v3066_v6 = vmul.f32 %v5751_v15, %v3027_v2  ;;  %v3025_v18 = vadd.f32 %v2900_v20, %v2813_v19  ;;  %v4256_v13 = vpop.f32.mrf.mxu0  ;;  %v3102_v45 = vadd.f32 %v5760_v54, %v3063_v32  ;;  %v2818_v44 = vadd.f32 %v4221_v63, %v5647_v38 }
 0x1f0   : > { %v2701_v21 = vpop.f32.mrf.mxu1  ;;  %v3136_v20 = vmax.f32 %v3104_v52, 0.0  ;;  %v2589_v19 = vadd.f32 %v5650_v34, %v2383_v25 }
 0x1f1   : > { %v3105_v40 = vadd.f32 %v5760_v54, %v3066_v6  ;;  %v3064_v1 = vmul.f32 %v5751_v15, %v3025_v18  ;;  %v2816_v48 = vadd.f32 %v2701_v21, %v5654_v3  ;;  %v2916_v4 = vpop.f32.mrf.mxu0  ;;  %v3030_v30 = vadd.f32 %v4255_v11, %v2818_v44 }
 0x1f2   : > { %v4222_v60 = vpop.f32.mrf.mxu1  ;;  %v3134_v59 = vmax.f32 %v3102_v45, 0.0 }
 0x1f3   : > { %v3137_v2 = vmax.f32 %v3105_v40, 0.0  ;;  %v3103_v8 = vadd.f32 %v5760_v54, %v3064_v1  ;;  %v3028_v57 = vadd.f32 %v2913_v27, %v2816_v48  ;;  %v2819_v32 = vadd.f32 %v4222_v60, %v2591_v58  ;;  %v4259_v38 = vpop.f32.mrf.mxu0 }
 0x1f4   : > { %v3069_v3 = vmul.f32 %v5751_v15, %v3030_v30  ;;  %v2704_v11 = vpop.f32.mrf.mxu1  ;;  %v2595_v58 = vadd.f32 %v5659_v16, %v2389_v62  ;;  %v2387_v40 = vadd.f32 %v5670_v42, %v5568_v17 }
 0x1f5   : > { %v3735_v52 = vpack.c.bf16 %v3137_v2, %v3136_v20  ;;  %v3135_v63 = vmax.f32 %v3103_v8, 0.0  ;;  %v3067_v27 = vmul.f32 %v5751_v15, %v3028_v57  ;;  %v3031_v6 = vadd.f32 %v4256_v13, %v2819_v32  ;;  %v2929_v34 = vpop.f32.mrf.mxu0 }
 0x1f6   : > { %v3108_v18 = vadd.f32 %v5760_v54, %v3069_v3  ;;  %v2817_v33 = vadd.f32 %v2704_v11, %v2589_v19  ;;  %v4225_v14 = vpop.f32.mrf.mxu1 }
 0x1f7   : > { %3807 = vst [vmem:[%s5785_s10 + $0x8] sm:$0xff] %v3735_v52   ;;  %v3730_v25 = vpack.c.bf16 %v3135_v63, %v3134_v59  ;;  %v3070_v45 = vmul.f32 %v5751_v15, %v3031_v6  ;;  %v2822_v44 = vadd.f32 %v4225_v14, %v5661_v23  ;;  %v4260_v21 = vpop.f32.mrf.mxu0  ;;  %v3106_v13 = vadd.f32 %v5760_v54, %v3067_v27 }
 0x1f8   : > { %v3029_v1 = vadd.f32 %v2916_v4, %v2817_v33  ;;  %v2717_v48 = vpop.f32.mrf.mxu1  ;;  %v3140_v8 = vmax.f32 %v3108_v18, 0.0  ;;  %v2593_v4 = vadd.f32 %v5664_v31, %v2387_v40 }
 0x1f9   : > { %3731 = vst [vmem:[%s5785_s10] sm:$0xff] %v3730_v25   ;;  %v3109_v20 = vadd.f32 %v5760_v54, %v3070_v45  ;;  %v3034_v30 = vadd.f32 %v4259_v38, %v2822_v44  ;;  %v2820_v60 = vadd.f32 %v2717_v48, %v5668_v56  ;;  %v2932_v2 = vpop.f32.mrf.mxu0  ;;  %v2393_v56 = vadd.f32 %v5680_v55, %v5577_v37 }
 0x1fa   : > { %v3068_v23 = vmul.f32 %v5751_v15, %v3029_v1  ;;  %v4226_v57 = vpop.f32.mrf.mxu1  ;;  %v3138_v38 = vmax.f32 %v3106_v13, 0.0  ;;  %v2391_v37 = vadd.f32 %v5684_v10, %v5580_v28 }
 0x1fb   : > { %v3141_v32 = vmax.f32 %v3109_v20, 0.0  ;;  %v3073_v16 = vmul.f32 %v5751_v15, %v3034_v30  ;;  %v3032_v19 = vadd.f32 %v2929_v34, %v2820_v60  ;;  %v2823_v17 = vadd.f32 %v4226_v57, %v2595_v58  ;;  %v4263_v42 = vpop.f32.mrf.mxu0 }
 0x1fc   : > { %v3107_v62 = vadd.f32 %v5760_v54, %v3068_v23  ;;  %v2720_v59 = vpop.f32.mrf.mxu1  ;;  %v2599_v44 = vadd.f32 %v5673_v24, %v2393_v56 }
 0x1fd   : > { %v3745_v3 = vpack.c.bf16 %v3141_v32, %v3140_v8  ;;  %v3035_v11 = vadd.f32 %v4260_v21, %v2823_v17  ;;  %v2945_v52 = vpop.f32.mrf.mxu0  ;;  %v3112_v27 = vadd.f32 %v5760_v54, %v3073_v16  ;;  %v3071_v6 = vmul.f32 %v5751_v15, %v3032_v19 }
 0x1fe   : > { %v3139_v63 = vmax.f32 %v3107_v62, 0.0  ;;  %v2821_v34 = vadd.f32 %v2720_v59, %v2593_v4  ;;  %v4229_v18 = vpop.f32.mrf.mxu1 }
 0x1ff   : > { %3809 = vst [vmem:[%s5785_s10 + $0x18] sm:$0xff] %v3745_v3   ;;  %v3074_v31 = vmul.f32 %v5751_v15, %v3035_v11  ;;  %v2826_v33 = vadd.f32 %v4229_v18, %v5675_v26  ;;  %v4264_v14 = vpop.f32.mrf.mxu0  ;;  %v3144_v48 = vmax.f32 %v3112_v27, 0.0  ;;  %v3110_v13 = vadd.f32 %v5760_v54, %v3071_v6 }
 0x200   : > { %v3740_v55 = vpack.c.bf16 %v3139_v63, %v3138_v38  ;;  %v3033_v25 = vadd.f32 %v2932_v2, %v2821_v34  ;;  %v2733_v45 = vpop.f32.mrf.mxu1  ;;  %v2597_v2 = vadd.f32 %v5678_v47, %v2391_v37  ;;  %v2395_v38 = vadd.f32 %v5698_v51, %v5592_v49 }
 0x201   : > { %v3113_v21 = vadd.f32 %v5760_v54, %v3074_v31  ;;  %v3038_v58 = vadd.f32 %v4263_v42, %v2826_v33  ;;  %v2824_v40 = vadd.f32 %v2733_v45, %v5682_v46  ;;  %v2948_v1 = vpop.f32.mrf.mxu0  ;;  %v2397_v46 = vadd.f32 %v5694_v5, %v5589_v53 }
 0x202   : > { %3808 = vst [vmem:[%s5785_s10 + $0x10] sm:$0xff] %v3740_v55   ;;  %v3072_v26 = vmul.f32 %v5751_v15, %v3033_v25  ;;  %v4230_v20 = vpop.f32.mrf.mxu1  ;;  %v3142_v17 = vmax.f32 %v3110_v13, 0.0  ;;  %v2601_v55 = vadd.f32 %v5692_v36, %v2395_v38 }
 0x203   : > { %v3145_v30 = vmax.f32 %v3113_v21, 0.0  ;;  %v3077_v28 = vmul.f32 %v5751_v15, %v3038_v58  ;;  %v3036_v10 = vadd.f32 %v2945_v52, %v2824_v40  ;;  %v2827_v60 = vadd.f32 %v4230_v20, %v2599_v44  ;;  %v4267_v24 = vpop.f32.mrf.mxu0 }
 0x204   : > { %v3111_v8 = vadd.f32 %v5760_v54, %v3072_v26  ;;  %v2736_v23 = vpop.f32.mrf.mxu1  ;;  %v2603_v56 = vadd.f32 %v5687_v9, %v2397_v46 }
 0x205   : > { %v3755_v57 = vpack.c.bf16 %v3145_v30, %v3144_v48  ;;  %v3075_v32 = vmul.f32 %v5751_v15, %v3036_v10  ;;  %v3039_v16 = vadd.f32 %v4264_v14, %v2827_v60  ;;  %v2961_v19 = vpop.f32.mrf.mxu0  ;;  %v3116_v4 = vadd.f32 %v5760_v54, %v3077_v28 }
 0x206   : > { %v3143_v42 = vmax.f32 %v3111_v8, 0.0  ;;  %v2825_v62 = vadd.f32 %v2736_v23, %v2597_v2  ;;  %v4233_v59 = vpop.f32.mrf.mxu1  ;;  %v6054_v23 = vld [vmem:[#allocation24_spill] sm:$0xff] }
 0x207   : > { %3811 = vst [vmem:[%s5785_s10 + $0x28] sm:$0xff] %v3755_v57   ;;  %v3078_v47 = vmul.f32 %v5751_v15, %v3039_v16  ;;  %v2830_v53 = vadd.f32 %v4233_v59, %v5689_v41  ;;  %v4268_v5 = vpop.f32.mrf.mxu0  ;;  %v3114_v63 = vadd.f32 %v5760_v54, %v3075_v32  ;;  %v3148_v31 = vmax.f32 %v3116_v4, 0.0  ;;  %v6055_v59 = vld [vmem:[#allocation19_spill] sm:$0xff] }
 0x208   : > { %v3750_v3 = vpack.c.bf16 %v3143_v42, %v3142_v17  ;;  %v3037_v11 = vadd.f32 %v2948_v1, %v2825_v62  ;;  %v2749_v52 = vpop.f32.mrf.mxu1 }
 0x209   : > { %v3117_v27 = vadd.f32 %v5760_v54, %v3078_v47  ;;  %v3042_v6 = vadd.f32 %v4267_v24, %v2830_v53  ;;  %v2828_v34 = vadd.f32 %v2749_v52, %v5696_v7  ;;  %v2964_v18 = vpop.f32.mrf.mxu0  ;;  %v2401_v7 = vadd.f32 %v5708_v39, %v5601_v0  ;;  %v6053_v24 = vld [vmem:[#allocation15_spill] sm:$0xff]  ;;  %v6056_v53 = vld [vmem:[#allocation9_spill] sm:$0xff] }
 0x20a   : > { %3810 = vst [vmem:[%s5785_s10 + $0x20] sm:$0xff] %v3750_v3   ;;  %v3076_v41 = vmul.f32 %v5751_v15, %v3037_v11  ;;  %v4234_v33 = vpop.f32.mrf.mxu1  ;;  %v3146_v44 = vmax.f32 %v3114_v63, 0.0  ;;  %v2399_v0 = vadd.f32 %v5712_v61, %v5604_v12 }
 0x20b   : > { %v3149_v9 = vmax.f32 %v3117_v27, 0.0  ;;  %v3081_v14 = vmul.f32 %v5751_v15, %v3042_v6  ;;  %v3040_v49 = vadd.f32 %v2961_v19, %v2828_v34  ;;  %v2831_v51 = vadd.f32 %v4234_v33, %v2603_v56  ;;  %v4271_v37 = vpop.f32.mrf.mxu0 }
 0x20c   : > { %v3115_v25 = vadd.f32 %v5760_v54, %v3076_v41  ;;  %v2752_v45 = vpop.f32.mrf.mxu1  ;;  %v2607_v2 = vadd.f32 %v6053_v24, %v2401_v7  ;;  %v2605_v47 = vadd.f32 %v6055_v59, %v2399_v0 }
 0x20d   : > { %v3765_v21 = vpack.c.bf16 %v3149_v9, %v3148_v31  ;;  %v3043_v58 = vadd.f32 %v4268_v5, %v2831_v51  ;;  %v2977_v40 = vpop.f32.mrf.mxu0  ;;  %v3120_v48 = vadd.f32 %v5760_v54, %v3081_v14  ;;  %v3079_v13 = vmul.f32 %v5751_v15, %v3040_v49  ;;  %v6057_v14 = vld [vmem:[#allocation7_spill] sm:$0xff]  ;;  %v6058_v49 = vld [vmem:[#allocation12_spill] sm:$0xff] }
 0x20e   : > { %v3147_v1 = vmax.f32 %v3115_v25, 0.0  ;;  %v2829_v26 = vadd.f32 %v2752_v45, %v2601_v55  ;;  %v4237_v20 = vpop.f32.mrf.mxu1  ;;  %v2405_v5 = vadd.f32 %v5722_v35, %v6056_v53  ;;  %v2403_v51 = vadd.f32 %v6058_v49, %v6057_v14 }
 0x20f   : > { %3813 = vst [vmem:[%s5785_s10 + $0x38] sm:$0xff] %v3765_v21   ;;  %v3082_v36 = vmul.f32 %v5751_v15, %v3043_v58  ;;  %v2834_v30 = vadd.f32 %v4237_v20, %v5703_v29  ;;  %v4272_v28 = vpop.f32.mrf.mxu0  ;;  %v3152_v16 = vmax.f32 %v3120_v48, 0.0  ;;  %v3118_v19 = vadd.f32 %v5760_v54, %v3079_v13  ;;  %v6059_v21 = vld [vmem:[#allocation10_spill] sm:$0xff] }
 0x210   : > { %v3760_v39 = vpack.c.bf16 %v3147_v1, %v3146_v44  ;;  %v3041_v10 = vadd.f32 %v2964_v18, %v2829_v26  ;;  %v2765_v60 = vpop.f32.mrf.mxu1  ;;  %v2611_v9 = vadd.f32 %v5715_v50, %v2405_v5 }
 0x211   : > { %v3121_v46 = vadd.f32 %v5760_v54, %v3082_v36  ;;  %v3046_v8 = vadd.f32 %v4271_v37, %v2834_v30  ;;  %v2832_v57 = vadd.f32 %v2765_v60, %v6054_v23  ;;  %v2980_v32 = vpop.f32.mrf.mxu0  ;;  %v3150_v27 = vmax.f32 %v3118_v19, 0.0  ;;  %v6060_v30 = vld [vmem:[#allocation5_spill] sm:$0xff] }
 0x212   : > { %3812 = vst [vmem:[%s5785_s10 + $0x30] sm:$0xff] %v3760_v39   ;;  %v3080_v29 = vmul.f32 %v5751_v15, %v3041_v10  ;;  %v4238_v17 = vpop.f32.mrf.mxu1  ;;  %v6061_v10 = vld [vmem:[#allocation11_spill] sm:$0xff] }
 0x213   : > { %v3153_v42 = vmax.f32 %v3121_v46, 0.0  ;;  %v3085_v12 = vmul.f32 %v5751_v15, %v3046_v8  ;;  %v3044_v61 = vadd.f32 %v2977_v40, %v2832_v57  ;;  %v2835_v4 = vadd.f32 %v4238_v17, %v2607_v2  ;;  %v4275_v62 = vpop.f32.mrf.mxu0 }
 0x214   : > { %v3119_v56 = vadd.f32 %v5760_v54, %v3080_v29  ;;  %v2768_v38 = vpop.f32.mrf.mxu1  ;;  %v2409_v60 = vadd.f32 %v5736_v22, %v6061_v10  ;;  %v6062_v29 = vld [vmem:[#allocation17_spill] sm:$0xff] }
 0x215   : > { %v3775_v3 = vpack.c.bf16 %v3153_v42, %v3152_v16  ;;  %v3083_v11 = vmul.f32 %v5751_v15, %v3044_v61  ;;  %v3047_v52 = vadd.f32 %v4272_v28, %v2835_v4  ;;  %v2993_v63 = vpop.f32.mrf.mxu0  ;;  %v3124_v34 = vadd.f32 %v5760_v54, %v3085_v12  ;;  %v6063_v12 = vld [vmem:[#allocation13_spill] sm:$0xff]  ;;  %v6064_v61 = vld [vmem:[#allocation2_spill] sm:$0xff] }
 0x216   : > { %v3151_v6 = vmax.f32 %v3119_v56, 0.0  ;;  %v2833_v18 = vadd.f32 %v2768_v38, %v2605_v47  ;;  %v4241_v31 = vpop.f32.mrf.mxu1  ;;  %v2609_v28 = vadd.f32 %v6060_v30, %v2403_v51  ;;  %v2407_v22 = vadd.f32 %v6064_v61, %v6063_v12  ;;  %v6065_v47 = vld [vmem:[#allocation14_spill] sm:$0xff]  ;;  %v6066_v38 = vld [vmem:[#allocation25_spill] sm:$0xff] }
 0x217   : > { %3815 = vst [vmem:[%s5785_s10 + $0x48] sm:$0xff] %v3775_v3   ;;  %v3086_v41 = vmul.f32 %v5751_v15, %v3047_v52  ;;  %v2838_v35 = vadd.f32 %v4241_v31, %v5717_v43  ;;  %v4276_v33 = vpop.f32.mrf.mxu0  ;;  %v3122_v45 = vadd.f32 %v5760_v54, %v3083_v11  ;;  %v3156_v1 = vmax.f32 %v3124_v34, 0.0 }
 0x218   : > { %v3770_v37 = vpack.c.bf16 %v3151_v6, %v3150_v27  ;;  %v3045_v55 = vadd.f32 %v2980_v32, %v2833_v18  ;;  %v2781_v25 = vpop.f32.mrf.mxu1  ;;  %v2615_v53 = vadd.f32 %v6065_v47, %v2409_v60 }
 0x219   : > { %v3125_v7 = vadd.f32 %v5760_v54, %v3086_v41  ;;  %v3050_v44 = vadd.f32 %v4275_v62, %v2838_v35  ;;  %v2836_v58 = vadd.f32 %v2781_v25, %v6059_v21  ;;  %v2996_v40 = vpop.f32.mrf.mxu0  ;;  %v3154_v24 = vmax.f32 %v3122_v45, 0.0  ;;  %v6067_v35 = vld [vmem:[#allocation22_spill] sm:$0xff] }
 0x21a   : > { %3814 = vst [vmem:[%s5785_s10 + $0x40] sm:$0xff] %v3770_v37   ;;  %v3084_v43 = vmul.f32 %v5751_v15, %v3045_v55  ;;  %v4242_v48 = vpop.f32.mrf.mxu1 }
 0x21b   : > { %v3157_v50 = vmax.f32 %v3125_v7, 0.0  ;;  %v3089_v13 = vmul.f32 %v5751_v15, %v3050_v44  ;;  %v3048_v26 = vadd.f32 %v2993_v63, %v2836_v58  ;;  %v2839_v20 = vadd.f32 %v4242_v48, %v2611_v9  ;;  %v4279_v36 = vpop.f32.mrf.mxu0 }
 0x21c   : > { %v3123_v0 = vadd.f32 %v5760_v54, %v3084_v43  ;;  %v2784_v39 = vpop.f32.mrf.mxu1 }
 0x21d   : > { %v3785_v2 = vpack.c.bf16 %v3157_v50, %v3156_v1  ;;  %v3051_v46 = vadd.f32 %v4276_v33, %v2839_v20  ;;  %v3128_v23 = vadd.f32 %v5760_v54, %v3089_v13  ;;  %v3087_v57 = vmul.f32 %v5751_v15, %v3048_v26  ;;  %v3009_v42 = vpop.f32.mrf.mxu0 }
 0x21e   : > { %v3155_v8 = vmax.f32 %v3123_v0, 0.0  ;;  %v2837_v32 = vadd.f32 %v2784_v39, %v2609_v28  ;;  %v4245_v16 = vpop.f32.mrf.mxu1  ;;  %v2613_v33 = vadd.f32 %v6067_v35, %v2407_v22 }
 0x21f   : > { %3817 = vst [vmem:[%s5785_s10 + $0x58] sm:$0xff] %v3785_v2   ;;  %v3090_v19 = vmul.f32 %v5751_v15, %v3051_v46  ;;  %v2842_v17 = vadd.f32 %v4245_v16, %v6062_v29  ;;  %v3160_v11 = vmax.f32 %v3128_v23, 0.0  ;;  %v3126_v52 = vadd.f32 %v5760_v54, %v3087_v57  ;;  %v4280_v41 = vpop.f32.mrf.mxu0 }
 0x220   : > { %v3780_v4 = vpack.c.bf16 %v3155_v8, %v3154_v24  ;;  %v3049_v62 = vadd.f32 %v2996_v40, %v2837_v32  ;;  %v2797_v59 = vpop.f32.mrf.mxu1 }
 0x221   : > { %v3129_v5 = vadd.f32 %v5760_v54, %v3090_v19  ;;  %v3054_v56 = vadd.f32 %v4279_v36, %v2842_v17  ;;  %v2840_v3 = vadd.f32 %v2797_v59, %v6066_v38  ;;  %v3158_v37 = vmax.f32 %v3126_v52, 0.0  ;;  %v3012_v21 = vpop.f32.mrf.mxu0 }
 0x222   : > { %3816 = vst [vmem:[%s5785_s10 + $0x50] sm:$0xff] %v3780_v4   ;;  %v3088_v63 = vmul.f32 %v5751_v15, %v3049_v62  ;;  %v4246_v27 = vpop.f32.mrf.mxu1 }
 0x223   : > { %v3161_v6 = vmax.f32 %v3129_v5, 0.0  ;;  %v3093_v34 = vmul.f32 %v5751_v15, %v3054_v56  ;;  %v3052_v18 = vadd.f32 %v3009_v42, %v2840_v3  ;;  %v2843_v31 = vadd.f32 %v4246_v27, %v2615_v53 }
 0x224   : > { %v3127_v9 = vadd.f32 %v5760_v54, %v3088_v63  ;;  %v2800_v14 = vpop.f32.mrf.mxu1 }
 0x225   : > { %v3795_v49 = vpack.c.bf16 %v3161_v6, %v3160_v11  ;;  %v3055_v51 = vadd.f32 %v4280_v41, %v2843_v31  ;;  %v3091_v25 = vmul.f32 %v5751_v15, %v3052_v18  ;;  %v2841_v45 = vadd.f32 %v2800_v14, %v2613_v33 }
 0x226   : > { %v3159_v55 = vmax.f32 %v3127_v9, 0.0  ;;  %v3132_v7 = vadd.f32 %v5760_v54, %v3093_v34 }
 0x227   : > { %3819 = vst [vmem:[%s5785_s10 + $0x68] sm:$0xff] %v3795_v49   ;;  %v3094_v44 = vmul.f32 %v5751_v15, %v3055_v51  ;;  %v3053_v40 = vadd.f32 %v3012_v21, %v2841_v45  ;;  %v3130_v43 = vadd.f32 %v5760_v54, %v3091_v25 }
 0x228   : > { %v3790_v58 = vpack.c.bf16 %v3159_v55, %v3158_v37  ;;  %v3164_v50 = vmax.f32 %v3132_v7, 0.0 }
 0x229   : > { %v3133_v1 = vadd.f32 %v5760_v54, %v3094_v44  ;;  %v3092_v48 = vmul.f32 %v5751_v15, %v3053_v40  ;;  %v3162_v36 = vmax.f32 %v3130_v43, 0.0 }
 0x22a   : > { %3818 = vst [vmem:[%s5785_s10 + $0x60] sm:$0xff] %v3790_v58  }
 0x22b   : > { %v3165_v13 = vmax.f32 %v3133_v1, 0.0  ;;  %v3131_v26 = vadd.f32 %v5760_v54, %v3092_v48 }
 0x22d   : > { %v3805_v20 = vpack.c.bf16 %v3165_v13, %v3164_v50  ;;  %v3163_v30 = vmax.f32 %v3131_v26, 0.0 }
 0x22f   : > { %3821 = vst [vmem:[%s5785_s10 + $0x78] sm:$0xff] %v3805_v20   ;;  %v3800_v28 = vpack.c.bf16 %v3163_v30, %v3162_v36 }
 0x231   : > { %3820 = vst [vmem:[%s5785_s10 + $0x70] sm:$0xff] %v3800_v28  }
 0x232 PF: > { %s15_s20 = sadd.s32 1, %s4360_s20   ;;  %s6068_s18 = smov %s4356_s19 }
 0x233   : > { %p12_p6 = scmp.ge.s32.totalorder %s15_s20, 4   ;;  %s6069_s19 = smov %s6071_s21 }
 0x235   :  { %14 = sbr.rel (!%p12_p6) target bundleno = 2 (0x2), region = 81 }

// kernel: double_conv2d.7
= control target key start
LH: loop header
LB: loop body
LE: loop exit
PB: predicated region body
PF: predicated region fallthrough
CT: control target
= control target key end

     0   :  { %s4105_s18 = smov 0   ;;  %s4107_s19 = smov 0   ;;  %s5685_s0 = inlined_call_operand.vmem [shape: bf16[2,18,18,8], index: 0, kind: input, shape index: {}, may-alias: {0,1}]   ;;  %s5686_s1 = inlined_call_operand.vmem [shape: bf16[2,18,18,8], index: 1, kind: input, shape index: {}, may-alias: {0,1}]   ;;  %s5687_s2 = inlined_call_operand.vmem [shape: bf16[9,8,128], index: 2, kind: input, shape index: {}]   ;;  %s5688_s3 = inlined_call_operand.vmem [shape: f32[1,128], index: 3, kind: input, shape index: {}]   ;;  %s5689_s4 = inlined_call_operand.vmem [shape: f32[1,128], index: 4, kind: input, shape index: {}]   ;;  %s5690_s5 = inlined_call_operand.vmem [shape: f32[512,128], index: 5, kind: output, shape index: {}]  }
   0x1   :  { %s4109_s20 = smov 0  }
   0x2 LB: > { %s27_s21 = sadd.s32 1, %s4069_s19  ;;  %p3300_p0 = scmp.ge.s32.totalorder %s4073_s20, 1  ;;  %s4073_s20 = sphi %s4109_s20, %s15_s20   ;;  %s4069_s19 = sphi %s4107_s19, %s5894_s19   ;;  %s4065_s18 = sphi %s4105_s18, %s5893_s18  }
   0x3   : > { %p29_p1 = scmp.ge.s32.totalorder %s27_s21, 2  ;;  %p245_p2 = scmp.lt.s32.totalorder %s4073_s20, 3 }
   0x5   : > { %s5896_s21 = smov (%p29_p1, %s27_s21), 0  ;;  %p246_p3 = pnand %p3300_p0, %p245_p2 }
   0x7   : > { %249 = sbr.rel (%p246_p3) target bundleno = 560 (0x230), region = 40 }
   0xc   : > { %v3305_v0 = vld [vmem:[%s5687_s2 + $0x4] sm:$0xf]  ;;  %vm882_vm0 = vcmask 1043456   ;;  %p302_p4 = scmp.lt.s32.totalorder %s4065_s18, 1  ;;  %v395_v2 = vld [vmem:[%s5687_s2] sm:$0xf] }
   0xd   : > { %3997 = vmatprep.subr.msk.bf16.mxu1 %vm882_vm0, %v3305_v0  ;;  %3996 = vmatprep.subr.msk.bf16.mxu0 %vm882_vm0, %v3305_v0  ;;  %v884_v1 = vsel %vm882_vm0, %v3305_v0, 0  ;;  %v3386_v3 = vld [vmem:[%s5687_s2 + $0x8] sm:$0xf]  ;;  %vm396_vm1 = vsmask.f32 3328  ;;  %v4152_v4 = vsel %vm882_vm0, %v395_v2, 0 }
   0xe   : > { %3995 = vmatpush3.bf16.msra.mxu1 %v884_v1  ;;  %3689 = vmatpush3.bf16.msra.mxu0 %v884_v1  ;;  %s4136_s26 = scalar_select %p302_p4, %s4065_s18, 1  ;;  %vm397_vm2 = vsmask.f32 7440  ;;  %v4155_v5 = vsel %vm882_vm0, %v3386_v3, 0  ;;  %vm833_vm3 = vcmask 64512   ;;  %v5734_v32 = vmov 0 }
   0xf   : > { %3998 = vmatprep.subr.msk.bf16.mxu1 %vm882_vm0, %v395_v2  ;;  %3999 = vmatprep.subr.msk.bf16.mxu0 %vm882_vm0, %v3386_v3  ;;  %vm4194_vm4 = vmor %vm396_vm1, %vm397_vm2  ;;  %vm1355_vm5 = vcmask 1042432   ;;  %vm1356_vm6 = vcmask 1046532   ;;  %s3303_s28 = sshll.u32 %s4065_s18, 5 }
  0x10   : > { %s4006_s29 = smul.u32 216, %s4136_s26  ;;  %v5735_v32 = vsel %vm4194_vm4, 4294967295, %v5734_v32  ;;  %vm4517_vm7 = vmor %vm1355_vm5, %vm1356_vm6  ;;  %p334_p5 = scmp.lt.s32.totalorder %s3303_s28, 63 }
  0x11   : > { %5736 = vst [vmem:[#allocation2_spill] sm:$0xff] %v5735_v32 }
  0x12   : > { %s4149_s7 = scalar_lea.vmem %s5685_s0, %s4006_s29  ;;  %s3534_s16 = sadd.s32 192, %s4006_s29 }
  0x13   : > { %v4158_v6 = vld [vmem:[%s4149_s7] sm:$0xf]  ;;  %v4161_v7 = vld [vmem:[%s4149_s7 + $0x4] sm:$0xf]  ;;  %v4164_v8 = vld [vmem:[%s4149_s7 + $0x8] sm:$0x1]  ;;  %s4824_s23 = scalar_lea.vmem %s5686_s1, %s3534_s16 }
  0x14   : > { %v400_v9 = vshrl.u32 %v4158_v6, 16  ;;  %v403_v10 = vshll.u32 %v4158_v6, 16  ;;  %v409_v11 = vshll.u32 %v4161_v7, 16  ;;  %v413_v12 = vshrl.u32 %v4161_v7, 16  ;;  %v4171_v13 = vld [vmem:[%s4149_s7 + $0x60] sm:$0xf] }
  0x15   : > { %v419_v14 = vshll.u32 %v4164_v8, 16  ;;  %v4176_v16 = vld [vmem:[%s4149_s7 + $0x64] sm:$0xf]  ;;  %v4179_v17 = vld [vmem:[%s4149_s7 + $0x68] sm:$0x1]  ;;  %v592_v23 = vshrl.u32 %v4171_v13, 16 }
  0x16   : > { %v402_v18 = vrot.slane %v400_v9, 4  ;;  %v405_v19 = vrot.slane %v403_v10, 5  ;;  %v411_v20 = vrot.slane %v409_v11, 5  ;;  %v415_v21 = vrot.slane %v413_v12, 4  ;;  %v4187_v30 = vld [vmem:[%s4149_s7 + $0xc] sm:$0xf] }
  0x17   : > { %v421_v22 = vrot.slane %v419_v14, 5  ;;  %v595_v24 = vshll.u32 %v4171_v13, 16  ;;  %v601_v25 = vshll.u32 %v4176_v16, 16  ;;  %v605_v28 = vshrl.u32 %v4176_v16, 16  ;;  %v4190_v31 = vld [vmem:[%s4149_s7 + $0x10] sm:$0xf] }
  0x18   : > { %v406_v26 = vor.u32 %v405_v19, %v402_v18  ;;  %v416_v27 = vor.u32 %v415_v21, %v411_v20  ;;  %v611_v29 = vshll.u32 %v4179_v17, 16  ;;  %v594_v33 = vrot.slane %v592_v23, 4  ;;  %v4201_v42 = vld [vmem:[%s4149_s7 + $0x14] sm:$0x1]  ;;  %v4212_v54 = vld [vmem:[%s4149_s7 + $0x6c] sm:$0xf] }
  0x19   : > { %v597_v34 = vrot.slane %v595_v24, 5  ;;  %v603_v35 = vrot.slane %v601_v25, 5  ;;  %v607_v39 = vrot.slane %v605_v28, 4  ;;  %v424_v43 = vshrl.u32 %v4187_v30, 16  ;;  %5737 = vst [vmem:[#allocation3_spill] sm:$0xff] %v4212_v54  ;;  %s5898_s28 = smov (!%p334_p5, %s3303_s28), 63 }
  0x1a   : > { %v407_v37 = vrot.slane %v406_v26, 4  ;;  %v417_v38 = vrot.slane %v416_v27, 4  ;;  %v613_v40 = vrot.slane %v611_v29, 5  ;;  %v427_v44 = vshll.u32 %v4187_v30, 16  ;;  %v4216_v59 = vld [vmem:[%s4149_s7 + $0x70] sm:$0xf] }
  0x1b   : > { %v598_v41 = vor.u32 %v597_v34, %v594_v33  ;;  %v433_v45 = vshll.u32 %v4190_v31, 16  ;;  %v608_v48 = vor.u32 %v607_v39, %v603_v35  ;;  %v437_v49 = vshrl.u32 %v4190_v31, 16  ;;  %v4224_v0 = vld [vmem:[%s4149_s7 + $0x74] sm:$0x1]  ;;  %v4230_v10 = vld [vmem:[%s4149_s7 + $0x18] sm:$0xf] }
  0x1c   : > { %v412_v46 = vsel %vm4194_vm4, %v407_v37, %v411_v20  ;;  %v422_v47 = vsel %vm4194_vm4, %v417_v38, %v421_v22  ;;  %v426_v52 = vrot.slane %v424_v43, 4  ;;  %v429_v53 = vrot.slane %v427_v44, 5  ;;  %5738 = vst [vmem:[#allocation4_spill] sm:$0xff] %v4224_v0  ;;  %v4239_v23 = vld [vmem:[%s4149_s7 + $0x1c] sm:$0xf] }
  0x1d   : > { %v3306_v50 = vcombine.low %v412_v46, %v422_v47  ;;  %v599_v51 = vrot.slane %v598_v41, 4  ;;  %v609_v55 = vrot.slane %v608_v48, 4  ;;  %v435_v56 = vrot.slane %v433_v45, 5  ;;  %v4246_v27 = vld [vmem:[%s4149_s7 + $0x20] sm:$0x1] }
  0x1e   : > { %v439_v57 = vrot.slane %v437_v49, 4  ;;  %v443_v58 = vshll.u32 %v4201_v42, 16  ;;  %v430_v61 = vor.u32 %v429_v53, %v426_v52  ;;  %v616_v9 = vshrl.u32 %v4212_v54, 16  ;;  %v4253_v37 = vld [vmem:[%s4149_s7 + $0x78] sm:$0xf] }
  0x1f   : > { %3690 = vmatprep.mubr.msk.bf16.mxu0 %vm833_vm3, %v3306_v50  ;;  %v604_v60 = vsel %vm4194_vm4, %v599_v51, %v603_v35  ;;  %v614_v1 = vsel %vm4194_vm4, %v609_v55, %v613_v40  ;;  %v619_v14 = vshll.u32 %v4212_v54, 16  ;;  %v625_v18 = vshll.u32 %v4216_v59, 16  ;;  %5740 = vst [vmem:[#allocation6_spill] sm:$0xff] %v4253_v37  ;;  %v4261_v43 = vld [vmem:[%s5687_s2 + $0x10] sm:$0xf] }
  0x20   : > { %v440_v2 = vor.u32 %v439_v57, %v435_v56  ;;  %v445_v3 = vrot.slane %v443_v58, 5  ;;  %v4232_v11 = vcombine.low %v604_v60, %v614_v1  ;;  %v431_v12 = vrot.slane %v430_v61, 4  ;;  %v4266_v48 = vld [vmem:[%s4149_s7 + $0x7c] sm:$0xf]  ;;  %v4274_v58 = vld [vmem:[%s4149_s7 + $0x80] sm:$0x1] }
  0x21   : > { %v618_v20 = vrot.slane %v616_v9, 4  ;;  %v629_v21 = vshrl.u32 %v4216_v59, 16  ;;  %v635_v22 = vshll.u32 %v4224_v0, 16  ;;  %v621_v25 = vrot.slane %v619_v14, 5  ;;  %5742 = vst [vmem:[#allocation8_spill] sm:$0xff] %v4266_v48  ;;  %5743 = vst [vmem:[#allocation9_spill] sm:$0xff] %v4274_v58 }
  0x22   : > { %5739 = vst [vmem:[#allocation5_spill] sm:$0xff] %v4232_v11  ;;  %v441_v19 = vrot.slane %v440_v2, 4  ;;  %3706 = vmatprep.mubr.msk.bf16.mxu1 %vm833_vm3, %v4232_v11  ;;  %v436_v24 = vsel %vm4194_vm4, %v431_v12, %v435_v56  ;;  %v627_v26 = vrot.slane %v625_v18, 5  ;;  %v448_v28 = vshrl.u32 %v4230_v10, 16  ;;  %v4288_v18 = vld [vmem:[%s4149_s7 + $0x28] sm:$0xf] }
  0x23   : > { %v631_v33 = vrot.slane %v629_v21, 4  ;;  %v637_v34 = vrot.slane %v635_v22, 5  ;;  %v451_v35 = vshll.u32 %v4230_v10, 16  ;;  %v622_v39 = vor.u32 %v621_v25, %v618_v20 }
  0x24   : > { %v446_v29 = vsel %vm4194_vm4, %v441_v19, %v445_v3  ;;  %v450_v40 = vrot.slane %v448_v28, 4  ;;  %v457_v41 = vshll.u32 %v4239_v23, 16  ;;  %v461_v46 = vshrl.u32 %v4239_v23, 16  ;;  %v4280_v3 = vld [vmem:[%s4149_s7 + $0x24] sm:$0xf] }
  0x25   : > { %v4255_v38 = vcombine.low %v436_v24, %v446_v29  ;;  %v632_v44 = vor.u32 %v631_v33, %v627_v26  ;;  %v453_v45 = vrot.slane %v451_v35, 5  ;;  %v467_v47 = vshll.u32 %v4246_v27, 16  ;;  %v4296_v24 = vld [vmem:[%s5687_s2 + $0xc] sm:$0xf] }
  0x26   : > { %v623_v49 = vrot.slane %v622_v39, 4  ;;  %v459_v50 = vrot.slane %v457_v41, 5  ;;  %v640_v51 = vshrl.u32 %v4253_v37, 16  ;;  %v643_v52 = vshll.u32 %v4253_v37, 16  ;;  %v4301_v29 = vld [vmem:[%s4149_s7 + $0x2c] sm:$0x1] }
  0x27   : > { %5741 = vst [vmem:[#allocation7_spill] sm:$0xff] %v4255_v38  ;;  %3691 = vmatmul.mubr.msk.bf16.vlgmr.msra.gmra.mxu0 %vm833_vm3, %v4255_v38  ;;  %v633_v53 = vrot.slane %v632_v44, 4  ;;  %v454_v55 = vor.u32 %v453_v45, %v450_v40  ;;  %v463_v56 = vrot.slane %v461_v46, 4  ;;  %v469_v57 = vrot.slane %v467_v47, 5  ;;  %v4309_v41 = vld [vmem:[%s4149_s7 + $0x84] sm:$0xf] }
  0x28   : > { %3757 = vmatpush3.bf16.msra.mxu0 %v4155_v5  ;;  %v628_v60 = vsel %vm4194_vm4, %v623_v49, %v627_v26  ;;  %v642_v61 = vrot.slane %v640_v51, 4  ;;  %v645_v1 = vrot.slane %v643_v52, 5  ;;  %v649_v2 = vshll.u32 %v4266_v48, 16  ;;  %v4316_v49 = vld [vmem:[%s4149_s7 + $0x88] sm:$0xf] }
  0x29   : > { %4001 = vmatprep.subr.msk.bf16.mxu0 %vm882_vm0, %v4261_v43  ;;  %v638_v5 = vsel %vm4194_vm4, %v633_v53, %v637_v34  ;;  %v455_v9 = vrot.slane %v454_v55, 4  ;;  %v464_v12 = vor.u32 %v463_v56, %v459_v50  ;;  %v653_v14 = vshrl.u32 %v4266_v48, 16  ;;  %v4456_v38 = vld [vmem:[%s4149_s7 + $0xb0] sm:$0x1]  ;;  %v4478_v48 = vld [vmem:[%s4149_s7 + $0x5c] sm:$0x1] }
  0x2a   : > { %v4290_v19 = vcombine.low %v628_v60, %v638_v5  ;;  %v646_v20 = vor.u32 %v645_v1, %v642_v61  ;;  %v651_v21 = vrot.slane %v649_v2, 5  ;;  %v659_v22 = vshll.u32 %v4274_v58, 16  ;;  %5755 = vst [vmem:[#allocation21_spill] sm:$0xff] %v4456_v38 }
  0x2b   : > { %v460_v25 = vsel %vm4194_vm4, %v455_v9, %v459_v50  ;;  %v465_v26 = vrot.slane %v464_v12, 4  ;;  %v655_v28 = vrot.slane %v653_v14, 4  ;;  %v472_v33 = vshrl.u32 %v4280_v3, 16  ;;  %v4335_v9 = vld [vmem:[%s4149_s7 + $0x30] sm:$0xf] }
  0x2c   : > { %5744 = vst [vmem:[#allocation10_spill] sm:$0xff] %v4290_v19  ;;  %3707 = vmatmul.mubr.msk.bf16.vlgmr.msra.gmra.mxu1 %vm833_vm3, %v4290_v19  ;;  %v647_v34 = vrot.slane %v646_v20, 4  ;;  %v661_v35 = vrot.slane %v659_v22, 5  ;;  %v475_v39 = vshll.u32 %v4280_v3, 16  ;;  %v481_v40 = vshll.u32 %v4288_v18, 16 }
  0x2d   : > { %3723 = vmatpush3.bf16.msra.mxu1 %v4152_v4  ;;  %v470_v44 = vsel %vm4194_vm4, %v465_v26, %v469_v57  ;;  %v656_v45 = vor.u32 %v655_v28, %v651_v21  ;;  %v474_v46 = vrot.slane %v472_v33, 4  ;;  %v485_v47 = vshrl.u32 %v4288_v18, 16  ;;  %v4326_v57 = vld [vmem:[%s4149_s7 + $0x8c] sm:$0x1]  ;;  %v4340_v22 = vld [vmem:[%s4149_s7 + $0x34] sm:$0xf] }
  0x2e   : > { %v4318_v50 = vcombine.low %v460_v25, %v470_v44  ;;  %v652_v51 = vsel %vm4194_vm4, %v647_v34, %v651_v21  ;;  %v477_v52 = vrot.slane %v475_v39, 5  ;;  %v483_v53 = vrot.slane %v481_v40, 5  ;;  %4000 = vmatprep.subr.msk.bf16.mxu1 %vm882_vm0, %v4296_v24 }
  0x2f   : > { %v657_v4 = vrot.slane %v656_v45, 4  ;;  %v487_v55 = vrot.slane %v485_v47, 4  ;;  %v491_v56 = vshll.u32 %v4301_v29, 16  ;;  %v664_v60 = vshrl.u32 %v4309_v41, 16 }
  0x30   : > { %5745 = vst [vmem:[#allocation11_spill] sm:$0xff] %v4318_v50  ;;  %3694 = vmatprep.mubr.msk.bf16.mxu0 %vm833_vm3, %v4318_v50  ;;  %v478_v61 = vor.u32 %v477_v52, %v474_v46  ;;  %v667_v1 = vshll.u32 %v4309_v41, 16  ;;  %v673_v2 = vshll.u32 %v4316_v49, 16  ;;  %v677_v5 = vshrl.u32 %v4316_v49, 16  ;;  %v4351_v46 = vld [vmem:[%s4149_s7 + $0x38] sm:$0x1] }
  0x31   : > { %v662_v12 = vsel %vm4194_vm4, %v657_v4, %v661_v35  ;;  %v488_v14 = vor.u32 %v487_v55, %v483_v53  ;;  %v493_v20 = vrot.slane %v491_v56, 5  ;;  %v666_v21 = vrot.slane %v664_v60, 4  ;;  %v4356_v52 = vld [vmem:[%s4149_s7 + $0x90] sm:$0xf] }
  0x32   : > { %v4342_v25 = vcombine.low %v652_v51, %v662_v12  ;;  %v479_v26 = vrot.slane %v478_v61, 4  ;;  %v669_v28 = vrot.slane %v667_v1, 5  ;;  %v675_v33 = vrot.slane %v673_v2, 5  ;;  %v4361_v61 = vld [vmem:[%s4149_s7 + $0x94] sm:$0xf] }
  0x33   : > { %v489_v34 = vrot.slane %v488_v14, 4  ;;  %v679_v39 = vrot.slane %v677_v5, 4  ;;  %v683_v40 = vshll.u32 %v4326_v57, 16  ;;  %v496_v44 = vshrl.u32 %v4335_v9, 16 }
  0x34   : > { %5746 = vst [vmem:[#allocation12_spill] sm:$0xff] %v4342_v25  ;;  %3710 = vmatprep.mubr.msk.bf16.mxu1 %vm833_vm3, %v4342_v25  ;;  %v484_v35 = vsel %vm4194_vm4, %v479_v26, %v483_v53  ;;  %v670_v45 = vor.u32 %v669_v28, %v666_v21  ;;  %v499_v47 = vshll.u32 %v4335_v9, 16  ;;  %v505_v51 = vshll.u32 %v4340_v22, 16  ;;  %v4407_v25 = vld [vmem:[%s4149_s7 + $0xa0] sm:$0xf] }
  0x35   : > { %v494_v4 = vsel %vm4194_vm4, %v489_v34, %v493_v20  ;;  %v680_v55 = vor.u32 %v679_v39, %v675_v33  ;;  %v685_v56 = vrot.slane %v683_v40, 5  ;;  %v498_v60 = vrot.slane %v496_v44, 4  ;;  %v4373_v34 = vld [vmem:[%s4149_s7 + $0x98] sm:$0x1]  ;;  %v4378_v44 = vld [vmem:[%s4149_s7 + $0x3c] sm:$0xf] }
  0x36   : > { %v4363_v53 = vcombine.low %v484_v35, %v494_v4  ;;  %v671_v1 = vrot.slane %v670_v45, 4  ;;  %v501_v2 = vrot.slane %v499_v47, 5  ;;  %v507_v5 = vrot.slane %v505_v51, 5  ;;  %v4383_v4 = vld [vmem:[%s4149_s7 + $0x40] sm:$0xf] }
  0x37   : > { %v681_v12 = vrot.slane %v680_v55, 4  ;;  %v509_v14 = vshrl.u32 %v4340_v22, 16  ;;  %v515_v21 = vshll.u32 %v4351_v46, 16  ;;  %v688_v20 = vshrl.u32 %v4356_v52, 16 }
  0x38   : > { %5747 = vst [vmem:[#allocation13_spill] sm:$0xff] %v4363_v53  ;;  %3695 = vmatmul.mubr.msk.bf16.gmra.mxu0 %vm833_vm3, %v4363_v53  ;;  %v676_v26 = vsel %vm4194_vm4, %v671_v1, %v675_v33  ;;  %v502_v28 = vor.u32 %v501_v2, %v498_v60  ;;  %v691_v39 = vshll.u32 %v4356_v52, 16  ;;  %v697_v40 = vshll.u32 %v4361_v61, 16 }
  0x39   : > { %v686_v35 = vsel %vm4194_vm4, %v681_v12, %v685_v56  ;;  %v511_v45 = vrot.slane %v509_v14, 4  ;;  %v517_v47 = vrot.slane %v515_v21, 5  ;;  %v690_v51 = vrot.slane %v688_v20, 4  ;;  %v4395_v14 = vld [vmem:[%s4149_s7 + $0x44] sm:$0x1] }
  0x3a   : > { %v4385_v33 = vcombine.low %v676_v26, %v686_v35  ;;  %v503_v55 = vrot.slane %v502_v28, 4  ;;  %v693_v60 = vrot.slane %v691_v39, 5  ;;  %v699_v1 = vrot.slane %v697_v40, 5  ;;  %v4400_v26 = vld [vmem:[%s4149_s7 + $0x9c] sm:$0xf] }
  0x3b   : > { %v512_v2 = vor.u32 %v511_v45, %v507_v5  ;;  %v701_v36 = vshrl.u32 %v4361_v61, 16  ;;  %v707_v63 = vshll.u32 %v4373_v34, 16  ;;  %v520_v15 = vshrl.u32 %v4378_v44, 16 }
  0x3c   : > { %5748 = vst [vmem:[#allocation14_spill] sm:$0xff] %v4385_v33  ;;  %3711 = vmatmul.mubr.msk.bf16.gmra.mxu1 %vm833_vm3, %v4385_v33  ;;  %v508_v56 = vsel %vm4194_vm4, %v503_v55, %v507_v5  ;;  %v694_v12 = vor.u32 %v693_v60, %v690_v51  ;;  %v523_v21 = vshll.u32 %v4378_v44, 16  ;;  %v529_v20 = vshll.u32 %v4383_v4, 16 }
  0x3d   : > { %v513_v28 = vrot.slane %v512_v2, 4  ;;  %v703_v39 = vrot.slane %v701_v36, 4  ;;  %v709_v40 = vrot.slane %v707_v63, 5  ;;  %v522_v35 = vrot.slane %v520_v15, 4 }
  0x3e   : > { %v695_v45 = vrot.slane %v694_v12, 4  ;;  %v525_v62 = vrot.slane %v523_v21, 5  ;;  %v531_v33 = vrot.slane %v529_v20, 5  ;;  %v533_v5 = vshrl.u32 %v4383_v4, 16  ;;  %v4415_v21 = vld [vmem:[%s4149_s7 + $0xa4] sm:$0x1] }
  0x3f   : > { %v518_v51 = vsel %vm4194_vm4, %v513_v28, %v517_v47  ;;  %v704_v55 = vor.u32 %v703_v39, %v699_v1  ;;  %v539_v60 = vshll.u32 %v4395_v14, 16  ;;  %v712_v2 = vshrl.u32 %v4400_v26, 16  ;;  %5750 = vst [vmem:[#allocation16_spill] sm:$0xff] %v4415_v21  ;;  %v4418_v20 = vld [vmem:[%s4149_s7 + $0x48] sm:$0xf] }
  0x40   : > { %v4410_v36 = vcombine.low %v508_v56, %v518_v51  ;;  %v700_v15 = vsel %vm4194_vm4, %v695_v45, %v699_v1  ;;  %v526_v63 = vor.u32 %v525_v62, %v522_v35  ;;  %v535_v12 = vrot.slane %v533_v5, 4 }
  0x41   : > { %v705_v47 = vrot.slane %v704_v55, 4  ;;  %v541_v28 = vrot.slane %v539_v60, 5  ;;  %v714_v39 = vrot.slane %v712_v2, 4  ;;  %v715_v19 = vshll.u32 %v4400_v26, 16  ;;  %v4429_v55 = vld [vmem:[%s4149_s7 + $0x4c] sm:$0xf] }
  0x42   : > { %5749 = vst [vmem:[#allocation15_spill] sm:$0xff] %v4410_v36  ;;  %3698 = vmatprep.mubr.msk.bf16.mxu0 %vm833_vm3, %v4410_v36  ;;  %v527_v56 = vrot.slane %v526_v63, 4  ;;  %v536_v51 = vor.u32 %v535_v12, %v531_v33  ;;  %v721_v1 = vshll.u32 %v4407_v25, 16  ;;  %v725_v62 = vshrl.u32 %v4407_v25, 16  ;;  %v4437_v36 = vld [vmem:[%s4149_s7 + $0x50] sm:$0x1] }
  0x43   : > { %v710_v35 = vsel %vm4194_vm4, %v705_v47, %v709_v40  ;;  %v717_v45 = vrot.slane %v715_v19, 5  ;;  %v731_v5 = vshll.u32 %v4415_v21, 16  ;;  %v544_v60 = vshrl.u32 %v4418_v20, 16  ;;  %v4440_v47 = vld [vmem:[%s4149_s7 + $0xa8] sm:$0xf] }
  0x44   : > { %v4432_v2 = vcombine.low %v700_v15, %v710_v35  ;;  %v532_v63 = vsel %vm4194_vm4, %v527_v56, %v531_v33  ;;  %v537_v12 = vrot.slane %v536_v51, 4  ;;  %v723_v11 = vrot.slane %v721_v1, 5  ;;  %5752 = vst [vmem:[#allocation18_spill] sm:$0xff] %v4440_v47 }
  0x45   : > { %v718_v53 = vor.u32 %v717_v45, %v714_v39  ;;  %v727_v50 = vrot.slane %v725_v62, 4  ;;  %v733_v40 = vrot.slane %v731_v5, 5  ;;  %v546_v19 = vrot.slane %v544_v60, 4  ;;  %v4453_v45 = vld [vmem:[%s4149_s7 + $0xac] sm:$0xf] }
  0x46   : > { %5751 = vst [vmem:[#allocation17_spill] sm:$0xff] %v4432_v2  ;;  %3714 = vmatprep.mubr.msk.bf16.mxu1 %vm833_vm3, %v4432_v2  ;;  %v542_v15 = vsel %vm4194_vm4, %v537_v12, %v541_v28  ;;  %v547_v33 = vshll.u32 %v4418_v20, 16  ;;  %v553_v56 = vshll.u32 %v4429_v55, 16  ;;  %v557_v51 = vshrl.u32 %v4429_v55, 16  ;;  %5754 = vst [vmem:[#allocation20_spill] sm:$0xff] %v4453_v45 }
  0x47   : > { %v4449_v1 = vcombine.low %v532_v63, %v542_v15  ;;  %v719_v39 = vrot.slane %v718_v53, 4  ;;  %v728_v62 = vor.u32 %v727_v50, %v723_v11  ;;  %v563_v35 = vshll.u32 %v4437_v36, 16 }
  0x48   : > { %v549_v5 = vrot.slane %v547_v33, 5  ;;  %v555_v60 = vrot.slane %v553_v56, 5  ;;  %v559_v2 = vrot.slane %v557_v51, 4  ;;  %v736_v28 = vshrl.u32 %v4440_v47, 16  ;;  %v4466_v51 = vld [vmem:[%s4149_s7 + $0x54] sm:$0xf] }
  0x49   : > { %5753 = vst [vmem:[#allocation19_spill] sm:$0xff] %v4449_v1  ;;  %3699 = vmatmul.mubr.msk.bf16.gmra.mxu0 %vm833_vm3, %v4449_v1  ;;  %v724_v53 = vsel %vm4194_vm4, %v719_v39, %v723_v11  ;;  %v729_v50 = vrot.slane %v728_v62, 4  ;;  %v565_v63 = vrot.slane %v563_v35, 5  ;;  %v739_v12 = vshll.u32 %v4440_v47, 16  ;;  %v4473_v62 = vld [vmem:[%s4149_s7 + $0x58] sm:$0xf] }
  0x4a   : > { %v550_v15 = vor.u32 %v549_v5, %v546_v19  ;;  %v560_v58 = vor.u32 %v559_v2, %v555_v60  ;;  %v738_v33 = vrot.slane %v736_v28, 4  ;;  %v745_v56 = vshll.u32 %v4453_v45, 16 }
  0x4b   : > { %v734_v1 = vsel %vm4194_vm4, %v729_v50, %v733_v40  ;;  %v741_v37 = vrot.slane %v739_v12, 5  ;;  %v749_v11 = vshrl.u32 %v4453_v45, 16  ;;  %v755_v39 = vshll.u32 %v4456_v38, 16 }
  0x4c   : > { %v4475_v2 = vcombine.low %v724_v53, %v734_v1  ;;  %v551_v19 = vrot.slane %v550_v15, 4  ;;  %v561_v35 = vrot.slane %v560_v58, 4  ;;  %v747_v5 = vrot.slane %v745_v56, 5 }
  0x4d   : > { %v742_v28 = vor.u32 %v741_v37, %v738_v33  ;;  %v751_v0 = vrot.slane %v749_v11, 4  ;;  %v757_v54 = vrot.slane %v755_v39, 5  ;;  %v568_v40 = vshrl.u32 %v4466_v51, 16  ;;  %v4490_v37 = vld [vmem:[%s4149_s7 + $0xb4] sm:$0xf] }
  0x4e   : > { %5756 = vst [vmem:[#allocation22_spill] sm:$0xff] %v4475_v2  ;;  %3715 = vmatmul.mubr.msk.bf16.gmra.mxu1 %vm833_vm3, %v4475_v2  ;;  %v556_v50 = vsel %vm4194_vm4, %v551_v19, %v555_v60  ;;  %v566_v1 = vsel %vm4194_vm4, %v561_v35, %v565_v63  ;;  %v571_v58 = vshll.u32 %v4466_v51, 16  ;;  %v577_v53 = vshll.u32 %v4473_v62, 16  ;;  %5757 = vst [vmem:[#allocation23_spill] sm:$0xff] %v4490_v37  ;;  %v4495_v11 = vld [vmem:[%s4149_s7 + $0xb8] sm:$0xf] }
  0x4f   : > { %v4492_v12 = vcombine.low %v556_v50, %v566_v1  ;;  %v743_v15 = vrot.slane %v742_v28, 4  ;;  %v752_v33 = vor.u32 %v751_v0, %v747_v5  ;;  %v570_v56 = vrot.slane %v568_v40, 4 }
  0x50   : > { %v573_v39 = vrot.slane %v571_v58, 5  ;;  %v579_v2 = vrot.slane %v577_v53, 5  ;;  %v581_v60 = vshrl.u32 %v4473_v62, 16  ;;  %v587_v63 = vshll.u32 %v4478_v48, 16  ;;  %v4506_v58 = vld [vmem:[%s4149_s7 + $0xbc] sm:$0x1] }
  0x51   : > { %5758 = vst [vmem:[#allocation24_spill] sm:$0xff] %v4492_v12  ;;  %3702 = vmatprep.mubr.msk.bf16.mxu0 %vm833_vm3, %v4492_v12  ;;  %v748_v19 = vsel %vm4194_vm4, %v743_v15, %v747_v5  ;;  %v753_v35 = vrot.slane %v752_v33, 4  ;;  %v760_v28 = vshrl.u32 %v4490_v37, 16  ;;  %v763_v0 = vshll.u32 %v4490_v37, 16  ;;  %s3304_s7 = sshll.u32 %s5898_s28, 3 }
  0x52   : > { %v574_v40 = vor.u32 %v573_v39, %v570_v56  ;;  %v583_v50 = vrot.slane %v581_v60, 4  ;;  %v589_v1 = vrot.slane %v587_v63, 5  ;;  %v769_v53 = vshll.u32 %v4495_v11, 16  ;;  %s5507_s10 = scalar_lea.vmem %s5690_s5, %s3304_s7 }
  0x53   : > { %v758_v38 = vsel %vm4194_vm4, %v753_v35, %v757_v54  ;;  %v762_v47 = vrot.slane %v760_v28, 4  ;;  %v765_v12 = vrot.slane %v763_v0, 5  ;;  %v773_v45 = vshrl.u32 %v4495_v11, 16 }
  0x54   : > { %v4512_v5 = vcombine.low %v748_v19, %v758_v38  ;;  %v575_v15 = vrot.slane %v574_v40, 4  ;;  %v584_v33 = vor.u32 %v583_v50, %v579_v2  ;;  %v771_v21 = vrot.slane %v769_v53, 5 }
  0x55   : > { %v766_v37 = vor.u32 %v765_v12, %v762_v47  ;;  %v775_v56 = vrot.slane %v773_v45, 4  ;;  %v779_v39 = vshll.u32 %v4506_v58, 16  ;;  %v3370_v54 = vrot.slane %v4158_v6, 9 }
  0x56   : > { %3718 = vmatprep.mubr.msk.bf16.mxu1 %vm833_vm3, %v4512_v5  ;;  %v580_v38 = vsel %vm4194_vm4, %v575_v15, %v579_v2  ;;  %v585_v63 = vrot.slane %v584_v33, 4  ;;  %v1360_v47 = vrot.slane %v4161_v7, 5  ;;  %v4529_v45 = vcombine.low %v4187_v30, %v4190_v31 }
  0x57   : > { %v767_v12 = vrot.slane %v766_v37, 4  ;;  %v776_v19 = vor.u32 %v775_v56, %v771_v21  ;;  %v781_v35 = vrot.slane %v779_v39, 5  ;;  %v3371_v28 = vrot.slane %v4187_v30, 9 }
  0x58   : > { %v590_v0 = vsel %vm4194_vm4, %v585_v63, %v589_v1  ;;  %v1361_v40 = vsel %vm4517_vm7, %v3370_v54, %v1360_v47  ;;  %v1362_v50 = vrot.slane %v1360_v47, 4  ;;  %v5761_v2 = vrot.slane %v4190_v31, 5 }
  0x59   : > { %v4538_v15 = vcombine.low %v580_v38, %v590_v0  ;;  %v772_v33 = vsel %vm4194_vm4, %v767_v12, %v771_v21  ;;  %v777_v37 = vrot.slane %v776_v19, 4  ;;  %v5763_v1 = vrot.slane %v4164_v8, 5 }
  0x5a   : > { %v1369_v53 = vrot.slane %v5761_v2, 4  ;;  %v5762_v56 = vmov %v5761_v2  ;;  %v5764_v54 = vrot.slane %v4201_v42, 5  ;;  %v4556_v63 = vcombine.low %v4230_v10, %v4239_v23 }
  0x5b   : > { %v1368_v30 = vsel %vm4517_vm7, %v3371_v28, %v5762_v56  ;;  %v1364_v39 = vsel %vm4517_vm7, %v1362_v50, %v5763_v1  ;;  %v3372_v21 = vrot.slane %v4230_v10, 9  ;;  %3703 = vmatmul.mubr.msk.bf16.gmra.mxu0 %vm833_vm3, %v4538_v15  ;;  %v782_v8 = vsel %vm4194_vm4, %v777_v37, %v781_v35 }
  0x5c   : > { %v1371_v38 = vsel %vm4517_vm7, %v1369_v53, %v5764_v54  ;;  %v3387_v31 = vcombine.low %v1361_v40, %v1364_v39  ;;  %v1374_v42 = vrot.slane %v4239_v23, 5  ;;  %v4566_v12 = vcombine.low %v772_v33, %v782_v8 }
  0x5d   : > { %v4563_v47 = vcombine.low %v1368_v30, %v1371_v38  ;;  %v1377_v19 = vrot.slane %v4246_v27, 5  ;;  %v1381_v0 = vrot.slane %v4288_v18, 5  ;;  %v3373_v35 = vrot.slane %v4280_v3, 9 }
  0x5e   : > { %5765 = vst [vmem:[#allocation25_spill] sm:$0xff] %v4566_v12  ;;  %3758 = vmatprep.mubr.msk.bf16.mxu0 %vm833_vm3, %v3387_v31  ;;  %v1375_v10 = vsel %vm4517_vm7, %v3372_v21, %v1374_v42  ;;  %v1376_v28 = vrot.slane %v1374_v42, 4  ;;  %3719 = vmatmul.mubr.msk.bf16.gmra.mxu1 %vm833_vm3, %v4566_v12  ;;  %v3374_v40 = vrot.slane %v4335_v9, 9  ;;  %v1388_v23 = vrot.slane %v4340_v22, 5 }
  0x5f   : > { %v5766_v27 = vcombine.low %v4158_v6, %v4161_v7  ;;  %v1383_v2 = vrot.slane %v1381_v0, 4  ;;  %v1384_v53 = vrot.slane %v4301_v29, 5  ;;  %v1391_v33 = vrot.slane %v4351_v46, 5  ;;  %v4601_v46 = vld [vmem:[%s5687_s2 + $0x18] sm:$0xf] }
  0x60   : > { %v1378_v50 = vsel %vm4517_vm7, %v1376_v28, %v1377_v19  ;;  %v1390_v56 = vrot.slane %v1388_v23, 4  ;;  %v2003_v30 = vsel %vm882_vm0, %v4261_v43, 0  ;;  %v1395_v1 = vrot.slane %v4383_v4, 5  ;;  %v4618_v19 = vld [vmem:[%s5687_s2 + $0x14] sm:$0xf] }
  0x61   : > { %3724 = vmatprep.mubr.msk.bf16.mxu1 %vm833_vm3, %v5766_v27  ;;  %v4586_v37 = vcombine.low %v1375_v10, %v1378_v50  ;;  %v1775_v6 = vsel %vm882_vm0, %v4296_v24, 0  ;;  %v1382_v7 = vsel %vm4517_vm7, %v3373_v35, %v1381_v0  ;;  %v1389_v39 = vsel %vm4517_vm7, %v3374_v40, %v1388_v23 }
  0x62   : > { %v1402_v29 = vrot.slane %v4429_v55, 5  ;;  %v1385_v43 = vsel %vm4517_vm7, %v1383_v2, %v1384_v53  ;;  %v1392_v24 = vsel %vm4517_vm7, %v1390_v56, %v1391_v33  ;;  %v3375_v54 = vrot.slane %v4378_v44, 9 }
  0x63   : > { %3759 = vmatmul.mubr.msk.bf16.vlgmr.msra.gmra.mxu0 %vm833_vm3, %v4563_v47  ;;  %v1398_v38 = vrot.slane %v4395_v14, 5  ;;  %v1397_v21 = vrot.slane %v1395_v1, 4  ;;  %v3376_v8 = vrot.slane %v4418_v20, 9  ;;  %v1405_v42 = vrot.slane %v4437_v36, 5 }
  0x64   : > { %3825 = vmatpush3.bf16.msra.mxu0 %v2003_v30  ;;  %3762 = vmatprep.mubr.msk.bf16.mxu0 %vm833_vm3, %v4586_v37  ;;  %v1404_v31 = vrot.slane %v1402_v29, 4  ;;  %v4626_v14 = vcombine.low %v1382_v7, %v1385_v43  ;;  %v4628_v10 = vcombine.low %v1389_v39, %v1392_v24  ;;  %v1396_v36 = vsel %vm4517_vm7, %v3375_v54, %v1395_v1 }
  0x65   : > { %4003 = vmatprep.subr.msk.bf16.mxu0 %vm882_vm0, %v4601_v46  ;;  %v1399_v28 = vsel %vm4517_vm7, %v1397_v21, %v1398_v38  ;;  %v1403_v0 = vsel %vm4517_vm7, %v3376_v8, %v1402_v29  ;;  %v1409_v40 = vrot.slane %v4473_v62, 5  ;;  %v1419_v23 = vrot.slane %v4179_v17, 5  ;;  %v5767_v8 = vld [vmem:[#allocation16_spill] sm:$0xff] }
  0x66   : > { %3725 = vmatmul.mubr.msk.bf16.vlgmr.msra.gmra.mxu1 %vm833_vm3, %v4529_v45  ;;  %v1406_v35 = vsel %vm4517_vm7, %v1404_v31, %v1405_v42  ;;  %v3377_v27 = vrot.slane %v4466_v51, 9  ;;  %v3378_v50 = vrot.slane %v4171_v13, 9  ;;  %v1416_v2 = vrot.slane %v4176_v16, 5  ;;  %v5768_v42 = vld [vmem:[#allocation20_spill] sm:$0xff] }
  0x67   : > { %3791 = vmatpush3.bf16.msra.mxu1 %v1775_v6  ;;  %3728 = vmatprep.mubr.msk.bf16.mxu1 %vm833_vm3, %v4556_v63  ;;  %v4647_v53 = vcombine.low %v4280_v3, %v4288_v18  ;;  %v4651_v33 = vcombine.low %v4335_v9, %v4340_v22  ;;  %v4655_v56 = vcombine.low %v4378_v44, %v4383_v4  ;;  %v1412_v3 = vrot.slane %v4478_v48, 5 }
  0x68   : > { %4002 = vmatprep.subr.msk.bf16.mxu1 %vm882_vm0, %v4618_v19  ;;  %v4659_v17 = vcombine.low %v4418_v20, %v4429_v55  ;;  %v4663_v30 = vcombine.low %v1396_v36, %v1399_v28  ;;  %v4665_v1 = vcombine.low %v1403_v0, %v1406_v35  ;;  %v4670_v18 = vcombine.low %v4309_v41, %v4316_v49  ;;  %v5769_v36 = vld [vmem:[#allocation18_spill] sm:$0xff] }
  0x69   : > { %v1411_v9 = vrot.slane %v1409_v40, 4  ;;  %v3381_v22 = vrot.slane %v4309_v41, 9  ;;  %v1437_v44 = vrot.slane %v4316_v49, 5  ;;  %v1440_v4 = vrot.slane %v4326_v57, 5 }
  0x6a   : > { %v1410_v20 = vsel %vm4517_vm7, %v3377_v27, %v1409_v40  ;;  %v1417_v48 = vsel %vm4517_vm7, %v3378_v50, %v1416_v2  ;;  %v1418_v55 = vrot.slane %v1416_v2, 4  ;;  %v4683_v6 = vcombine.low %v4356_v52, %v4361_v61  ;;  %v5770_v40 = vld [vmem:[#allocation21_spill] sm:$0xff] }
  0x6b   : > { %3763 = vmatmul.mubr.msk.bf16.gmra.mxu0 %vm833_vm3, %v4626_v14  ;;  %v1438_v41 = vsel %vm4517_vm7, %v3381_v22, %v1437_v44  ;;  %v1439_v49 = vrot.slane %v1437_v44, 4  ;;  %v3382_v57 = vrot.slane %v4356_v52, 9  ;;  %v1444_v7 = vrot.slane %v4361_v61, 5 }
  0x6c   : > { %3766 = vmatprep.mubr.msk.bf16.mxu0 %vm833_vm3, %v4628_v10  ;;  %v1423_v39 = vrot.slane %v4216_v59, 5  ;;  %v1447_v29 = vrot.slane %v4373_v34, 5  ;;  %v4697_v43 = vcombine.low %v4400_v26, %v4407_v25  ;;  %v3383_v24 = vrot.slane %v4400_v26, 9 }
  0x6d   : > { %v1413_v54 = vsel %vm4517_vm7, %v1411_v9, %v1412_v3  ;;  %v1441_v52 = vsel %vm4517_vm7, %v1439_v49, %v1440_v4  ;;  %v1445_v61 = vsel %vm4517_vm7, %v3382_v57, %v1444_v7  ;;  %v1446_v38 = vrot.slane %v1444_v7, 4  ;;  %v5771_v3 = vld [vmem:[#allocation23_spill] sm:$0xff]  ;;  %v5772_v57 = vld [vmem:[#allocation8_spill] sm:$0xff] }
  0x6e   : > { %3729 = vmatmul.mubr.msk.bf16.gmra.mxu1 %vm833_vm3, %v4647_v53  ;;  %v4706_v21 = vcombine.low %v1438_v41, %v1441_v52  ;;  %v1451_v34 = vrot.slane %v4407_v25, 5  ;;  %v1454_v31 = vrot.slane %v5767_v8, 5  ;;  %v4712_v28 = vcombine.low %v5769_v36, %v5768_v42 }
  0x6f   : > { %3732 = vmatprep.mubr.msk.bf16.mxu1 %vm833_vm3, %v4651_v33  ;;  %v1448_v26 = vsel %vm4517_vm7, %v1446_v38, %v1447_v29  ;;  %v3384_v0 = vrot.slane %v5769_v36, 9  ;;  %v1458_v35 = vrot.slane %v5768_v42, 5  ;;  %v1461_v27 = vrot.slane %v5770_v40, 5  ;;  %v5774_v42 = vld [vmem:[#allocation4_spill] sm:$0xff] }
  0x70   : > { %v4721_v50 = vcombine.low %v1445_v61, %v1448_v26  ;;  %v1452_v25 = vsel %vm4517_vm7, %v3383_v24, %v1451_v34  ;;  %v1453_v2 = vrot.slane %v1451_v34, 4  ;;  %v4727_v9 = vcombine.low %v5771_v3, %v4495_v11 }
  0x71   : > { %v1459_v22 = vsel %vm4517_vm7, %v3384_v0, %v1458_v35  ;;  %v1460_v44 = vrot.slane %v1458_v35, 4  ;;  %v3385_v4 = vrot.slane %v5771_v3, 9  ;;  %v1465_v41 = vrot.slane %v4495_v11, 5  ;;  %v5775_v0 = vld [vmem:[#allocation6_spill] sm:$0xff] }
  0x72   : > { %v1420_v49 = vsel %vm4517_vm7, %v1418_v55, %v1419_v23  ;;  %v1430_v7 = vrot.slane %v5772_v57, 5  ;;  %v1455_v29 = vsel %vm4517_vm7, %v1453_v2, %v1454_v31  ;;  %v1468_v24 = vrot.slane %v4506_v58, 5  ;;  %v5773_v55 = vld [vmem:[#allocation3_spill] sm:$0xff] }
  0x73   : > { %3767 = vmatmul.mubr.msk.bf16.gmra.mxu0 %vm833_vm3, %v4663_v30  ;;  %v4743_v52 = vcombine.low %v1452_v25, %v1455_v29  ;;  %v1462_v61 = vsel %vm4517_vm7, %v1460_v44, %v1461_v27  ;;  %v1466_v11 = vsel %vm4517_vm7, %v3385_v4, %v1465_v41  ;;  %v1467_v38 = vrot.slane %v1465_v41, 4  ;;  %v5776_v27 = vld [vmem:[#allocation9_spill] sm:$0xff]  ;;  %v4837_v4 = vld [vmem:[%s4824_s23] sm:$0xf]  ;;  %v391_v41 = vld [vmem:[%s4824_s23 + $0x8] sm:$0x1] }
  0x74   : > { %3770 = vmatprep.mubr.msk.bf16.mxu0 %vm833_vm3, %v4665_v1  ;;  %v4751_v23 = vcombine.low %v1410_v20, %v1413_v54  ;;  %v3379_v34 = vrot.slane %v5773_v55, 9  ;;  %v4754_v58 = vcombine.low %v1459_v22, %v1462_v61  ;;  %v4756_v8 = vcombine.low %v1417_v48, %v1420_v49  ;;  %v5777_v61 = vld [vmem:[#allocation7_spill] sm:$0xff] }
  0x75   : > { %v1425_v31 = vrot.slane %v1423_v39, 4  ;;  %v1426_v36 = vrot.slane %v5774_v42, 5  ;;  %v1469_v26 = vsel %vm4517_vm7, %v1467_v38, %v1468_v24  ;;  %v3380_v35 = vrot.slane %v5775_v0, 9  ;;  %v5779_v42 = vld [vmem:[#allocation13_spill] sm:$0xff] }
  0x76   : > { %3733 = vmatmul.mubr.msk.bf16.gmra.mxu1 %vm833_vm3, %v4655_v56  ;;  %v1432_v40 = vrot.slane %v1430_v7, 4  ;;  %v1433_v25 = vrot.slane %v5776_v27, 5  ;;  %v4763_v2 = vcombine.low %v1466_v11, %v1469_v26  ;;  %v4767_v20 = vcombine.low %v4466_v51, %v4473_v62  ;;  %v5783_v26 = vld [vmem:[#allocation5_spill] sm:$0xff] }
  0x77   : > { %3736 = vmatprep.mubr.msk.bf16.mxu1 %vm833_vm3, %v4659_v17  ;;  %v4773_v48 = vcombine.low %v4171_v13, %v4176_v16  ;;  %v1424_v54 = vsel %vm4517_vm7, %v3379_v34, %v1423_v39  ;;  %v1427_v3 = vsel %vm4517_vm7, %v1425_v31, %v1426_v36  ;;  %v1431_v51 = vsel %vm4517_vm7, %v3380_v35, %v1430_v7  ;;  %v5778_v34 = vld [vmem:[#allocation11_spill] sm:$0xff]  ;;  %v5782_v36 = vld [vmem:[#allocation24_spill] sm:$0xff] }
  0x78   : > { %v1434_v62 = vsel %vm4517_vm7, %v1432_v40, %v1433_v25  ;;  %v4789_v13 = vcombine.low %v1424_v54, %v1427_v3  ;;  %v4795_v39 = vcombine.low %v5773_v55, %v4216_v59  ;;  %v4801_v22 = vcombine.low %v5775_v0, %v5772_v57  ;;  %v4831_v59 = vld [vmem:[%s4824_s23 + $0x4] sm:$0xf]  ;;  %v3511_v55 = vld [vmem:[%s5687_s2 + $0x20] sm:$0xf]  ;;  %v5785_v35 = vld [vmem:[#allocation12_spill] sm:$0xff] }
  0x79   : > { %v4791_v16 = vcombine.low %v1431_v51, %v1434_v62  ;;  %v2201_v44 = vrot.slane %v4831_v59, 5  ;;  %v3455_v49 = vrot.slane %v4837_v4, 9  ;;  %v2204_v7 = vrot.slane %v391_v41, 5  ;;  %v5784_v0 = vld [vmem:[#allocation10_spill] sm:$0xff] }
  0x7a   : > { %v2421_v38 = vsel %vm882_vm0, %v4601_v46, 0  ;;  %v2215_v31 = vsel %vm882_vm0, %v4618_v19, 0  ;;  %v5780_v46 = vld [vmem:[#allocation15_spill] sm:$0xff]  ;;  %v5786_v40 = vld [vmem:[#allocation14_spill] sm:$0xff]  ;;  %v1971_v27 = vshrl.u32 %v4837_v4, 16  ;;  %v1974_v25 = vshll.u32 %v4837_v4, 16 }
  0x7b   : > { %3771 = vmatmul.mubr.msk.bf16.gmra.mxu0 %vm833_vm3, %v4751_v23  ;;  %v2203_v57 = vrot.slane %v2201_v44, 4  ;;  %v2202_v29 = vsel %vm4517_vm7, %v3455_v49, %v2201_v44  ;;  %v5781_v19 = vld [vmem:[#allocation19_spill] sm:$0xff]  ;;  %v1984_v54 = vshrl.u32 %v4831_v59, 16  ;;  %v1980_v3 = vshll.u32 %v4831_v59, 16 }
  0x7c   : > { %3774 = vmatprep.mubr.msk.bf16.mxu0 %vm833_vm3, %v4756_v8  ;;  %v1973_v51 = vrot.slane %v1971_v27, 4  ;;  %v1976_v62 = vrot.slane %v1974_v25, 5 }
  0x7d   : > { %v2205_v24 = vsel %vm4517_vm7, %v2203_v57, %v2204_v7  ;;  %v1982_v44 = vrot.slane %v1980_v3, 5  ;;  %v1986_v49 = vrot.slane %v1984_v54, 4  ;;  %v5787_v57 = vld [vmem:[#allocation17_spill] sm:$0xff]  ;;  %v5788_v7 = vld [vmem:[#allocation22_spill] sm:$0xff]  ;;  %v3420_v3 = vcombine.low %v4837_v4, %v4831_v59 }
  0x7e   : > { %3737 = vmatmul.mubr.msk.bf16.gmra.mxu1 %vm833_vm3, %v4767_v20  ;;  %v4849_v11 = vcombine.low %v2202_v29, %v2205_v24  ;;  %v1977_v29 = vor.u32 %v1976_v62, %v1973_v51  ;;  %v2861_v51 = vsel %vm882_vm0, %v3511_v55, 0 }
  0x7f   : > { %3740 = vmatprep.mubr.msk.bf16.mxu1 %vm833_vm3, %v4773_v48  ;;  %v1987_v24 = vor.u32 %v1986_v49, %v1982_v44 }
  0x83   : > { %3775 = vmatmul.mubr.msk.bf16.gmra.mxu0 %vm833_vm3, %v4789_v13 }
  0x84   : > { %3778 = vmatprep.mubr.msk.bf16.mxu0 %vm833_vm3, %v4791_v16 }
  0x86   : > { %3741 = vmatmul.mubr.msk.bf16.gmra.mxu1 %vm833_vm3, %v4795_v39 }
  0x87   : > { %3744 = vmatprep.mubr.msk.bf16.mxu1 %vm833_vm3, %v4801_v22 }
  0x8b   : > { %3779 = vmatmul.mubr.msk.bf16.gmra.mxu0 %vm833_vm3, %v4706_v21 }
  0x8c   : > { %3782 = vmatprep.mubr.msk.bf16.mxu0 %vm833_vm3, %v4721_v50 }
  0x8e   : > { %3745 = vmatmul.mubr.msk.bf16.gmra.mxu1 %vm833_vm3, %v4670_v18 }
  0x8f   : > { %3748 = vmatprep.mubr.msk.bf16.mxu1 %vm833_vm3, %v4683_v6 }
  0x93   : > { %3783 = vmatmul.mubr.msk.bf16.gmra.mxu0 %vm833_vm3, %v4743_v52 }
  0x94   : > { %3786 = vmatprep.mubr.msk.bf16.mxu0 %vm833_vm3, %v4754_v58 }
  0x96   : > { %3749 = vmatmul.mubr.msk.bf16.gmra.mxu1 %vm833_vm3, %v4697_v43 }
  0x97   : > { %3752 = vmatprep.mubr.msk.bf16.mxu1 %vm833_vm3, %v4712_v28 }
  0x9b   : > { %3787 = vmatmul.mubr.msk.bf16.gmra.mxu0 %vm833_vm3, %v4763_v2 }
  0x9c   : > { %3826 = vmatprep.mubr.msk.bf16.mxu0 %vm833_vm3, %v5777_v61  ;;  %v1990_v61 = vshll.u32 %v391_v41, 16 }
  0x9e   : > { %3753 = vmatmul.mubr.msk.bf16.gmra.mxu1 %vm833_vm3, %v4727_v9  ;;  %v1992_v27 = vrot.slane %v1990_v61, 5  ;;  %v5041_v61 = vld [vmem:[%s4824_s23 + $0x10] sm:$0xf] }
  0x9f   : > { %3792 = vmatprep.mubr.msk.bf16.mxu1 %vm833_vm3, %v4529_v45  ;;  %v3492_v45 = vld [vmem:[%s5687_s2 + $0x1c] sm:$0xf] }
  0xa0   : > { %v2649_v62 = vsel %vm882_vm0, %v3492_v45, 0 }
  0xa3   : > { %3827 = vmatmul.mubr.msk.bf16.vlgmr.msra.gmra.mxu0 %vm833_vm3, %v5778_v34 }
  0xa4   : > { %3893 = vmatpush3.bf16.msra.mxu0 %v2421_v38  ;;  %3830 = vmatprep.mubr.msk.bf16.mxu0 %vm833_vm3, %v5779_v42  ;;  %v1978_v38 = vrot.slane %v1977_v29, 4 }
  0xa5   : > { %4005 = vmatprep.subr.msk.bf16.mxu0 %vm882_vm0, %v3511_v55 }
  0xa6   : > { %3793 = vmatmul.mubr.msk.bf16.vlgmr.msra.gmra.mxu1 %vm833_vm3, %v4556_v63  ;;  %v1983_v25 = vsel %vm4194_vm4, %v1978_v38, %v1982_v44 }
  0xa7   : > { %3859 = vmatpush3.bf16.msra.mxu1 %v2215_v31  ;;  %3796 = vmatprep.mubr.msk.bf16.mxu1 %vm833_vm3, %v4647_v53  ;;  %v1988_v31 = vrot.slane %v1987_v24, 4 }
  0xa8   : > { %4004 = vmatprep.subr.msk.bf16.mxu1 %vm882_vm0, %v3492_v45 }
  0xa9   : > { %v1993_v41 = vsel %vm4194_vm4, %v1988_v31, %v1992_v27 }
  0xaa   : > { %v4931_v54 = vcombine.low %v1983_v25, %v1993_v41 }
  0xab   : > { %3831 = vmatmul.mubr.msk.bf16.gmra.mxu0 %vm833_vm3, %v5780_v46 }
  0xac   : > { %3834 = vmatprep.mubr.msk.bf16.mxu0 %vm833_vm3, %v5781_v19  ;;  %5789 = vst [vmem:[#allocation16_spill] sm:$0xff] %v4931_v54 }
  0xae   : > { %3797 = vmatmul.mubr.msk.bf16.gmra.mxu1 %vm833_vm3, %v4651_v33 }
  0xaf   : > { %3800 = vmatprep.mubr.msk.bf16.mxu1 %vm833_vm3, %v4655_v56 }
  0xb3   : > { %3835 = vmatmul.mubr.msk.bf16.gmra.mxu0 %vm833_vm3, %v5782_v36 }
  0xb4   : > { %3838 = vmatprep.mubr.msk.bf16.mxu0 %vm833_vm3, %v4538_v15 }
  0xb6   : > { %3801 = vmatmul.mubr.msk.bf16.gmra.mxu1 %vm833_vm3, %v4659_v17 }
  0xb7   : > { %3804 = vmatprep.mubr.msk.bf16.mxu1 %vm833_vm3, %v4767_v20 }
  0xbb   : > { %3839 = vmatmul.mubr.msk.bf16.gmra.mxu0 %vm833_vm3, %v5783_v26 }
  0xbc   : > { %3842 = vmatprep.mubr.msk.bf16.mxu0 %vm833_vm3, %v5784_v0 }
  0xbe   : > { %3805 = vmatmul.mubr.msk.bf16.gmra.mxu1 %vm833_vm3, %v4773_v48 }
  0xbf   : > { %3808 = vmatprep.mubr.msk.bf16.mxu1 %vm833_vm3, %v4795_v39 }
  0xc3   : > { %3843 = vmatmul.mubr.msk.bf16.gmra.mxu0 %vm833_vm3, %v5785_v35 }
  0xc4   : > { %3846 = vmatprep.mubr.msk.bf16.mxu0 %vm833_vm3, %v5786_v40 }
  0xc6   : > { %3809 = vmatmul.mubr.msk.bf16.gmra.mxu1 %vm833_vm3, %v4801_v22 }
  0xc7   : > { %3812 = vmatprep.mubr.msk.bf16.mxu1 %vm833_vm3, %v4670_v18 }
  0xcb   : > { %3847 = vmatmul.mubr.msk.bf16.gmra.mxu0 %vm833_vm3, %v5787_v57 }
  0xcc   : > { %3850 = vmatprep.mubr.msk.bf16.mxu0 %vm833_vm3, %v5788_v7 }
  0xce   : > { %3813 = vmatmul.mubr.msk.bf16.gmra.mxu1 %vm833_vm3, %v4683_v6 }
  0xcf   : > { %3816 = vmatprep.mubr.msk.bf16.mxu1 %vm833_vm3, %v4697_v43 }
  0xd3   : > { %3851 = vmatmul.mubr.msk.bf16.gmra.mxu0 %vm833_vm3, %v4512_v5 }
  0xd4   : > { %3854 = vmatprep.mubr.msk.bf16.mxu0 %vm833_vm3, %v4566_v12 }
  0xd6   : > { %3817 = vmatmul.mubr.msk.bf16.gmra.mxu1 %vm833_vm3, %v4712_v28 }
  0xd7   : > { %3820 = vmatprep.mubr.msk.bf16.mxu1 %vm833_vm3, %v4727_v9 }
  0xdb   : > { %3855 = vmatmul.mubr.msk.bf16.gmra.mxu0 %vm833_vm3, %v4931_v54 }
  0xdc   : > { %3894 = vmatprep.mubr.msk.bf16.mxu0 %vm833_vm3, %v4556_v63 }
  0xde   : > { %3821 = vmatmul.mubr.msk.bf16.gmra.mxu1 %vm833_vm3, %v3420_v3 }
  0xdf   : > { %3860 = vmatprep.mubr.msk.bf16.mxu1 %vm833_vm3, %v4563_v47 }
  0xe3   : > { %3895 = vmatmul.mubr.msk.bf16.vlgmr.msra.gmra.mxu0 %vm833_vm3, %v4647_v53 }
  0xe4   : > { %3961 = vmatpush3.bf16.msra.mxu0 %v2861_v51  ;;  %3898 = vmatprep.mubr.msk.bf16.mxu0 %vm833_vm3, %v4651_v33 }
  0xe6   : > { %3861 = vmatmul.mubr.msk.bf16.vlgmr.msra.gmra.mxu1 %vm833_vm3, %v4586_v37 }
  0xe7   : > { %3927 = vmatpush3.bf16.msra.mxu1 %v2649_v62  ;;  %3864 = vmatprep.mubr.msk.bf16.mxu1 %vm833_vm3, %v4626_v14  ;;  %v4954_v63 = vpop.f32.mrf.mxu0 }
  0xe9   : > { %v4964_v53 = vpop.f32.mrf.mxu0 }
  0xeb   : > { %3899 = vmatmul.mubr.msk.bf16.gmra.mxu0 %vm833_vm3, %v4655_v56  ;;  %v4970_v56 = vpop.f32.mrf.mxu0 }
  0xec   : > { %3902 = vmatprep.mubr.msk.bf16.mxu0 %vm833_vm3, %v4659_v17  ;;  %v4960_v47 = vpop.f32.mrf.mxu1 }
  0xed   : > { %v4980_v59 = vpop.f32.mrf.mxu0 }
  0xee   : > { %3865 = vmatmul.mubr.msk.bf16.gmra.mxu1 %vm833_vm3, %v4628_v10  ;;  %v4966_v33 = vpop.f32.mrf.mxu1 }
  0xef   : > { %3868 = vmatprep.mubr.msk.bf16.mxu1 %vm833_vm3, %v4663_v30 }
  0xf0   : > { %v4976_v17 = vpop.f32.mrf.mxu1 }
  0xf2   : > { %v4982_v4 = vpop.f32.mrf.mxu1 }
  0xf3   : > { %3903 = vmatmul.mubr.msk.bf16.gmra.mxu0 %vm833_vm3, %v4767_v20 }
  0xf4   : > { %3906 = vmatprep.mubr.msk.bf16.mxu0 %vm833_vm3, %v4773_v48 }
  0xf6   : > { %3869 = vmatmul.mubr.msk.bf16.gmra.mxu1 %vm833_vm3, %v4665_v1 }
  0xf7   : > { %3872 = vmatprep.mubr.msk.bf16.mxu1 %vm833_vm3, %v4751_v23 }
  0xf8   : > { %v4986_v20 = vpop.f32.mrf.mxu0 }
  0xfa   : > { %v4996_v55 = vpop.f32.mrf.mxu0 }
  0xfb   : > { %3907 = vmatmul.mubr.msk.bf16.gmra.mxu0 %vm833_vm3, %v4795_v39 }
  0xfc   : > { %3910 = vmatprep.mubr.msk.bf16.mxu0 %vm833_vm3, %v4801_v22  ;;  %v4992_v48 = vpop.f32.mrf.mxu1  ;;  %v5002_v39 = vpop.f32.mrf.mxu0 }
  0xfe   : > { %3873 = vmatmul.mubr.msk.bf16.gmra.mxu1 %vm833_vm3, %v4756_v8  ;;  %v4998_v45 = vpop.f32.mrf.mxu1  ;;  %v5012_v44 = vpop.f32.mrf.mxu0 }
  0xff   : > { %3876 = vmatprep.mubr.msk.bf16.mxu1 %vm833_vm3, %v4789_v13 }
 0x100   : > { %v5008_v22 = vpop.f32.mrf.mxu1 }
 0x102   : > { %v5014_v49 = vpop.f32.mrf.mxu1 }
 0x103   : > { %3911 = vmatmul.mubr.msk.bf16.gmra.mxu0 %vm833_vm3, %v4670_v18 }
 0x104   : > { %3914 = vmatprep.mubr.msk.bf16.mxu0 %vm833_vm3, %v4683_v6 }
 0x106   : > { %3877 = vmatmul.mubr.msk.bf16.gmra.mxu1 %vm833_vm3, %v4791_v16 }
 0x107   : > { %3880 = vmatprep.mubr.msk.bf16.mxu1 %vm833_vm3, %v4706_v21 }
 0x109   : > { %v5018_v18 = vpop.f32.mrf.mxu0 }
 0x10b   : > { %3915 = vmatmul.mubr.msk.bf16.gmra.mxu0 %vm833_vm3, %v4697_v43  ;;  %v5028_v29 = vpop.f32.mrf.mxu0 }
 0x10c   : > { %3918 = vmatprep.mubr.msk.bf16.mxu0 %vm833_vm3, %v4712_v28  ;;  %v5038_v28 = vld [vmem:[%s4824_s23 + $0xc] sm:$0xf] }
 0x10d   : > { %v5034_v43 = vpop.f32.mrf.mxu0 }
 0x10e   : > { %3881 = vmatmul.mubr.msk.bf16.gmra.mxu1 %vm833_vm3, %v4721_v50  ;;  %v5024_v6 = vpop.f32.mrf.mxu1 }
 0x10f   : > { %5790 = vst [vmem:[#allocation20_spill] sm:$0xff] %v5024_v6  ;;  %3884 = vmatprep.mubr.msk.bf16.mxu1 %vm833_vm3, %v4743_v52  ;;  %v5047_v31 = vpop.f32.mrf.mxu0 }
 0x110   : > { %v5030_v24 = vpop.f32.mrf.mxu1 }
 0x111   : > { %5791 = vst [vmem:[#allocation18_spill] sm:$0xff] %v5030_v24 }
 0x112   : > { %v5045_v38 = vpop.f32.mrf.mxu1 }
 0x113   : > { %3919 = vmatmul.mubr.msk.bf16.gmra.mxu0 %vm833_vm3, %v4727_v9  ;;  %5792 = vst [vmem:[#allocation21_spill] sm:$0xff] %v5045_v38  ;;  %v3475_v9 = vcombine.low %v5038_v28, %v5041_v61 }
 0x114   : > { %3922 = vmatprep.mubr.msk.bf16.mxu0 %vm833_vm3, %v3420_v3  ;;  %v5053_v27 = vpop.f32.mrf.mxu1 }
 0x115   : > { %5793 = vst [vmem:[#allocation23_spill] sm:$0xff] %v5053_v27 }
 0x116   : > { %3885 = vmatmul.mubr.msk.bf16.gmra.mxu1 %vm833_vm3, %v4754_v58 }
 0x117   : > { %3888 = vmatprep.mubr.msk.bf16.mxu1 %vm833_vm3, %v4763_v2 }
 0x11b   : > { %v5055_v25 = vpop.f32.mrf.mxu0  ;;  %3923 = vmatmul.mubr.msk.bf16.gmra.mxu0 %vm833_vm3, %v3475_v9 }
 0x11c   : > { %3962 = vmatprep.mubr.msk.bf16.mxu0 %vm833_vm3, %v4586_v37 }
 0x11d   : > { %v5060_v41 = vpop.f32.mrf.mxu0 }
 0x11e   : > { %v5062_v3 = vpop.f32.mrf.mxu1  ;;  %3889 = vmatmul.mubr.msk.bf16.gmra.mxu1 %vm833_vm3, %v4849_v11 }
 0x11f   : > { %5794 = vst [vmem:[#allocation8_spill] sm:$0xff] %v5062_v3  ;;  %v5066_v51 = vpop.f32.mrf.mxu0  ;;  %3928 = vmatprep.mubr.msk.bf16.mxu1 %vm833_vm3, %v5778_v34 }
 0x120   : > { %v5070_v62 = vpop.f32.mrf.mxu1 }
 0x121   : > { %5795 = vst [vmem:[#allocation3_spill] sm:$0xff] %v5070_v62  ;;  %v5072_v27 = vpop.f32.mrf.mxu0 }
 0x122   : > { %v5074_v9 = vpop.f32.mrf.mxu1 }
 0x123   : > { %5796 = vst [vmem:[#allocation4_spill] sm:$0xff] %v5074_v9  ;;  %v3760_v38 = vpop.f32.mrf.mxu0  ;;  %3963 = vmatmul.mubr.msk.bf16.vlgmr.msra.gmra.mxu0 %vm833_vm3, %v4626_v14 }
 0x124   : > { %v5078_v37 = vpop.f32.mrf.mxu1  ;;  %3966 = vmatprep.mubr.msk.bf16.mxu0 %vm833_vm3, %v4628_v10 }
 0x125   : > { %5797 = vst [vmem:[#allocation6_spill] sm:$0xff] %v5078_v37  ;;  %v1605_v3 = vpop.f32.mrf.mxu0 }
 0x126   : > { %v3726_v24 = vpop.f32.mrf.mxu1  ;;  %3929 = vmatmul.mubr.msk.bf16.vlgmr.msra.gmra.mxu1 %vm833_vm3, %v5779_v42 }
 0x127   : > { %v1221_v34 = vadd.f32 %v3726_v24, %v4954_v63  ;;  %v3761_v62 = vpop.f32.mrf.mxu0  ;;  %3932 = vmatprep.mubr.msk.bf16.mxu1 %vm833_vm3, %v5780_v46 }
 0x128   : > { %v1212_v9 = vpop.f32.mrf.mxu1 }
 0x129   : > { %v5087_v54 = vadd.f32 %v3760_v38, %v1221_v34  ;;  %v1213_v14 = vadd.f32 %v1212_v9, %v4964_v53  ;;  %v1608_v37 = vpop.f32.mrf.mxu0 }
 0x12a   : > { %v3727_v6 = vpop.f32.mrf.mxu1 }
 0x12b   : > { %v5090_v32 = vadd.f32 %v1605_v3, %v1213_v14  ;;  %v1224_v10 = vadd.f32 %v3727_v6, %v4970_v56  ;;  %v3764_v12 = vpop.f32.mrf.mxu0  ;;  %3967 = vmatmul.mubr.msk.bf16.gmra.mxu0 %vm833_vm3, %v4663_v30 }
 0x12c   : > { %v1215_v42 = vpop.f32.mrf.mxu1  ;;  %3970 = vmatprep.mubr.msk.bf16.mxu0 %vm833_vm3, %v4665_v1 }
 0x12d   : > { %v5097_v46 = vadd.f32 %v3761_v62, %v1224_v10  ;;  %v1216_v63 = vadd.f32 %v1215_v42, %v4980_v59  ;;  %v1621_v24 = vpop.f32.mrf.mxu0 }
 0x12e   : > { %v3730_v53 = vpop.f32.mrf.mxu1  ;;  %3933 = vmatmul.mubr.msk.bf16.gmra.mxu1 %vm833_vm3, %v5781_v19 }
 0x12f   : > { %v5102_v38 = vadd.f32 %v1608_v37, %v1216_v63  ;;  %v1237_v56 = vadd.f32 %v3730_v53, %v4986_v20  ;;  %v3765_v6 = vpop.f32.mrf.mxu0  ;;  %3936 = vmatprep.mubr.msk.bf16.mxu1 %vm833_vm3, %v5782_v36 }
 0x130   : > { %v1228_v30 = vpop.f32.mrf.mxu1 }
 0x131   : > { %v5107_v3 = vadd.f32 %v3764_v12, %v1237_v56  ;;  %v1229_v1 = vadd.f32 %v1228_v30, %v4996_v55  ;;  %v1624_v62 = vpop.f32.mrf.mxu0 }
 0x132   : > { %v3731_v59 = vpop.f32.mrf.mxu1 }
 0x133   : > { %v5110_v9 = vadd.f32 %v1621_v24, %v1229_v1  ;;  %v1240_v34 = vadd.f32 %v3731_v59, %v5002_v39  ;;  %v3768_v19 = vpop.f32.mrf.mxu0  ;;  %3971 = vmatmul.mubr.msk.bf16.gmra.mxu0 %vm833_vm3, %v4751_v23 }
 0x134   : > { %v1231_v20 = vpop.f32.mrf.mxu1  ;;  %3974 = vmatprep.mubr.msk.bf16.mxu0 %vm833_vm3, %v4756_v8 }
 0x135   : > { %v5117_v36 = vadd.f32 %v3765_v6, %v1240_v34  ;;  %v1232_v12 = vadd.f32 %v1231_v20, %v5012_v44  ;;  %v1637_v37 = vpop.f32.mrf.mxu0 }
 0x136   : > { %v3734_v55 = vpop.f32.mrf.mxu1  ;;  %3937 = vmatmul.mubr.msk.bf16.gmra.mxu1 %vm833_vm3, %v4538_v15 }
 0x137   : > { %v5122_v14 = vadd.f32 %v1624_v62, %v1232_v12  ;;  %v1253_v39 = vadd.f32 %v3734_v55, %v5018_v18  ;;  %v3769_v10 = vpop.f32.mrf.mxu0  ;;  %3940 = vmatprep.mubr.msk.bf16.mxu1 %vm833_vm3, %v5783_v26 }
 0x138   : > { %v1244_v23 = vpop.f32.mrf.mxu1 }
 0x139   : > { %v5127_v42 = vadd.f32 %v3768_v19, %v1253_v39  ;;  %v1245_v8 = vadd.f32 %v1244_v23, %v5028_v29  ;;  %v1640_v63 = vpop.f32.mrf.mxu0 }
 0x13a   : > { %v3735_v44 = vpop.f32.mrf.mxu1 }
 0x13b   : > { %v5130_v24 = vadd.f32 %v1637_v37, %v1245_v8  ;;  %v1256_v53 = vadd.f32 %v3735_v44, %v5034_v43  ;;  %v3772_v15 = vpop.f32.mrf.mxu0  ;;  %3975 = vmatmul.mubr.msk.bf16.gmra.mxu0 %vm833_vm3, %v4789_v13  ;;  %v2620_v37 = vshll.u32 %v5038_v28, 16 }
 0x13c   : > { %v1247_v18 = vpop.f32.mrf.mxu1  ;;  %3978 = vmatprep.mubr.msk.bf16.mxu0 %vm833_vm3, %v4791_v16 }
 0x13d   : > { %v5137_v26 = vadd.f32 %v3769_v10, %v1256_v53  ;;  %v1248_v56 = vadd.f32 %v1247_v18, %v5047_v31  ;;  %v1653_v6 = vpop.f32.mrf.mxu0  ;;  %v2622_v44 = vrot.slane %v2620_v37, 5 }
 0x13e   : > { %v3738_v29 = vpop.f32.mrf.mxu1  ;;  %3941 = vmatmul.mubr.msk.bf16.gmra.mxu1 %vm833_vm3, %v5784_v0 }
 0x13f   : > { %v5142_v30 = vadd.f32 %v1640_v63, %v1248_v56  ;;  %v1269_v43 = vadd.f32 %v3738_v29, %v5055_v25  ;;  %v3773_v1 = vpop.f32.mrf.mxu0  ;;  %3944 = vmatprep.mubr.msk.bf16.mxu1 %vm833_vm3, %v5785_v35 }
 0x140   : > { %v1260_v13 = vpop.f32.mrf.mxu1 }
 0x141   : > { %v5147_v62 = vadd.f32 %v3772_v15, %v1269_v43  ;;  %v1261_v16 = vadd.f32 %v1260_v13, %v5060_v41  ;;  %v1656_v59 = vpop.f32.mrf.mxu0  ;;  %v2617_v41 = vshrl.u32 %v5038_v28, 16 }
 0x142   : > { %v3739_v31 = vpop.f32.mrf.mxu1 }
 0x143   : > { %v5150_v34 = vadd.f32 %v1653_v6, %v1261_v16  ;;  %v1272_v19 = vadd.f32 %v3739_v31, %v5066_v51  ;;  %v3776_v0 = vpop.f32.mrf.mxu0  ;;  %3979 = vmatmul.mubr.msk.bf16.gmra.mxu0 %vm833_vm3, %v4706_v21  ;;  %v2626_v51 = vshll.u32 %v5041_v61, 16  ;;  %v2630_v21 = vshrl.u32 %v5041_v61, 16 }
 0x144   : > { %v1263_v25 = vpop.f32.mrf.mxu1  ;;  %3982 = vmatprep.mubr.msk.bf16.mxu0 %vm833_vm3, %v4721_v50 }
 0x145   : > { %v5157_v35 = vadd.f32 %v3773_v1, %v1272_v19  ;;  %v1264_v20 = vadd.f32 %v1263_v25, %v5072_v27  ;;  %v1669_v12 = vpop.f32.mrf.mxu0  ;;  %v2628_v15 = vrot.slane %v2626_v51, 5  ;;  %v2632_v18 = vrot.slane %v2630_v21, 4 }
 0x146   : > { %v3742_v55 = vpop.f32.mrf.mxu1  ;;  %3945 = vmatmul.mubr.msk.bf16.gmra.mxu1 %vm833_vm3, %v5786_v40  ;;  %v2619_v40 = vrot.slane %v2617_v41, 4  ;;  %v3510_v19 = vrot.slane %v5038_v28, 9 }
 0x147   : > { %v5166_v39 = vadd.f32 %v1656_v59, %v1264_v20  ;;  %v1285_v50 = vadd.f32 %v3742_v55, %v4960_v47  ;;  %v3777_v10 = vpop.f32.mrf.mxu0  ;;  %3948 = vmatprep.mubr.msk.bf16.mxu1 %vm833_vm3, %v5787_v57  ;;  %v2847_v57 = vrot.slane %v5041_v61, 5 }
 0x148   : > { %v1276_v27 = vpop.f32.mrf.mxu1 }
 0x149   : > { %v5171_v23 = vadd.f32 %v3776_v0, %v1285_v50  ;;  %v1277_v8 = vadd.f32 %v1276_v27, %v4966_v33  ;;  %v1672_v63 = vpop.f32.mrf.mxu0  ;;  %v394_v33 = vld [vmem:[%s4824_s23 + $0x14] sm:$0x1] }
 0x14a   : > { %v3743_v53 = vpop.f32.mrf.mxu1  ;;  %v2636_v31 = vshll.u32 %v394_v33, 16  ;;  %v2850_v25 = vrot.slane %v394_v33, 5 }
 0x14b   : > { %v5174_v56 = vadd.f32 %v1669_v12, %v1277_v8  ;;  %v1288_v47 = vadd.f32 %v3743_v53, %v4976_v17  ;;  %v3780_v6 = vpop.f32.mrf.mxu0  ;;  %3983 = vmatmul.mubr.msk.bf16.gmra.mxu0 %vm833_vm3, %v4743_v52  ;;  %v2623_v17 = vor.u32 %v2622_v44, %v2619_v40 }
 0x14c   : > { %v1279_v29 = vpop.f32.mrf.mxu1  ;;  %3986 = vmatprep.mubr.msk.bf16.mxu0 %vm833_vm3, %v4754_v58  ;;  %v2633_v58 = vor.u32 %v2632_v18, %v2628_v15  ;;  %v2638_v28 = vrot.slane %v2636_v31, 5 }
 0x14d   : > { %v5183_v43 = vadd.f32 %v3777_v10, %v1288_v47  ;;  %v1280_v1 = vadd.f32 %v1279_v29, %v4982_v4  ;;  %v1685_v13 = vpop.f32.mrf.mxu0  ;;  %v2849_v4 = vrot.slane %v2847_v57, 4  ;;  %v2624_v37 = vrot.slane %v2623_v17, 4  ;;  %v5801_v47 = vld [vmem:[#allocation16_spill] sm:$0xff]  ;;  %v5802_v29 = vld [vmem:[#allocation18_spill] sm:$0xff]  ;;  %v5803_v17 = vld [vmem:[#allocation21_spill] sm:$0xff] }
 0x14e   : > { %v3746_v16 = vpop.f32.mrf.mxu1  ;;  %3949 = vmatmul.mubr.msk.bf16.gmra.mxu1 %vm833_vm3, %v5788_v7 }
 0x14f   : > { %v5188_v59 = vadd.f32 %v1672_v63, %v1280_v1  ;;  %v1301_v52 = vadd.f32 %v3746_v16, %v4992_v48  ;;  %v3781_v61 = vpop.f32.mrf.mxu0  ;;  %3952 = vmatprep.mubr.msk.bf16.mxu1 %vm833_vm3, %v4512_v5  ;;  %v2634_v5 = vrot.slane %v2633_v58, 4  ;;  %v2851_v50 = vsel %vm4517_vm7, %v2849_v4, %v2850_v25  ;;  %v5798_v63 = vld [vmem:[#allocation25_spill] sm:$0xff] }
 0x150   : > { %v1292_v0 = vpop.f32.mrf.mxu1  ;;  %v2629_v40 = vsel %vm4194_vm4, %v2624_v37, %v2628_v15 }
 0x151   : > { %v5194_v20 = vadd.f32 %v3780_v6, %v1301_v52  ;;  %v1293_v7 = vadd.f32 %v1292_v0, %v4998_v45  ;;  %v1688_v12 = vpop.f32.mrf.mxu0  ;;  %v2848_v45 = vsel %vm4517_vm7, %v3510_v19, %v2847_v57  ;;  %v2639_v60 = vsel %vm4194_vm4, %v2634_v5, %v2638_v28  ;;  %v5804_v19 = vld [vmem:[#allocation23_spill] sm:$0xff] }
 0x152   : > { %v3747_v41 = vpop.f32.mrf.mxu1  ;;  %v3493_v15 = vcombine.low %v2629_v40, %v2639_v60  ;;  %v5806_v5 = vld [vmem:[#allocation3_spill] sm:$0xff]  ;;  %v5808_v40 = vld [vmem:[#allocation6_spill] sm:$0xff] }
 0x153   : > { %v5197_v55 = vadd.f32 %v1685_v13, %v1293_v7  ;;  %v1304_v48 = vadd.f32 %v3747_v41, %v5008_v22  ;;  %v3784_v51 = vpop.f32.mrf.mxu0  ;;  %3987 = vmatmul.mubr.msk.bf16.gmra.mxu0 %vm833_vm3, %v4763_v2 }
 0x154   : > { %v1295_v21 = vpop.f32.mrf.mxu1  ;;  %3990 = vmatprep.mubr.msk.bf16.mxu0 %vm833_vm3, %v4849_v11  ;;  %v5800_v11 = vld [vmem:[#allocation20_spill] sm:$0xff] }
 0x155   : > { %v5208_v10 = vadd.f32 %v3781_v61, %v1304_v48  ;;  %v1296_v22 = vadd.f32 %v1295_v21, %v5014_v49  ;;  %v1701_v27 = vpop.f32.mrf.mxu0  ;;  %v3512_v49 = vcombine.low %v2848_v45, %v2851_v50 }
 0x156   : > { %v3750_v8 = vpop.f32.mrf.mxu1  ;;  %3953 = vmatmul.mubr.msk.bf16.gmra.mxu1 %vm833_vm3, %v5798_v63 }
 0x157   : > { %v5215_v44 = vadd.f32 %v1688_v12, %v1296_v22  ;;  %v1317_v53 = vadd.f32 %v3750_v8, %v5800_v11  ;;  %v3785_v18 = vpop.f32.mrf.mxu0  ;;  %3956 = vmatprep.mubr.msk.bf16.mxu1 %vm833_vm3, %v5801_v47  ;;  %v5805_v12 = vld [vmem:[#allocation8_spill] sm:$0xff] }
 0x158   : > { %v1308_v6 = vpop.f32.mrf.mxu1  ;;  %v5807_v22 = vld [vmem:[#allocation4_spill] sm:$0xff] }
 0x159   : > { %v5222_v57 = vadd.f32 %v3784_v51, %v1317_v53  ;;  %v1309_v33 = vadd.f32 %v1308_v6, %v5802_v29  ;;  %v1704_v1 = vpop.f32.mrf.mxu0 }
 0x15a   : > { %v3751_v13 = vpop.f32.mrf.mxu1 }
 0x15b   : > { %v5225_v16 = vadd.f32 %v1701_v27, %v1309_v33  ;;  %v1320_v52 = vadd.f32 %v3751_v13, %v5803_v17  ;;  %v3788_v61 = vpop.f32.mrf.mxu0  ;;  %3991 = vmatmul.mubr.msk.bf16.gmra.mxu0 %vm833_vm3, %v3512_v49 }
 0x15c   : > { %v1311_v58 = vpop.f32.mrf.mxu1 }
 0x15d   : > { %v5229_v31 = vadd.f32 %v3785_v18, %v1320_v52  ;;  %v1312_v0 = vadd.f32 %v1311_v58, %v5804_v19  ;;  %v1717_v4 = vpop.f32.mrf.mxu0 }
 0x15e   : > { %v3754_v25 = vpop.f32.mrf.mxu1  ;;  %3957 = vmatmul.mubr.msk.bf16.gmra.mxu1 %vm833_vm3, %v3493_v15 }
 0x15f   : > { %v5233_v7 = vadd.f32 %v1704_v1, %v1312_v0  ;;  %v1333_v41 = vadd.f32 %v3754_v25, %v5805_v12  ;;  %v3789_v37 = vpop.f32.mrf.mxu0 }
 0x160   : > { %v1324_v48 = vpop.f32.mrf.mxu1 }
 0x161   : > { %v5236_v51 = vadd.f32 %v3788_v61, %v1333_v41  ;;  %v1325_v28 = vadd.f32 %v1324_v48, %v5806_v5  ;;  %v1720_v21 = vpop.f32.mrf.mxu0 }
 0x162   : > { %v3755_v45 = vpop.f32.mrf.mxu1 }
 0x163   : > { %v5239_v50 = vadd.f32 %v1717_v4, %v1325_v28  ;;  %v1336_v27 = vadd.f32 %v3755_v45, %v5807_v22  ;;  %v3828_v8 = vpop.f32.mrf.mxu0 }
 0x164   : > { %v1327_v63 = vpop.f32.mrf.mxu1 }
 0x165   : > { %v5242_v2 = vadd.f32 %v3789_v37, %v1336_v27  ;;  %v1328_v11 = vadd.f32 %v1327_v63, %v5808_v40  ;;  %v2039_v53 = vpop.f32.mrf.mxu0 }
 0x166   : > { %v3794_v18 = vpop.f32.mrf.mxu1 }
 0x167   : > { %v5245_v47 = vadd.f32 %v1720_v21, %v1328_v11  ;;  %v1940_v60 = vadd.f32 %v3794_v18, %v5087_v54  ;;  %v3829_v49 = vpop.f32.mrf.mxu0 }
 0x168   : > { %v1811_v6 = vpop.f32.mrf.mxu1 }
 0x169   : > { %v5248_v29 = vadd.f32 %v3828_v8, %v1940_v60  ;;  %v1938_v33 = vadd.f32 %v1811_v6, %v5090_v32  ;;  %v2042_v1 = vpop.f32.mrf.mxu0 }
 0x16a   : > { %v3795_v13 = vpop.f32.mrf.mxu1 }
 0x16b   : > { %v5251_v15 = vadd.f32 %v2039_v53, %v1938_v33  ;;  %v1941_v17 = vadd.f32 %v3795_v13, %v5097_v46  ;;  %v3832_v52 = vpop.f32.mrf.mxu0 }
 0x16c   : > { %v1814_v61 = vpop.f32.mrf.mxu1 }
 0x16d   : > { %v5254_v58 = vadd.f32 %v3829_v49, %v1941_v17  ;;  %v1939_v19 = vadd.f32 %v1814_v61, %v5102_v38  ;;  %v2055_v0 = vpop.f32.mrf.mxu0 }
 0x16e   : > { %v3798_v54 = vpop.f32.mrf.mxu1 }
 0x16f   : > { %v5257_v4 = vadd.f32 %v2042_v1, %v1939_v19  ;;  %v1944_v25 = vadd.f32 %v3798_v54, %v5107_v3  ;;  %v3833_v12 = vpop.f32.mrf.mxu0 }
 0x170   : > { %v1827_v32 = vpop.f32.mrf.mxu1 }
 0x171   : > { %v5260_v41 = vadd.f32 %v3832_v52, %v1944_v25  ;;  %v1942_v37 = vadd.f32 %v1827_v32, %v5110_v9  ;;  %v2058_v48 = vpop.f32.mrf.mxu0 }
 0x172   : > { %v3799_v46 = vpop.f32.mrf.mxu1 }
 0x173   : > { %v5263_v5 = vadd.f32 %v2055_v0, %v1942_v37  ;;  %v1945_v28 = vadd.f32 %v3799_v46, %v5117_v36  ;;  %v3836_v21 = vpop.f32.mrf.mxu0 }
 0x174   : > { %v1830_v38 = vpop.f32.mrf.mxu1 }
 0x175   : > { %v5266_v45 = vadd.f32 %v3833_v12, %v1945_v28  ;;  %v1943_v22 = vadd.f32 %v1830_v38, %v5122_v14  ;;  %v2071_v27 = vpop.f32.mrf.mxu0 }
 0x176   : > { %v3802_v3 = vpop.f32.mrf.mxu1 }
 0x177   : > { %v5269_v8 = vadd.f32 %v2058_v48, %v1943_v22  ;;  %v1948_v63 = vadd.f32 %v3802_v3, %v5127_v42  ;;  %v3837_v40 = vpop.f32.mrf.mxu0 }
 0x178   : > { %v1843_v9 = vpop.f32.mrf.mxu1 }
 0x179   : > { %v5272_v11 = vadd.f32 %v3836_v21, %v1948_v63  ;;  %v1946_v53 = vadd.f32 %v1843_v9, %v5130_v24  ;;  %v2074_v18 = vpop.f32.mrf.mxu0 }
 0x17a   : > { %v3803_v36 = vpop.f32.mrf.mxu1 }
 0x17b   : > { %v5275_v60 = vadd.f32 %v2071_v27, %v1946_v53  ;;  %v1949_v49 = vadd.f32 %v3803_v36, %v5137_v26  ;;  %v3840_v6 = vpop.f32.mrf.mxu0 }
 0x17c   : > { %v1846_v14 = vpop.f32.mrf.mxu1 }
 0x17d   : > { %v5278_v33 = vadd.f32 %v3837_v40, %v1949_v49  ;;  %v1947_v1 = vadd.f32 %v1846_v14, %v5142_v30  ;;  %v2087_v13 = vpop.f32.mrf.mxu0 }
 0x17e   : > { %v3806_v42 = vpop.f32.mrf.mxu1 }
 0x17f   : > { %v5281_v17 = vadd.f32 %v2074_v18, %v1947_v1  ;;  %v1952_v52 = vadd.f32 %v3806_v42, %v5147_v62  ;;  %v3841_v61 = vpop.f32.mrf.mxu0 }
 0x180   : > { %v1859_v24 = vpop.f32.mrf.mxu1 }
 0x181   : > { %v5284_v19 = vadd.f32 %v3840_v6, %v1952_v52  ;;  %v1950_v0 = vadd.f32 %v1859_v24, %v5150_v34  ;;  %v2090_v54 = vpop.f32.mrf.mxu0 }
 0x182   : > { %v3807_v26 = vpop.f32.mrf.mxu1 }
 0x183   : > { %v5287_v25 = vadd.f32 %v2087_v13, %v1950_v0  ;;  %v1953_v12 = vadd.f32 %v3807_v26, %v5157_v35  ;;  %v3844_v32 = vpop.f32.mrf.mxu0 }
 0x184   : > { %v1862_v30 = vpop.f32.mrf.mxu1 }
 0x185   : > { %v5290_v37 = vadd.f32 %v3841_v61, %v1953_v12  ;;  %v1951_v48 = vadd.f32 %v1862_v30, %v5166_v39  ;;  %v2103_v46 = vpop.f32.mrf.mxu0 }
 0x186   : > { %v3810_v62 = vpop.f32.mrf.mxu1 }
 0x187   : > { %v5293_v28 = vadd.f32 %v2090_v54, %v1951_v48  ;;  %v1956_v21 = vadd.f32 %v3810_v62, %v5171_v23  ;;  %v3845_v38 = vpop.f32.mrf.mxu0 }
 0x188   : > { %v1875_v34 = vpop.f32.mrf.mxu1 }
 0x189   : > { %v5296_v22 = vadd.f32 %v3844_v32, %v1956_v21  ;;  %v1954_v27 = vadd.f32 %v1875_v34, %v5174_v56  ;;  %v2106_v3 = vpop.f32.mrf.mxu0 }
 0x18a   : > { %v3811_v35 = vpop.f32.mrf.mxu1 }
 0x18b   : > { %v5299_v63 = vadd.f32 %v2103_v46, %v1954_v27  ;;  %v1957_v40 = vadd.f32 %v3811_v35, %v5183_v43  ;;  %v3848_v9 = vpop.f32.mrf.mxu0 }
 0x18c   : > { %v1878_v39 = vpop.f32.mrf.mxu1 }
 0x18d   : > { %v5302_v53 = vadd.f32 %v3845_v38, %v1957_v40  ;;  %v1955_v18 = vadd.f32 %v1878_v39, %v5188_v59  ;;  %v2119_v36 = vpop.f32.mrf.mxu0 }
 0x18e   : > { %v3814_v23 = vpop.f32.mrf.mxu1 }
 0x18f   : > { %5809 = vst [vmem:[#allocation9_spill] sm:$0xff] %v5302_v53  ;;  %v5305_v49 = vadd.f32 %v2106_v3, %v1955_v18  ;;  %v1960_v6 = vadd.f32 %v3814_v23, %v5194_v20  ;;  %v3849_v14 = vpop.f32.mrf.mxu0 }
 0x190   : > { %v1891_v56 = vpop.f32.mrf.mxu1 }
 0x191   : > { %5810 = vst [vmem:[#allocation7_spill] sm:$0xff] %v5305_v49  ;;  %v5308_v1 = vadd.f32 %v3848_v9, %v1960_v6  ;;  %v1958_v13 = vadd.f32 %v1891_v56, %v5197_v55  ;;  %v2122_v42 = vpop.f32.mrf.mxu0 }
 0x192   : > { %v3815_v43 = vpop.f32.mrf.mxu1 }
 0x193   : > { %5811 = vst [vmem:[#allocation11_spill] sm:$0xff] %v5308_v1  ;;  %v5311_v52 = vadd.f32 %v2119_v36, %v1958_v13  ;;  %v1961_v61 = vadd.f32 %v3815_v43, %v5208_v10  ;;  %v3852_v24 = vpop.f32.mrf.mxu0 }
 0x194   : > { %v1894_v59 = vpop.f32.mrf.mxu1 }
 0x195   : > { %5812 = vst [vmem:[#allocation13_spill] sm:$0xff] %v5311_v52  ;;  %v5314_v0 = vadd.f32 %v3849_v14, %v1961_v61  ;;  %v1959_v54 = vadd.f32 %v1894_v59, %v5215_v44  ;;  %v2135_v26 = vpop.f32.mrf.mxu0 }
 0x196   : > { %v3818_v20 = vpop.f32.mrf.mxu1 }
 0x197   : > { %5813 = vst [vmem:[#allocation15_spill] sm:$0xff] %v5314_v0  ;;  %v5317_v12 = vadd.f32 %v2122_v42, %v1959_v54  ;;  %v1964_v32 = vadd.f32 %v3818_v20, %v5222_v57  ;;  %v3853_v30 = vpop.f32.mrf.mxu0 }
 0x198   : > { %v1907_v55 = vpop.f32.mrf.mxu1 }
 0x199   : > { %5814 = vst [vmem:[#allocation19_spill] sm:$0xff] %v5317_v12  ;;  %v5320_v48 = vadd.f32 %v3852_v24, %v1964_v32  ;;  %v1962_v46 = vadd.f32 %v1907_v55, %v5225_v16  ;;  %v2138_v62 = vpop.f32.mrf.mxu0 }
 0x19a   : > { %v3819_v10 = vpop.f32.mrf.mxu1 }
 0x19b   : > { %5815 = vst [vmem:[#allocation24_spill] sm:$0xff] %v5320_v48  ;;  %v5323_v21 = vadd.f32 %v2135_v26, %v1962_v46  ;;  %v1965_v38 = vadd.f32 %v3819_v10, %v5229_v31  ;;  %v3856_v34 = vpop.f32.mrf.mxu0 }
 0x19c   : > { %v1910_v44 = vpop.f32.mrf.mxu1 }
 0x19d   : > { %5816 = vst [vmem:[#allocation5_spill] sm:$0xff] %v5323_v21  ;;  %v5326_v27 = vadd.f32 %v3853_v30, %v1965_v38  ;;  %v1963_v3 = vadd.f32 %v1910_v44, %v5233_v7  ;;  %v2151_v35 = vpop.f32.mrf.mxu0 }
 0x19e   : > { %v3822_v57 = vpop.f32.mrf.mxu1 }
 0x19f   : > { %5817 = vst [vmem:[#allocation10_spill] sm:$0xff] %v5326_v27  ;;  %v5329_v40 = vadd.f32 %v2138_v62, %v1963_v3  ;;  %v1968_v9 = vadd.f32 %v3822_v57, %v5236_v51  ;;  %v3857_v39 = vpop.f32.mrf.mxu0 }
 0x1a0   : > { %v1923_v16 = vpop.f32.mrf.mxu1 }
 0x1a1   : > { %5818 = vst [vmem:[#allocation12_spill] sm:$0xff] %v5329_v40  ;;  %v5332_v18 = vadd.f32 %v3856_v34, %v1968_v9  ;;  %v1966_v36 = vadd.f32 %v1923_v16, %v5239_v50  ;;  %v2154_v23 = vpop.f32.mrf.mxu0 }
 0x1a2   : > { %v3823_v31 = vpop.f32.mrf.mxu1 }
 0x1a3   : > { %5819 = vst [vmem:[#allocation14_spill] sm:$0xff] %v5332_v18  ;;  %v5335_v6 = vadd.f32 %v2151_v35, %v1966_v36  ;;  %v1969_v14 = vadd.f32 %v3823_v31, %v5242_v2  ;;  %v5338_v56 = vpop.f32.mrf.mxu0 }
 0x1a4   : > { %v1926_v7 = vpop.f32.mrf.mxu1 }
 0x1a5   : > { %5820 = vst [vmem:[#allocation17_spill] sm:$0xff] %v5335_v6  ;;  %v5340_v13 = vadd.f32 %v3857_v39, %v1969_v14  ;;  %v1967_v42 = vadd.f32 %v1926_v7, %v5245_v47  ;;  %v5343_v51 = vpop.f32.mrf.mxu0 }
 0x1a6   : > { %v3862_v43 = vpop.f32.mrf.mxu1 }
 0x1a7   : > { %5821 = vst [vmem:[#allocation22_spill] sm:$0xff] %v5340_v13  ;;  %v5345_v61 = vadd.f32 %v2154_v23, %v1967_v42  ;;  %v5347_v24 = vpop.f32.mrf.mxu0 }
 0x1a8   : > { %v2251_v50 = vpop.f32.mrf.mxu1 }
 0x1a9   : > { %5822 = vst [vmem:[#allocation25_spill] sm:$0xff] %v5345_v61  ;;  %v5349_v59 = vpop.f32.mrf.mxu0 }
 0x1aa   : > { %v5351_v54 = vpop.f32.mrf.mxu1 }
 0x1ab   : > { %v5353_v2 = vpop.f32.mrf.mxu0 }
 0x1ac   : > { %v5355_v26 = vpop.f32.mrf.mxu1 }
 0x1ad   : > { %v5357_v20 = vpop.f32.mrf.mxu0 }
 0x1ae   : > { %v5359_v32 = vpop.f32.mrf.mxu1 }
 0x1af   : > { %v5361_v47 = vpop.f32.mrf.mxu0 }
 0x1b0   : > { %v5363_v30 = vpop.f32.mrf.mxu1 }
 0x1b1   : > { %v5365_v55 = vpop.f32.mrf.mxu0 }
 0x1b2   : > { %v5367_v46 = vpop.f32.mrf.mxu1 }
 0x1b3   : > { %v5369_v62 = vpop.f32.mrf.mxu0 }
 0x1b4   : > { %v5371_v10 = vpop.f32.mrf.mxu1 }
 0x1b5   : > { %v5373_v38 = vpop.f32.mrf.mxu0 }
 0x1b6   : > { %v5375_v34 = vpop.f32.mrf.mxu1 }
 0x1b7   : > { %v5377_v44 = vpop.f32.mrf.mxu0 }
 0x1b8   : > { %v5379_v3 = vpop.f32.mrf.mxu1 }
 0x1b9   : > { %v5381_v35 = vpop.f32.mrf.mxu0 }
 0x1ba   : > { %v5383_v57 = vpop.f32.mrf.mxu1 }
 0x1bb   : > { %v5385_v9 = vpop.f32.mrf.mxu0 }
 0x1bc   : > { %v5387_v39 = vpop.f32.mrf.mxu1 }
 0x1bd   : > { %v5389_v16 = vpop.f32.mrf.mxu0 }
 0x1be   : > { %v5391_v36 = vpop.f32.mrf.mxu1 }
 0x1bf   : > { %v5393_v23 = vpop.f32.mrf.mxu0 }
 0x1c0   : > { %v5395_v31 = vpop.f32.mrf.mxu1 }
 0x1c1   : > { %v5397_v14 = vpop.f32.mrf.mxu0 }
 0x1c2   : > { %v5399_v7 = vpop.f32.mrf.mxu1 }
 0x1c3   : > { %v5401_v42 = vpop.f32.mrf.mxu0 }
 0x1c4   : > { %v5403_v61 = vpop.f32.mrf.mxu1 }
 0x1c5   : > { %v5405_v13 = vpop.f32.mrf.mxu0 }
 0x1c6   : > { %5823 = vst [vmem:[#allocation2_spill] sm:$0xff] %v5405_v13  ;;  %v5407_v6 = vpop.f32.mrf.mxu1 }
 0x1c7   : > { %v5409_v18 = vpop.f32.mrf.mxu0 }
 0x1c8   : > { %5824 = vst [vmem:[#allocation20_spill] sm:$0xff] %v5409_v18  ;;  %v5411_v40 = vpop.f32.mrf.mxu1 }
 0x1c9   : > { %v5413_v27 = vpop.f32.mrf.mxu0 }
 0x1ca   : > { %5825 = vst [vmem:[#allocation16_spill] sm:$0xff] %v5413_v27  ;;  %v5415_v21 = vpop.f32.mrf.mxu1 }
 0x1cb   : > { %5826 = vst [vmem:[#allocation18_spill] sm:$0xff] %v5415_v21  ;;  %v5417_v48 = vpop.f32.mrf.mxu0 }
 0x1cc   : > { %5827 = vst [vmem:[#allocation21_spill] sm:$0xff] %v5417_v48  ;;  %v5419_v12 = vpop.f32.mrf.mxu1 }
 0x1cd   : > { %5828 = vst [vmem:[#allocation23_spill] sm:$0xff] %v5419_v12  ;;  %v5421_v0 = vpop.f32.mrf.mxu0 }
 0x1ce   : > { %5829 = vst [vmem:[#allocation8_spill] sm:$0xff] %v5421_v0  ;;  %v5423_v52 = vpop.f32.mrf.mxu1 }
 0x1cf   : > { %5830 = vst [vmem:[#allocation3_spill] sm:$0xff] %v5423_v52  ;;  %v5425_v1 = vpop.f32.mrf.mxu0 }
 0x1d0   : > { %5831 = vst [vmem:[#allocation4_spill] sm:$0xff] %v5425_v1  ;;  %v5427_v49 = vpop.f32.mrf.mxu1 }
 0x1d1   : > { %5832 = vst [vmem:[#allocation6_spill] sm:$0xff] %v5427_v49  ;;  %v5429_v13 = vpop.f32.mrf.mxu0 }
 0x1d2   : > { %5833 = vst [vmem:[#allocation26_spill] sm:$0xff] %v5429_v13  ;;  %v5431_v18 = vpop.f32.mrf.mxu1 }
 0x1d3   : > { %5834 = vst [vmem:[#allocation27_spill] sm:$0xff] %v5431_v18  ;;  %v5433_v27 = vpop.f32.mrf.mxu0 }
 0x1d4   : > { %5835 = vst [vmem:[#allocation28_spill] sm:$0xff] %v5433_v27  ;;  %v5435_v21 = vpop.f32.mrf.mxu1 }
 0x1d5   : > { %5836 = vst [vmem:[#allocation29_spill] sm:$0xff] %v5435_v21  ;;  %v5437_v48 = vpop.f32.mrf.mxu0 }
 0x1d6   : > { %5837 = vst [vmem:[#allocation30_spill] sm:$0xff] %v5437_v48  ;;  %v5439_v12 = vpop.f32.mrf.mxu1 }
 0x1d7   : > { %5838 = vst [vmem:[#allocation31_spill] sm:$0xff] %v5439_v12  ;;  %v5441_v0 = vpop.f32.mrf.mxu0 }
 0x1d8   : > { %5839 = vst [vmem:[#allocation32_spill] sm:$0xff] %v5441_v0  ;;  %v5443_v52 = vpop.f32.mrf.mxu1  ;;  %v2380_v0 = vadd.f32 %v3862_v43, %v5248_v29  ;;  %v2379_v29 = vadd.f32 %v5355_v26, %v5257_v4  ;;  %v2382_v4 = vadd.f32 %v5363_v30, %v5263_v5 }
 0x1d9   : > { %5840 = vst [vmem:[#allocation33_spill] sm:$0xff] %v5443_v52  ;;  %v5445_v1 = vpop.f32.mrf.mxu0 }
 0x1da   : > { %5841 = vst [vmem:[#allocation34_spill] sm:$0xff] %v5445_v1  ;;  %v5447_v49 = vpop.f32.mrf.mxu1 }
 0x1db   : > { %5842 = vst [vmem:[#allocation35_spill] sm:$0xff] %v5447_v49  ;;  %v5449_v13 = vpop.f32.mrf.mxu0  ;;  %v2378_v49 = vadd.f32 %v2251_v50, %v5251_v15  ;;  %v5481_v50 = vld [vmem:[%s5688_s3] ss:$0 sm:$0xff] }
 0x1dc   : > { %5843 = vst [vmem:[#allocation36_spill] sm:$0xff] %v5449_v13  ;;  %v5451_v53 = vpop.f32.mrf.mxu1 }
 0x1dd   : > { %5844 = vst [vmem:[#allocation37_spill] sm:$0xff] %v5451_v53  ;;  %v5453_v18 = vpop.f32.mrf.mxu0  ;;  %v2584_v12 = vadd.f32 %v5343_v51, %v2378_v49  ;;  %v2384_v49 = vadd.f32 %v5359_v32, %v5260_v41  ;;  %v2585_v51 = vadd.f32 %v5349_v59, %v2379_v29  ;;  %v2385_v41 = vadd.f32 %v5367_v46, %v5266_v45 }
 0x1de   : > { %5845 = vst [vmem:[#allocation38_spill] sm:$0xff] %v5453_v18  ;;  %v5455_v27 = vpop.f32.mrf.mxu1  ;;  %v2586_v18 = vadd.f32 %v5338_v56, %v2380_v0  ;;  %v2588_v59 = vadd.f32 %v5357_v20, %v2382_v4 }
 0x1df   : > { %5846 = vst [vmem:[#allocation39_spill] sm:$0xff] %v5455_v27  ;;  %v5457_v21 = vpop.f32.mrf.mxu0  ;;  %v2591_v20 = vadd.f32 %v5361_v47, %v2385_v41 }
 0x1e0   : > { %5847 = vst [vmem:[#allocation40_spill] sm:$0xff] %v5457_v21  ;;  %v5459_v48 = vpop.f32.mrf.mxu1  ;;  %v2381_v21 = vadd.f32 %v5351_v54, %v5254_v58 }
 0x1e1   : > { %5848 = vst [vmem:[#allocation41_spill] sm:$0xff] %v5459_v48  ;;  %v5463_v52 = vpop.f32.mrf.mxu0 }
 0x1e2   : > { %5849 = vst [vmem:[#allocation42_spill] sm:$0xff] %v5463_v52  ;;  %v5465_v1 = vpop.f32.mrf.mxu1  ;;  %v2587_v58 = vadd.f32 %v5347_v24, %v2381_v21 }
 0x1e3   : > { %v3964_v13 = vpop.f32.mrf.mxu0 }
 0x1e4   : > { %v5468_v53 = vpop.f32.mrf.mxu1 }
 0x1e5   : > { %5850 = vst [vmem:[#allocation43_spill] sm:$0xff] %v5468_v53  ;;  %v2897_v27 = vpop.f32.mrf.mxu0  ;;  %v2590_v53 = vadd.f32 %v5353_v2, %v2384_v49 }
 0x1e6   : > { %v3930_v48 = vpop.f32.mrf.mxu1 }
 0x1e7   : > { %v2814_v43 = vadd.f32 %v3930_v48, %v2586_v18  ;;  %v3965_v15 = vpop.f32.mrf.mxu0  ;;  %v5491_v48 = vld [vmem:[%s5689_s4] ss:$0 sm:$0xff] }
 0x1e8   : > { %v2685_v0 = vpop.f32.mrf.mxu1 }
 0x1e9   : > { %v3026_v56 = vadd.f32 %v3964_v13, %v2814_v43  ;;  %v2812_v54 = vadd.f32 %v2685_v0, %v2584_v12  ;;  %v2900_v52 = vpop.f32.mrf.mxu0 }
 0x1ea   : > { %v3931_v18 = vpop.f32.mrf.mxu1 }
 0x1eb   : > { %v3065_v21 = vmul.f32 %v5481_v50, %v3026_v56  ;;  %v3024_v13 = vadd.f32 %v2897_v27, %v2812_v54  ;;  %v2815_v12 = vadd.f32 %v3931_v18, %v2587_v58  ;;  %v3968_v24 = vpop.f32.mrf.mxu0  ;;  %v2383_v27 = vadd.f32 %v5371_v10, %v5269_v8 }
 0x1ec   : > { %v2688_v26 = vpop.f32.mrf.mxu1  ;;  %v2388_v8 = vadd.f32 %v5375_v34, %v5272_v11 }
 0x1ed   : > { %v3104_v5 = vadd.f32 %v5491_v48, %v3065_v21  ;;  %v3063_v32 = vmul.f32 %v5481_v50, %v3024_v13  ;;  %v3027_v30 = vadd.f32 %v3965_v15, %v2815_v12  ;;  %v2813_v43 = vadd.f32 %v2688_v26, %v2585_v51  ;;  %v2913_v0 = vpop.f32.mrf.mxu0 }
 0x1ee   : > { %v3934_v45 = vpop.f32.mrf.mxu1  ;;  %v2589_v21 = vadd.f32 %v5365_v55, %v2383_v27  ;;  %v2594_v41 = vadd.f32 %v5369_v62, %v2388_v8  ;;  %v2386_v26 = vadd.f32 %v5379_v3, %v5275_v60  ;;  %v2387_v27 = vadd.f32 %v5387_v39, %v5281_v17 }
 0x1ef   : > { %v3136_v46 = vmax.f32 %v3104_v5, 0.0  ;;  %v3102_v29 = vadd.f32 %v5491_v48, %v3063_v32  ;;  %v3066_v15 = vmul.f32 %v5481_v50, %v3027_v30  ;;  %v3025_v58 = vadd.f32 %v2900_v52, %v2813_v43  ;;  %v3969_v2 = vpop.f32.mrf.mxu0 }
 0x1f0   : > { %v2818_v10 = vadd.f32 %v3934_v45, %v2590_v53  ;;  %v2701_v56 = vpop.f32.mrf.mxu1  ;;  %v2389_v5 = vadd.f32 %v5383_v57, %v5278_v33  ;;  %v2392_v17 = vadd.f32 %v5391_v36, %v5284_v19 }
 0x1f1   : > { %3168 = vst [vmem:[%s5507_s10 + $0x10] sm:$0xff] %v3136_v46  ;;  %v3134_v54 = vmax.f32 %v3102_v29, 0.0  ;;  %v3105_v49 = vadd.f32 %v5491_v48, %v3066_v15  ;;  %v3064_v4 = vmul.f32 %v5481_v50, %v3025_v58  ;;  %v2816_v18 = vadd.f32 %v2701_v56, %v2588_v59  ;;  %v2916_v51 = vpop.f32.mrf.mxu0 }
 0x1f2   : > { %v3030_v52 = vadd.f32 %v3968_v24, %v2818_v10  ;;  %v3935_v13 = vpop.f32.mrf.mxu1  ;;  %v2592_v29 = vadd.f32 %v5373_v38, %v2386_v26  ;;  %v2595_v15 = vadd.f32 %v5377_v44, %v2389_v5  ;;  %v2390_v38 = vadd.f32 %v5395_v31, %v5287_v25 }
 0x1f3   : > { %3166 = vst [vmem:[%s5507_s10] sm:$0xff] %v3134_v54  ;;  %v3137_v47 = vmax.f32 %v3105_v49, 0.0  ;;  %v3103_v12 = vadd.f32 %v5491_v48, %v3064_v4  ;;  %v3028_v11 = vadd.f32 %v2913_v0, %v2816_v18  ;;  %v2819_v53 = vadd.f32 %v3935_v13, %v2591_v20  ;;  %v3972_v34 = vpop.f32.mrf.mxu0 }
 0x1f4   : > { %v3069_v55 = vmul.f32 %v5481_v50, %v3030_v52  ;;  %v2704_v24 = vpop.f32.mrf.mxu1  ;;  %v2593_v54 = vadd.f32 %v5381_v35, %v2387_v27 }
 0x1f5   : > { %3169 = vst [vmem:[%s5507_s10 + $0x18] sm:$0xff] %v3137_v47  ;;  %v3135_v32 = vmax.f32 %v3103_v12, 0.0  ;;  %v3067_v30 = vmul.f32 %v5481_v50, %v3028_v11  ;;  %v3031_v43 = vadd.f32 %v3969_v2, %v2819_v53  ;;  %v2817_v0 = vadd.f32 %v2704_v24, %v2589_v21  ;;  %v2929_v59 = vpop.f32.mrf.mxu0 }
 0x1f6   : > { %v3108_v62 = vadd.f32 %v5491_v48, %v3069_v55  ;;  %v3938_v45 = vpop.f32.mrf.mxu1  ;;  %v2598_v21 = vadd.f32 %v5385_v9, %v2392_v17  ;;  %v2596_v11 = vadd.f32 %v5389_v16, %v2390_v38  ;;  %v2393_v53 = vadd.f32 %v5399_v7, %v5290_v37 }
 0x1f7   : > { %3167 = vst [vmem:[%s5507_s10 + $0x8] sm:$0xff] %v3135_v32  ;;  %v3106_v60 = vadd.f32 %v5491_v48, %v3067_v30  ;;  %v3070_v33 = vmul.f32 %v5481_v50, %v3031_v43  ;;  %v3029_v3 = vadd.f32 %v2916_v51, %v2817_v0  ;;  %v2822_v57 = vadd.f32 %v3938_v45, %v2594_v41  ;;  %v3973_v46 = vpop.f32.mrf.mxu0 }
 0x1f8   : > { %v3140_v39 = vmax.f32 %v3108_v62, 0.0  ;;  %v2717_v58 = vpop.f32.mrf.mxu1  ;;  %v2396_v30 = vadd.f32 %v5407_v6, %v5296_v22  ;;  %v2394_v22 = vadd.f32 %v5411_v40, %v5299_v63 }
 0x1f9   : > { %v3138_v2 = vmax.f32 %v3106_v60, 0.0  ;;  %v3109_v20 = vadd.f32 %v5491_v48, %v3070_v33  ;;  %v3068_v8 = vmul.f32 %v5481_v50, %v3029_v3  ;;  %v3034_v10 = vadd.f32 %v3972_v34, %v2822_v57  ;;  %v2932_v56 = vpop.f32.mrf.mxu0 }
 0x1fa   : > { %3172 = vst [vmem:[%s5507_s10 + $0x30] sm:$0xff] %v3140_v39  ;;  %v2820_v44 = vadd.f32 %v2717_v58, %v2592_v29  ;;  %v3939_v49 = vpop.f32.mrf.mxu1  ;;  %v2391_v34 = vadd.f32 %v5403_v61, %v5293_v28  ;;  %v5851_v29 = vld [vmem:[#allocation9_spill] sm:$0xff] }
 0x1fb   : > { %3170 = vst [vmem:[%s5507_s10 + $0x20] sm:$0xff] %v3138_v2  ;;  %v3141_v19 = vmax.f32 %v3109_v20, 0.0  ;;  %v3107_v36 = vadd.f32 %v5491_v48, %v3068_v8  ;;  %v3073_v4 = vmul.f32 %v5481_v50, %v3034_v10  ;;  %v2823_v18 = vadd.f32 %v3939_v49, %v2595_v15  ;;  %v3976_v51 = vpop.f32.mrf.mxu0  ;;  %v5852_v15 = vld [vmem:[#allocation18_spill] sm:$0xff] }
 0x1fc   : > { %v3032_v52 = vadd.f32 %v2929_v59, %v2820_v44  ;;  %v2720_v13 = vpop.f32.mrf.mxu1  ;;  %v2599_v59 = vadd.f32 %v5393_v23, %v2393_v53  ;;  %v2597_v27 = vadd.f32 %v5397_v14, %v2391_v34  ;;  %v2397_v23 = vadd.f32 %v5852_v15, %v5851_v29  ;;  %v5853_v20 = vld [vmem:[#allocation2_spill] sm:$0xff]  ;;  %v5859_v34 = vld [vmem:[#allocation13_spill] sm:$0xff] }
 0x1fd   : > { %3173 = vst [vmem:[%s5507_s10 + $0x38] sm:$0xff] %v3141_v19  ;;  %v3139_v35 = vmax.f32 %v3107_v36, 0.0  ;;  %v3112_v25 = vadd.f32 %v5491_v48, %v3073_v4  ;;  %v3035_v31 = vadd.f32 %v3973_v46, %v2823_v18  ;;  %v2821_v47 = vadd.f32 %v2720_v13, %v2593_v54  ;;  %v2945_v12 = vpop.f32.mrf.mxu0  ;;  %v5854_v19 = vld [vmem:[#allocation20_spill] sm:$0xff]  ;;  %v5855_v4 = vld [vmem:[#allocation7_spill] sm:$0xff]  ;;  %v5867_v29 = vld [vmem:[#allocation29_spill] sm:$0xff] }
 0x1fe   : > { %v3071_v9 = vmul.f32 %v5481_v50, %v3032_v52  ;;  %v3942_v41 = vpop.f32.mrf.mxu1  ;;  %v2602_v46 = vadd.f32 %v5401_v42, %v2396_v30  ;;  %v2600_v8 = vadd.f32 %v5853_v20, %v2394_v22  ;;  %v2603_v36 = vadd.f32 %v5854_v19, %v2397_v23  ;;  %v5856_v18 = vld [vmem:[#allocation23_spill] sm:$0xff] }
 0x1ff   : > { %3171 = vst [vmem:[%s5507_s10 + $0x28] sm:$0xff] %v3139_v35  ;;  %v3144_v26 = vmax.f32 %v3112_v25, 0.0  ;;  %v3074_v5 = vmul.f32 %v5481_v50, %v3035_v31  ;;  %v3033_v55 = vadd.f32 %v2932_v56, %v2821_v47  ;;  %v2826_v24 = vadd.f32 %v3942_v41, %v2598_v21  ;;  %v3977_v32 = vpop.f32.mrf.mxu0  ;;  %v5857_v21 = vld [vmem:[#allocation11_spill] sm:$0xff] }
 0x200   : > { %v3110_v16 = vadd.f32 %v5491_v48, %v3071_v9  ;;  %v2733_v43 = vpop.f32.mrf.mxu1  ;;  %v5858_v52 = vld [vmem:[#allocation3_spill] sm:$0xff]  ;;  %v5860_v9 = vld [vmem:[#allocation6_spill] sm:$0xff] }
 0x201   : > { %3176 = vst [vmem:[%s5507_s10 + $0x50] sm:$0xff] %v3144_v26  ;;  %v3113_v37 = vadd.f32 %v5491_v48, %v3074_v5  ;;  %v3072_v28 = vmul.f32 %v5481_v50, %v3033_v55  ;;  %v3038_v61 = vadd.f32 %v3976_v51, %v2826_v24  ;;  %v2824_v7 = vadd.f32 %v2733_v43, %v2596_v11  ;;  %v2948_v0 = vpop.f32.mrf.mxu0  ;;  %v5861_v43 = vld [vmem:[#allocation16_spill] sm:$0xff] }
 0x202   : > { %v3142_v6 = vmax.f32 %v3110_v16, 0.0  ;;  %v3943_v62 = vpop.f32.mrf.mxu1  ;;  %v2395_v51 = vadd.f32 %v5856_v18, %v5855_v4  ;;  %v2400_v13 = vadd.f32 %v5858_v52, %v5857_v21  ;;  %v2398_v41 = vadd.f32 %v5860_v9, %v5859_v34  ;;  %v5871_v4 = vld [vmem:[#allocation31_spill] sm:$0xff]  ;;  %v5873_v21 = vld [vmem:[#allocation33_spill] sm:$0xff] }
 0x203   : > { %v3145_v45 = vmax.f32 %v3113_v37, 0.0  ;;  %v3111_v60 = vadd.f32 %v5491_v48, %v3072_v28  ;;  %v3077_v33 = vmul.f32 %v5481_v50, %v3038_v61  ;;  %v3036_v3 = vadd.f32 %v2945_v12, %v2824_v7  ;;  %v3980_v57 = vpop.f32.mrf.mxu0  ;;  %v5862_v28 = vld [vmem:[#allocation21_spill] sm:$0xff]  ;;  %v5863_v7 = vld [vmem:[#allocation15_spill] sm:$0xff] }
 0x204   : > { %3174 = vst [vmem:[%s5507_s10 + $0x40] sm:$0xff] %v3142_v6  ;;  %v2827_v14 = vadd.f32 %v3943_v62, %v2599_v59  ;;  %v2736_v17 = vpop.f32.mrf.mxu1  ;;  %v2601_v37 = vadd.f32 %v5861_v43, %v2395_v51  ;;  %v2606_v61 = vadd.f32 %v5862_v28, %v2400_v13  ;;  %v5872_v51 = vld [vmem:[#allocation5_spill] sm:$0xff]  ;;  %v5875_v34 = vld [vmem:[#allocation35_spill] sm:$0xff] }
 0x205   : > { %3177 = vst [vmem:[%s5507_s10 + $0x58] sm:$0xff] %v3145_v45  ;;  %v3143_v63 = vmax.f32 %v3111_v60, 0.0  ;;  %v3116_v40 = vadd.f32 %v5491_v48, %v3077_v33  ;;  %v3075_v39 = vmul.f32 %v5481_v50, %v3036_v3  ;;  %v2825_v58 = vadd.f32 %v2736_v17, %v2597_v27  ;;  %v2961_v2 = vpop.f32.mrf.mxu0  ;;  %v5865_v3 = vld [vmem:[#allocation8_spill] sm:$0xff] }
 0x206   : > { %v3039_v10 = vadd.f32 %v3977_v32, %v2827_v14  ;;  %v3946_v56 = vpop.f32.mrf.mxu1  ;;  %v2402_v52 = vadd.f32 %v5873_v21, %v5872_v51 }
 0x207   : > { %3175 = vst [vmem:[%s5507_s10 + $0x48] sm:$0xff] %v3143_v63  ;;  %v3148_v42 = vmax.f32 %v3116_v40, 0.0  ;;  %v3114_v54 = vadd.f32 %v5491_v48, %v3075_v39  ;;  %v3037_v38 = vadd.f32 %v2948_v0, %v2825_v58  ;;  %v2830_v44 = vadd.f32 %v3946_v56, %v2602_v46  ;;  %v3981_v49 = vpop.f32.mrf.mxu0  ;;  %v5864_v0 = vld [vmem:[#allocation27_spill] sm:$0xff] }
 0x208   : > { %v3078_v35 = vmul.f32 %v5481_v50, %v3039_v10  ;;  %v2749_v25 = vpop.f32.mrf.mxu1  ;;  %v2401_v59 = vadd.f32 %v5864_v0, %v5863_v7  ;;  %v5866_v46 = vld [vmem:[#allocation19_spill] sm:$0xff]  ;;  %v5879_v7 = vld [vmem:[#allocation37_spill] sm:$0xff] }
 0x209   : > { %3180 = vst [vmem:[%s5507_s10 + $0x70] sm:$0xff] %v3148_v42  ;;  %v3146_v31 = vmax.f32 %v3114_v54, 0.0  ;;  %v3076_v47 = vmul.f32 %v5481_v50, %v3037_v38  ;;  %v3042_v12 = vadd.f32 %v3980_v57, %v2830_v44  ;;  %v2828_v11 = vadd.f32 %v2749_v25, %v2600_v8  ;;  %v2964_v53 = vpop.f32.mrf.mxu0 }
 0x20a   : > { %v3117_v26 = vadd.f32 %v5491_v48, %v3078_v35  ;;  %v3947_v5 = vpop.f32.mrf.mxu1  ;;  %v2604_v57 = vadd.f32 %v5865_v3, %v2398_v41  ;;  %v2399_v15 = vadd.f32 %v5867_v29, %v5866_v46  ;;  %v5882_v46 = vld [vmem:[#allocation39_spill] sm:$0xff] }
 0x20b   : > { %3178 = vst [vmem:[%s5507_s10 + $0x60] sm:$0xff] %v3146_v31  ;;  %v3115_v55 = vadd.f32 %v5491_v48, %v3076_v47  ;;  %v3081_v24 = vmul.f32 %v5481_v50, %v3042_v12  ;;  %v3040_v32 = vadd.f32 %v2961_v2, %v2828_v11  ;;  %v2831_v30 = vadd.f32 %v3947_v5, %v2603_v36  ;;  %v3984_v16 = vpop.f32.mrf.mxu0  ;;  %v5868_v2 = vld [vmem:[#allocation4_spill] sm:$0xff] }
 0x20c   : > { %v3149_v27 = vmax.f32 %v3117_v26, 0.0  ;;  %v2752_v22 = vpop.f32.mrf.mxu1  ;;  %v2607_v20 = vadd.f32 %v5868_v2, %v2401_v59  ;;  %v5870_v36 = vld [vmem:[#allocation24_spill] sm:$0xff] }
 0x20d   : > { %v3147_v6 = vmax.f32 %v3115_v55, 0.0  ;;  %v3120_v62 = vadd.f32 %v5491_v48, %v3081_v24  ;;  %v3079_v45 = vmul.f32 %v5481_v50, %v3040_v32  ;;  %v3043_v60 = vadd.f32 %v3981_v49, %v2831_v30  ;;  %v2977_v33 = vpop.f32.mrf.mxu0  ;;  %v5869_v49 = vld [vmem:[#allocation26_spill] sm:$0xff] }
 0x20e   : > { %3181 = vst [vmem:[%s5507_s10 + $0x78] sm:$0xff] %v3149_v27  ;;  %v2829_v23 = vadd.f32 %v2752_v22, %v2601_v37  ;;  %v3950_v14 = vpop.f32.mrf.mxu1  ;;  %v2605_v19 = vadd.f32 %v5869_v49, %v2399_v15  ;;  %v2404_v18 = vadd.f32 %v5871_v4, %v5870_v36  ;;  %v5877_v37 = vld [vmem:[#allocation30_spill] sm:$0xff]  ;;  %v5886_v36 = vld [vmem:[#allocation41_spill] sm:$0xff] }
 0x20f   : > { %3179 = vst [vmem:[%s5507_s10 + $0x68] sm:$0xff] %v3147_v6  ;;  %v3152_v17 = vmax.f32 %v3120_v62, 0.0  ;;  %v3118_v63 = vadd.f32 %v5491_v48, %v3079_v45  ;;  %v3082_v40 = vmul.f32 %v5481_v50, %v3043_v60  ;;  %v2834_v39 = vadd.f32 %v3950_v14, %v2606_v61  ;;  %v3985_v58 = vpop.f32.mrf.mxu0  ;;  %v5878_v61 = vld [vmem:[#allocation12_spill] sm:$0xff] }
 0x210   : > { %v3041_v8 = vadd.f32 %v2964_v53, %v2829_v23  ;;  %v2765_v10 = vpop.f32.mrf.mxu1  ;;  %v5874_v53 = vld [vmem:[#allocation10_spill] sm:$0xff]  ;;  %v2608_v28 = vadd.f32 %v5877_v37, %v2402_v52  ;;  %v2403_v0 = vadd.f32 %v5879_v7, %v5878_v61 }
 0x211   : > { %3184 = vst [vmem:[%s5507_s10 + $0x90] sm:$0xff] %v3152_v17  ;;  %v3150_v56 = vmax.f32 %v3118_v63, 0.0  ;;  %v3121_v42 = vadd.f32 %v5491_v48, %v3082_v40  ;;  %v3046_v54 = vadd.f32 %v3984_v16, %v2834_v39  ;;  %v2832_v38 = vadd.f32 %v2765_v10, %v2604_v57  ;;  %v2980_v44 = vpop.f32.mrf.mxu0  ;;  %v5876_v16 = vld [vmem:[#allocation28_spill] sm:$0xff]  ;;  %v5881_v57 = vld [vmem:[#allocation14_spill] sm:$0xff] }
 0x212   : > { %v3080_v13 = vmul.f32 %v5481_v50, %v3041_v8  ;;  %v3951_v35 = vpop.f32.mrf.mxu1  ;;  %v2405_v9 = vadd.f32 %v5875_v34, %v5874_v53  ;;  %v2610_v43 = vadd.f32 %v5876_v16, %v2404_v18  ;;  %v2408_v29 = vadd.f32 %v5882_v46, %v5881_v57  ;;  %v5887_v18 = vld [vmem:[#allocation22_spill] sm:$0xff] }
 0x213   : > { %3182 = vst [vmem:[%s5507_s10 + $0x80] sm:$0xff] %v3150_v56  ;;  %v3153_v25 = vmax.f32 %v3121_v42, 0.0  ;;  %v3085_v31 = vmul.f32 %v5481_v50, %v3046_v54  ;;  %v3044_v47 = vadd.f32 %v2977_v33, %v2832_v38  ;;  %v2835_v12 = vadd.f32 %v3951_v35, %v2607_v20  ;;  %v3988_v11 = vpop.f32.mrf.mxu0  ;;  %v5880_v33 = vld [vmem:[#allocation32_spill] sm:$0xff] }
 0x214   : > { %v3119_v41 = vadd.f32 %v5491_v48, %v3080_v13  ;;  %v2768_v26 = vpop.f32.mrf.mxu1  ;;  %v2611_v3 = vadd.f32 %v5880_v33, %v2405_v9  ;;  %v2409_v51 = vadd.f32 %v5465_v1, %v5887_v18 }
 0x215   : > { %3185 = vst [vmem:[%s5507_s10 + $0x98] sm:$0xff] %v3153_v25  ;;  %v3124_v5 = vadd.f32 %v5491_v48, %v3085_v31  ;;  %v3083_v55 = vmul.f32 %v5481_v50, %v3044_v47  ;;  %v3047_v24 = vadd.f32 %v3985_v58, %v2835_v12  ;;  %v2833_v32 = vadd.f32 %v2768_v26, %v2605_v19  ;;  %v2993_v30 = vpop.f32.mrf.mxu0  ;;  %v5883_v58 = vld [vmem:[#allocation34_spill] sm:$0xff]  ;;  %v5885_v19 = vld [vmem:[#allocation17_spill] sm:$0xff]  ;;  %v5889_v12 = vld [vmem:[#allocation43_spill] sm:$0xff] }
 0x216   : > { %v3151_v59 = vmax.f32 %v3119_v41, 0.0  ;;  %v3954_v27 = vpop.f32.mrf.mxu1  ;;  %v2609_v2 = vadd.f32 %v5883_v58, %v2403_v0  ;;  %v2406_v4 = vadd.f32 %v5886_v36, %v5885_v19  ;;  %v5888_v47 = vld [vmem:[#allocation25_spill] sm:$0xff]  ;;  %v5892_v0 = vld [vmem:[#allocation42_spill] sm:$0xff] }
 0x217   : > { %v3156_v22 = vmax.f32 %v3124_v5, 0.0  ;;  %v3122_v6 = vadd.f32 %v5491_v48, %v3083_v55  ;;  %v3086_v62 = vmul.f32 %v5481_v50, %v3047_v24  ;;  %v3045_v45 = vadd.f32 %v2980_v44, %v2833_v32  ;;  %v3989_v60 = vpop.f32.mrf.mxu0  ;;  %v5884_v44 = vld [vmem:[#allocation36_spill] sm:$0xff]  ;;  %v5890_v55 = vld [vmem:[#allocation38_spill] sm:$0xff] }
 0x218   : > { %3183 = vst [vmem:[%s5507_s10 + $0x88] sm:$0xff] %v3151_v59  ;;  %v2838_v15 = vadd.f32 %v3954_v27, %v2610_v43  ;;  %v2781_v23 = vpop.f32.mrf.mxu1  ;;  %v2614_v49 = vadd.f32 %v5884_v44, %v2408_v29  ;;  %v2612_v24 = vadd.f32 %v5890_v55, %v2406_v4  ;;  %v5891_v32 = vld [vmem:[#allocation40_spill] sm:$0xff] }
 0x219   : > { %3188 = vst [vmem:[%s5507_s10 + $0xb0] sm:$0xff] %v3156_v22  ;;  %v3154_v14 = vmax.f32 %v3122_v6, 0.0  ;;  %v3125_v17 = vadd.f32 %v5491_v48, %v3086_v62  ;;  %v3084_v63 = vmul.f32 %v5481_v50, %v3045_v45  ;;  %v2836_v40 = vadd.f32 %v2781_v23, %v2608_v28  ;;  %v2996_v39 = vpop.f32.mrf.mxu0 }
 0x21a   : > { %v3050_v20 = vadd.f32 %v3988_v11, %v2838_v15  ;;  %v3955_v8 = vpop.f32.mrf.mxu1  ;;  %v2407_v11 = vadd.f32 %v5889_v12, %v5888_v47 }
 0x21b   : > { %3186 = vst [vmem:[%s5507_s10 + $0xa0] sm:$0xff] %v3154_v14  ;;  %v3157_v10 = vmax.f32 %v3125_v17, 0.0  ;;  %v3123_v56 = vadd.f32 %v5491_v48, %v3084_v63  ;;  %v3048_v42 = vadd.f32 %v2993_v30, %v2836_v40  ;;  %v2839_v54 = vadd.f32 %v3955_v8, %v2611_v3  ;;  %v3992_v38 = vpop.f32.mrf.mxu0 }
 0x21c   : > { %v3089_v21 = vmul.f32 %v5481_v50, %v3050_v20  ;;  %v2784_v52 = vpop.f32.mrf.mxu1  ;;  %v2615_v30 = vadd.f32 %v5891_v32, %v2409_v51  ;;  %v2613_v59 = vadd.f32 %v5892_v0, %v2407_v11 }
 0x21d   : > { %3189 = vst [vmem:[%s5507_s10 + $0xb8] sm:$0xff] %v3157_v10  ;;  %v3155_v13 = vmax.f32 %v3123_v56, 0.0  ;;  %v3087_v35 = vmul.f32 %v5481_v50, %v3048_v42  ;;  %v3051_v25 = vadd.f32 %v3989_v60, %v2839_v54  ;;  %v2837_v31 = vadd.f32 %v2784_v52, %v2609_v2  ;;  %v3009_v9 = vpop.f32.mrf.mxu0 }
 0x21e   : > { %v3128_v53 = vadd.f32 %v5491_v48, %v3089_v21  ;;  %v3958_v34 = vpop.f32.mrf.mxu1 }
 0x21f   : > { %3187 = vst [vmem:[%s5507_s10 + $0xa8] sm:$0xff] %v3155_v13  ;;  %v3126_v1 = vadd.f32 %v5491_v48, %v3087_v35  ;;  %v3090_v41 = vmul.f32 %v5481_v50, %v3051_v25  ;;  %v3049_v26 = vadd.f32 %v2996_v39, %v2837_v31  ;;  %v2842_v5 = vadd.f32 %v3958_v34, %v2614_v49  ;;  %v3993_v6 = vpop.f32.mrf.mxu0 }
 0x220   : > { %v3160_v16 = vmax.f32 %v3128_v53, 0.0  ;;  %v2797_v43 = vpop.f32.mrf.mxu1 }
 0x221   : > { %v3158_v37 = vmax.f32 %v3126_v1, 0.0  ;;  %v3129_v28 = vadd.f32 %v5491_v48, %v3090_v41  ;;  %v3088_v61 = vmul.f32 %v5481_v50, %v3049_v26  ;;  %v3054_v7 = vadd.f32 %v3992_v38, %v2842_v5  ;;  %v3012_v17 = vpop.f32.mrf.mxu0 }
 0x222   : > { %3192 = vst [vmem:[%s5507_s10 + $0xd0] sm:$0xff] %v3160_v16  ;;  %v2840_v27 = vadd.f32 %v2797_v43, %v2612_v24  ;;  %v3959_v22 = vpop.f32.mrf.mxu1 }
 0x223   : > { %3190 = vst [vmem:[%s5507_s10 + $0xc0] sm:$0xff] %v3158_v37  ;;  %v3161_v62 = vmax.f32 %v3129_v28, 0.0  ;;  %v3127_v45 = vadd.f32 %v5491_v48, %v3088_v61  ;;  %v3093_v60 = vmul.f32 %v5481_v50, %v3054_v7  ;;  %v2843_v33 = vadd.f32 %v3959_v22, %v2615_v30 }
 0x224   : > { %v3052_v3 = vadd.f32 %v3009_v9, %v2840_v27  ;;  %v2800_v57 = vpop.f32.mrf.mxu1 }
 0x225   : > { %3193 = vst [vmem:[%s5507_s10 + $0xd8] sm:$0xff] %v3161_v62  ;;  %v3159_v46 = vmax.f32 %v3127_v45, 0.0  ;;  %v3132_v29 = vadd.f32 %v5491_v48, %v3093_v60  ;;  %v3055_v15 = vadd.f32 %v3993_v6, %v2843_v33  ;;  %v2841_v23 = vadd.f32 %v2800_v57, %v2613_v59 }
 0x226   : > { %v3091_v14 = vmul.f32 %v5481_v50, %v3052_v3 }
 0x227   : > { %3191 = vst [vmem:[%s5507_s10 + $0xc8] sm:$0xff] %v3159_v46  ;;  %v3164_v63 = vmax.f32 %v3132_v29, 0.0  ;;  %v3094_v40 = vmul.f32 %v5481_v50, %v3055_v15  ;;  %v3053_v39 = vadd.f32 %v3012_v17, %v2841_v23 }
 0x228   : > { %v3130_v58 = vadd.f32 %v5491_v48, %v3091_v14 }
 0x229   : > { %3196 = vst [vmem:[%s5507_s10 + $0xf0] sm:$0xff] %v3164_v63  ;;  %v3133_v2 = vadd.f32 %v5491_v48, %v3094_v40  ;;  %v3092_v20 = vmul.f32 %v5481_v50, %v3053_v39 }
 0x22a   : > { %v3162_v8 = vmax.f32 %v3130_v58, 0.0 }
 0x22b   : > { %v3165_v10 = vmax.f32 %v3133_v2, 0.0  ;;  %v3131_v56 = vadd.f32 %v5491_v48, %v3092_v20 }
 0x22c   : > { %3194 = vst [vmem:[%s5507_s10 + $0xe0] sm:$0xff] %v3162_v8 }
 0x22d   : > { %3197 = vst [vmem:[%s5507_s10 + $0xf8] sm:$0xff] %v3165_v10  ;;  %v3163_v42 = vmax.f32 %v3131_v56, 0.0 }
 0x22f   : > { %3195 = vst [vmem:[%s5507_s10 + $0xe8] sm:$0xff] %v3163_v42 }
 0x230 PF: > { %s15_s20 = sadd.s32 1, %s4073_s20   ;;  %s5893_s18 = smov %s4069_s19 }
 0x231   : > { %p12_p6 = scmp.ge.s32.totalorder %s15_s20, 4   ;;  %s5894_s19 = smov %s5896_s21 }
 0x233   :  { %14 = sbr.rel (!%p12_p6) target bundleno = 2 (0x2), region = 81 }

</bundles_post_ra>
